<compile_context>
chip_gen: v7x
topology: tpu7x:2x2x1
jax: 0.10.0
libtpu: 0.0.40
codegen_flags: <defaults>
</compile_context>

<pallas_src>
import numpy as np

import jax
import jax.numpy as jnp
from jax.experimental import pallas as pl
from jax.experimental.pallas import tpu as pltpu

# ----------------------------- problem sizes --------------------------------
B = 16         # batch (example; independent along batch -> grid-parallel)
B_BLK = 8      # batch rows per grid step (fills the 8 sublanes)
NCHUNK = B // B_BLK
C = 4          # input channels          (== input_size[1])
T = 6          # seq_len                 (== input_size[2], conv3d in-channels)
H_SP = 12     # spatial H               (== input_size[0])
W_SP = 12     # spatial W
GRID = 3       # lstms_shape
GG = GRID * GRID
DSV = 3        # downsample_version
F = DSV * C    # per-cell downsample feature dim
E = 32         # embedding_size
HID = 32       # hidden_size
STEP = 5       # conv3d out-channels

NF = GG * F        # 108   concatenated per-cell features
NE = GG * E        # 288   concatenated per-cell embeddings
NH = GG * HID      # 288   concatenated hidden state
GPAD = 3 * 128     # 384   per-gate padded width -> every gate slice 128-aligned
NGWP = 4 * GPAD    # 1536  padded gate width, gate-major [i|f|g|o]


# ----------------------------- plain-JAX glue --------------------------------
def downsample_for_lstm(x):
    """x: (B, C, T, H, W) -> (T, B, GRID, GRID, 3*C)."""
    b, c, t, h, w = x.shape
    hp, wp = h // GRID, w // GRID
    xr = x.reshape(b, c, t, GRID, hp, GRID, wp)
    avg = xr.mean(axis=(4, 6))
    mx = xr.max(axis=(4, 6))
    mn = xr.min(axis=(4, 6))
    feat = jnp.concatenate([avg, mx, mn], axis=1)        # (B, 3C, T, g, g)
    return jnp.transpose(feat, (2, 0, 3, 4, 1))          # (T, B, g, g, 3C)


# --------------------------- fused Pallas kernel ------------------------------
def fused_slstm_kernel(down_ref, wde_ref, bde_ref, wse_ref, bse_ref,
                       wie_ref, wis_ref, whh_ref, blp_ref, wo_ref,
                       wc_ref, bc_ref, bo_ref,
                       out_ref, gp_scr):
    # down_ref : (T, B_BLK, NF)        VMEM (per-chunk block)
    # wde_ref  : (NF, NE)   bf16       block-diag frame-embedding weight
    # bde_ref  : (1, NE)    f32
    # wse_ref  : (NH, E) f32, bse_ref: (1, E) f32
    # wie_ref  : (NE, NGWP) bf16   wis_ref: (E, NGWP) bf16
    # whh_ref  : (NH, NGWP) bf16   blp_ref: (1, NGWP) f32
    # wo_ref   : (NH, GG)   f32        block-structured out_linear weight
    # wc_ref   : (STEP, T) SMEM, bc_ref: (STEP,) SMEM, bo_ref: (1,) SMEM
    # out_ref  : (STEP, B_BLK, GG)
    # gp_scr   : (T, B_BLK, NGWP) f32  VMEM scratch (hoisted gate pre-activations)
    f32 = jnp.float32

    # ---- hoisted input-side matmuls (off the serial recurrence) -------------
    frames = down_ref[...].reshape(T * B_BLK, NF)                    # (48,108)
    emb = jax.nn.relu(
        jnp.dot(frames, wde_ref[...].astype(f32),
                preferred_element_type=f32) + bde_ref[...])          # (48,288)
    gp = jnp.dot(emb, wie_ref[...].astype(f32),
                 preferred_element_type=f32) + blp_ref[...]          # (48,1536)
    gp_scr[...] = gp.reshape(T, B_BLK, NGWP)

    # bf16-stored recurrent weights -> f32 once (DMA'd at half the HBM bytes)
    wis = wis_ref[...].astype(f32)                                   # (32,1536)
    whh = whh_ref[...].astype(f32)                                   # (288,1536)

    # ---- recurrence ----------------------------------------------------------
    h = jnp.zeros((B_BLK, NH), f32)
    c = jnp.zeros((B_BLK, NH), f32)
    hs = []
    for t in range(T):                                   # static unroll, T = 6
        social = jax.nn.relu(
            jnp.dot(h, wse_ref[...], preferred_element_type=f32)
            + bse_ref[...])                                          # (8,32)
        gates = (gp_scr[t]
                 + jnp.dot(social, wis, preferred_element_type=f32)
                 + jnp.dot(h, whh, preferred_element_type=f32))      # (8,1536)
        # every gate starts at a multiple of 128 lanes -> no lane relayouts
        i_g = jax.nn.sigmoid(gates[:, 0 * GPAD:0 * GPAD + NH])
        f_g = jax.nn.sigmoid(gates[:, 1 * GPAD:1 * GPAD + NH])
        g_g = jnp.tanh(      gates[:, 2 * GPAD:2 * GPAD + NH])
        o_g = jax.nn.sigmoid(gates[:, 3 * GPAD:3 * GPAD + NH])
        c = f_g * c + i_g * g_g
        h = o_g * jnp.tanh(c)
        hs.append(h)

    # ---- fused head: conv3d(1x1x1) + relu, then ONE out_linear matmul --------
    rows = []
    for s in range(STEP):                                # static unroll, STEP=5
        acc = jnp.zeros((B_BLK, NH), f32)
        for t in range(T):
            acc = acc + wc_ref[s, t] * hs[t]
        rows.append(jax.nn.relu(acc + bc_ref[s]))
    r_all = jnp.concatenate(rows, axis=0)                            # (40,288)
    z = (jnp.dot(r_all, wo_ref[...], preferred_element_type=f32)
         + bo_ref[0])                                                # (40,9)
    out_ref[...] = z.reshape(STEP, B_BLK, GG)


_SMEM = pl.BlockSpec(memory_space=pltpu.MemorySpace.SMEM)


def _const_spec(shape):
    nd = len(shape)
    # full-array block with a constant index_map -> DMA'd once, VMEM-resident
    return pl.BlockSpec(shape, lambda i, _nd=nd: (0,) * _nd)


def _grid_spec():
    return pltpu.PrefetchScalarGridSpec(
        num_scalar_prefetch=0,
        grid=(NCHUNK,),
        in_specs=[
            pl.BlockSpec((T, B_BLK, NF), lambda i: (0, i, 0)),   # down (per chunk)
            _const_spec((NF, NE)),       # wde_bd  (bf16)
            _const_spec((1, NE)),        # bde
            _const_spec((NH, E)),        # wse
            _const_spec((1, E)),         # bse
            _const_spec((NE, NGWP)),     # wie_pad (bf16)
            _const_spec((E, NGWP)),      # wis_pad (bf16)
            _const_spec((NH, NGWP)),     # whh_pad (bf16)
            _const_spec((1, NGWP)),      # bl_pad
            _const_spec((NH, GG)),       # wo_bd
            _SMEM, _SMEM, _SMEM,         # wc, bc, bo
        ],
        out_specs=pl.BlockSpec((STEP, B_BLK, GG), lambda i: (0, i, 0)),
        scratch_shapes=[pltpu.VMEM((T, B_BLK, NGWP), jnp.float32)],
    )


# ------------------------------ full forward ---------------------------------
@jax.jit
def social_lstm_downsample_forward(x, bp):
    down3 = downsample_for_lstm(x).reshape(T, B, NF)      # (T, B, GG*F)
    out = pl.pallas_call(
        fused_slstm_kernel,
        out_shape=jax.ShapeDtypeStruct((STEP, B, GG), jnp.float32),
        grid_spec=_grid_spec(),
        compiler_params=pltpu.CompilerParams(
            dimension_semantics=("parallel",)),            # 2nd TC on v7x
    )(down3, bp["wde_bd"], bp["bde_big"], bp["wse"], bp["bse"],
      bp["wie_pad"], bp["wis_pad"], bp["whh_pad"], bp["bl_pad"], bp["wo_bd"],
      bp["wc"], bp["bc"], bp["bo"])
    # equivalent of .squeeze() on (STEP, B, g, g, 1)
    return out.reshape(STEP, B, GRID, GRID)


# --------------------- one-time weight re-packing (host) ----------------------
def quantize_matmul_weights(p):
    """Round the big matmul weights to bf16 (exactly what the kernel stores)."""
    q = dict(p)
    for k in ("wde", "wih", "whh"):
        q[k] = p[k].astype(jnp.bfloat16).astype(jnp.float32)
    return q


def prepare_blocked_params(p):
    """Pack per-cell weights into block-diagonal, gate-major, 128-lane-aligned
    (padded-to-384-per-gate) matrices; big matmul weights stored as bf16."""
    wde = np.asarray(p["wde"], np.float32); bde = np.asarray(p["bde"], np.float32)
    wih = np.asarray(p["wih"], np.float32); whh = np.asarray(p["whh"], np.float32)
    bl = np.asarray(p["bl"], np.float32); wo = np.asarray(p["wo"], np.float32)

    wde_bd = np.zeros((NF, NE), np.float32)
    for k in range(GG):
        wde_bd[k * F:(k + 1) * F, k * E:(k + 1) * E] = wde
    bde_big = np.tile(bde, (1, GG)).astype(np.float32)              # (1, NE)

    wie_pad = np.zeros((NE, NGWP), np.float32)
    wis_pad = np.zeros((E, NGWP), np.float32)
    whh_pad = np.zeros((NH, NGWP), np.float32)
    bl_pad = np.zeros((1, NGWP), np.float32)
    for k in range(GG):
        for g in range(4):
            cols = slice(g * GPAD + k * HID, g * GPAD + (k + 1) * HID)
            src = slice(g * HID, (g + 1) * HID)
            wie_pad[k * E:(k + 1) * E, cols] = wih[k, :E, src]      # emb rows
            wis_pad[:, cols] = wih[k, E:, src]                      # social rows
            whh_pad[k * HID:(k + 1) * HID, cols] = whh[k, :, src]
            bl_pad[0, cols] = bl[k, src]

    wo_bd = np.zeros((NH, GG), np.float32)
    for k in range(GG):
        wo_bd[k * HID:(k + 1) * HID, k] = wo[:, 0]

    bf16 = jnp.bfloat16
    return {
        "wde_bd": jnp.asarray(wde_bd, bf16), "bde_big": jnp.asarray(bde_big),
        "wse": jnp.asarray(p["wse"]), "bse": jnp.asarray(p["bse"]),
        "wie_pad": jnp.asarray(wie_pad, bf16), "wis_pad": jnp.asarray(wis_pad, bf16),
        "whh_pad": jnp.asarray(whh_pad, bf16), "bl_pad": jnp.asarray(bl_pad),
        "wo_bd": jnp.asarray(wo_bd),
        "wc": jnp.asarray(p["wc"]), "bc": jnp.asarray(np.asarray(p["bc"])[:, 0]),
        "bo": jnp.asarray(np.asarray(p["bo"]).reshape(1)),
    }


# ------------------------------ reference ------------------------------------
def reference_forward(x, p):
    down = downsample_for_lstm(x).reshape(T, B, GG, F)
    emb_all = jax.nn.relu(jnp.einsum("tbgf,fe->tbge", down, p["wde"])
                          + p["bde"][0])
    h = jnp.zeros((B, GG, HID), jnp.float32)
    c = jnp.zeros((B, GG, HID), jnp.float32)
    outs = []
    for t in range(T):
        social = jax.nn.relu(h.reshape(B, GG * HID) @ p["wse"] + p["bse"][0])
        hn, cn = [], []
        for k in range(GG):
            xin = jnp.concatenate([emb_all[t, :, k, :], social], axis=1)
            gates = xin @ p["wih"][k] + h[:, k, :] @ p["whh"][k] + p["bl"][k]
            i_g = jax.nn.sigmoid(gates[:, :HID])
            f_g = jax.nn.sigmoid(gates[:, HID:2 * HID])
            g_g = jnp.tanh(gates[:, 2 * HID:3 * HID])
            o_g = jax.nn.sigmoid(gates[:, 3 * HID:])
            c_k = f_g * c[:, k, :] + i_g * g_g
            h_k = o_g * jnp.tanh(c_k)
            hn.append(h_k)
            cn.append(c_k)
        h = jnp.stack(hn, axis=1)
        c = jnp.stack(cn, axis=1)
        outs.append(h)
    outputs = jnp.stack(outs, axis=0)                      # (T, B, GG, HID)
    conv = jnp.einsum("st,tbgh->sbgh", p["wc"], outputs) \
        + p["bc"][:, 0][:, None, None, None]
    conv = jax.nn.relu(conv)
    z = jnp.einsum("sbgh,ho->sbgo", conv, p["wo"])[..., 0] + p["bo"][0, 0]
    return z.reshape(STEP, B, GRID, GRID)


# ------------------------------ parameters ------------------------------------
def init_params(key):
    ks = jax.random.split(key, 12)
    s = 0.1
    return {
        "wde": s * jax.random.normal(ks[0], (F, E), jnp.float32),
        "bde": s * jax.random.normal(ks[1], (1, E), jnp.float32),
        "wse": s * jax.random.normal(ks[2], (GG * HID, E), jnp.float32),
        "bse": s * jax.random.normal(ks[3], (1, E), jnp.float32),
        # per-cell LSTM weights, stored pre-transposed: x @ W_ih, h @ W_hh
        "wih": s * jax.random.normal(ks[4], (GG, 2 * E, 4 * HID), jnp.float32),
        "whh": s * jax.random.normal(ks[5], (GG, HID, 4 * HID), jnp.float32),
        # combined bias_ih + bias_hh
        "bl": s * jax.random.normal(ks[6], (GG, 4 * HID), jnp.float32),
        # conv3d(T -> STEP, kernel 1x1x1): weight (STEP, T), bias (STEP, 1)
        "wc": s * jax.random.normal(ks[7], (STEP, T), jnp.float32),
        "bc": s * jax.random.normal(ks[8], (STEP, 1), jnp.float32),
        "wo": s * jax.random.normal(ks[9], (HID, 1), jnp.float32),
        "bo": s * jax.random.normal(ks[10], (1, 1), jnp.float32),
    }


if __name__ == "__main__":
    key = jax.random.PRNGKey(0)
    kx, kp = jax.random.split(key)
    x = jax.random.normal(kx, (B, C, T, H_SP, W_SP), jnp.float32)
    params = init_params(kp)
    # bf16-round the weights the kernel stores in bf16, so the pure-JAX
    # reference uses bit-identical weight values (keeps the check tight).
    qparams = quantize_matmul_weights(params)
    blocked = prepare_blocked_params(qparams)

    out = social_lstm_downsample_forward(x, blocked)
    out = jax.block_until_ready(out)

    ref = reference_forward(x, qparams)
    assert out.shape == (STEP, B, GRID, GRID), out.shape
    assert bool(jnp.all(jnp.isfinite(out)))
    max_err = float(jnp.max(jnp.abs(out - ref)))
    assert bool(jnp.allclose(out, ref, atol=2e-4, rtol=2e-4)), max_err
    print("KERNEL_OK")
</pallas_src>

<mosaic_0001>
module attributes {stable_mosaic.version = 11 : i64} {
  func.func @fused_slstm_kernel(%arg0: i32, %arg1: memref<6x8x108xf32, #tpu.memory_space<vmem>>, %arg2: memref<108x288xbf16, #tpu.memory_space<vmem>>, %arg3: memref<1x288xf32, #tpu.memory_space<vmem>>, %arg4: memref<288x32xf32, #tpu.memory_space<vmem>>, %arg5: memref<1x32xf32, #tpu.memory_space<vmem>>, %arg6: memref<288x1536xbf16, #tpu.memory_space<vmem>>, %arg7: memref<32x1536xbf16, #tpu.memory_space<vmem>>, %arg8: memref<288x1536xbf16, #tpu.memory_space<vmem>>, %arg9: memref<1x1536xf32, #tpu.memory_space<vmem>>, %arg10: memref<288x9xf32, #tpu.memory_space<vmem>>, %arg11: memref<5x6xf32, #tpu.memory_space<smem>>, %arg12: memref<5xf32, #tpu.memory_space<smem>>, %arg13: memref<1xf32, #tpu.memory_space<smem>>, %arg14: memref<5x8x9xf32, #tpu.memory_space<vmem>>, %arg15: memref<6x8x1536xf32, #tpu.memory_space<vmem>>) attributes {dimension_semantics = [#tpu.dimension_semantics<parallel>], iteration_bounds = array<i64: 2>, scalar_prefetch = 0 : i64, scratch_operands = 1 : i64, tpu.core_type = #tpu.core_type<tc>, window_params = [{transform_indices = @transform_0, window_bounds = array<i64: 6, 8, 108>}, {pipeline_mode = #tpu.pipeline_mode<synchronous>, transform_indices = @transform_1, window_bounds = array<i64: 108, 288>}, {pipeline_mode = #tpu.pipeline_mode<synchronous>, transform_indices = @transform_2, window_bounds = array<i64: 1, 288>}, {pipeline_mode = #tpu.pipeline_mode<synchronous>, transform_indices = @transform_3, window_bounds = array<i64: 288, 32>}, {pipeline_mode = #tpu.pipeline_mode<synchronous>, transform_indices = @transform_4, window_bounds = array<i64: 1, 32>}, {pipeline_mode = #tpu.pipeline_mode<synchronous>, transform_indices = @transform_5, window_bounds = array<i64: 288, 1536>}, {pipeline_mode = #tpu.pipeline_mode<synchronous>, transform_indices = @transform_6, window_bounds = array<i64: 32, 1536>}, {pipeline_mode = #tpu.pipeline_mode<synchronous>, transform_indices = @transform_7, window_bounds = array<i64: 288, 1536>}, {pipeline_mode = #tpu.pipeline_mode<synchronous>, transform_indices = @transform_8, window_bounds = array<i64: 1, 1536>}, {pipeline_mode = #tpu.pipeline_mode<synchronous>, transform_indices = @transform_9, window_bounds = array<i64: 288, 9>}, {transform_indices = @transform_10, window_bounds = array<i64: 5, 6>}, {transform_indices = @transform_11, window_bounds = array<i64: 5>}, {transform_indices = @transform_12, window_bounds = array<i64: 1>}, {transform_indices = @transform_13, window_bounds = array<i64: 5, 8, 9>}]} {
    %c0 = arith.constant 0 : index
    %c0_0 = arith.constant 0 : index
    %c0_1 = arith.constant 0 : index
    %0 = vector.load %arg1[%c0, %c0_0, %c0_1] : memref<6x8x108xf32, #tpu.memory_space<vmem>>, vector<6x8x108xf32>
    %1 = vector.shape_cast %0 : vector<6x8x108xf32> to vector<48x108xf32>
    %c0_2 = arith.constant 0 : index
    %c0_3 = arith.constant 0 : index
    %2 = vector.load %arg2[%c0_2, %c0_3] : memref<108x288xbf16, #tpu.memory_space<vmem>>, vector<108x288xbf16>
    %3 = arith.extf %2 : vector<108x288xbf16> to vector<108x288xf32>
    %cst = arith.constant dense<0.000000e+00> : vector<48x288xf32>
    %4 = tpu.matmul %1, %3, %cst {dimension_numbers = #tpu.dot_dimension_numbers<[1], [0], [0], [1], [0, 0, 1, 1], [], []>} : vector<48x108xf32>, vector<108x288xf32>, vector<48x288xf32> -> vector<48x288xf32>
    %c0_4 = arith.constant 0 : index
    %c0_5 = arith.constant 0 : index
    %5 = vector.load %arg3[%c0_4, %c0_5] : memref<1x288xf32, #tpu.memory_space<vmem>>, vector<1x288xf32>
    %6 = vector.broadcast %5 : vector<1x288xf32> to vector<48x288xf32>
    %7 = arith.addf %4, %6 : vector<48x288xf32>
    %cst_6 = arith.constant 0.000000e+00 : f32
    %8 = vector.broadcast %cst_6 : f32 to vector<48x288xf32>
    %9 = arith.maximumf %7, %8 : vector<48x288xf32>
    %c0_7 = arith.constant 0 : index
    %c0_8 = arith.constant 0 : index
    %10 = vector.load %arg6[%c0_7, %c0_8] : memref<288x1536xbf16, #tpu.memory_space<vmem>>, vector<288x1536xbf16>
    %11 = arith.extf %10 : vector<288x1536xbf16> to vector<288x1536xf32>
    %cst_9 = arith.constant dense<0.000000e+00> : vector<48x1536xf32>
    %12 = tpu.matmul %9, %11, %cst_9 {dimension_numbers = #tpu.dot_dimension_numbers<[1], [0], [0], [1], [0, 0, 1, 1], [], []>} : vector<48x288xf32>, vector<288x1536xf32>, vector<48x1536xf32> -> vector<48x1536xf32>
    %c0_10 = arith.constant 0 : index
    %c0_11 = arith.constant 0 : index
    %13 = vector.load %arg9[%c0_10, %c0_11] : memref<1x1536xf32, #tpu.memory_space<vmem>>, vector<1x1536xf32>
    %14 = vector.broadcast %13 : vector<1x1536xf32> to vector<48x1536xf32>
    %15 = arith.addf %12, %14 : vector<48x1536xf32>
    %16 = vector.shape_cast %15 : vector<48x1536xf32> to vector<6x8x1536xf32>
    %c0_12 = arith.constant 0 : index
    %c0_13 = arith.constant 0 : index
    %c0_14 = arith.constant 0 : index
    %17 = vector.load %arg15[%c0_12, %c0_13, %c0_14] : memref<6x8x1536xf32, #tpu.memory_space<vmem>>, vector<6x8x1536xf32>
    tpu.vector_store %arg15[%c0_12, %c0_13, %c0_14], %16 {strides = array<i32>} : memref<6x8x1536xf32, #tpu.memory_space<vmem>>, vector<6x8x1536xf32>,
    %c0_15 = arith.constant 0 : index
    %c0_16 = arith.constant 0 : index
    %18 = vector.load %arg7[%c0_15, %c0_16] : memref<32x1536xbf16, #tpu.memory_space<vmem>>, vector<32x1536xbf16>
    %19 = arith.extf %18 : vector<32x1536xbf16> to vector<32x1536xf32>
    %c0_17 = arith.constant 0 : index
    %c0_18 = arith.constant 0 : index
    %20 = vector.load %arg8[%c0_17, %c0_18] : memref<288x1536xbf16, #tpu.memory_space<vmem>>, vector<288x1536xbf16>
    %21 = arith.extf %20 : vector<288x1536xbf16> to vector<288x1536xf32>
    %cst_19 = arith.constant 0.000000e+00 : f32
    %22 = vector.broadcast %cst_19 : f32 to vector<8x288xf32>
    %cst_20 = arith.constant 0.000000e+00 : f32
    %23 = vector.broadcast %cst_20 : f32 to vector<8x288xf32>
    %c0_21 = arith.constant 0 : index
    %c0_22 = arith.constant 0 : index
    %24 = vector.load %arg4[%c0_21, %c0_22] : memref<288x32xf32, #tpu.memory_space<vmem>>, vector<288x32xf32>
    %cst_23 = arith.constant dense<0.000000e+00> : vector<8x32xf32>
    %25 = tpu.matmul %22, %24, %cst_23 {dimension_numbers = #tpu.dot_dimension_numbers<[1], [0], [0], [1], [0, 0, 1, 1], [], []>} : vector<8x288xf32>, vector<288x32xf32>, vector<8x32xf32> -> vector<8x32xf32>
    %c0_24 = arith.constant 0 : index
    %c0_25 = arith.constant 0 : index
    %26 = vector.load %arg5[%c0_24, %c0_25] : memref<1x32xf32, #tpu.memory_space<vmem>>, vector<1x32xf32>
    %27 = vector.broadcast %26 : vector<1x32xf32> to vector<8x32xf32>
    %28 = arith.addf %25, %27 : vector<8x32xf32>
    %cst_26 = arith.constant 0.000000e+00 : f32
    %29 = vector.broadcast %cst_26 : f32 to vector<8x32xf32>
    %30 = arith.maximumf %28, %29 : vector<8x32xf32>
    %c0_27 = arith.constant 0 : index
    %c0_28 = arith.constant 0 : index
    %c0_29 = arith.constant 0 : index
    %31 = vector.load %arg15[%c0_27, %c0_28, %c0_29] : memref<6x8x1536xf32, #tpu.memory_space<vmem>>, vector<1x8x1536xf32>
    %32 = vector.shape_cast %31 : vector<1x8x1536xf32> to vector<8x1536xf32>
    %cst_30 = arith.constant dense<0.000000e+00> : vector<8x1536xf32>
    %33 = tpu.matmul %30, %19, %cst_30 {dimension_numbers = #tpu.dot_dimension_numbers<[1], [0], [0], [1], [0, 0, 1, 1], [], []>} : vector<8x32xf32>, vector<32x1536xf32>, vector<8x1536xf32> -> vector<8x1536xf32>
    %34 = arith.addf %32, %33 : vector<8x1536xf32>
    %cst_31 = arith.constant dense<0.000000e+00> : vector<8x1536xf32>
    %35 = tpu.matmul %22, %21, %cst_31 {dimension_numbers = #tpu.dot_dimension_numbers<[1], [0], [0], [1], [0, 0, 1, 1], [], []>} : vector<8x288xf32>, vector<288x1536xf32>, vector<8x1536xf32> -> vector<8x1536xf32>
    %36 = arith.addf %34, %35 : vector<8x1536xf32>
    %37 = vector.extract_strided_slice %36 {offsets = [0, 0], sizes = [8, 288], strides = [1, 1]} : vector<8x1536xf32> to vector<8x288xf32>
    %38 = arith.negf %37 : vector<8x288xf32>
    %39 = math.exp %38 : vector<8x288xf32>
    %cst_32 = arith.constant 1.000000e+00 : f32
    %40 = vector.broadcast %cst_32 : f32 to vector<8x288xf32>
    %41 = arith.addf %40, %39 : vector<8x288xf32>
    %42 = arith.divf %40, %41 : vector<8x288xf32>
    %43 = vector.extract_strided_slice %36 {offsets = [0, 384], sizes = [8, 288], strides = [1, 1]} : vector<8x1536xf32> to vector<8x288xf32>
    %44 = arith.negf %43 : vector<8x288xf32>
    %45 = math.exp %44 : vector<8x288xf32>
    %cst_33 = arith.constant 1.000000e+00 : f32
    %46 = vector.broadcast %cst_33 : f32 to vector<8x288xf32>
    %47 = arith.addf %46, %45 : vector<8x288xf32>
    %48 = arith.divf %46, %47 : vector<8x288xf32>
    %49 = vector.extract_strided_slice %36 {offsets = [0, 768], sizes = [8, 288], strides = [1, 1]} : vector<8x1536xf32> to vector<8x288xf32>
    %50 = math.tanh %49 : vector<8x288xf32>
    %51 = vector.extract_strided_slice %36 {offsets = [0, 1152], sizes = [8, 288], strides = [1, 1]} : vector<8x1536xf32> to vector<8x288xf32>
    %52 = arith.negf %51 : vector<8x288xf32>
    %53 = math.exp %52 : vector<8x288xf32>
    %cst_34 = arith.constant 1.000000e+00 : f32
    %54 = vector.broadcast %cst_34 : f32 to vector<8x288xf32>
    %55 = arith.addf %54, %53 : vector<8x288xf32>
    %56 = arith.divf %54, %55 : vector<8x288xf32>
    %57 = arith.mulf %48, %23 : vector<8x288xf32>
    %58 = arith.mulf %42, %50 : vector<8x288xf32>
    %59 = arith.addf %57, %58 : vector<8x288xf32>
    %60 = math.tanh %59 : vector<8x288xf32>
    %61 = arith.mulf %56, %60 : vector<8x288xf32>
    %c0_35 = arith.constant 0 : index
    %c0_36 = arith.constant 0 : index
    %62 = vector.load %arg4[%c0_35, %c0_36] : memref<288x32xf32, #tpu.memory_space<vmem>>, vector<288x32xf32>
    %cst_37 = arith.constant dense<0.000000e+00> : vector<8x32xf32>
    %63 = tpu.matmul %61, %62, %cst_37 {dimension_numbers = #tpu.dot_dimension_numbers<[1], [0], [0], [1], [0, 0, 1, 1], [], []>} : vector<8x288xf32>, vector<288x32xf32>, vector<8x32xf32> -> vector<8x32xf32>
    %c0_38 = arith.constant 0 : index
    %c0_39 = arith.constant 0 : index
    %64 = vector.load %arg5[%c0_38, %c0_39] : memref<1x32xf32, #tpu.memory_space<vmem>>, vector<1x32xf32>
    %65 = vector.broadcast %64 : vector<1x32xf32> to vector<8x32xf32>
    %66 = arith.addf %63, %65 : vector<8x32xf32>
    %cst_40 = arith.constant 0.000000e+00 : f32
    %67 = vector.broadcast %cst_40 : f32 to vector<8x32xf32>
    %68 = arith.maximumf %66, %67 : vector<8x32xf32>
    %c1 = arith.constant 1 : index
    %c0_41 = arith.constant 0 : index
    %c0_42 = arith.constant 0 : index
    %69 = vector.load %arg15[%c1, %c0_41, %c0_42] : memref<6x8x1536xf32, #tpu.memory_space<vmem>>, vector<1x8x1536xf32>
    %70 = vector.shape_cast %69 : vector<1x8x1536xf32> to vector<8x1536xf32>
    %cst_43 = arith.constant dense<0.000000e+00> : vector<8x1536xf32>
    %71 = tpu.matmul %68, %19, %cst_43 {dimension_numbers = #tpu.dot_dimension_numbers<[1], [0], [0], [1], [0, 0, 1, 1], [], []>} : vector<8x32xf32>, vector<32x1536xf32>, vector<8x1536xf32> -> vector<8x1536xf32>
    %72 = arith.addf %70, %71 : vector<8x1536xf32>
    %cst_44 = arith.constant dense<0.000000e+00> : vector<8x1536xf32>
    %73 = tpu.matmul %61, %21, %cst_44 {dimension_numbers = #tpu.dot_dimension_numbers<[1], [0], [0], [1], [0, 0, 1, 1], [], []>} : vector<8x288xf32>, vector<288x1536xf32>, vector<8x1536xf32> -> vector<8x1536xf32>
    %74 = arith.addf %72, %73 : vector<8x1536xf32>
    %75 = vector.extract_strided_slice %74 {offsets = [0, 0], sizes = [8, 288], strides = [1, 1]} : vector<8x1536xf32> to vector<8x288xf32>
    %76 = arith.negf %75 : vector<8x288xf32>
    %77 = math.exp %76 : vector<8x288xf32>
    %cst_45 = arith.constant 1.000000e+00 : f32
    %78 = vector.broadcast %cst_45 : f32 to vector<8x288xf32>
    %79 = arith.addf %78, %77 : vector<8x288xf32>
    %80 = arith.divf %78, %79 : vector<8x288xf32>
    %81 = vector.extract_strided_slice %74 {offsets = [0, 384], sizes = [8, 288], strides = [1, 1]} : vector<8x1536xf32> to vector<8x288xf32>
    %82 = arith.negf %81 : vector<8x288xf32>
    %83 = math.exp %82 : vector<8x288xf32>
    %cst_46 = arith.constant 1.000000e+00 : f32
    %84 = vector.broadcast %cst_46 : f32 to vector<8x288xf32>
    %85 = arith.addf %84, %83 : vector<8x288xf32>
    %86 = arith.divf %84, %85 : vector<8x288xf32>
    %87 = vector.extract_strided_slice %74 {offsets = [0, 768], sizes = [8, 288], strides = [1, 1]} : vector<8x1536xf32> to vector<8x288xf32>
    %88 = math.tanh %87 : vector<8x288xf32>
    %89 = vector.extract_strided_slice %74 {offsets = [0, 1152], sizes = [8, 288], strides = [1, 1]} : vector<8x1536xf32> to vector<8x288xf32>
    %90 = arith.negf %89 : vector<8x288xf32>
    %91 = math.exp %90 : vector<8x288xf32>
    %cst_47 = arith.constant 1.000000e+00 : f32
    %92 = vector.broadcast %cst_47 : f32 to vector<8x288xf32>
    %93 = arith.addf %92, %91 : vector<8x288xf32>
    %94 = arith.divf %92, %93 : vector<8x288xf32>
    %95 = arith.mulf %86, %59 : vector<8x288xf32>
    %96 = arith.mulf %80, %88 : vector<8x288xf32>
    %97 = arith.addf %95, %96 : vector<8x288xf32>
    %98 = math.tanh %97 : vector<8x288xf32>
    %99 = arith.mulf %94, %98 : vector<8x288xf32>
    %c0_48 = arith.constant 0 : index
    %c0_49 = arith.constant 0 : index
    %100 = vector.load %arg4[%c0_48, %c0_49] : memref<288x32xf32, #tpu.memory_space<vmem>>, vector<288x32xf32>
    %cst_50 = arith.constant dense<0.000000e+00> : vector<8x32xf32>
    %101 = tpu.matmul %99, %100, %cst_50 {dimension_numbers = #tpu.dot_dimension_numbers<[1], [0], [0], [1], [0, 0, 1, 1], [], []>} : vector<8x288xf32>, vector<288x32xf32>, vector<8x32xf32> -> vector<8x32xf32>
    %c0_51 = arith.constant 0 : index
    %c0_52 = arith.constant 0 : index
    %102 = vector.load %arg5[%c0_51, %c0_52] : memref<1x32xf32, #tpu.memory_space<vmem>>, vector<1x32xf32>
    %103 = vector.broadcast %102 : vector<1x32xf32> to vector<8x32xf32>
    %104 = arith.addf %101, %103 : vector<8x32xf32>
    %cst_53 = arith.constant 0.000000e+00 : f32
    %105 = vector.broadcast %cst_53 : f32 to vector<8x32xf32>
    %106 = arith.maximumf %104, %105 : vector<8x32xf32>
    %c2 = arith.constant 2 : index
    %c0_54 = arith.constant 0 : index
    %c0_55 = arith.constant 0 : index
    %107 = vector.load %arg15[%c2, %c0_54, %c0_55] : memref<6x8x1536xf32, #tpu.memory_space<vmem>>, vector<1x8x1536xf32>
    %108 = vector.shape_cast %107 : vector<1x8x1536xf32> to vector<8x1536xf32>
    %cst_56 = arith.constant dense<0.000000e+00> : vector<8x1536xf32>
    %109 = tpu.matmul %106, %19, %cst_56 {dimension_numbers = #tpu.dot_dimension_numbers<[1], [0], [0], [1], [0, 0, 1, 1], [], []>} : vector<8x32xf32>, vector<32x1536xf32>, vector<8x1536xf32> -> vector<8x1536xf32>
    %110 = arith.addf %108, %109 : vector<8x1536xf32>
    %cst_57 = arith.constant dense<0.000000e+00> : vector<8x1536xf32>
    %111 = tpu.matmul %99, %21, %cst_57 {dimension_numbers = #tpu.dot_dimension_numbers<[1], [0], [0], [1], [0, 0, 1, 1], [], []>} : vector<8x288xf32>, vector<288x1536xf32>, vector<8x1536xf32> -> vector<8x1536xf32>
    %112 = arith.addf %110, %111 : vector<8x1536xf32>
    %113 = vector.extract_strided_slice %112 {offsets = [0, 0], sizes = [8, 288], strides = [1, 1]} : vector<8x1536xf32> to vector<8x288xf32>
    %114 = arith.negf %113 : vector<8x288xf32>
    %115 = math.exp %114 : vector<8x288xf32>
    %cst_58 = arith.constant 1.000000e+00 : f32
    %116 = vector.broadcast %cst_58 : f32 to vector<8x288xf32>
    %117 = arith.addf %116, %115 : vector<8x288xf32>
    %118 = arith.divf %116, %117 : vector<8x288xf32>
    %119 = vector.extract_strided_slice %112 {offsets = [0, 384], sizes = [8, 288], strides = [1, 1]} : vector<8x1536xf32> to vector<8x288xf32>
    %120 = arith.negf %119 : vector<8x288xf32>
    %121 = math.exp %120 : vector<8x288xf32>
    %cst_59 = arith.constant 1.000000e+00 : f32
    %122 = vector.broadcast %cst_59 : f32 to vector<8x288xf32>
    %123 = arith.addf %122, %121 : vector<8x288xf32>
    %124 = arith.divf %122, %123 : vector<8x288xf32>
    %125 = vector.extract_strided_slice %112 {offsets = [0, 768], sizes = [8, 288], strides = [1, 1]} : vector<8x1536xf32> to vector<8x288xf32>
    %126 = math.tanh %125 : vector<8x288xf32>
    %127 = vector.extract_strided_slice %112 {offsets = [0, 1152], sizes = [8, 288], strides = [1, 1]} : vector<8x1536xf32> to vector<8x288xf32>
    %128 = arith.negf %127 : vector<8x288xf32>
    %129 = math.exp %128 : vector<8x288xf32>
    %cst_60 = arith.constant 1.000000e+00 : f32
    %130 = vector.broadcast %cst_60 : f32 to vector<8x288xf32>
    %131 = arith.addf %130, %129 : vector<8x288xf32>
    %132 = arith.divf %130, %131 : vector<8x288xf32>
    %133 = arith.mulf %124, %97 : vector<8x288xf32>
    %134 = arith.mulf %118, %126 : vector<8x288xf32>
    %135 = arith.addf %133, %134 : vector<8x288xf32>
    %136 = math.tanh %135 : vector<8x288xf32>
    %137 = arith.mulf %132, %136 : vector<8x288xf32>
    %c0_61 = arith.constant 0 : index
    %c0_62 = arith.constant 0 : index
    %138 = vector.load %arg4[%c0_61, %c0_62] : memref<288x32xf32, #tpu.memory_space<vmem>>, vector<288x32xf32>
    %cst_63 = arith.constant dense<0.000000e+00> : vector<8x32xf32>
    %139 = tpu.matmul %137, %138, %cst_63 {dimension_numbers = #tpu.dot_dimension_numbers<[1], [0], [0], [1], [0, 0, 1, 1], [], []>} : vector<8x288xf32>, vector<288x32xf32>, vector<8x32xf32> -> vector<8x32xf32>
    %c0_64 = arith.constant 0 : index
    %c0_65 = arith.constant 0 : index
    %140 = vector.load %arg5[%c0_64, %c0_65] : memref<1x32xf32, #tpu.memory_space<vmem>>, vector<1x32xf32>
    %141 = vector.broadcast %140 : vector<1x32xf32> to vector<8x32xf32>
    %142 = arith.addf %139, %141 : vector<8x32xf32>
    %cst_66 = arith.constant 0.000000e+00 : f32
    %143 = vector.broadcast %cst_66 : f32 to vector<8x32xf32>
    %144 = arith.maximumf %142, %143 : vector<8x32xf32>
    %c3 = arith.constant 3 : index
    %c0_67 = arith.constant 0 : index
    %c0_68 = arith.constant 0 : index
    %145 = vector.load %arg15[%c3, %c0_67, %c0_68] : memref<6x8x1536xf32, #tpu.memory_space<vmem>>, vector<1x8x1536xf32>
    %146 = vector.shape_cast %145 : vector<1x8x1536xf32> to vector<8x1536xf32>
    %cst_69 = arith.constant dense<0.000000e+00> : vector<8x1536xf32>
    %147 = tpu.matmul %144, %19, %cst_69 {dimension_numbers = #tpu.dot_dimension_numbers<[1], [0], [0], [1], [0, 0, 1, 1], [], []>} : vector<8x32xf32>, vector<32x1536xf32>, vector<8x1536xf32> -> vector<8x1536xf32>
    %148 = arith.addf %146, %147 : vector<8x1536xf32>
    %cst_70 = arith.constant dense<0.000000e+00> : vector<8x1536xf32>
    %149 = tpu.matmul %137, %21, %cst_70 {dimension_numbers = #tpu.dot_dimension_numbers<[1], [0], [0], [1], [0, 0, 1, 1], [], []>} : vector<8x288xf32>, vector<288x1536xf32>, vector<8x1536xf32> -> vector<8x1536xf32>
    %150 = arith.addf %148, %149 : vector<8x1536xf32>
    %151 = vector.extract_strided_slice %150 {offsets = [0, 0], sizes = [8, 288], strides = [1, 1]} : vector<8x1536xf32> to vector<8x288xf32>
    %152 = arith.negf %151 : vector<8x288xf32>
    %153 = math.exp %152 : vector<8x288xf32>
    %cst_71 = arith.constant 1.000000e+00 : f32
    %154 = vector.broadcast %cst_71 : f32 to vector<8x288xf32>
    %155 = arith.addf %154, %153 : vector<8x288xf32>
    %156 = arith.divf %154, %155 : vector<8x288xf32>
    %157 = vector.extract_strided_slice %150 {offsets = [0, 384], sizes = [8, 288], strides = [1, 1]} : vector<8x1536xf32> to vector<8x288xf32>
    %158 = arith.negf %157 : vector<8x288xf32>
    %159 = math.exp %158 : vector<8x288xf32>
    %cst_72 = arith.constant 1.000000e+00 : f32
    %160 = vector.broadcast %cst_72 : f32 to vector<8x288xf32>
    %161 = arith.addf %160, %159 : vector<8x288xf32>
    %162 = arith.divf %160, %161 : vector<8x288xf32>
    %163 = vector.extract_strided_slice %150 {offsets = [0, 768], sizes = [8, 288], strides = [1, 1]} : vector<8x1536xf32> to vector<8x288xf32>
    %164 = math.tanh %163 : vector<8x288xf32>
    %165 = vector.extract_strided_slice %150 {offsets = [0, 1152], sizes = [8, 288], strides = [1, 1]} : vector<8x1536xf32> to vector<8x288xf32>
    %166 = arith.negf %165 : vector<8x288xf32>
    %167 = math.exp %166 : vector<8x288xf32>
    %cst_73 = arith.constant 1.000000e+00 : f32
    %168 = vector.broadcast %cst_73 : f32 to vector<8x288xf32>
    %169 = arith.addf %168, %167 : vector<8x288xf32>
    %170 = arith.divf %168, %169 : vector<8x288xf32>
    %171 = arith.mulf %162, %135 : vector<8x288xf32>
    %172 = arith.mulf %156, %164 : vector<8x288xf32>
    %173 = arith.addf %171, %172 : vector<8x288xf32>
    %174 = math.tanh %173 : vector<8x288xf32>
    %175 = arith.mulf %170, %174 : vector<8x288xf32>
    %c0_74 = arith.constant 0 : index
    %c0_75 = arith.constant 0 : index
    %176 = vector.load %arg4[%c0_74, %c0_75] : memref<288x32xf32, #tpu.memory_space<vmem>>, vector<288x32xf32>
    %cst_76 = arith.constant dense<0.000000e+00> : vector<8x32xf32>
    %177 = tpu.matmul %175, %176, %cst_76 {dimension_numbers = #tpu.dot_dimension_numbers<[1], [0], [0], [1], [0, 0, 1, 1], [], []>} : vector<8x288xf32>, vector<288x32xf32>, vector<8x32xf32> -> vector<8x32xf32>
    %c0_77 = arith.constant 0 : index
    %c0_78 = arith.constant 0 : index
    %178 = vector.load %arg5[%c0_77, %c0_78] : memref<1x32xf32, #tpu.memory_space<vmem>>, vector<1x32xf32>
    %179 = vector.broadcast %178 : vector<1x32xf32> to vector<8x32xf32>
    %180 = arith.addf %177, %179 : vector<8x32xf32>
    %cst_79 = arith.constant 0.000000e+00 : f32
    %181 = vector.broadcast %cst_79 : f32 to vector<8x32xf32>
    %182 = arith.maximumf %180, %181 : vector<8x32xf32>
    %c4 = arith.constant 4 : index
    %c0_80 = arith.constant 0 : index
    %c0_81 = arith.constant 0 : index
    %183 = vector.load %arg15[%c4, %c0_80, %c0_81] : memref<6x8x1536xf32, #tpu.memory_space<vmem>>, vector<1x8x1536xf32>
    %184 = vector.shape_cast %183 : vector<1x8x1536xf32> to vector<8x1536xf32>
    %cst_82 = arith.constant dense<0.000000e+00> : vector<8x1536xf32>
    %185 = tpu.matmul %182, %19, %cst_82 {dimension_numbers = #tpu.dot_dimension_numbers<[1], [0], [0], [1], [0, 0, 1, 1], [], []>} : vector<8x32xf32>, vector<32x1536xf32>, vector<8x1536xf32> -> vector<8x1536xf32>
    %186 = arith.addf %184, %185 : vector<8x1536xf32>
    %cst_83 = arith.constant dense<0.000000e+00> : vector<8x1536xf32>
    %187 = tpu.matmul %175, %21, %cst_83 {dimension_numbers = #tpu.dot_dimension_numbers<[1], [0], [0], [1], [0, 0, 1, 1], [], []>} : vector<8x288xf32>, vector<288x1536xf32>, vector<8x1536xf32> -> vector<8x1536xf32>
    %188 = arith.addf %186, %187 : vector<8x1536xf32>
    %189 = vector.extract_strided_slice %188 {offsets = [0, 0], sizes = [8, 288], strides = [1, 1]} : vector<8x1536xf32> to vector<8x288xf32>
    %190 = arith.negf %189 : vector<8x288xf32>
    %191 = math.exp %190 : vector<8x288xf32>
    %cst_84 = arith.constant 1.000000e+00 : f32
    %192 = vector.broadcast %cst_84 : f32 to vector<8x288xf32>
    %193 = arith.addf %192, %191 : vector<8x288xf32>
    %194 = arith.divf %192, %193 : vector<8x288xf32>
    %195 = vector.extract_strided_slice %188 {offsets = [0, 384], sizes = [8, 288], strides = [1, 1]} : vector<8x1536xf32> to vector<8x288xf32>
    %196 = arith.negf %195 : vector<8x288xf32>
    %197 = math.exp %196 : vector<8x288xf32>
    %cst_85 = arith.constant 1.000000e+00 : f32
    %198 = vector.broadcast %cst_85 : f32 to vector<8x288xf32>
    %199 = arith.addf %198, %197 : vector<8x288xf32>
    %200 = arith.divf %198, %199 : vector<8x288xf32>
    %201 = vector.extract_strided_slice %188 {offsets = [0, 768], sizes = [8, 288], strides = [1, 1]} : vector<8x1536xf32> to vector<8x288xf32>
    %202 = math.tanh %201 : vector<8x288xf32>
    %203 = vector.extract_strided_slice %188 {offsets = [0, 1152], sizes = [8, 288], strides = [1, 1]} : vector<8x1536xf32> to vector<8x288xf32>
    %204 = arith.negf %203 : vector<8x288xf32>
    %205 = math.exp %204 : vector<8x288xf32>
    %cst_86 = arith.constant 1.000000e+00 : f32
    %206 = vector.broadcast %cst_86 : f32 to vector<8x288xf32>
    %207 = arith.addf %206, %205 : vector<8x288xf32>
    %208 = arith.divf %206, %207 : vector<8x288xf32>
    %209 = arith.mulf %200, %173 : vector<8x288xf32>
    %210 = arith.mulf %194, %202 : vector<8x288xf32>
    %211 = arith.addf %209, %210 : vector<8x288xf32>
    %212 = math.tanh %211 : vector<8x288xf32>
    %213 = arith.mulf %208, %212 : vector<8x288xf32>
    %c0_87 = arith.constant 0 : index
    %c0_88 = arith.constant 0 : index
    %214 = vector.load %arg4[%c0_87, %c0_88] : memref<288x32xf32, #tpu.memory_space<vmem>>, vector<288x32xf32>
    %cst_89 = arith.constant dense<0.000000e+00> : vector<8x32xf32>
    %215 = tpu.matmul %213, %214, %cst_89 {dimension_numbers = #tpu.dot_dimension_numbers<[1], [0], [0], [1], [0, 0, 1, 1], [], []>} : vector<8x288xf32>, vector<288x32xf32>, vector<8x32xf32> -> vector<8x32xf32>
    %c0_90 = arith.constant 0 : index
    %c0_91 = arith.constant 0 : index
    %216 = vector.load %arg5[%c0_90, %c0_91] : memref<1x32xf32, #tpu.memory_space<vmem>>, vector<1x32xf32>
    %217 = vector.broadcast %216 : vector<1x32xf32> to vector<8x32xf32>
    %218 = arith.addf %215, %217 : vector<8x32xf32>
    %cst_92 = arith.constant 0.000000e+00 : f32
    %219 = vector.broadcast %cst_92 : f32 to vector<8x32xf32>
    %220 = arith.maximumf %218, %219 : vector<8x32xf32>
    %c5 = arith.constant 5 : index
    %c0_93 = arith.constant 0 : index
    %c0_94 = arith.constant 0 : index
    %221 = vector.load %arg15[%c5, %c0_93, %c0_94] : memref<6x8x1536xf32, #tpu.memory_space<vmem>>, vector<1x8x1536xf32>
    %222 = vector.shape_cast %221 : vector<1x8x1536xf32> to vector<8x1536xf32>
    %cst_95 = arith.constant dense<0.000000e+00> : vector<8x1536xf32>
    %223 = tpu.matmul %220, %19, %cst_95 {dimension_numbers = #tpu.dot_dimension_numbers<[1], [0], [0], [1], [0, 0, 1, 1], [], []>} : vector<8x32xf32>, vector<32x1536xf32>, vector<8x1536xf32> -> vector<8x1536xf32>
    %224 = arith.addf %222, %223 : vector<8x1536xf32>
    %cst_96 = arith.constant dense<0.000000e+00> : vector<8x1536xf32>
    %225 = tpu.matmul %213, %21, %cst_96 {dimension_numbers = #tpu.dot_dimension_numbers<[1], [0], [0], [1], [0, 0, 1, 1], [], []>} : vector<8x288xf32>, vector<288x1536xf32>, vector<8x1536xf32> -> vector<8x1536xf32>
    %226 = arith.addf %224, %225 : vector<8x1536xf32>
    %227 = vector.extract_strided_slice %226 {offsets = [0, 0], sizes = [8, 288], strides = [1, 1]} : vector<8x1536xf32> to vector<8x288xf32>
    %228 = arith.negf %227 : vector<8x288xf32>
    %229 = math.exp %228 : vector<8x288xf32>
    %cst_97 = arith.constant 1.000000e+00 : f32
    %230 = vector.broadcast %cst_97 : f32 to vector<8x288xf32>
    %231 = arith.addf %230, %229 : vector<8x288xf32>
    %232 = arith.divf %230, %231 : vector<8x288xf32>
    %233 = vector.extract_strided_slice %226 {offsets = [0, 384], sizes = [8, 288], strides = [1, 1]} : vector<8x1536xf32> to vector<8x288xf32>
    %234 = arith.negf %233 : vector<8x288xf32>
    %235 = math.exp %234 : vector<8x288xf32>
    %cst_98 = arith.constant 1.000000e+00 : f32
    %236 = vector.broadcast %cst_98 : f32 to vector<8x288xf32>
    %237 = arith.addf %236, %235 : vector<8x288xf32>
    %238 = arith.divf %236, %237 : vector<8x288xf32>
    %239 = vector.extract_strided_slice %226 {offsets = [0, 768], sizes = [8, 288], strides = [1, 1]} : vector<8x1536xf32> to vector<8x288xf32>
    %240 = math.tanh %239 : vector<8x288xf32>
    %241 = vector.extract_strided_slice %226 {offsets = [0, 1152], sizes = [8, 288], strides = [1, 1]} : vector<8x1536xf32> to vector<8x288xf32>
    %242 = arith.negf %241 : vector<8x288xf32>
    %243 = math.exp %242 : vector<8x288xf32>
    %cst_99 = arith.constant 1.000000e+00 : f32
    %244 = vector.broadcast %cst_99 : f32 to vector<8x288xf32>
    %245 = arith.addf %244, %243 : vector<8x288xf32>
    %246 = arith.divf %244, %245 : vector<8x288xf32>
    %247 = arith.mulf %238, %211 : vector<8x288xf32>
    %248 = arith.mulf %232, %240 : vector<8x288xf32>
    %249 = arith.addf %247, %248 : vector<8x288xf32>
    %250 = math.tanh %249 : vector<8x288xf32>
    %251 = arith.mulf %246, %250 : vector<8x288xf32>
    %cst_100 = arith.constant 0.000000e+00 : f32
    %252 = vector.broadcast %cst_100 : f32 to vector<8x288xf32>
    %c0_101 = arith.constant 0 : index
    %c0_102 = arith.constant 0 : index
    %253 = memref.load %arg11[%c0_101, %c0_102] : memref<5x6xf32, #tpu.memory_space<smem>>
    %254 = vector.broadcast %253 : f32 to vector<8x288xf32>
    %255 = arith.mulf %254, %61 : vector<8x288xf32>
    %256 = arith.addf %252, %255 : vector<8x288xf32>
    %c0_103 = arith.constant 0 : index
    %c1_104 = arith.constant 1 : index
    %257 = memref.load %arg11[%c0_103, %c1_104] : memref<5x6xf32, #tpu.memory_space<smem>>
    %258 = vector.broadcast %257 : f32 to vector<8x288xf32>
    %259 = arith.mulf %258, %99 : vector<8x288xf32>
    %260 = arith.addf %256, %259 : vector<8x288xf32>
    %c0_105 = arith.constant 0 : index
    %c2_106 = arith.constant 2 : index
    %261 = memref.load %arg11[%c0_105, %c2_106] : memref<5x6xf32, #tpu.memory_space<smem>>
    %262 = vector.broadcast %261 : f32 to vector<8x288xf32>
    %263 = arith.mulf %262, %137 : vector<8x288xf32>
    %264 = arith.addf %260, %263 : vector<8x288xf32>
    %c0_107 = arith.constant 0 : index
    %c3_108 = arith.constant 3 : index
    %265 = memref.load %arg11[%c0_107, %c3_108] : memref<5x6xf32, #tpu.memory_space<smem>>
    %266 = vector.broadcast %265 : f32 to vector<8x288xf32>
    %267 = arith.mulf %266, %175 : vector<8x288xf32>
    %268 = arith.addf %264, %267 : vector<8x288xf32>
    %c0_109 = arith.constant 0 : index
    %c4_110 = arith.constant 4 : index
    %269 = memref.load %arg11[%c0_109, %c4_110] : memref<5x6xf32, #tpu.memory_space<smem>>
    %270 = vector.broadcast %269 : f32 to vector<8x288xf32>
    %271 = arith.mulf %270, %213 : vector<8x288xf32>
    %272 = arith.addf %268, %271 : vector<8x288xf32>
    %c0_111 = arith.constant 0 : index
    %c5_112 = arith.constant 5 : index
    %273 = memref.load %arg11[%c0_111, %c5_112] : memref<5x6xf32, #tpu.memory_space<smem>>
    %274 = vector.broadcast %273 : f32 to vector<8x288xf32>
    %275 = arith.mulf %274, %251 : vector<8x288xf32>
    %276 = arith.addf %272, %275 : vector<8x288xf32>
    %c0_113 = arith.constant 0 : index
    %277 = memref.load %arg12[%c0_113] : memref<5xf32, #tpu.memory_space<smem>>
    %278 = vector.broadcast %277 : f32 to vector<8x288xf32>
    %279 = arith.addf %276, %278 : vector<8x288xf32>
    %cst_114 = arith.constant 0.000000e+00 : f32
    %280 = vector.broadcast %cst_114 : f32 to vector<8x288xf32>
    %281 = arith.maximumf %279, %280 : vector<8x288xf32>
    %cst_115 = arith.constant 0.000000e+00 : f32
    %282 = vector.broadcast %cst_115 : f32 to vector<8x288xf32>
    %c1_116 = arith.constant 1 : index
    %c0_117 = arith.constant 0 : index
    %283 = memref.load %arg11[%c1_116, %c0_117] : memref<5x6xf32, #tpu.memory_space<smem>>
    %284 = vector.broadcast %283 : f32 to vector<8x288xf32>
    %285 = arith.mulf %284, %61 : vector<8x288xf32>
    %286 = arith.addf %282, %285 : vector<8x288xf32>
    %c1_118 = arith.constant 1 : index
    %c1_119 = arith.constant 1 : index
    %287 = memref.load %arg11[%c1_118, %c1_119] : memref<5x6xf32, #tpu.memory_space<smem>>
    %288 = vector.broadcast %287 : f32 to vector<8x288xf32>
    %289 = arith.mulf %288, %99 : vector<8x288xf32>
    %290 = arith.addf %286, %289 : vector<8x288xf32>
    %c1_120 = arith.constant 1 : index
    %c2_121 = arith.constant 2 : index
    %291 = memref.load %arg11[%c1_120, %c2_121] : memref<5x6xf32, #tpu.memory_space<smem>>
    %292 = vector.broadcast %291 : f32 to vector<8x288xf32>
    %293 = arith.mulf %292, %137 : vector<8x288xf32>
    %294 = arith.addf %290, %293 : vector<8x288xf32>
    %c1_122 = arith.constant 1 : index
    %c3_123 = arith.constant 3 : index
    %295 = memref.load %arg11[%c1_122, %c3_123] : memref<5x6xf32, #tpu.memory_space<smem>>
    %296 = vector.broadcast %295 : f32 to vector<8x288xf32>
    %297 = arith.mulf %296, %175 : vector<8x288xf32>
    %298 = arith.addf %294, %297 : vector<8x288xf32>
    %c1_124 = arith.constant 1 : index
    %c4_125 = arith.constant 4 : index
    %299 = memref.load %arg11[%c1_124, %c4_125] : memref<5x6xf32, #tpu.memory_space<smem>>
    %300 = vector.broadcast %299 : f32 to vector<8x288xf32>
    %301 = arith.mulf %300, %213 : vector<8x288xf32>
    %302 = arith.addf %298, %301 : vector<8x288xf32>
    %c1_126 = arith.constant 1 : index
    %c5_127 = arith.constant 5 : index
    %303 = memref.load %arg11[%c1_126, %c5_127] : memref<5x6xf32, #tpu.memory_space<smem>>
    %304 = vector.broadcast %303 : f32 to vector<8x288xf32>
    %305 = arith.mulf %304, %251 : vector<8x288xf32>
    %306 = arith.addf %302, %305 : vector<8x288xf32>
    %c1_128 = arith.constant 1 : index
    %307 = memref.load %arg12[%c1_128] : memref<5xf32, #tpu.memory_space<smem>>
    %308 = vector.broadcast %307 : f32 to vector<8x288xf32>
    %309 = arith.addf %306, %308 : vector<8x288xf32>
    %cst_129 = arith.constant 0.000000e+00 : f32
    %310 = vector.broadcast %cst_129 : f32 to vector<8x288xf32>
    %311 = arith.maximumf %309, %310 : vector<8x288xf32>
    %cst_130 = arith.constant 0.000000e+00 : f32
    %312 = vector.broadcast %cst_130 : f32 to vector<8x288xf32>
    %c2_131 = arith.constant 2 : index
    %c0_132 = arith.constant 0 : index
    %313 = memref.load %arg11[%c2_131, %c0_132] : memref<5x6xf32, #tpu.memory_space<smem>>
    %314 = vector.broadcast %313 : f32 to vector<8x288xf32>
    %315 = arith.mulf %314, %61 : vector<8x288xf32>
    %316 = arith.addf %312, %315 : vector<8x288xf32>
    %c2_133 = arith.constant 2 : index
    %c1_134 = arith.constant 1 : index
    %317 = memref.load %arg11[%c2_133, %c1_134] : memref<5x6xf32, #tpu.memory_space<smem>>
    %318 = vector.broadcast %317 : f32 to vector<8x288xf32>
    %319 = arith.mulf %318, %99 : vector<8x288xf32>
    %320 = arith.addf %316, %319 : vector<8x288xf32>
    %c2_135 = arith.constant 2 : index
    %c2_136 = arith.constant 2 : index
    %321 = memref.load %arg11[%c2_135, %c2_136] : memref<5x6xf32, #tpu.memory_space<smem>>
    %322 = vector.broadcast %321 : f32 to vector<8x288xf32>
    %323 = arith.mulf %322, %137 : vector<8x288xf32>
    %324 = arith.addf %320, %323 : vector<8x288xf32>
    %c2_137 = arith.constant 2 : index
    %c3_138 = arith.constant 3 : index
    %325 = memref.load %arg11[%c2_137, %c3_138] : memref<5x6xf32, #tpu.memory_space<smem>>
    %326 = vector.broadcast %325 : f32 to vector<8x288xf32>
    %327 = arith.mulf %326, %175 : vector<8x288xf32>
    %328 = arith.addf %324, %327 : vector<8x288xf32>
    %c2_139 = arith.constant 2 : index
    %c4_140 = arith.constant 4 : index
    %329 = memref.load %arg11[%c2_139, %c4_140] : memref<5x6xf32, #tpu.memory_space<smem>>
    %330 = vector.broadcast %329 : f32 to vector<8x288xf32>
    %331 = arith.mulf %330, %213 : vector<8x288xf32>
    %332 = arith.addf %328, %331 : vector<8x288xf32>
    %c2_141 = arith.constant 2 : index
    %c5_142 = arith.constant 5 : index
    %333 = memref.load %arg11[%c2_141, %c5_142] : memref<5x6xf32, #tpu.memory_space<smem>>
    %334 = vector.broadcast %333 : f32 to vector<8x288xf32>
    %335 = arith.mulf %334, %251 : vector<8x288xf32>
    %336 = arith.addf %332, %335 : vector<8x288xf32>
    %c2_143 = arith.constant 2 : index
    %337 = memref.load %arg12[%c2_143] : memref<5xf32, #tpu.memory_space<smem>>
    %338 = vector.broadcast %337 : f32 to vector<8x288xf32>
    %339 = arith.addf %336, %338 : vector<8x288xf32>
    %cst_144 = arith.constant 0.000000e+00 : f32
    %340 = vector.broadcast %cst_144 : f32 to vector<8x288xf32>
    %341 = arith.maximumf %339, %340 : vector<8x288xf32>
    %cst_145 = arith.constant 0.000000e+00 : f32
    %342 = vector.broadcast %cst_145 : f32 to vector<8x288xf32>
    %c3_146 = arith.constant 3 : index
    %c0_147 = arith.constant 0 : index
    %343 = memref.load %arg11[%c3_146, %c0_147] : memref<5x6xf32, #tpu.memory_space<smem>>
    %344 = vector.broadcast %343 : f32 to vector<8x288xf32>
    %345 = arith.mulf %344, %61 : vector<8x288xf32>
    %346 = arith.addf %342, %345 : vector<8x288xf32>
    %c3_148 = arith.constant 3 : index
    %c1_149 = arith.constant 1 : index
    %347 = memref.load %arg11[%c3_148, %c1_149] : memref<5x6xf32, #tpu.memory_space<smem>>
    %348 = vector.broadcast %347 : f32 to vector<8x288xf32>
    %349 = arith.mulf %348, %99 : vector<8x288xf32>
    %350 = arith.addf %346, %349 : vector<8x288xf32>
    %c3_150 = arith.constant 3 : index
    %c2_151 = arith.constant 2 : index
    %351 = memref.load %arg11[%c3_150, %c2_151] : memref<5x6xf32, #tpu.memory_space<smem>>
    %352 = vector.broadcast %351 : f32 to vector<8x288xf32>
    %353 = arith.mulf %352, %137 : vector<8x288xf32>
    %354 = arith.addf %350, %353 : vector<8x288xf32>
    %c3_152 = arith.constant 3 : index
    %c3_153 = arith.constant 3 : index
    %355 = memref.load %arg11[%c3_152, %c3_153] : memref<5x6xf32, #tpu.memory_space<smem>>
    %356 = vector.broadcast %355 : f32 to vector<8x288xf32>
    %357 = arith.mulf %356, %175 : vector<8x288xf32>
    %358 = arith.addf %354, %357 : vector<8x288xf32>
    %c3_154 = arith.constant 3 : index
    %c4_155 = arith.constant 4 : index
    %359 = memref.load %arg11[%c3_154, %c4_155] : memref<5x6xf32, #tpu.memory_space<smem>>
    %360 = vector.broadcast %359 : f32 to vector<8x288xf32>
    %361 = arith.mulf %360, %213 : vector<8x288xf32>
    %362 = arith.addf %358, %361 : vector<8x288xf32>
    %c3_156 = arith.constant 3 : index
    %c5_157 = arith.constant 5 : index
    %363 = memref.load %arg11[%c3_156, %c5_157] : memref<5x6xf32, #tpu.memory_space<smem>>
    %364 = vector.broadcast %363 : f32 to vector<8x288xf32>
    %365 = arith.mulf %364, %251 : vector<8x288xf32>
    %366 = arith.addf %362, %365 : vector<8x288xf32>
    %c3_158 = arith.constant 3 : index
    %367 = memref.load %arg12[%c3_158] : memref<5xf32, #tpu.memory_space<smem>>
    %368 = vector.broadcast %367 : f32 to vector<8x288xf32>
    %369 = arith.addf %366, %368 : vector<8x288xf32>
    %cst_159 = arith.constant 0.000000e+00 : f32
    %370 = vector.broadcast %cst_159 : f32 to vector<8x288xf32>
    %371 = arith.maximumf %369, %370 : vector<8x288xf32>
    %cst_160 = arith.constant 0.000000e+00 : f32
    %372 = vector.broadcast %cst_160 : f32 to vector<8x288xf32>
    %c4_161 = arith.constant 4 : index
    %c0_162 = arith.constant 0 : index
    %373 = memref.load %arg11[%c4_161, %c0_162] : memref<5x6xf32, #tpu.memory_space<smem>>
    %374 = vector.broadcast %373 : f32 to vector<8x288xf32>
    %375 = arith.mulf %374, %61 : vector<8x288xf32>
    %376 = arith.addf %372, %375 : vector<8x288xf32>
    %c4_163 = arith.constant 4 : index
    %c1_164 = arith.constant 1 : index
    %377 = memref.load %arg11[%c4_163, %c1_164] : memref<5x6xf32, #tpu.memory_space<smem>>
    %378 = vector.broadcast %377 : f32 to vector<8x288xf32>
    %379 = arith.mulf %378, %99 : vector<8x288xf32>
    %380 = arith.addf %376, %379 : vector<8x288xf32>
    %c4_165 = arith.constant 4 : index
    %c2_166 = arith.constant 2 : index
    %381 = memref.load %arg11[%c4_165, %c2_166] : memref<5x6xf32, #tpu.memory_space<smem>>
    %382 = vector.broadcast %381 : f32 to vector<8x288xf32>
    %383 = arith.mulf %382, %137 : vector<8x288xf32>
    %384 = arith.addf %380, %383 : vector<8x288xf32>
    %c4_167 = arith.constant 4 : index
    %c3_168 = arith.constant 3 : index
    %385 = memref.load %arg11[%c4_167, %c3_168] : memref<5x6xf32, #tpu.memory_space<smem>>
    %386 = vector.broadcast %385 : f32 to vector<8x288xf32>
    %387 = arith.mulf %386, %175 : vector<8x288xf32>
    %388 = arith.addf %384, %387 : vector<8x288xf32>
    %c4_169 = arith.constant 4 : index
    %c4_170 = arith.constant 4 : index
    %389 = memref.load %arg11[%c4_169, %c4_170] : memref<5x6xf32, #tpu.memory_space<smem>>
    %390 = vector.broadcast %389 : f32 to vector<8x288xf32>
    %391 = arith.mulf %390, %213 : vector<8x288xf32>
    %392 = arith.addf %388, %391 : vector<8x288xf32>
    %c4_171 = arith.constant 4 : index
    %c5_172 = arith.constant 5 : index
    %393 = memref.load %arg11[%c4_171, %c5_172] : memref<5x6xf32, #tpu.memory_space<smem>>
    %394 = vector.broadcast %393 : f32 to vector<8x288xf32>
    %395 = arith.mulf %394, %251 : vector<8x288xf32>
    %396 = arith.addf %392, %395 : vector<8x288xf32>
    %c4_173 = arith.constant 4 : index
    %397 = memref.load %arg12[%c4_173] : memref<5xf32, #tpu.memory_space<smem>>
    %398 = vector.broadcast %397 : f32 to vector<8x288xf32>
    %399 = arith.addf %396, %398 : vector<8x288xf32>
    %cst_174 = arith.constant 0.000000e+00 : f32
    %400 = vector.broadcast %cst_174 : f32 to vector<8x288xf32>
    %401 = arith.maximumf %399, %400 : vector<8x288xf32>
    %402 = tpu.concatenate %281, %311, %341, %371, %401 in 0 : vector<8x288xf32>, vector<8x288xf32>, vector<8x288xf32>, vector<8x288xf32>, vector<8x288xf32> -> vector<40x288xf32>
    %c0_175 = arith.constant 0 : index
    %c0_176 = arith.constant 0 : index
    %403 = vector.load %arg10[%c0_175, %c0_176] : memref<288x9xf32, #tpu.memory_space<vmem>>, vector<288x9xf32>
    %cst_177 = arith.constant dense<0.000000e+00> : vector<40x9xf32>
    %404 = tpu.matmul %402, %403, %cst_177 {dimension_numbers = #tpu.dot_dimension_numbers<[1], [0], [0], [1], [0, 0, 1, 1], [], []>} : vector<40x288xf32>, vector<288x9xf32>, vector<40x9xf32> -> vector<40x9xf32>
    %c0_178 = arith.constant 0 : index
    %405 = memref.load %arg13[%c0_178] : memref<1xf32, #tpu.memory_space<smem>>
    %406 = vector.broadcast %405 : f32 to vector<40x9xf32>
    %407 = arith.addf %404, %406 : vector<40x9xf32>
    %408 = vector.shape_cast %407 : vector<40x9xf32> to vector<5x8x9xf32>
    %c0_179 = arith.constant 0 : index
    %c0_180 = arith.constant 0 : index
    %c0_181 = arith.constant 0 : index
    %409 = vector.load %arg14[%c0_179, %c0_180, %c0_181] : memref<5x8x9xf32, #tpu.memory_space<vmem>>, vector<5x8x9xf32>
    tpu.vector_store %arg14[%c0_179, %c0_180, %c0_181], %408 {strides = array<i32>} : memref<5x8x9xf32, #tpu.memory_space<vmem>>, vector<5x8x9xf32>,
    return
  }
  func.func @transform_0(%arg0: i32) -> (i32, i32, i32) {
    %c0_i32 = arith.constant 0 : i32
    %c0_i32_0 = arith.constant 0 : i32
    %c0_i32_1 = arith.constant 0 : i32
    return %c0_i32, %arg0, %c0_i32_0 : i32, i32, i32
  }
  func.func @transform_1(%arg0: i32) -> (i32, i32) {
    %c0_i32 = arith.constant 0 : i32
    %c0_i32_0 = arith.constant 0 : i32
    %c0_i32_1 = arith.constant 0 : i32
    return %c0_i32, %c0_i32_0 : i32, i32
  }
  func.func @transform_2(%arg0: i32) -> (i32, i32) {
    %c0_i32 = arith.constant 0 : i32
    %c0_i32_0 = arith.constant 0 : i32
    %c0_i32_1 = arith.constant 0 : i32
    return %c0_i32, %c0_i32_0 : i32, i32
  }
  func.func @transform_3(%arg0: i32) -> (i32, i32) {
    %c0_i32 = arith.constant 0 : i32
    %c0_i32_0 = arith.constant 0 : i32
    %c0_i32_1 = arith.constant 0 : i32
    return %c0_i32, %c0_i32_0 : i32, i32
  }
  func.func @transform_4(%arg0: i32) -> (i32, i32) {
    %c0_i32 = arith.constant 0 : i32
    %c0_i32_0 = arith.constant 0 : i32
    %c0_i32_1 = arith.constant 0 : i32
    return %c0_i32, %c0_i32_0 : i32, i32
  }
  func.func @transform_5(%arg0: i32) -> (i32, i32) {
    %c0_i32 = arith.constant 0 : i32
    %c0_i32_0 = arith.constant 0 : i32
    %c0_i32_1 = arith.constant 0 : i32
    return %c0_i32, %c0_i32_0 : i32, i32
  }
  func.func @transform_6(%arg0: i32) -> (i32, i32) {
    %c0_i32 = arith.constant 0 : i32
    %c0_i32_0 = arith.constant 0 : i32
    %c0_i32_1 = arith.constant 0 : i32
    return %c0_i32, %c0_i32_0 : i32, i32
  }
  func.func @transform_7(%arg0: i32) -> (i32, i32) {
    %c0_i32 = arith.constant 0 : i32
    %c0_i32_0 = arith.constant 0 : i32
    %c0_i32_1 = arith.constant 0 : i32
    return %c0_i32, %c0_i32_0 : i32, i32
  }
  func.func @transform_8(%arg0: i32) -> (i32, i32) {
    %c0_i32 = arith.constant 0 : i32
    %c0_i32_0 = arith.constant 0 : i32
    %c0_i32_1 = arith.constant 0 : i32
    return %c0_i32, %c0_i32_0 : i32, i32
  }
  func.func @transform_9(%arg0: i32) -> (i32, i32) {
    %c0_i32 = arith.constant 0 : i32
    %c0_i32_0 = arith.constant 0 : i32
    %c0_i32_1 = arith.constant 0 : i32
    return %c0_i32, %c0_i32_0 : i32, i32
  }
  func.func @transform_10(%arg0: i32) -> (i32, i32) {
    %c0_i32 = arith.constant 0 : i32
    %c0_i32_0 = arith.constant 0 : i32
    %c0_i32_1 = arith.constant 0 : i32
    return %c0_i32, %c0_i32_0 : i32, i32
  }
  func.func @transform_11(%arg0: i32) -> i32 {
    %c0_i32 = arith.constant 0 : i32
    %c0_i32_0 = arith.constant 0 : i32
    return %c0_i32 : i32
  }
  func.func @transform_12(%arg0: i32) -> i32 {
    %c0_i32 = arith.constant 0 : i32
    %c0_i32_0 = arith.constant 0 : i32
    return %c0_i32 : i32
  }
  func.func @transform_13(%arg0: i32) -> (i32, i32, i32) {
    %c0_i32 = arith.constant 0 : i32
    %c0_i32_0 = arith.constant 0 : i32
    %c0_i32_1 = arith.constant 0 : i32
    return %c0_i32, %arg0, %c0_i32_0 : i32, i32, i32
  }
}

</mosaic_0001>

<bundles_post_ra>
// kernel: social_lstm_downsample_forward.1
= control target key start
LH: loop header
LB: loop body
LE: loop exit
PB: predicated region body
PF: predicated region fallthrough
CT: control target
= control target key end

     0   :  { %s28793_s0 = inlined_call_operand.vmem [shape: f32[6,16,108], index: 0, kind: input, shape index: {}]   ;;  %s28794_s1 = inlined_call_operand.vmem [shape: bf16[108,288], index: 1, kind: input, shape index: {}]   ;;  %s28795_s2 = inlined_call_operand.vmem [shape: f32[1,288], index: 2, kind: input, shape index: {}]   ;;  %s28796_s3 = inlined_call_operand.vmem [shape: f32[288,32], index: 3, kind: input, shape index: {}]   ;;  %s28797_s4 = inlined_call_operand.vmem [shape: f32[1,32], index: 4, kind: input, shape index: {}]   ;;  %s28798_s5 = inlined_call_operand.vmem [shape: bf16[288,1536], index: 5, kind: input, shape index: {}]   ;;  %s28799_s6 = inlined_call_operand.vmem [shape: bf16[32,1536], index: 6, kind: input, shape index: {}]   ;;  %s28800_s7 = inlined_call_operand.vmem [shape: bf16[288,1536], index: 7, kind: input, shape index: {}]   ;;  %s28801_s8 = inlined_call_operand.vmem [shape: f32[1,1536], index: 8, kind: input, shape index: {}]   ;;  %s28802_s9 = inlined_call_operand.vmem [shape: f32[288,9], index: 9, kind: input, shape index: {}]   ;;  %s28803_s10 = inlined_call_operand.vmem [shape: f32[5,6], index: 10, kind: input, shape index: {}]   ;;  %s28804_s11 = inlined_call_operand.vmem [shape: f32[5], index: 11, kind: input, shape index: {}]   ;;  %s28805_s12 = inlined_call_operand.<no memory space> [shape: f32[1], index: 12, kind: input, shape index: {}]   ;;  %s28806_s13 = inlined_call_operand.vmem [shape: f32[5,16,9], index: 13, kind: output, shape index: {}]  }
   0x1   :  { %18 = sst [smem:[#allocation3]] %s28805_s12 }
   0x2   :  { %19 = vsyncpa [#allocation6], 0 }
   0x3   :  { %20 = vsyncpa [#allocation8], 0  ;;  %s21676_s27 = smov 0   ;;  %s21678_s28 = smov 0  }
   0x4   :  { %s21680_s29 = smov 0  }
   0x5 LB: > { %s21692_s12 = sadd.s32 4294967295, %s21595_s29   ;;  %s21695_s30 = sadd.s32 1, %s21595_s29   ;;  %s21595_s29 = sphi %s21680_s29, %s30333_s29   ;;  %s21591_s28 = sphi %s21678_s28, %s30332_s28   ;;  %s21587_s27 = sphi %s21676_s27, %s30331_s27  }
   0x6   : > { %s30_s14 = ssub.s32 %s21595_s29, %s21695_s30  ;;  %s33_s15 = sadd.s32 1, %s21591_s28 }
   0x7   : > { %p31_p0 = scmp.eq.s32.totalorder %s30_s14, 0  ;;  %p40_p1 = scmp.ne.s32.totalorder %s21591_s28, %s21587_s27 }
   0x8   : > { %p41_p2 = scmp.eq.s32.totalorder %s21595_s29, 0  ;;  %p322_p3 = scmp.eq.s32.totalorder %s21692_s12, 1 }
   0x9   : > { %s21705_s16 = scalar_select %p31_p0, %s21591_s28, %s33_s15  }
   0xa   : > { %p21707_p4 = por %p41_p2, %p40_p1  ;;  %p21711_p5 = por %p322_p3, %p40_p1 }
   0xb   : > { %p13490_p6 = scmp.ge.s32.totalorder %s21595_s29, 1  ;;  %p335_p7 = scmp.lt.s32.totalorder %s21595_s29, 3 }
   0xc   : > { %s29339_s17 = scalar_select %p21707_p4, 1, 0 }
   0xd   : > { %s29340_s18 = scalar_select %p21711_p5, 1, 0 }
   0xe   : > { %p28807_p8 = scmp.eq.s32.totalorder %s21692_s12, 0  ;;  %p21718_p9 = pnand %p13490_p6, %p335_p7 }
   0xf   : > { %s375_s22 = sshll.u32 %s28803_s10, 4  ;;  %s386_s25 = sshll.u32 %s28804_s11, 4  ;;  %s376_s22 = int_to_ptr.vmem [resolvable:$true] %s375_s22  ;;  %s387_s25 = int_to_ptr.vmem [resolvable:$true] %s386_s25 }
  0x10   : > { %s29341_s19 = scalar_select %p21718_p9, 1, 0 }
  0x11   : > { %p19851_p10 = pneg %p21718_p9  ;;  %s21535_s14 = scalar_lea.vmem %s376_s22, 128 }
  0x12   : > { %p21536_p12 = scmp.ne.s32.totalorder %s376_s22, %s21535_s14  ;;  %p21543_p2 = scmp.lt.s32.totalorder %s376_s22, %s376_s22 }
  0x13   : > { %p21732_p11 = pnand %p28807_p8, %p19851_p10  ;;  %p21544_p3 = scmp.lt.s32.totalorder %s21535_s14, %s21535_s14 }
  0x15   : > { %p21537_p13 = pneg %p21732_p11  ;;  %p21545_p6 = por %p21544_p3, %p21543_p2 }
  0x17   : > { %p21538_p0 = pnand %p21537_p13, %p21536_p12 }
  0x19   : > { %p21539_p1 = pneg %p21538_p0 }
  0x1b   : > { %p21546_p7 = pnand %p21545_p6, %p21539_p1 }
  0x1d   : > { %21549 = shalt.err (!%p21546_p7)
}
  0x1e   : > { %s21597_s15 = smov [#allocation5]   ;;  %s21550_s20 = scalar_lea.vmem %s387_s25, 16 }
  0x1f   : > { %19854 = dma.vmem_to_smem (!%p21732_p11), %s376_s22, 128, %s21597_s15, [#allocation6]  }
  0x20   : > { %p21551_p10 = scmp.ne.s32.totalorder %s387_s25, %s21550_s20  ;;  %p21558_p9 = scmp.lt.s32.totalorder %s387_s25, %s387_s25 }
  0x21   : > { %p21559_p4 = scmp.lt.s32.totalorder %s21550_s20, %s21550_s20 }
  0x22   : > { %p21553_p8 = pnand %p21551_p10, %p21537_p13 }
  0x23   : > { %p21560_p12 = por %p21559_p4, %p21558_p9 }
  0x24   : > { %p21554_p5 = pneg %p21553_p8 }
  0x26   : > { %p21561_p0 = pnand %p21560_p12, %p21554_p5 }
  0x28   : > { %21564 = shalt.err (!%p21561_p0)
}
  0x29   : > { %s21598_s21 = smov [#allocation7]   ;;  %p13493_p1 = scmp.ge.s32.totalorder %s21595_s29, 2 }
  0x2a   : > { %19857 = dma.vmem_to_smem (!%p21732_p11), %s387_s25, 16, %s21598_s21, [#allocation8]  }
  0x2b   : > { %396 = sbr.rel (%p13493_p1) target bundleno = 57 (0x39), region = 64  ;;  %p29343_p2 = scmp.ne.s32.totalorder (!%p13493_p1), %s29339_s17, 0 }
  0x32   : > { %399 = sbr.rel (!%p29343_p2) target bundleno = 57 (0x39), region = 68  ;;  %s401_s22 = sand.u32 (%p29343_p2), 1, %s21591_s28  }
  0x33   : > { %s13494_s23 = sshll.u32 (%p29343_p2), %s21595_s29, 3  ;;  %s19840_s24 = smul.u32 (%p29343_p2), 48, %s401_s22 }
  0x34   : > { %s405_s20 = scalar_lea.vmem (%p29343_p2), %s28793_s0, %s13494_s23 }
  0x35   : > { %v443_v0 = vld [vmem:[%s405_s20] sm:$0xff] (%p29343_p2)  ;;  %v445_v1 = vld [vmem:[%s405_s20 + $0x10] sm:$0xff] (%p29343_p2)  ;;  %s403_s25 = scalar_lea.vmem (%p29343_p2), [#allocation4], %s19840_s24 }
  0x36   : > { %v447_v2 = vld [vmem:[%s405_s20 + $0x20] sm:$0xff] (%p29343_p2)  ;;  %v449_v3 = vld [vmem:[%s405_s20 + $0x30] sm:$0xff] (%p29343_p2)  ;;  %444 = vst [vmem:[%s403_s25] sm:$0xff] (%p29343_p2), %v443_v0  ;;  %446 = vst [vmem:[%s403_s25 + $0x8] sm:$0xff] (%p29343_p2), %v445_v1 }
  0x37   : > { %v451_v4 = vld [vmem:[%s405_s20 + $0x40] sm:$0xff] (%p29343_p2)  ;;  %v453_v5 = vld [vmem:[%s405_s20 + $0x50] sm:$0xff] (%p29343_p2)  ;;  %448 = vst [vmem:[%s403_s25 + $0x10] sm:$0xff] (%p29343_p2), %v447_v2  ;;  %450 = vst [vmem:[%s403_s25 + $0x18] sm:$0xff] (%p29343_p2), %v449_v3 }
  0x38   : > { %452 = vst [vmem:[%s403_s25 + $0x20] sm:$0xff] (%p29343_p2), %v451_v4  ;;  %454 = vst [vmem:[%s403_s25 + $0x28] sm:$0xff] (%p29343_p2), %v453_v5 }
  0x39 PF: > { %p29344_p4 = scmp.ne.s32.totalorder %s29341_s19, 0 }
  0x3b   : > { %463 = sbr.rel (%p29344_p4) target bundleno = 4990 (0x137e), region = 106 }
  0x42   : > { %s466_s29 = sand.u32 1, %s21587_s27   ;;  %p29345_p5 = scmp.eq.s32.totalorder %s21692_s12, 0 }
  0x43   : > { %s19841_s17 = smul.u32 48, %s466_s29 }
  0x45   : > { %s21755_s26 = scalar_lea.vmem [#allocation4], %s19841_s17 }
  0x46   : > { %21578 = dma.done.wait (%p29345_p5), [#allocation6], 128   ;;  %p29346_p8 = pmov %p29345_p5 }
  0x47   : > { %p29347_p9 = pmov %p29345_p5 }
  0x48   : > { %21580 = vsyncadd (%p29346_p8), [#allocation6], 4294967168 }
  0x49   : > { %21582 = dma.done.wait (%p29347_p9), [#allocation8], 16   ;;  %p29348_p11 = pmov %p29345_p5 }
  0x4b   : > { %21584 = vsyncadd (%p29348_p11), [#allocation8], 4294967280 }
  0x4c   : > { %480 = sfence }
  0x4d   : > { %v19892_v6 = vld [vmem:[%s28794_s1 + $0x4] ss:$12 sps:$4 sm:$0xff]   ;;  %v19894_v7 = vld [vmem:[%s28794_s1] ss:$12 sps:$4 sm:$0xff]   ;;  %v19895_v8 = vld [vmem:[%s28794_s1 + $0x1c] ss:$12 sps:$4 sm:$0xff]  }
  0x4e   : > { %14159 = vmatprep.subr.bf16.mxu0 %v19892_v6  ;;  %v28811_v9 = vmov 0.0   ;;  %v19897_v10 = vld [vmem:[%s28794_s1 + $0x18] ss:$12 sps:$4 sm:$0xff]   ;;  %v19898_v11 = vld [vmem:[%s28794_s1 + $0x34] ss:$12 sps:$4 sm:$0xff]   ;;  %vm610_vm0 = vcmask 883712  }
  0x4f   : > { %703 = vmatprep.mubr.f32.mxu0 %v28811_v9  ;;  %14161 = vmatpush1.bf16.msra.mxu0 %v19894_v7  ;;  %v19900_v12 = vld [vmem:[%s28794_s1 + $0x30] ss:$12 sps:$4 sm:$0xff]   ;;  %v19901_v13 = vld [vmem:[%s28794_s1 + $0x4c] ss:$12 sps:$4 sm:$0xff]   ;;  %v19903_v14 = vld [vmem:[%s28794_s1 + $0x48] ss:$12 sps:$4 sm:$0xff]  }
  0x50   : > { %14163 = vmatprep.subr.bf16.mxu0 %v19895_v8  ;;  %v19912_v15 = vld [vmem:[%s28794_s1 + $0x8] ss:$12 sps:$4 sm:$0xff]   ;;  %v19914_v17 = vld [vmem:[%s28794_s1 + $0x20] ss:$12 sps:$4 sm:$0xff]   ;;  %v19904_v18 = vld [vmem:[%s28794_s1 + $0x64] ss:$12 sps:$4 sm:$0xff]  }
  0x51   : > { %v517_v16 = vld [vmem:[%s21755_s26] sm:$0xff]  ;;  %14189 = vmatprep.subr.bf16.mxu1 %v19912_v15  ;;  %v19907_v21 = vld [vmem:[%s28794_s1 + $0x7c] ss:$12 sps:$4 sm:$0xff]   ;;  %vm629_vm1 = vcmask 1043456   ;;  %vm21600_vm2 = vmmov 1   ;;  %v519_v37 = vld [vmem:[%s21755_s26 + $0x10] sm:$0xff] }
  0x52   : > { %14060 = vmatprep.mubr.msk.f32.mxu1 %vm610_vm0, %v517_v16  ;;  %14191 = vmatpush3.bf16.msra.mxu1 %v19912_v15  ;;  %v19915_v19 = vld [vmem:[%s28794_s1 + $0x38] ss:$12 sps:$4 sm:$0xff]   ;;  %v19906_v20 = vld [vmem:[%s28794_s1 + $0x60] ss:$12 sps:$4 sm:$0xff]   ;;  %v19916_v22 = vld [vmem:[%s28794_s1 + $0x50] ss:$12 sps:$4 sm:$0xff]  }
  0x53   : > { %14165 = vmatpush1.bf16.msra.mxu0 %v19897_v10  ;;  %14193 = vmatprep.subr.bf16.mxu1 %v19914_v17  ;;  %v19909_v23 = vld [vmem:[%s28794_s1 + $0x78] ss:$12 sps:$4 sm:$0xff]   ;;  %v19910_v24 = vld [vmem:[%s28794_s1 + $0x94] ss:$12 sps:$4 sm:$0x3f]   ;;  %vm21819_vm3 = vmpackc.low %vm629_vm1, %vm21600_vm2  ;;  %vm1565_vm4 = vcmask 261120  }
  0x54   : > { %14167 = vmatprep.subr.bf16.mxu0 %v19898_v11  ;;  %v19917_v26 = vld [vmem:[%s28794_s1 + $0x68] ss:$12 sps:$4 sm:$0xff]   ;;  %v19913_v27 = vld [vmem:[%s28794_s1 + $0x90] ss:$12 sps:$4 sm:$0x3f]   ;;  %vm21602_vm5 = vmmov 0  }
  0x55   : > { %v19920_v28 = vld [vmem:[%s28798_s5 + $0x4] ss:$48 sps:$4 sm:$0xff]   ;;  %v19918_v29 = vld [vmem:[%s28794_s1 + $0x80] ss:$12 sps:$4 sm:$0xff]   ;;  %v19925_v40 = vld [vmem:[%s28798_s5 + $0x8] ss:$48 sps:$4 sm:$0xff]  }
  0x56   : > { %14195 = vmatpush3.bf16.msra.mxu1 %v19914_v17  ;;  %v19922_v30 = vld [vmem:[%s28798_s5] ss:$48 sps:$4 sm:$0xff]   ;;  %v19926_v31 = vld [vmem:[%s28798_s5 + $0x64] ss:$48 sps:$4 sm:$0xff]   ;;  %v518_v33 = vld [vmem:[%s21755_s26 + $0x8] sm:$0xff]  ;;  %s12834_s22 = sld [smem:[#allocation5]] }
  0x57   : > { %14169 = vmatpush1.bf16.msra.mxu0 %v19900_v12  ;;  %14197 = vmatprep.subr.bf16.mxu1 %v19915_v19  ;;  %v19919_v32 = vld [vmem:[%s28794_s1 + $0x98] ss:$12 sps:$4 sm:$0x3f]   ;;  %v19928_v34 = vld [vmem:[%s28798_s5 + $0x60] ss:$48 sps:$4 sm:$0xff]   ;;  %s13680_s23 = sld [smem:[#allocation5 + $0x80]] }
  0x58   : > { %14171 = vmatprep.subr.bf16.mxu0 %v19901_v13  ;;  %v19932_v35 = vld [vmem:[%s28798_s5 + $0xc4] ss:$48 sps:$4 sm:$0xff]   ;;  %v19923_v36 = vld [vmem:[%s28798_s5 + $0xc] ss:$48 sps:$4 sm:$0xff]   ;;  %v19934_v38 = vld [vmem:[%s28798_s5 + $0xc0] ss:$48 sps:$4 sm:$0xff]  }
  0x59   : > { %v19938_v39 = vld [vmem:[%s28798_s5 + $0x124] ss:$48 sps:$4 sm:$0xff]   ;;  %v19929_v41 = vld [vmem:[%s28798_s5 + $0x6c] ss:$48 sps:$4 sm:$0xff]   ;;  %v19940_v43 = vld [vmem:[%s28798_s5 + $0x120] ss:$48 sps:$4 sm:$0xff]  }
  0x5a   : > { %14199 = vmatpush3.bf16.msra.mxu1 %v19915_v19  ;;  %v520_v42 = vld [vmem:[%s21755_s26 + $0x18] sm:$0xff]  ;;  %v19944_v44 = vld [vmem:[%s28798_s5 + $0x184] ss:$48 sps:$4 sm:$0xff]   ;;  %v19946_v48 = vld [vmem:[%s28798_s5 + $0x180] ss:$48 sps:$4 sm:$0xff]   ;;  %s13694_s24 = sld [smem:[#allocation5 + $0x180]] }
  0x5b   : > { %14173 = vmatpush1.bf16.msra.mxu0 %v19903_v14  ;;  %14201 = vmatprep.subr.bf16.mxu1 %v19916_v22  ;;  %v19931_v45 = vld [vmem:[%s28798_s5 + $0x68] ss:$48 sps:$4 sm:$0xff]   ;;  %v19935_v46 = vld [vmem:[%s28798_s5 + $0xcc] ss:$48 sps:$4 sm:$0xff]   ;;  %v521_v47 = vld [vmem:[%s21755_s26 + $0x20] sm:$0xff]  ;;  %s13701_s14 = sld [smem:[#allocation5 + $0x200]] }
  0x5c   : > { %14175 = vmatprep.subr.bf16.mxu0 %v19904_v18  ;;  %v19950_v49 = vld [vmem:[%s28798_s5 + $0x1e4] ss:$48 sps:$4 sm:$0xff]   ;;  %v19937_v50 = vld [vmem:[%s28798_s5 + $0xc8] ss:$48 sps:$4 sm:$0xff]   ;;  %v19941_v51 = vld [vmem:[%s28798_s5 + $0x12c] ss:$48 sps:$4 sm:$0xff]  }
  0x5d   : > { %v522_v52 = vld [vmem:[%s21755_s26 + $0x28] sm:$0xff]  ;;  %v19952_v53 = vld [vmem:[%s28798_s5 + $0x1e0] ss:$48 sps:$4 sm:$0xff]   ;;  %v19956_v54 = vld [vmem:[%s28798_s5 + $0x244] ss:$48 sps:$4 sm:$0xff]   ;;  %s13687_s26 = sld [smem:[#allocation5 + $0x100]] }
  0x5e   : > { %14203 = vmatpush3.bf16.msra.mxu1 %v19916_v22  ;;  %v19943_v55 = vld [vmem:[%s28798_s5 + $0x128] ss:$48 sps:$4 sm:$0xff]   ;;  %v19947_v56 = vld [vmem:[%s28798_s5 + $0x18c] ss:$48 sps:$4 sm:$0xff]   ;;  %v19958_v57 = vld [vmem:[%s28798_s5 + $0x240] ss:$48 sps:$4 sm:$0xff]  }
  0x5f   : > { %14177 = vmatpush1.bf16.msra.mxu0 %v19906_v20  ;;  %14205 = vmatprep.subr.bf16.mxu1 %v19917_v26  ;;  %v19962_v58 = vld [vmem:[%s28798_s5 + $0x2a4] ss:$48 sps:$4 sm:$0xff]   ;;  %v19949_v59 = vld [vmem:[%s28798_s5 + $0x188] ss:$48 sps:$4 sm:$0xff]   ;;  %v19953_v60 = vld [vmem:[%s28798_s5 + $0x1ec] ss:$48 sps:$4 sm:$0xff]  }
  0x60   : > { %14179 = vmatprep.subr.bf16.mxu0 %v19907_v21  ;;  %v19964_v61 = vld [vmem:[%s28798_s5 + $0x2a0] ss:$48 sps:$4 sm:$0xff]   ;;  %v19968_v62 = vld [vmem:[%s28798_s5 + $0x304] ss:$48 sps:$4 sm:$0xff]   ;;  %v19955_v63 = vld [vmem:[%s28798_s5 + $0x1e8] ss:$48 sps:$4 sm:$0xff]  }
  0x61   : > { %v19959_v0 = vld [vmem:[%s28798_s5 + $0x24c] ss:$48 sps:$4 sm:$0xff]   ;;  %v19970_v1 = vld [vmem:[%s28798_s5 + $0x300] ss:$48 sps:$4 sm:$0xff]   ;;  %v19974_v2 = vld [vmem:[%s28798_s5 + $0x364] ss:$48 sps:$4 sm:$0xff]  }
  0x62   : > { %14207 = vmatpush3.bf16.msra.mxu1 %v19917_v26  ;;  %v19961_v3 = vld [vmem:[%s28798_s5 + $0x248] ss:$48 sps:$4 sm:$0xff]   ;;  %v19965_v4 = vld [vmem:[%s28798_s5 + $0x2ac] ss:$48 sps:$4 sm:$0xff]   ;;  %v19976_v5 = vld [vmem:[%s28798_s5 + $0x360] ss:$48 sps:$4 sm:$0xff]  }
  0x63   : > { %14181 = vmatpush1.bf16.msra.mxu0 %v19909_v23  ;;  %14209 = vmatprep.subr.bf16.mxu1 %v19918_v29  ;;  %v19980_v6 = vld [vmem:[%s28798_s5 + $0x3c4] ss:$48 sps:$4 sm:$0xff]   ;;  %v19967_v7 = vld [vmem:[%s28798_s5 + $0x2a8] ss:$48 sps:$4 sm:$0xff]   ;;  %v19971_v8 = vld [vmem:[%s28798_s5 + $0x30c] ss:$48 sps:$4 sm:$0xff]  }
  0x64   : > { %14184 = vmatprep.subr.msk.bf16.mxu0 %vm21819_vm3, %v19910_v24  ;;  %v19982_v10 = vld [vmem:[%s28798_s5 + $0x3c0] ss:$48 sps:$4 sm:$0xff]   ;;  %v19986_v11 = vld [vmem:[%s28798_s5 + $0x424] ss:$48 sps:$4 sm:$0xff]   ;;  %v19973_v12 = vld [vmem:[%s28798_s5 + $0x308] ss:$48 sps:$4 sm:$0xff]  }
  0x65   : > { %v19977_v13 = vld [vmem:[%s28798_s5 + $0x36c] ss:$48 sps:$4 sm:$0xff]   ;;  %v19988_v14 = vld [vmem:[%s28798_s5 + $0x420] ss:$48 sps:$4 sm:$0xff]   ;;  %v19992_v15 = vld [vmem:[%s28798_s5 + $0x484] ss:$48 sps:$4 sm:$0xff]  }
  0x66   : > { %14211 = vmatpush3.bf16.msra.mxu1 %v19918_v29  ;;  %v19983_v17 = vld [vmem:[%s28798_s5 + $0x3cc] ss:$48 sps:$4 sm:$0xff]   ;;  %v19994_v18 = vld [vmem:[%s28798_s5 + $0x480] ss:$48 sps:$4 sm:$0xff]   ;;  %v19998_v19 = vld [vmem:[%s28798_s5 + $0x4e4] ss:$48 sps:$4 sm:$0xff]  }
  0x67   : > { %14187 = vmatpush1.bf16.msk.msra.mxu0 %vm21819_vm3, %v19913_v27  ;;  %14214 = vmatprep.subr.msk.bf16.mxu1 %vm21819_vm3, %v19919_v32  ;;  %v19985_v20 = vld [vmem:[%s28798_s5 + $0x3c8] ss:$48 sps:$4 sm:$0xff]   ;;  %v19989_v21 = vld [vmem:[%s28798_s5 + $0x42c] ss:$48 sps:$4 sm:$0xff]   ;;  %v20000_v22 = vld [vmem:[%s28798_s5 + $0x4e0] ss:$48 sps:$4 sm:$0xff]  }
  0x68   : > { %14219 = vmatprep.subr.bf16.mxu0 %v19920_v28  ;;  %v20004_v23 = vld [vmem:[%s28798_s5 + $0x544] ss:$48 sps:$4 sm:$0xff]   ;;  %v19991_v24 = vld [vmem:[%s28798_s5 + $0x428] ss:$48 sps:$4 sm:$0xff]   ;;  %v19995_v25 = vld [vmem:[%s28798_s5 + $0x48c] ss:$48 sps:$4 sm:$0xff]  }
  0x69   : > { %v20006_v26 = vld [vmem:[%s28798_s5 + $0x540] ss:$48 sps:$4 sm:$0xff]   ;;  %v19997_v27 = vld [vmem:[%s28798_s5 + $0x488] ss:$48 sps:$4 sm:$0xff]   ;;  %v20001_v28 = vld [vmem:[%s28798_s5 + $0x4ec] ss:$48 sps:$4 sm:$0xff]  }
  0x6a   : > { %13500 = vmatmul.mubr.msk.f32.vlgmr.msra.gmra.mrb[0].mxu0 %vm610_vm0, %v517_v16  ;;  %14217 = vmatpush3.bf16.msk.msra.mxu1 %vm21819_vm3, %v19919_v32  ;;  %v19979_v16 = vld [vmem:[%s28798_s5 + $0x368] ss:$48 sps:$4 sm:$0xff]   ;;  %v20010_v32 = vld [vmem:[%s28798_s5 + $0x5a4] ss:$48 sps:$4 sm:$0xff]   ;;  %s13675_s15 = sld [smem:[#allocation5 + $0x1]]  ;;  %s28556_s21 = sld [smem:[#allocation5 + $0x2]] }
  0x6b   : > { %709 = vmatprep.mubr.f32.mxu0 %v28811_v9  ;;  %14221 = vmatpush1.bf16.msra.mxu0 %v19922_v30  ;;  %v20003_v29 = vld [vmem:[%s28798_s5 + $0x4e8] ss:$48 sps:$4 sm:$0xff]   ;;  %v20007_v30 = vld [vmem:[%s28798_s5 + $0x54c] ss:$48 sps:$4 sm:$0xff]   ;;  %s13681_s20 = sld [smem:[#allocation5 + $0x81]]  ;;  %vm13347_vm6 = vcmask 72704  }
  0x6c   : > { %14223 = vmatprep.subr.bf16.mxu0 %v19926_v31  ;;  %14291 = vmatprep.subr.bf16.mxu1 %v19923_v36  ;;  %v20009_v31 = vld [vmem:[%s28798_s5 + $0x548] ss:$48 sps:$4 sm:$0xff]   ;;  %v20016_v36 = vld [vmem:[%s28798_s5 + $0x604] ss:$48 sps:$4 sm:$0xff]   ;;  %s13688_s25 = sld [smem:[#allocation5 + $0x101]]  ;;  %p30330_p13 = scmp.ne.s32.totalorder %s29340_s18, 0 }
  0x6d   : > { %14061 = vmatmul.mubr.msk.f32.vlgmr.msra.gmra.mrb[0].mxu1 %vm610_vm0, %v518_v33  ;;  %s13695_s17 = sld [smem:[#allocation5 + $0x181]]  ;;  %s13713_s27 = sshll.u32 (%p30330_p13), %s21692_s12, 3 }
  0x6e   : > { %13501 = vmatmul.mubr.msk.f32.gmra.mrb[2].mxu0 %vm610_vm0, %v518_v33  ;;  %14063 = vmatprep.mubr.msk.f32.mxu1 %vm610_vm0, %v519_v37  ;;  %v20013_v33 = vld [vmem:[%s28798_s5 + $0x5ac] ss:$48 sps:$4 sm:$0xff]   ;;  %s28546_s19 = sld [smem:[#allocation5 + $0x201]] }
  0x6f   : > { %715 = vmatprep.mubr.f32.mxu0 %v28811_v9  ;;  %14225 = vmatpush1.bf16.msra.mxu0 %v19928_v34  ;;  %v20012_v34 = vld [vmem:[%s28798_s5 + $0x5a0] ss:$48 sps:$4 sm:$0xff]  }
  0x70   : > { %14227 = vmatprep.subr.bf16.mxu0 %v19932_v35  ;;  %14293 = vmatpush1.bf16.msra.mxu1 %v19925_v40  ;;  %v20015_v35 = vld [vmem:[%s28798_s5 + $0x5a8] ss:$48 sps:$4 sm:$0xff]  }
  0x71   : > { %14295 = vmatprep.subr.bf16.mxu1 %v19929_v41  ;;  %14064 = vmatmul.mubr.msk.f32.gmra.mrb[2].mxu1 %vm610_vm0, %v520_v42  ;;  %v22070_v41 = vld [vmem:[%s28795_s2] sm:$0x7] }
  0x72   : > { %13502 = vmatmul.mubr.msk.f32.gmra.mrb[4].mxu0 %vm610_vm0, %v519_v37  ;;  %14066 = vmatprep.mubr.msk.f32.mxu1 %vm610_vm0, %v521_v47  ;;  %v20022_v37 = vld [vmem:[%s28798_s5 + $0x60c] ss:$48 sps:$4 sm:$0xff]  }
  0x73   : > { %721 = vmatprep.mubr.f32.mxu0 %v28811_v9  ;;  %14229 = vmatpush1.bf16.msra.mxu0 %v19934_v38  ;;  %v595_v38 = vlaneseq }
  0x74   : > { %14231 = vmatprep.subr.bf16.mxu0 %v19938_v39  ;;  %14297 = vmatpush1.bf16.msra.mxu1 %v19931_v45 }
  0x75   : > { %14299 = vmatprep.subr.bf16.mxu1 %v19935_v46  ;;  %14067 = vmatmul.mubr.msk.f32.gmra.mrb[4].mxu1 %vm610_vm0, %v522_v52  ;;  %v22062_v39 = vshrl.u32 %v595_v38, 7 }
  0x76   : > { %13503 = vmatmul.mubr.msk.f32.gmra.mrb[6].mxu0 %vm610_vm0, %v520_v42 }
  0x77   : > { %727 = vmatprep.mubr.f32.mxu0 %v28811_v9  ;;  %14233 = vmatpush1.bf16.msra.mxu0 %v19940_v43  ;;  %v22065_v40 = vsub.s32 0, %v22062_v39  ;;  %v22073_v42 = vsub.s32 1, %v22062_v39 }
  0x78   : > { %14235 = vmatprep.subr.bf16.mxu0 %v19944_v44  ;;  %14301 = vmatpush1.bf16.msra.mxu1 %v19937_v50 }
  0x79   : > { %14303 = vmatprep.subr.bf16.mxu1 %v19941_v51  ;;  %v22077_v43 = vrot.slane %v22070_v41, %v22065_v40  ;;  %v22081_v44 = vrot.slane %v22070_v41, %v22073_v42  ;;  %v20018_v51 = vld [vmem:[%s28798_s5 + $0x600] ss:$48 sps:$4 sm:$0xff]  }
  0x7a   : > { %13504 = vmatmul.mubr.msk.f32.gmra.mrb[8].mxu0 %vm610_vm0, %v521_v47 }
  0x7b   : > { %733 = vmatprep.mubr.f32.mxu0 %v28811_v9  ;;  %14237 = vmatpush1.bf16.msra.mxu0 %v19946_v48 }
  0x7c   : > { %14239 = vmatprep.subr.bf16.mxu0 %v19950_v49  ;;  %14305 = vmatpush1.bf16.msra.mxu1 %v19943_v55 }
  0x7d   : > { %14307 = vmatprep.subr.bf16.mxu1 %v19947_v56  ;;  %v20019_v56 = vld [vmem:[%s28798_s5 + $0x664] ss:$48 sps:$4 sm:$0xff]  }
  0x7e   : > { %13505 = vmatmul.mubr.msk.f32.gmra.mrb[10].mxu0 %vm610_vm0, %v522_v52  ;;  %v20024_v52 = vld [vmem:[%s28798_s5 + $0x608] ss:$48 sps:$4 sm:$0xff]  }
  0x7f   : > { %14241 = vmatpush1.bf16.msra.mxu0 %v19952_v53 }
  0x80   : > { %14243 = vmatprep.subr.bf16.mxu0 %v19956_v54  ;;  %14309 = vmatpush1.bf16.msra.mxu1 %v19949_v59 }
  0x81   : > { %14311 = vmatprep.subr.bf16.mxu1 %v19953_v60 }
  0x83   : > { %14245 = vmatpush1.bf16.msra.mxu0 %v19958_v57  ;;  %v20025_v57 = vld [vmem:[%s28798_s5 + $0x66c] ss:$48 sps:$4 sm:$0xff]  }
  0x84   : > { %14247 = vmatprep.subr.bf16.mxu0 %v19962_v58  ;;  %14313 = vmatpush1.bf16.msra.mxu1 %v19955_v63 }
  0x85   : > { %14315 = vmatprep.subr.bf16.mxu1 %v19959_v0 }
  0x87   : > { %14249 = vmatpush1.bf16.msra.mxu0 %v19964_v61  ;;  %v20021_v61 = vld [vmem:[%s28798_s5 + $0x660] ss:$48 sps:$4 sm:$0xff]  }
  0x88   : > { %14251 = vmatprep.subr.bf16.mxu0 %v19968_v62  ;;  %14317 = vmatpush1.bf16.msra.mxu1 %v19961_v3  ;;  %v20027_v62 = vld [vmem:[%s28798_s5 + $0x668] ss:$48 sps:$4 sm:$0xff]   ;;  %v20031_v3 = vld [vmem:[%s28798_s5 + $0x1c] ss:$48 sps:$4 sm:$0xff]  }
  0x89   : > { %14319 = vmatprep.subr.bf16.mxu1 %v19965_v4 }
  0x8b   : > { %14253 = vmatpush1.bf16.msra.mxu0 %v19970_v1 }
  0x8c   : > { %14255 = vmatprep.subr.bf16.mxu0 %v19974_v2  ;;  %14321 = vmatpush1.bf16.msra.mxu1 %v19967_v7  ;;  %v20028_v2 = vld [vmem:[%s28798_s5 + $0x14] ss:$48 sps:$4 sm:$0xff]  }
  0x8d   : > { %14323 = vmatprep.subr.bf16.mxu1 %v19971_v8 }
  0x8f   : > { %14257 = vmatpush1.bf16.msra.mxu0 %v19976_v5 }
  0x90   : > { %14259 = vmatprep.subr.bf16.mxu0 %v19980_v6  ;;  %14325 = vmatpush1.bf16.msra.mxu1 %v19973_v12 }
  0x91   : > { %14327 = vmatprep.subr.bf16.mxu1 %v19977_v13 }
  0x93   : > { %14261 = vmatpush1.bf16.msra.mxu0 %v19982_v10 }
  0x94   : > { %14263 = vmatprep.subr.bf16.mxu0 %v19986_v11  ;;  %14329 = vmatpush1.bf16.msra.mxu1 %v19979_v16 }
  0x95   : > { %14331 = vmatprep.subr.bf16.mxu1 %v19983_v17 }
  0x97   : > { %14265 = vmatpush1.bf16.msra.mxu0 %v19988_v14 }
  0x98   : > { %14267 = vmatprep.subr.bf16.mxu0 %v19992_v15  ;;  %14333 = vmatpush1.bf16.msra.mxu1 %v19985_v20  ;;  %v22140_v15 = vsub.s32 2, %v22062_v39 }
  0x99   : > { %14335 = vmatprep.subr.bf16.mxu1 %v19989_v21 }
  0x9b   : > { %14269 = vmatpush1.bf16.msra.mxu0 %v19994_v18 }
  0x9c   : > { %14271 = vmatprep.subr.bf16.mxu0 %v19998_v19  ;;  %14337 = vmatpush1.bf16.msra.mxu1 %v19991_v24  ;;  %v22156_v24 = vrot.slane %v22070_v41, %v22140_v15  ;;  %v20034_v41 = vld [vmem:[%s28798_s5 + $0x74] ss:$48 sps:$4 sm:$0xff]  }
  0x9d   : > { %14339 = vmatprep.subr.bf16.mxu1 %v19995_v25 }
  0x9f   : > { %14273 = vmatpush1.bf16.msra.mxu0 %v20000_v22 }
  0xa0   : > { %14275 = vmatprep.subr.bf16.mxu0 %v20004_v23  ;;  %14341 = vmatpush1.bf16.msra.mxu1 %v19997_v27 }
  0xa1   : > { %14343 = vmatprep.subr.bf16.mxu1 %v20001_v28 }
  0xa3   : > { %14277 = vmatpush1.bf16.msra.mxu0 %v20006_v26 }
  0xa4   : > { %14345 = vmatpush1.bf16.msra.mxu1 %v20003_v29  ;;  %14279 = vmatprep.subr.bf16.mxu0 %v20010_v32 }
  0xa5   : > { %14347 = vmatprep.subr.bf16.mxu1 %v20007_v30 }
  0xa7   : > { %14281 = vmatpush1.bf16.msra.mxu0 %v20012_v34 }
  0xa8   : > { %14349 = vmatpush1.bf16.msra.mxu1 %v20009_v31  ;;  %14283 = vmatprep.subr.bf16.mxu0 %v20016_v36  ;;  %v20030_v36 = vld [vmem:[%s28798_s5 + $0x10] ss:$48 sps:$4 sm:$0xff]  }
  0xa9   : > { %14351 = vmatprep.subr.bf16.mxu1 %v20013_v33 }
  0xac   : > { %14353 = vmatpush1.bf16.msra.mxu1 %v20015_v35 }
  0xad   : > { %14355 = vmatprep.subr.bf16.mxu1 %v20022_v37  ;;  %v20033_v37 = vld [vmem:[%s28798_s5 + $0x18] ss:$48 sps:$4 sm:$0xff]  }
 0x13d   : > { %v705_v45 = vpop.f32.mrb[0].mxu0 }
 0x13e   : > { %v706_v46 = vadd.f32 %v705_v45, %v22077_v43  ;;  %v707_v47 = vpop.f32.mrb[1].mxu0  ;;  %v20036_v45 = vld [vmem:[%s28798_s5 + $0x70] ss:$48 sps:$4 sm:$0xff]  }
 0x13f   : > { %v708_v48 = vadd.f32 %v707_v47, %v22081_v44 }
 0x140   : > { %v22093_v53 = vmax.f32 %v706_v46, 0.0  ;;  %v14062_v5 = vpop.f32.mrb[0].mxu1  ;;  %v20039_v46 = vld [vmem:[%s28798_s5 + $0x78] ss:$48 sps:$4 sm:$0xff]  }
 0x141   : > { %v22085_v49 = vmax.f32 %v708_v48, 0.0  ;;  %v711_v50 = vpop.f32.mrb[2].mxu0  ;;  %v806_v6 = vpop.f32.mrb[1].mxu1  ;;  %v812_v38 = vadd.f32 %v14062_v5, %v22156_v24  ;;  %v20040_v48 = vld [vmem:[%s28798_s5 + $0xd4] ss:$48 sps:$4 sm:$0xff]  }
 0x142   : > { %v712_v54 = vadd.f32 %v711_v50, %v22077_v43  ;;  %v713_v55 = vpop.f32.mrb[3].mxu0  ;;  %v807_v32 = vadd.f32 %v806_v6, %v22156_v24  ;;  %v20043_v50 = vld [vmem:[%s28798_s5 + $0xdc] ss:$48 sps:$4 sm:$0xff]   ;;  %v20057_v5 = vld [vmem:[%s28798_s5 + $0x198] ss:$48 sps:$4 sm:$0xff]  }
 0x143   : > { %v714_v58 = vadd.f32 %v713_v55, %v22081_v44  ;;  %1648 = vmatprep.mubr.f32.mxu0 %v22085_v49  ;;  %1850 = vmatprep.mubr.f32.mxu1 %v22085_v49  ;;  %v22205_v47 = vmax.f32 %v812_v38, 0.0  ;;  %v20045_v55 = vld [vmem:[%s28798_s5 + $0xd8] ss:$48 sps:$4 sm:$0xff]   ;;  %v20058_v6 = vld [vmem:[%s28798_s5 + $0x1f4] ss:$48 sps:$4 sm:$0xff]  }
 0x144   : > { %1649 = vmatmul.mubr.f32.vlgmr.msra.gmra.mrb[12].mxu0 %v22093_v53  ;;  %1851 = vmatmul.mubr.f32.vlgmr.msra.gmra.mrb[6].mxu1 %v22093_v53  ;;  %v22115_v63 = vmax.f32 %v712_v54, 0.0  ;;  %v14065_v14 = vpop.f32.mrb[2].mxu1  ;;  %v22175_v35 = vmax.f32 %v807_v32, 0.0  ;;  %v20042_v54 = vld [vmem:[%s28798_s5 + $0xd0] ss:$48 sps:$4 sm:$0xff]  }
 0x145   : > { %v22107_v59 = vmax.f32 %v714_v58, 0.0  ;;  %v717_v60 = vpop.f32.mrb[4].mxu0  ;;  %14285 = vmatpush1.bf16.msra.mxu0 %v20018_v51  ;;  %14357 = vmatpush1.bf16.msra.mxu1 %v20024_v52  ;;  %v816_v16 = vpop.f32.mrb[3].mxu1  ;;  %v822_v51 = vadd.f32 %v14065_v14, %v22156_v24  ;;  %v20064_v14 = vld [vmem:[%s28798_s5 + $0x254] ss:$48 sps:$4 sm:$0xff]  }
 0x146   : > { %v718_v0 = vadd.f32 %v717_v60, %v22077_v43  ;;  %v719_v1 = vpop.f32.mrb[5].mxu0  ;;  %14287 = vmatprep.subr.bf16.mxu0 %v20019_v56  ;;  %14359 = vmatprep.subr.bf16.mxu1 %v20025_v57  ;;  %v20046_v56 = vld [vmem:[%s28798_s5 + $0x134] ss:$48 sps:$4 sm:$0xff]   ;;  %v20049_v57 = vld [vmem:[%s28798_s5 + $0x13c] ss:$48 sps:$4 sm:$0xff]  }
 0x147   : > { %v720_v4 = vadd.f32 %v719_v1, %v22081_v44  ;;  %1654 = vmatprep.mubr.f32.mxu0 %v22107_v59  ;;  %1856 = vmatprep.mubr.f32.mxu1 %v22107_v59  ;;  %v22236_v58 = vmax.f32 %v822_v51, 0.0  ;;  %v20055_v1 = vld [vmem:[%s28798_s5 + $0x19c] ss:$48 sps:$4 sm:$0xff]   ;;  %v20088_v38 = vld [vmem:[%s28798_s5 + $0x3d4] ss:$48 sps:$4 sm:$0xff]  }
 0x148   : > { %1655 = vmatmul.mubr.f32.gmra.mrb[14].mxu0 %v22115_v63  ;;  %1857 = vmatmul.mubr.f32.gmra.mrb[8].mxu1 %v22115_v63  ;;  %v22131_v10 = vmax.f32 %v718_v0, 0.0  ;;  %v22150_v23 = vpop.f32.mrb[4].mxu1  ;;  %v20052_v0 = vld [vmem:[%s28798_s5 + $0x194] ss:$48 sps:$4 sm:$0xff]   ;;  %v20085_v32 = vld [vmem:[%s28798_s5 + $0x37c] ss:$48 sps:$4 sm:$0xff]  }
 0x149   : > { %v22129_v7 = vmax.f32 %v720_v4, 0.0  ;;  %v723_v8 = vpop.f32.mrb[6].mxu0  ;;  %14289 = vmatpush1.bf16.msra.mxu0 %v20021_v61  ;;  %14361 = vmatpush1.bf16.msra.mxu1 %v20027_v62  ;;  %v826_v25 = vpop.f32.mrb[5].mxu1  ;;  %v20048_v61 = vld [vmem:[%s28798_s5 + $0x130] ss:$48 sps:$4 sm:$0xff]  }
 0x14a   : > { %v724_v11 = vadd.f32 %v723_v8, %v22077_v43  ;;  %v725_v12 = vpop.f32.mrb[7].mxu0  ;;  %14363 = vmatprep.subr.bf16.mxu0 %v20028_v2  ;;  %14435 = vmatprep.subr.bf16.mxu1 %v20031_v3  ;;  %v827_v60 = vadd.f32 %v826_v25, %v22156_v24  ;;  %v20051_v62 = vld [vmem:[%s28798_s5 + $0x138] ss:$48 sps:$4 sm:$0xff]   ;;  %v832_v2 = vadd.f32 %v22150_v23, %v22156_v24  ;;  %v20054_v4 = vld [vmem:[%s28798_s5 + $0x190] ss:$48 sps:$4 sm:$0xff]  }
 0x14b   : > { %v726_v13 = vadd.f32 %v725_v12, %v22081_v44  ;;  %1660 = vmatprep.mubr.f32.mxu0 %v22129_v7  ;;  %1862 = vmatprep.mubr.f32.mxu1 %v22129_v7  ;;  %v20061_v8 = vld [vmem:[%s28798_s5 + $0x1fc] ss:$48 sps:$4 sm:$0xff]   ;;  %v20060_v12 = vld [vmem:[%s28798_s5 + $0x1f0] ss:$48 sps:$4 sm:$0xff]   ;;  %v20076_v25 = vld [vmem:[%s28798_s5 + $0x314] ss:$48 sps:$4 sm:$0xff]  }
 0x14c   : > { %1661 = vmatmul.mubr.f32.gmra.mrb[16].mxu0 %v22131_v10  ;;  %1863 = vmatmul.mubr.f32.gmra.mrb[10].mxu1 %v22131_v10  ;;  %v22144_v19 = vmax.f32 %v724_v11, 0.0  ;;  %v22259_v3 = vmax.f32 %v827_v60, 0.0  ;;  %v22279_v11 = vmax.f32 %v832_v2, 0.0  ;;  %v20072_v23 = vld [vmem:[%s28798_s5 + $0x2b0] ss:$48 sps:$4 sm:$0xff]  }
 0x14d   : > { %v22142_v17 = vmax.f32 %v726_v13, 0.0  ;;  %v729_v18 = vpop.f32.mrb[8].mxu0  ;;  %v20063_v13 = vld [vmem:[%s28798_s5 + $0x1f8] ss:$48 sps:$4 sm:$0xff]   ;;  %v20100_v51 = vld [vmem:[%s28798_s5 + $0x494] ss:$48 sps:$4 sm:$0xff]  }
 0x14e   : > { %v730_v20 = vadd.f32 %v729_v18, %v22077_v43  ;;  %v731_v21 = vpop.f32.mrb[9].mxu0  ;;  %v20066_v18 = vld [vmem:[%s28798_s5 + $0x250] ss:$48 sps:$4 sm:$0xff]   ;;  %v20109_v60 = vld [vmem:[%s28798_s5 + $0x4fc] ss:$48 sps:$4 sm:$0xff]  }
 0x14f   : > { %v732_v22 = vadd.f32 %v731_v21, %v22081_v44  ;;  %1666 = vmatprep.mubr.f32.mxu0 %v22142_v17  ;;  %1868 = vmatprep.mubr.f32.mxu1 %v22142_v17  ;;  %v20070_v21 = vld [vmem:[%s28798_s5 + $0x2b4] ss:$48 sps:$4 sm:$0xff]   ;;  %v20114_v2 = vld [vmem:[%s28798_s5 + $0x550] ss:$48 sps:$4 sm:$0xff]  }
 0x150   : > { %1667 = vmatmul.mubr.f32.gmra.mrb[18].mxu0 %v22144_v19  ;;  %1869 = vmatmul.mubr.f32.gmra.mrb[12].mxu1 %v22144_v19  ;;  %v22160_v28 = vmax.f32 %v730_v20, 0.0  ;;  %v20069_v20 = vld [vmem:[%s28798_s5 + $0x258] ss:$48 sps:$4 sm:$0xff]  }
 0x151   : > { %v22158_v26 = vmax.f32 %v732_v22, 0.0  ;;  %v735_v27 = vpop.f32.mrb[10].mxu0  ;;  %v20073_v22 = vld [vmem:[%s28798_s5 + $0x2bc] ss:$48 sps:$4 sm:$0xff]  }
 0x152   : > { %v736_v29 = vadd.f32 %v735_v27, %v22077_v43  ;;  %v737_v30 = vpop.f32.mrb[11].mxu0  ;;  %v20037_v43 = vld [vmem:[%s28798_s5 + $0x7c] ss:$48 sps:$4 sm:$0xff]  }
 0x153   : > { %v738_v31 = vadd.f32 %v737_v30, %v22081_v44  ;;  %1672 = vmatprep.mubr.f32.mxu0 %v22158_v26  ;;  %1874 = vmatprep.mubr.f32.mxu1 %v22158_v26  ;;  %v817_v44 = vadd.f32 %v816_v16, %v22156_v24  ;;  %v20067_v16 = vld [vmem:[%s28798_s5 + $0x25c] ss:$48 sps:$4 sm:$0xff]   ;;  %v20075_v24 = vld [vmem:[%s28798_s5 + $0x2b8] ss:$48 sps:$4 sm:$0xff]  }
 0x154   : > { %1673 = vmatmul.mubr.f32.gmra.mrb[20].mxu0 %v22160_v28  ;;  %1875 = vmatmul.mubr.f32.gmra.mrb[14].mxu1 %v22160_v28  ;;  %v22171_v34 = vmax.f32 %v736_v29, 0.0  ;;  %v20079_v27 = vld [vmem:[%s28798_s5 + $0x31c] ss:$48 sps:$4 sm:$0xff]   ;;  %v20078_v29 = vld [vmem:[%s28798_s5 + $0x310] ss:$48 sps:$4 sm:$0xff]  }
 0x155   : > { %v22169_v33 = vmax.f32 %v738_v31, 0.0  ;;  %v22216_v52 = vmax.f32 %v817_v44, 0.0  ;;  %v20081_v30 = vld [vmem:[%s28798_s5 + $0x318] ss:$48 sps:$4 sm:$0xff]   ;;  %v20082_v31 = vld [vmem:[%s28798_s5 + $0x374] ss:$48 sps:$4 sm:$0xff]  }
 0x156   : > { %v20093_v44 = vld [vmem:[%s28798_s5 + $0x3d8] ss:$48 sps:$4 sm:$0xff]  }
 0x157   : > { %1678 = vmatprep.mubr.f32.mxu0 %v22169_v33  ;;  %1880 = vmatprep.mubr.f32.mxu1 %v22169_v33 }
 0x158   : > { %1679 = vmatmul.mubr.f32.gmra.mrb[22].mxu0 %v22171_v34  ;;  %1881 = vmatmul.mubr.f32.gmra.mrb[16].mxu1 %v22171_v34 }
 0x159   : > { %1749 = vmatprep.mubr.f32.mxu0 %v28811_v9  ;;  %1951 = vmatprep.mubr.f32.mxu1 %v28811_v9 }
 0x15c   : > { %13513 = vmatmul.mubr.msk.f32.vlgmr.msra.gmra.mrb[12].mxu0 %vm1565_vm4, %v22175_v35  ;;  %13519 = vmatmul.mubr.msk.f32.vlgmr.msra.gmra.mrb[6].mxu1 %vm1565_vm4, %v22175_v35 }
 0x15d   : > { %14365 = vmatpush1.bf16.msra.mxu0 %v20030_v36  ;;  %14437 = vmatpush1.bf16.msra.mxu1 %v20033_v37  ;;  %v20084_v36 = vld [vmem:[%s28798_s5 + $0x370] ss:$48 sps:$4 sm:$0xff]   ;;  %v20087_v37 = vld [vmem:[%s28798_s5 + $0x378] ss:$48 sps:$4 sm:$0xff]  }
 0x15e   : > { %1755 = vmatprep.mubr.f32.mxu0 %v28811_v9  ;;  %1957 = vmatprep.mubr.f32.mxu1 %v28811_v9 }
 0x15f   : > { %14367 = vmatprep.subr.bf16.mxu0 %v20034_v41  ;;  %14439 = vmatprep.subr.bf16.mxu1 %v20037_v43  ;;  %v20091_v41 = vld [vmem:[%s28798_s5 + $0x3dc] ss:$48 sps:$4 sm:$0xff]   ;;  %v20090_v43 = vld [vmem:[%s28798_s5 + $0x3d0] ss:$48 sps:$4 sm:$0xff]  }
 0x160   : > { %13514 = vmatmul.mubr.msk.f32.gmra.mrb[14].mxu0 %vm1565_vm4, %v22205_v47  ;;  %13520 = vmatmul.mubr.msk.f32.gmra.mrb[8].mxu1 %vm1565_vm4, %v22205_v47 }
 0x161   : > { %14369 = vmatpush1.bf16.msra.mxu0 %v20036_v45  ;;  %14441 = vmatpush1.bf16.msra.mxu1 %v20039_v46  ;;  %v20094_v45 = vld [vmem:[%s28798_s5 + $0x434] ss:$48 sps:$4 sm:$0xff]   ;;  %v20097_v46 = vld [vmem:[%s28798_s5 + $0x43c] ss:$48 sps:$4 sm:$0xff]  }
 0x162   : > { %1761 = vmatprep.mubr.f32.mxu0 %v28811_v9  ;;  %1963 = vmatprep.mubr.f32.mxu1 %v28811_v9 }
 0x163   : > { %14371 = vmatprep.subr.bf16.mxu0 %v20040_v48  ;;  %14443 = vmatprep.subr.bf16.mxu1 %v20043_v50  ;;  %v20096_v48 = vld [vmem:[%s28798_s5 + $0x430] ss:$48 sps:$4 sm:$0xff]   ;;  %v20099_v50 = vld [vmem:[%s28798_s5 + $0x438] ss:$48 sps:$4 sm:$0xff]  }
 0x164   : > { %13515 = vmatmul.mubr.msk.f32.gmra.mrb[16].mxu0 %vm1565_vm4, %v22216_v52  ;;  %13521 = vmatmul.mubr.msk.f32.gmra.mrb[10].mxu1 %vm1565_vm4, %v22216_v52 }
 0x165   : > { %14373 = vmatpush1.bf16.msra.mxu0 %v20042_v54  ;;  %14445 = vmatpush1.bf16.msra.mxu1 %v20045_v55  ;;  %v20103_v54 = vld [vmem:[%s28798_s5 + $0x49c] ss:$48 sps:$4 sm:$0xff]   ;;  %v20102_v55 = vld [vmem:[%s28798_s5 + $0x490] ss:$48 sps:$4 sm:$0xff]  }
 0x166   : > { %1767 = vmatprep.mubr.f32.mxu0 %v28811_v9  ;;  %1969 = vmatprep.mubr.f32.mxu1 %v28811_v9 }
 0x167   : > { %14375 = vmatprep.subr.bf16.mxu0 %v20046_v56  ;;  %14447 = vmatprep.subr.bf16.mxu1 %v20049_v57  ;;  %v20105_v56 = vld [vmem:[%s28798_s5 + $0x498] ss:$48 sps:$4 sm:$0xff]   ;;  %v20106_v57 = vld [vmem:[%s28798_s5 + $0x4f4] ss:$48 sps:$4 sm:$0xff]  }
 0x168   : > { %13516 = vmatmul.mubr.msk.f32.gmra.mrb[18].mxu0 %vm1565_vm4, %v22236_v58  ;;  %13522 = vmatmul.mubr.msk.f32.gmra.mrb[12].mxu1 %vm1565_vm4, %v22236_v58 }
 0x169   : > { %14377 = vmatpush1.bf16.msra.mxu0 %v20048_v61  ;;  %14449 = vmatpush1.bf16.msra.mxu1 %v20051_v62  ;;  %v20108_v61 = vld [vmem:[%s28798_s5 + $0x4f0] ss:$48 sps:$4 sm:$0xff]   ;;  %v20111_v62 = vld [vmem:[%s28798_s5 + $0x4f8] ss:$48 sps:$4 sm:$0xff]  }
 0x16a   : > { %1773 = vmatprep.mubr.f32.mxu0 %v28811_v9  ;;  %1975 = vmatprep.mubr.f32.mxu1 %v28811_v9 }
 0x16b   : > { %14379 = vmatprep.subr.bf16.mxu0 %v20052_v0  ;;  %14451 = vmatprep.subr.bf16.mxu1 %v20055_v1  ;;  %v20112_v0 = vld [vmem:[%s28798_s5 + $0x554] ss:$48 sps:$4 sm:$0xff]   ;;  %v20115_v1 = vld [vmem:[%s28798_s5 + $0x55c] ss:$48 sps:$4 sm:$0xff]  }
 0x16c   : > { %13517 = vmatmul.mubr.msk.f32.gmra.mrb[20].mxu0 %vm1565_vm4, %v22259_v3  ;;  %13523 = vmatmul.mubr.msk.f32.gmra.mrb[14].mxu1 %vm1565_vm4, %v22259_v3 }
 0x16d   : > { %14381 = vmatpush1.bf16.msra.mxu0 %v20054_v4  ;;  %14453 = vmatpush1.bf16.msra.mxu1 %v20057_v5  ;;  %v20117_v4 = vld [vmem:[%s28798_s5 + $0x558] ss:$48 sps:$4 sm:$0xff]   ;;  %v20118_v5 = vld [vmem:[%s28798_s5 + $0x5b4] ss:$48 sps:$4 sm:$0xff]  }
 0x16e   : > { %1779 = vmatprep.mubr.f32.mxu0 %v28811_v9  ;;  %1981 = vmatprep.mubr.f32.mxu1 %v28811_v9 }
 0x16f   : > { %14383 = vmatprep.subr.bf16.mxu0 %v20058_v6  ;;  %14455 = vmatprep.subr.bf16.mxu1 %v20061_v8  ;;  %v20121_v6 = vld [vmem:[%s28798_s5 + $0x5bc] ss:$48 sps:$4 sm:$0xff]   ;;  %v20120_v8 = vld [vmem:[%s28798_s5 + $0x5b0] ss:$48 sps:$4 sm:$0xff]  }
 0x170   : > { %13518 = vmatmul.mubr.msk.f32.gmra.mrb[22].mxu0 %vm1565_vm4, %v22279_v11  ;;  %13524 = vmatmul.mubr.msk.f32.gmra.mrb[16].mxu1 %vm1565_vm4, %v22279_v11 }
 0x171   : > { %14385 = vmatpush1.bf16.msra.mxu0 %v20060_v12  ;;  %14457 = vmatpush1.bf16.msra.mxu1 %v20063_v13  ;;  %v20123_v12 = vld [vmem:[%s28798_s5 + $0x5b8] ss:$48 sps:$4 sm:$0xff]   ;;  %v20124_v13 = vld [vmem:[%s28798_s5 + $0x614] ss:$48 sps:$4 sm:$0xff]  }
 0x172   : > { %2052 = vmatprep.mubr.f32.mxu0 %v22085_v49  ;;  %2254 = vmatprep.mubr.f32.mxu1 %v22085_v49 }
 0x173   : > { %14387 = vmatprep.subr.bf16.mxu0 %v20064_v14  ;;  %14459 = vmatprep.subr.bf16.mxu1 %v20067_v16  ;;  %v20130_v14 = vld [vmem:[%s28798_s5 + $0x61c] ss:$48 sps:$4 sm:$0xff]   ;;  %v20126_v16 = vld [vmem:[%s28798_s5 + $0x610] ss:$48 sps:$4 sm:$0xff]  }
 0x175   : > { %14389 = vmatpush1.bf16.msra.mxu0 %v20066_v18  ;;  %14461 = vmatpush1.bf16.msra.mxu1 %v20069_v20  ;;  %v20127_v18 = vld [vmem:[%s28798_s5 + $0x674] ss:$48 sps:$4 sm:$0xff]   ;;  %v20132_v20 = vld [vmem:[%s28798_s5 + $0x618] ss:$48 sps:$4 sm:$0xff]  }
 0x176   : > { %14391 = vmatprep.subr.bf16.mxu0 %v20070_v21  ;;  %14463 = vmatprep.subr.bf16.mxu1 %v20073_v22  ;;  %v20129_v21 = vld [vmem:[%s28798_s5 + $0x670] ss:$48 sps:$4 sm:$0xff]   ;;  %v20133_v22 = vld [vmem:[%s28798_s5 + $0x67c] ss:$48 sps:$4 sm:$0xff]  }
 0x179   : > { %14393 = vmatpush1.bf16.msra.mxu0 %v20072_v23  ;;  %14465 = vmatpush1.bf16.msra.mxu1 %v20075_v24  ;;  %v20135_v23 = vld [vmem:[%s28798_s5 + $0x678] ss:$48 sps:$4 sm:$0xff]   ;;  %v20136_v24 = vld [vmem:[%s28798_s5 + $0x24] ss:$48 sps:$4 sm:$0xff]  }
 0x17a   : > { %14395 = vmatprep.subr.bf16.mxu0 %v20076_v25  ;;  %14467 = vmatprep.subr.bf16.mxu1 %v20079_v27  ;;  %v20139_v25 = vld [vmem:[%s28798_s5 + $0x2c] ss:$48 sps:$4 sm:$0xff]   ;;  %v20138_v27 = vld [vmem:[%s28798_s5 + $0x20] ss:$48 sps:$4 sm:$0xff]  }
 0x17d   : > { %14397 = vmatpush1.bf16.msra.mxu0 %v20078_v29  ;;  %14469 = vmatpush1.bf16.msra.mxu1 %v20081_v30  ;;  %v20141_v29 = vld [vmem:[%s28798_s5 + $0x28] ss:$48 sps:$4 sm:$0xff]   ;;  %v20142_v30 = vld [vmem:[%s28798_s5 + $0x84] ss:$48 sps:$4 sm:$0xff]  }
 0x17e   : > { %14399 = vmatprep.subr.bf16.mxu0 %v20082_v31  ;;  %14471 = vmatprep.subr.bf16.mxu1 %v20085_v32  ;;  %v20145_v31 = vld [vmem:[%s28798_s5 + $0x8c] ss:$48 sps:$4 sm:$0xff]   ;;  %v20144_v32 = vld [vmem:[%s28798_s5 + $0x80] ss:$48 sps:$4 sm:$0xff]  }
 0x181   : > { %14401 = vmatpush1.bf16.msra.mxu0 %v20084_v36  ;;  %14473 = vmatpush1.bf16.msra.mxu1 %v20087_v37  ;;  %v20147_v36 = vld [vmem:[%s28798_s5 + $0x88] ss:$48 sps:$4 sm:$0xff]   ;;  %v20148_v37 = vld [vmem:[%s28798_s5 + $0xe4] ss:$48 sps:$4 sm:$0xff]  }
 0x182   : > { %14403 = vmatprep.subr.bf16.mxu0 %v20088_v38  ;;  %14475 = vmatprep.subr.bf16.mxu1 %v20091_v41  ;;  %v20151_v38 = vld [vmem:[%s28798_s5 + $0xec] ss:$48 sps:$4 sm:$0xff]   ;;  %v20150_v41 = vld [vmem:[%s28798_s5 + $0xe0] ss:$48 sps:$4 sm:$0xff]  }
 0x185   : > { %14405 = vmatpush1.bf16.msra.mxu0 %v20090_v43  ;;  %14477 = vmatpush1.bf16.msra.mxu1 %v20093_v44  ;;  %v20153_v43 = vld [vmem:[%s28798_s5 + $0xe8] ss:$48 sps:$4 sm:$0xff]   ;;  %v20154_v44 = vld [vmem:[%s28798_s5 + $0x144] ss:$48 sps:$4 sm:$0xff]  }
 0x186   : > { %14407 = vmatprep.subr.bf16.mxu0 %v20094_v45  ;;  %14479 = vmatprep.subr.bf16.mxu1 %v20097_v46  ;;  %v20157_v45 = vld [vmem:[%s28798_s5 + $0x14c] ss:$48 sps:$4 sm:$0xff]   ;;  %v20156_v46 = vld [vmem:[%s28798_s5 + $0x140] ss:$48 sps:$4 sm:$0xff]  }
 0x189   : > { %14409 = vmatpush1.bf16.msra.mxu0 %v20096_v48  ;;  %14481 = vmatpush1.bf16.msra.mxu1 %v20099_v50  ;;  %v20159_v48 = vld [vmem:[%s28798_s5 + $0x148] ss:$48 sps:$4 sm:$0xff]   ;;  %v20160_v50 = vld [vmem:[%s28798_s5 + $0x1a4] ss:$48 sps:$4 sm:$0xff]  }
 0x18a   : > { %14411 = vmatprep.subr.bf16.mxu0 %v20100_v51  ;;  %14483 = vmatprep.subr.bf16.mxu1 %v20103_v54  ;;  %v20163_v51 = vld [vmem:[%s28798_s5 + $0x1ac] ss:$48 sps:$4 sm:$0xff]   ;;  %v20162_v54 = vld [vmem:[%s28798_s5 + $0x1a0] ss:$48 sps:$4 sm:$0xff]  }
 0x18d   : > { %14413 = vmatpush1.bf16.msra.mxu0 %v20102_v55  ;;  %14485 = vmatpush1.bf16.msra.mxu1 %v20105_v56  ;;  %v20165_v55 = vld [vmem:[%s28798_s5 + $0x1a8] ss:$48 sps:$4 sm:$0xff]   ;;  %v20166_v56 = vld [vmem:[%s28798_s5 + $0x204] ss:$48 sps:$4 sm:$0xff]  }
 0x18e   : > { %14415 = vmatprep.subr.bf16.mxu0 %v20106_v57  ;;  %14487 = vmatprep.subr.bf16.mxu1 %v20109_v60  ;;  %v20169_v57 = vld [vmem:[%s28798_s5 + $0x20c] ss:$48 sps:$4 sm:$0xff]   ;;  %v20168_v60 = vld [vmem:[%s28798_s5 + $0x200] ss:$48 sps:$4 sm:$0xff]  }
 0x191   : > { %14417 = vmatpush1.bf16.msra.mxu0 %v20108_v61  ;;  %14489 = vmatpush1.bf16.msra.mxu1 %v20111_v62  ;;  %v20171_v61 = vld [vmem:[%s28798_s5 + $0x208] ss:$48 sps:$4 sm:$0xff]   ;;  %v20172_v62 = vld [vmem:[%s28798_s5 + $0x264] ss:$48 sps:$4 sm:$0xff]  }
 0x192   : > { %14419 = vmatprep.subr.bf16.mxu0 %v20112_v0  ;;  %14491 = vmatprep.subr.bf16.mxu1 %v20115_v1  ;;  %v20175_v0 = vld [vmem:[%s28798_s5 + $0x26c] ss:$48 sps:$4 sm:$0xff]   ;;  %v20174_v1 = vld [vmem:[%s28798_s5 + $0x260] ss:$48 sps:$4 sm:$0xff]  }
 0x195   : > { %14421 = vmatpush1.bf16.msra.mxu0 %v20114_v2  ;;  %14493 = vmatpush1.bf16.msra.mxu1 %v20117_v4  ;;  %v20177_v2 = vld [vmem:[%s28798_s5 + $0x268] ss:$48 sps:$4 sm:$0xff]   ;;  %v20178_v4 = vld [vmem:[%s28798_s5 + $0x2c4] ss:$48 sps:$4 sm:$0xff]  }
 0x196   : > { %14423 = vmatprep.subr.bf16.mxu0 %v20118_v5  ;;  %14495 = vmatprep.subr.bf16.mxu1 %v20121_v6  ;;  %v20181_v5 = vld [vmem:[%s28798_s5 + $0x2cc] ss:$48 sps:$4 sm:$0xff]   ;;  %v20180_v6 = vld [vmem:[%s28798_s5 + $0x2c0] ss:$48 sps:$4 sm:$0xff]  }
 0x199   : > { %14425 = vmatpush1.bf16.msra.mxu0 %v20120_v8  ;;  %14497 = vmatpush1.bf16.msra.mxu1 %v20123_v12  ;;  %v20184_v8 = vld [vmem:[%s28798_s5 + $0x324] ss:$48 sps:$4 sm:$0xff]   ;;  %v20187_v12 = vld [vmem:[%s28798_s5 + $0x32c] ss:$48 sps:$4 sm:$0xff]  }
 0x19a   : > { %14427 = vmatprep.subr.bf16.mxu0 %v20124_v13  ;;  %14499 = vmatprep.subr.bf16.mxu1 %v20130_v14  ;;  %v20186_v13 = vld [vmem:[%s28798_s5 + $0x320] ss:$48 sps:$4 sm:$0xff]   ;;  %v20189_v14 = vld [vmem:[%s28798_s5 + $0x328] ss:$48 sps:$4 sm:$0xff]  }
 0x19c   : > { %2053 = vmatmul.mubr.f32.vlgmr.msra.gmra.mrb[24].mxu0 %v22093_v53  ;;  %2255 = vmatmul.mubr.f32.vlgmr.msra.gmra.mrb[18].mxu1 %v22093_v53 }
 0x19d   : > { %2058 = vmatprep.mubr.f32.mxu0 %v22107_v59  ;;  %14429 = vmatpush1.bf16.msra.mxu0 %v20126_v16  ;;  %v20190_v16 = vld [vmem:[%s28798_s5 + $0x384] ss:$48 sps:$4 sm:$0xff]  }
 0x19e   : > { %2260 = vmatprep.mubr.f32.mxu1 %v22107_v59  ;;  %14431 = vmatprep.subr.bf16.mxu0 %v20127_v18  ;;  %v20193_v18 = vld [vmem:[%s28798_s5 + $0x38c] ss:$48 sps:$4 sm:$0xff]  }
 0x19f   : > { %14501 = vmatpush1.bf16.msra.mxu1 %v20132_v20  ;;  %v20192_v20 = vld [vmem:[%s28798_s5 + $0x380] ss:$48 sps:$4 sm:$0xff]  }
 0x1a0   : > { %2059 = vmatmul.mubr.f32.gmra.mrb[26].mxu0 %v22115_v63  ;;  %2261 = vmatmul.mubr.f32.gmra.mrb[20].mxu1 %v22115_v63 }
 0x1a1   : > { %2064 = vmatprep.mubr.f32.mxu0 %v22129_v7  ;;  %2266 = vmatprep.mubr.f32.mxu1 %v22129_v7 }
 0x1a2   : > { %14433 = vmatpush1.bf16.msra.mxu0 %v20129_v21  ;;  %14503 = vmatprep.subr.bf16.mxu1 %v20133_v22  ;;  %v20195_v21 = vld [vmem:[%s28798_s5 + $0x388] ss:$48 sps:$4 sm:$0xff]   ;;  %v20196_v22 = vld [vmem:[%s28798_s5 + $0x3e4] ss:$48 sps:$4 sm:$0xff]  }
 0x1a3   : > { %14505 = vmatpush1.bf16.msra.mxu1 %v20135_v23  ;;  %14507 = vmatprep.subr.bf16.mxu0 %v20136_v24  ;;  %v20199_v23 = vld [vmem:[%s28798_s5 + $0x3ec] ss:$48 sps:$4 sm:$0xff]   ;;  %v20198_v24 = vld [vmem:[%s28798_s5 + $0x3e0] ss:$48 sps:$4 sm:$0xff]  }
 0x1a4   : > { %2065 = vmatmul.mubr.f32.gmra.mrb[28].mxu0 %v22131_v10  ;;  %2267 = vmatmul.mubr.f32.gmra.mrb[22].mxu1 %v22131_v10 }
 0x1a5   : > { %2070 = vmatprep.mubr.f32.mxu0 %v22142_v17  ;;  %2272 = vmatprep.mubr.f32.mxu1 %v22142_v17 }
 0x1a6   : > { %14579 = vmatprep.subr.bf16.mxu1 %v20139_v25  ;;  %v20201_v25 = vld [vmem:[%s28798_s5 + $0x3e8] ss:$48 sps:$4 sm:$0xff]  }
 0x1a8   : > { %2071 = vmatmul.mubr.f32.gmra.mrb[30].mxu0 %v22144_v19  ;;  %2273 = vmatmul.mubr.f32.gmra.mrb[24].mxu1 %v22144_v19 }
 0x1a9   : > { %2076 = vmatprep.mubr.f32.mxu0 %v22158_v26  ;;  %2278 = vmatprep.mubr.f32.mxu1 %v22158_v26 }
 0x1ac   : > { %2077 = vmatmul.mubr.f32.gmra.mrb[32].mxu0 %v22160_v28  ;;  %2279 = vmatmul.mubr.f32.gmra.mrb[26].mxu1 %v22160_v28 }
 0x1ad   : > { %2082 = vmatprep.mubr.f32.mxu0 %v22169_v33  ;;  %2284 = vmatprep.mubr.f32.mxu1 %v22169_v33 }
 0x1b0   : > { %2083 = vmatmul.mubr.f32.gmra.mrb[34].mxu0 %v22171_v34  ;;  %2285 = vmatmul.mubr.f32.gmra.mrb[28].mxu1 %v22171_v34 }
 0x1b1   : > { %2153 = vmatprep.mubr.f32.mxu0 %v28811_v9  ;;  %2355 = vmatprep.mubr.f32.mxu1 %v28811_v9 }
 0x1b4   : > { %13525 = vmatmul.mubr.msk.f32.vlgmr.msra.gmra.mrb[24].mxu0 %vm1565_vm4, %v22175_v35  ;;  %13531 = vmatmul.mubr.msk.f32.vlgmr.msra.gmra.mrb[18].mxu1 %vm1565_vm4, %v22175_v35 }
 0x1b5   : > { %14509 = vmatpush1.bf16.msra.mxu0 %v20138_v27  ;;  %14581 = vmatpush1.bf16.msra.mxu1 %v20141_v29  ;;  %v20202_v27 = vld [vmem:[%s28798_s5 + $0x444] ss:$48 sps:$4 sm:$0xff]   ;;  %v20205_v29 = vld [vmem:[%s28798_s5 + $0x44c] ss:$48 sps:$4 sm:$0xff]  }
 0x1b6   : > { %2159 = vmatprep.mubr.f32.mxu0 %v28811_v9  ;;  %2361 = vmatprep.mubr.f32.mxu1 %v28811_v9 }
 0x1b7   : > { %14511 = vmatprep.subr.bf16.mxu0 %v20142_v30  ;;  %14583 = vmatprep.subr.bf16.mxu1 %v20145_v31  ;;  %v20204_v30 = vld [vmem:[%s28798_s5 + $0x440] ss:$48 sps:$4 sm:$0xff]   ;;  %v20207_v31 = vld [vmem:[%s28798_s5 + $0x448] ss:$48 sps:$4 sm:$0xff]  }
 0x1b8   : > { %13526 = vmatmul.mubr.msk.f32.gmra.mrb[26].mxu0 %vm1565_vm4, %v22205_v47  ;;  %13532 = vmatmul.mubr.msk.f32.gmra.mrb[20].mxu1 %vm1565_vm4, %v22205_v47 }
 0x1b9   : > { %14513 = vmatpush1.bf16.msra.mxu0 %v20144_v32  ;;  %14585 = vmatpush1.bf16.msra.mxu1 %v20147_v36  ;;  %v20208_v32 = vld [vmem:[%s28798_s5 + $0x4a4] ss:$48 sps:$4 sm:$0xff]   ;;  %v20211_v36 = vld [vmem:[%s28798_s5 + $0x4ac] ss:$48 sps:$4 sm:$0xff]  }
 0x1ba   : > { %2165 = vmatprep.mubr.f32.mxu0 %v28811_v9  ;;  %2367 = vmatprep.mubr.f32.mxu1 %v28811_v9 }
 0x1bb   : > { %14515 = vmatprep.subr.bf16.mxu0 %v20148_v37  ;;  %14587 = vmatprep.subr.bf16.mxu1 %v20151_v38  ;;  %v20210_v37 = vld [vmem:[%s28798_s5 + $0x4a0] ss:$48 sps:$4 sm:$0xff]   ;;  %v20213_v38 = vld [vmem:[%s28798_s5 + $0x4a8] ss:$48 sps:$4 sm:$0xff]  }
 0x1bc   : > { %13527 = vmatmul.mubr.msk.f32.gmra.mrb[28].mxu0 %vm1565_vm4, %v22216_v52  ;;  %13533 = vmatmul.mubr.msk.f32.gmra.mrb[22].mxu1 %vm1565_vm4, %v22216_v52 }
 0x1bd   : > { %14517 = vmatpush1.bf16.msra.mxu0 %v20150_v41  ;;  %14589 = vmatpush1.bf16.msra.mxu1 %v20153_v43  ;;  %v20214_v41 = vld [vmem:[%s28798_s5 + $0x504] ss:$48 sps:$4 sm:$0xff]   ;;  %v20217_v43 = vld [vmem:[%s28798_s5 + $0x50c] ss:$48 sps:$4 sm:$0xff]  }
 0x1be   : > { %2171 = vmatprep.mubr.f32.mxu0 %v28811_v9  ;;  %2373 = vmatprep.mubr.f32.mxu1 %v28811_v9 }
 0x1bf   : > { %14519 = vmatprep.subr.bf16.mxu0 %v20154_v44  ;;  %14591 = vmatprep.subr.bf16.mxu1 %v20157_v45  ;;  %v20216_v44 = vld [vmem:[%s28798_s5 + $0x500] ss:$48 sps:$4 sm:$0xff]   ;;  %v20219_v45 = vld [vmem:[%s28798_s5 + $0x508] ss:$48 sps:$4 sm:$0xff]  }
 0x1c0   : > { %13528 = vmatmul.mubr.msk.f32.gmra.mrb[30].mxu0 %vm1565_vm4, %v22236_v58  ;;  %13534 = vmatmul.mubr.msk.f32.gmra.mrb[24].mxu1 %vm1565_vm4, %v22236_v58 }
 0x1c1   : > { %14521 = vmatpush1.bf16.msra.mxu0 %v20156_v46  ;;  %14593 = vmatpush1.bf16.msra.mxu1 %v20159_v48  ;;  %v20220_v46 = vld [vmem:[%s28798_s5 + $0x564] ss:$48 sps:$4 sm:$0xff]   ;;  %v20223_v48 = vld [vmem:[%s28798_s5 + $0x56c] ss:$48 sps:$4 sm:$0xff]  }
 0x1c2   : > { %2177 = vmatprep.mubr.f32.mxu0 %v28811_v9  ;;  %2379 = vmatprep.mubr.f32.mxu1 %v28811_v9 }
 0x1c3   : > { %14523 = vmatprep.subr.bf16.mxu0 %v20160_v50  ;;  %14595 = vmatprep.subr.bf16.mxu1 %v20163_v51  ;;  %v20222_v50 = vld [vmem:[%s28798_s5 + $0x560] ss:$48 sps:$4 sm:$0xff]   ;;  %v20225_v51 = vld [vmem:[%s28798_s5 + $0x568] ss:$48 sps:$4 sm:$0xff]  }
 0x1c4   : > { %13529 = vmatmul.mubr.msk.f32.gmra.mrb[32].mxu0 %vm1565_vm4, %v22259_v3  ;;  %13535 = vmatmul.mubr.msk.f32.gmra.mrb[26].mxu1 %vm1565_vm4, %v22259_v3 }
 0x1c5   : > { %14525 = vmatpush1.bf16.msra.mxu0 %v20162_v54  ;;  %14597 = vmatpush1.bf16.msra.mxu1 %v20165_v55  ;;  %v20226_v54 = vld [vmem:[%s28798_s5 + $0x5c4] ss:$48 sps:$4 sm:$0xff]   ;;  %v20229_v55 = vld [vmem:[%s28798_s5 + $0x5cc] ss:$48 sps:$4 sm:$0xff]  }
 0x1c6   : > { %2183 = vmatprep.mubr.f32.mxu0 %v28811_v9  ;;  %2385 = vmatprep.mubr.f32.mxu1 %v28811_v9 }
 0x1c7   : > { %14527 = vmatprep.subr.bf16.mxu0 %v20166_v56  ;;  %14599 = vmatprep.subr.bf16.mxu1 %v20169_v57  ;;  %v20228_v56 = vld [vmem:[%s28798_s5 + $0x5c0] ss:$48 sps:$4 sm:$0xff]   ;;  %v20231_v57 = vld [vmem:[%s28798_s5 + $0x5c8] ss:$48 sps:$4 sm:$0xff]  }
 0x1c8   : > { %13530 = vmatmul.mubr.msk.f32.gmra.mrb[34].mxu0 %vm1565_vm4, %v22279_v11  ;;  %13536 = vmatmul.mubr.msk.f32.gmra.mrb[28].mxu1 %vm1565_vm4, %v22279_v11 }
 0x1c9   : > { %14529 = vmatpush1.bf16.msra.mxu0 %v20168_v60  ;;  %14601 = vmatpush1.bf16.msra.mxu1 %v20171_v61  ;;  %v20232_v60 = vld [vmem:[%s28798_s5 + $0x624] ss:$48 sps:$4 sm:$0xff]   ;;  %v20238_v61 = vld [vmem:[%s28798_s5 + $0x62c] ss:$48 sps:$4 sm:$0xff]  }
 0x1ca   : > { %2456 = vmatprep.mubr.f32.mxu0 %v22085_v49  ;;  %2658 = vmatprep.mubr.f32.mxu1 %v22085_v49  ;;  %v20183_v49 = vld [vmem:[%s28798_s5 + $0x2c8] ss:$48 sps:$4 sm:$0xff]  }
 0x1cb   : > { %14531 = vmatprep.subr.bf16.mxu0 %v20172_v62  ;;  %14603 = vmatprep.subr.bf16.mxu1 %v20175_v0  ;;  %v20234_v62 = vld [vmem:[%s28798_s5 + $0x620] ss:$48 sps:$4 sm:$0xff]   ;;  %v20235_v0 = vld [vmem:[%s28798_s5 + $0x684] ss:$48 sps:$4 sm:$0xff]  }
 0x1cd   : > { %14533 = vmatpush1.bf16.msra.mxu0 %v20174_v1  ;;  %14605 = vmatpush1.bf16.msra.mxu1 %v20177_v2  ;;  %v20240_v1 = vld [vmem:[%s28798_s5 + $0x628] ss:$48 sps:$4 sm:$0xff]   ;;  %v3604_v2 = vld [vmem:[%s28796_s3 + $0x80] sm:$0xff] }
 0x1ce   : > { %14535 = vmatprep.subr.bf16.mxu0 %v20178_v4  ;;  %14607 = vmatprep.subr.bf16.mxu1 %v20181_v5  ;;  %v3605_v4 = vld [vmem:[%s28796_s3 + $0x88] sm:$0xff]  ;;  %v20237_v5 = vld [vmem:[%s28798_s5 + $0x680] ss:$48 sps:$4 sm:$0xff]  }
 0x1d1   : > { %14537 = vmatpush1.bf16.msra.mxu0 %v20180_v6  ;;  %14609 = vmatpush1.bf16.msra.mxu1 %v20183_v49  ;;  %v20243_v6 = vld [vmem:[%s28798_s5 + $0x688] ss:$48 sps:$4 sm:$0xff]   ;;  %v22729_v49 = vpack.c.bf16 %v3605_v4, %v3604_v2  ;;  %v20246_v2 = vld [vmem:[%s28799_s6 + $0xc] ss:$48 sps:$4 sm:$0xff]   ;;  %v20248_v4 = vld [vmem:[%s28799_s6] ss:$48 sps:$4 sm:$0xff]  }
 0x1d2   : > { %14539 = vmatprep.subr.bf16.mxu0 %v20184_v8  ;;  %14611 = vmatprep.subr.bf16.mxu1 %v20187_v12  ;;  %v3591_v8 = vld [vmem:[%s28796_s3 + $0x18] sm:$0xff]  ;;  %v3608_v12 = vld [vmem:[%s28796_s3 + $0xa0] sm:$0xff] }
 0x1d3   : > { %29351 = vst [vmem:[#allocation12_spill] sm:$0xff] %v22729_v49 }
 0x1d5   : > { %14541 = vmatpush1.bf16.msra.mxu0 %v20186_v13  ;;  %14613 = vmatpush1.bf16.msra.mxu1 %v20189_v14  ;;  %v3609_v13 = vld [vmem:[%s28796_s3 + $0xa8] sm:$0xff] }
 0x1d6   : > { %14543 = vmatprep.subr.bf16.mxu0 %v20190_v16  ;;  %14615 = vmatprep.subr.bf16.mxu1 %v20193_v18  ;;  %v22799_v18 = vpack.c.bf16 %v3609_v13, %v3608_v12  ;;  %v13549_v12 = vld [vmem:[%s28797_s4] ss:$0 sm:$0xff] }
 0x1d8   : > { %29356 = vst [vmem:[#allocation17_spill] sm:$0xff] %v22799_v18 }
 0x1d9   : > { %14545 = vmatpush1.bf16.msra.mxu0 %v20192_v20  ;;  %14617 = vmatpush1.bf16.msra.mxu1 %v20195_v21  ;;  %v3592_v20 = vld [vmem:[%s28796_s3 + $0x20] sm:$0xff]  ;;  %v3610_v21 = vld [vmem:[%s28796_s3 + $0xb0] sm:$0xff] }
 0x1da   : > { %14547 = vmatprep.subr.bf16.mxu0 %v20196_v22  ;;  %14619 = vmatprep.subr.bf16.mxu1 %v20199_v23  ;;  %v3611_v22 = vld [vmem:[%s28796_s3 + $0xb8] sm:$0xff]  ;;  %v3622_v23 = vld [vmem:[%s28796_s3 + $0x110] sm:$0xff] }
 0x1dd   : > { %14549 = vmatpush1.bf16.msra.mxu0 %v20198_v24  ;;  %14621 = vmatpush1.bf16.msra.mxu1 %v20201_v25  ;;  %v3623_v24 = vld [vmem:[%s28796_s3 + $0x118] sm:$0xff] }
 0x1de   : > { %14551 = vmatprep.subr.bf16.mxu0 %v20202_v27  ;;  %14623 = vmatprep.subr.bf16.mxu1 %v20205_v29  ;;  %v22830_v27 = vpack.c.bf16 %v3611_v22, %v3610_v21  ;;  %v3595_v29 = vld [vmem:[%s28796_s3 + $0x38] sm:$0xff]  ;;  %v20260_v21 = vld [vmem:[%s28799_s6 + $0x10] ss:$48 sps:$4 sm:$0xff]  }
 0x1df   : > { %v20261_v22 = vld [vmem:[%s28799_s6 + $0x18] ss:$48 sps:$4 sm:$0xff]  }
 0x1e0   : > { %29358 = vst [vmem:[#allocation19_spill] sm:$0xff] %v22830_v27 }
 0x1e1   : > { %14553 = vmatpush1.bf16.msra.mxu0 %v20204_v30  ;;  %14625 = vmatpush1.bf16.msra.mxu1 %v20207_v31  ;;  %v3612_v30 = vld [vmem:[%s28796_s3 + $0xc0] sm:$0xff]  ;;  %v3613_v31 = vld [vmem:[%s28796_s3 + $0xc8] sm:$0xff] }
 0x1e2   : > { %14555 = vmatprep.subr.bf16.mxu0 %v20208_v32  ;;  %14627 = vmatprep.subr.bf16.mxu1 %v20211_v36  ;;  %v22845_v32 = vpack.c.bf16 %v3623_v24, %v3622_v23  ;;  %v20262_v24 = vld [vmem:[%s28799_s6 + $0x74] ss:$48 sps:$4 sm:$0xff]  }
 0x1e4   : > { %29359 = vst [vmem:[#allocation20_spill] sm:$0xff] %v22845_v32 }
 0x1e5   : > { %14557 = vmatpush1.bf16.msra.mxu0 %v20210_v37  ;;  %14629 = vmatpush1.bf16.msra.mxu1 %v20213_v38  ;;  %v22857_v37 = vpack.c.bf16 %v3613_v31, %v3612_v30  ;;  %v3596_v38 = vld [vmem:[%s28796_s3 + $0x40] sm:$0xff]  ;;  %v20267_v30 = vld [vmem:[%s28799_s6 + $0x78] ss:$48 sps:$4 sm:$0xff]  }
 0x1e6   : > { %14559 = vmatprep.subr.bf16.mxu0 %v20214_v41  ;;  %14631 = vmatprep.subr.bf16.mxu1 %v20217_v43  ;;  %v3614_v41 = vld [vmem:[%s28796_s3 + $0xd0] sm:$0xff]  ;;  %v3615_v43 = vld [vmem:[%s28796_s3 + $0xd8] sm:$0xff] }
 0x1e7   : > { %29361 = vst [vmem:[#allocation22_spill] sm:$0xff] %v22857_v37  ;;  %v20268_v31 = vld [vmem:[%s28799_s6 + $0x24] ss:$48 sps:$4 sm:$0xff]  }
 0x1e9   : > { %14561 = vmatpush1.bf16.msra.mxu0 %v20216_v44  ;;  %14633 = vmatpush1.bf16.msra.mxu1 %v20219_v45  ;;  %v22882_v45 = vpack.c.bf16 %v3615_v43, %v3614_v41  ;;  %v20273_v41 = vld [vmem:[%s28799_s6 + $0x28] ss:$48 sps:$4 sm:$0xff]   ;;  %v20274_v43 = vld [vmem:[%s28799_s6 + $0x84] ss:$48 sps:$4 sm:$0xff]  }
 0x1ea   : > { %14563 = vmatprep.subr.bf16.mxu0 %v20220_v46  ;;  %14635 = vmatprep.subr.bf16.mxu1 %v20223_v48  ;;  %v3598_v46 = vld [vmem:[%s28796_s3 + $0x50] sm:$0xff]  ;;  %v3616_v48 = vld [vmem:[%s28796_s3 + $0xe0] sm:$0xff] }
 0x1eb   : > { %29363 = vst [vmem:[#allocation24_spill] sm:$0xff] %v22882_v45 }
 0x1ed   : > { %14565 = vmatpush1.bf16.msra.mxu0 %v20222_v50  ;;  %14637 = vmatpush1.bf16.msra.mxu1 %v20225_v51  ;;  %v3617_v50 = vld [vmem:[%s28796_s3 + $0xe8] sm:$0xff] }
 0x1ee   : > { %14567 = vmatprep.subr.bf16.mxu0 %v20226_v54  ;;  %14639 = vmatprep.subr.bf16.mxu1 %v20229_v55  ;;  %v22906_v54 = vpack.c.bf16 %v3617_v50, %v3616_v48  ;;  %v3600_v55 = vld [vmem:[%s28796_s3 + $0x60] sm:$0xff]  ;;  %v20279_v48 = vld [vmem:[%s28799_s6 + $0x88] ss:$48 sps:$4 sm:$0xff]  }
 0x1ef   : > { %v20280_v50 = vld [vmem:[%s28800_s7 + $0x4] ss:$48 sps:$4 sm:$0xff]  }
 0x1f0   : > { %29365 = vst [vmem:[#allocation26_spill] sm:$0xff] %v22906_v54 }
 0x1f1   : > { %14569 = vmatpush1.bf16.msra.mxu0 %v20228_v56  ;;  %14641 = vmatpush1.bf16.msra.mxu1 %v20231_v57  ;;  %v3618_v56 = vld [vmem:[%s28796_s3 + $0xf0] sm:$0xff]  ;;  %v3619_v57 = vld [vmem:[%s28796_s3 + $0xf8] sm:$0xff] }
 0x1f2   : > { %14571 = vmatprep.subr.bf16.mxu0 %v20232_v60  ;;  %14643 = vmatprep.subr.bf16.mxu1 %v20238_v61  ;;  %v22929_v61 = vpack.c.bf16 %v3619_v57, %v3618_v56  ;;  %v20285_v56 = vld [vmem:[%s28800_s7 + $0x8] ss:$48 sps:$4 sm:$0xff]   ;;  %v20286_v57 = vld [vmem:[%s28800_s7 + $0x64] ss:$48 sps:$4 sm:$0xff]  }
 0x1f4   : > { %2457 = vmatmul.mubr.f32.vlgmr.msra.gmra.mrb[36].mxu0 %v22093_v53  ;;  %2659 = vmatmul.mubr.f32.vlgmr.msra.gmra.mrb[30].mxu1 %v22093_v53  ;;  %v20241_v53 = vld [vmem:[%s28798_s5 + $0x68c] ss:$48 sps:$4 sm:$0xff]   ;;  %29367 = vst [vmem:[#allocation28_spill] sm:$0xff] %v22929_v61 }
 0x1f5   : > { %2462 = vmatprep.mubr.f32.mxu0 %v22107_v59  ;;  %14573 = vmatpush1.bf16.msra.mxu0 %v20234_v62  ;;  %v3602_v62 = vld [vmem:[%s28796_s3 + $0x70] sm:$0xff] }
 0x1f6   : > { %2664 = vmatprep.mubr.f32.mxu1 %v22107_v59  ;;  %14575 = vmatprep.subr.bf16.mxu0 %v20235_v0  ;;  %v28809_v59 = vmov 0.0|0.0   ;;  %v3603_v0 = vld [vmem:[%s28796_s3 + $0x78] sm:$0xff] }
 0x1f7   : > { %14645 = vmatpush1.bf16.msra.mxu1 %v20240_v1  ;;  %v20244_v1 = vld [vmem:[%s28799_s6 + $0x4] ss:$48 sps:$4 sm:$0xff]  }
 0x1f8   : > { %2463 = vmatmul.mubr.f32.gmra.mrb[38].mxu0 %v22115_v63  ;;  %2665 = vmatmul.mubr.f32.gmra.mrb[32].mxu1 %v22115_v63  ;;  %v3588_v63 = vld [vmem:[%s28796_s3] sm:$0xff] }
 0x1f9   : > { %2468 = vmatprep.mubr.f32.mxu0 %v22129_v7  ;;  %2670 = vmatprep.mubr.f32.mxu1 %v22129_v7  ;;  %v3589_v7 = vld [vmem:[%s28796_s3 + $0x8] sm:$0xff] }
 0x1fa   : > { %14577 = vmatpush1.bf16.msra.mxu0 %v20237_v5  ;;  %14647 = vmatprep.subr.bf16.mxu1 %v20241_v53  ;;  %v20249_v5 = vld [vmem:[%s28799_s6 + $0x8] ss:$48 sps:$4 sm:$0xff]   ;;  %v20250_v53 = vld [vmem:[%s28799_s6 + $0x64] ss:$48 sps:$4 sm:$0xff]  }
 0x1fb   : > { %14649 = vmatpush1.bf16.msra.mxu1 %v20243_v6  ;;  %14651 = vmatprep.subr.bf16.mxu0 %v22729_v49  ;;  %v20252_v6 = vld [vmem:[%s28799_s6 + $0x6c] ss:$48 sps:$4 sm:$0xff]  }
 0x1fc   : > { %2469 = vmatmul.mubr.f32.gmra.mrb[40].mxu0 %v22131_v10  ;;  %2671 = vmatmul.mubr.f32.gmra.mrb[34].mxu1 %v22131_v10  ;;  %v3606_v10 = vld [vmem:[%s28796_s3 + $0x90] sm:$0xff] }
 0x1fd   : > { %2474 = vmatprep.mubr.f32.mxu0 %v22142_v17  ;;  %2676 = vmatprep.mubr.f32.mxu1 %v22142_v17  ;;  %v3607_v17 = vld [vmem:[%s28796_s3 + $0x98] sm:$0xff] }
 0x1fe   : > { %14682 = vmatprep.subr.bf16.mxu1 %v28809_v59 }
 0x200   : > { %2475 = vmatmul.mubr.f32.gmra.mrb[42].mxu0 %v22144_v19  ;;  %2677 = vmatmul.mubr.f32.gmra.mrb[36].mxu1 %v22144_v19  ;;  %v3620_v19 = vld [vmem:[%s28796_s3 + $0x100] sm:$0xff] }
 0x201   : > { %2480 = vmatprep.mubr.f32.mxu0 %v22158_v26  ;;  %2682 = vmatprep.mubr.f32.mxu1 %v22158_v26  ;;  %v3621_v26 = vld [vmem:[%s28796_s3 + $0x108] sm:$0xff] }
 0x202   : > { %v22787_v14 = vpack.c.bf16 %v3621_v26, %v3620_v19 }
 0x204   : > { %2481 = vmatmul.mubr.f32.gmra.mrb[44].mxu0 %v22160_v28  ;;  %2683 = vmatmul.mubr.f32.gmra.mrb[38].mxu1 %v22160_v28  ;;  %v22771_v28 = vpack.c.bf16 %v3589_v7, %v3588_v63  ;;  %29354 = vst [vmem:[#allocation15_spill] sm:$0xff] %v22787_v14  ;;  %v20254_v63 = vld [vmem:[%s28799_s6 + $0x60] ss:$48 sps:$4 sm:$0xff]   ;;  %v20255_v7 = vld [vmem:[%s28799_s6 + $0x68] ss:$48 sps:$4 sm:$0xff]  }
 0x205   : > { %2486 = vmatprep.mubr.f32.mxu0 %v22169_v33  ;;  %2688 = vmatprep.mubr.f32.mxu1 %v22169_v33  ;;  %v22773_v33 = vpack.c.bf16 %v3607_v17, %v3606_v10  ;;  %v20256_v10 = vld [vmem:[%s28799_s6 + $0x14] ss:$48 sps:$4 sm:$0xff]   ;;  %v20258_v17 = vld [vmem:[%s28799_s6 + $0x1c] ss:$48 sps:$4 sm:$0xff]  }
 0x206   : > { %29352 = vst [vmem:[#allocation13_spill] sm:$0xff] %v22771_v28 }
 0x207   : > { %29353 = vst [vmem:[#allocation14_spill] sm:$0xff] %v22773_v33 }
 0x208   : > { %2487 = vmatmul.mubr.f32.gmra.mrb[46].mxu0 %v22171_v34  ;;  %2689 = vmatmul.mubr.f32.gmra.mrb[40].mxu1 %v22171_v34  ;;  %v3590_v34 = vld [vmem:[%s28796_s3 + $0x10] sm:$0xff] }
 0x209   : > { %2557 = vmatprep.mubr.f32.mxu0 %v28811_v9  ;;  %2759 = vmatprep.mubr.f32.mxu1 %v28811_v9  ;;  %v22795_v16 = vpack.c.bf16 %v3591_v8, %v3590_v34 }
 0x20b   : > { %29355 = vst [vmem:[#allocation16_spill] sm:$0xff] %v22795_v16 }
 0x20c   : > { %13537 = vmatmul.mubr.msk.f32.vlgmr.msra.gmra.mrb[36].mxu0 %vm1565_vm4, %v22175_v35  ;;  %13543 = vmatmul.mubr.msk.f32.vlgmr.msra.gmra.mrb[30].mxu1 %vm1565_vm4, %v22175_v35  ;;  %v3593_v35 = vld [vmem:[%s28796_s3 + $0x28] sm:$0xff] }
 0x20d   : > { %14653 = vmatpush3.bf16.msra.mxu0 %v22771_v28  ;;  %2563 = vmatprep.mubr.f32.mxu0 %v28811_v9  ;;  %v22826_v25 = vpack.c.bf16 %v3593_v35, %v3592_v20 }
 0x20e   : > { %2765 = vmatprep.mubr.f32.mxu1 %v28811_v9  ;;  %14655 = vmatprep.subr.bf16.mxu0 %v22773_v33 }
 0x20f   : > { %14684 = vmatpush3.bf16.msra.mxu1 %v22787_v14  ;;  %29357 = vst [vmem:[#allocation18_spill] sm:$0xff] %v22826_v25 }
 0x210   : > { %13538 = vmatmul.mubr.msk.f32.gmra.mrb[38].mxu0 %vm1565_vm4, %v22205_v47  ;;  %13544 = vmatmul.mubr.msk.f32.gmra.mrb[32].mxu1 %vm1565_vm4, %v22205_v47  ;;  %v3594_v47 = vld [vmem:[%s28796_s3 + $0x30] sm:$0xff] }
 0x211   : > { %14657 = vmatpush3.bf16.msra.mxu0 %v22795_v16  ;;  %2569 = vmatprep.mubr.f32.mxu0 %v28811_v9  ;;  %v22853_v36 = vpack.c.bf16 %v3595_v29, %v3594_v47  ;;  %v20264_v47 = vld [vmem:[%s28799_s6 + $0x7c] ss:$48 sps:$4 sm:$0xff]   ;;  %v20266_v29 = vld [vmem:[%s28799_s6 + $0x70] ss:$48 sps:$4 sm:$0xff]  }
 0x212   : > { %2771 = vmatprep.mubr.f32.mxu1 %v28811_v9  ;;  %14659 = vmatprep.subr.bf16.mxu0 %v22799_v18 }
 0x213   : > { %14685 = vmatprep.subr.bf16.mxu1 %v28809_v59  ;;  %29360 = vst [vmem:[#allocation21_spill] sm:$0xff] %v22853_v36  ;;  %v23700_v59 = vld [vmem:[%s28800_s7 + $0x324] ss:$48 sps:$4 sm:$0xff]  }
 0x214   : > { %13539 = vmatmul.mubr.msk.f32.gmra.mrb[40].mxu0 %vm1565_vm4, %v22216_v52  ;;  %13545 = vmatmul.mubr.msk.f32.gmra.mrb[34].mxu1 %vm1565_vm4, %v22216_v52  ;;  %v3597_v52 = vld [vmem:[%s28796_s3 + $0x48] sm:$0xff]  ;;  %29374 = vst [vmem:[#allocation35_spill] sm:$0xff] %v23700_v59 }
 0x215   : > { %14661 = vmatpush3.bf16.msra.mxu0 %v22826_v25  ;;  %2575 = vmatprep.mubr.f32.mxu0 %v28811_v9  ;;  %v22878_v44 = vpack.c.bf16 %v3597_v52, %v3596_v38  ;;  %v20270_v38 = vld [vmem:[%s28799_s6 + $0x2c] ss:$48 sps:$4 sm:$0xff]   ;;  %v20272_v52 = vld [vmem:[%s28799_s6 + $0x20] ss:$48 sps:$4 sm:$0xff]  }
 0x216   : > { %2777 = vmatprep.mubr.f32.mxu1 %v28811_v9  ;;  %14663 = vmatprep.subr.bf16.mxu0 %v22830_v27 }
 0x217   : > { %14687 = vmatpush3.bf16.msra.mxu1 %v22845_v32  ;;  %29362 = vst [vmem:[#allocation23_spill] sm:$0xff] %v22878_v44 }
 0x218   : > { %13540 = vmatmul.mubr.msk.f32.gmra.mrb[42].mxu0 %vm1565_vm4, %v22236_v58  ;;  %13546 = vmatmul.mubr.msk.f32.gmra.mrb[36].mxu1 %vm1565_vm4, %v22236_v58  ;;  %v3599_v58 = vld [vmem:[%s28796_s3 + $0x58] sm:$0xff] }
 0x219   : > { %14665 = vmatpush3.bf16.msra.mxu0 %v22853_v36  ;;  %2581 = vmatprep.mubr.f32.mxu0 %v28811_v9  ;;  %v22902_v51 = vpack.c.bf16 %v3599_v58, %v3598_v46  ;;  %v20276_v46 = vld [vmem:[%s28799_s6 + $0x8c] ss:$48 sps:$4 sm:$0xff]   ;;  %v20278_v58 = vld [vmem:[%s28799_s6 + $0x80] ss:$48 sps:$4 sm:$0xff]  }
 0x21a   : > { %2783 = vmatprep.mubr.f32.mxu1 %v28811_v9  ;;  %14667 = vmatprep.subr.bf16.mxu0 %v22857_v37 }
 0x21b   : > { %29364 = vst [vmem:[#allocation25_spill] sm:$0xff] %v22902_v51  ;;  %14697 = vmatprep.subr.bf16.mxu1 %v20246_v2  ;;  %v20292_v2 = vld [vmem:[%s28800_s7 + $0xc4] ss:$48 sps:$4 sm:$0xff]  }
 0x21c   : > { %13541 = vmatmul.mubr.msk.f32.gmra.mrb[44].mxu0 %vm1565_vm4, %v22259_v3  ;;  %13547 = vmatmul.mubr.msk.f32.gmra.mrb[38].mxu1 %vm1565_vm4, %v22259_v3  ;;  %v3601_v3 = vld [vmem:[%s28796_s3 + $0x68] sm:$0xff] }
 0x21d   : > { %14669 = vmatpush3.bf16.msra.mxu0 %v22878_v44  ;;  %2587 = vmatprep.mubr.f32.mxu0 %v28811_v9  ;;  %v22925_v60 = vpack.c.bf16 %v3601_v3, %v3600_v55  ;;  %v20282_v55 = vld [vmem:[%s28800_s7 + $0xc] ss:$48 sps:$4 sm:$0xff]   ;;  %v20284_v3 = vld [vmem:[%s28800_s7] ss:$48 sps:$4 sm:$0xff]  }
 0x21e   : > { %2789 = vmatprep.mubr.f32.mxu1 %v28811_v9  ;;  %14671 = vmatprep.subr.bf16.mxu0 %v22882_v45 }
 0x21f   : > { %29366 = vst [vmem:[#allocation27_spill] sm:$0xff] %v22925_v60 }
 0x220   : > { %13542 = vmatmul.mubr.msk.f32.gmra.mrb[46].mxu0 %vm1565_vm4, %v22279_v11  ;;  %13548 = vmatmul.mubr.msk.f32.gmra.mrb[40].mxu1 %vm1565_vm4, %v22279_v11  ;;  %v22941_v11 = vpack.c.bf16 %v3603_v0, %v3602_v62  ;;  %v20288_v62 = vld [vmem:[%s28800_s7 + $0x6c] ss:$48 sps:$4 sm:$0xff]   ;;  %v20290_v0 = vld [vmem:[%s28800_s7 + $0x60] ss:$48 sps:$4 sm:$0xff]  }
 0x221   : > { %14673 = vmatpush3.bf16.msra.mxu0 %v22902_v51  ;;  %3698 = vmatprep.mubr.f32.mxu0 %v28811_v9 }
 0x222   : > { %14675 = vmatprep.subr.bf16.mxu0 %v22906_v54  ;;  %14077 = vmatprep.mubr.msk.f32.mxu1 %vm21602_vm5, %v28811_v9  ;;  %29368 = vst [vmem:[#allocation29_spill] sm:$0xff] %v22941_v11 }
 0x224   : > { %14078 = vmatmul.mubr.f32.vlgmr.msra.gmra.mrb[42].mxu1 %v28811_v9 }
 0x225   : > { %14677 = vmatpush3.bf16.msra.mxu0 %v22925_v60  ;;  %3925 = vmatprep.mubr.f32.mxu1 %v28811_v9 }
 0x226   : > { %14679 = vmatprep.subr.bf16.mxu0 %v22929_v61  ;;  %14699 = vmatpush1.bf16.msra.mxu1 %v20249_v5  ;;  %v20296_v5 = vld [vmem:[%s28800_s7 + $0xc0] ss:$48 sps:$4 sm:$0xff]  }
 0x227   : > { %14701 = vmatprep.subr.bf16.mxu1 %v20252_v6  ;;  %v20298_v6 = vld [vmem:[%s28800_s7 + $0x124] ss:$48 sps:$4 sm:$0xff]  }
 0x229   : > { %14681 = vmatpush3.bf16.msra.mxu0 %v22941_v11 }
 0x22a   : > { %14689 = vmatprep.subr.bf16.mxu0 %v20244_v1  ;;  %14703 = vmatpush1.bf16.msra.mxu1 %v20255_v7  ;;  %v20291_v1 = vld [vmem:[%s28800_s7 + $0x68] ss:$48 sps:$4 sm:$0xff]   ;;  %v20302_v7 = vld [vmem:[%s28800_s7 + $0x120] ss:$48 sps:$4 sm:$0xff]  }
 0x22b   : > { %14713 = vmatprep.subr.bf16.mxu1 %v20258_v17  ;;  %v20304_v17 = vld [vmem:[%s28800_s7 + $0x184] ss:$48 sps:$4 sm:$0xff]  }
 0x22c   : > { %3699 = vmatmul.mubr.f32.vlgmr.msra.gmra.mrb[48].mxu0 %v28811_v9 }
 0x22d   : > { %3854 = vmatprep.mubr.f32.mxu0 %v28811_v9  ;;  %14691 = vmatpush1.bf16.msra.mxu0 %v20248_v4  ;;  %v20294_v4 = vld [vmem:[%s28800_s7 + $0xcc] ss:$48 sps:$4 sm:$0xff]  }
 0x22e   : > { %14693 = vmatprep.subr.bf16.mxu0 %v20250_v53  ;;  %v20297_v53 = vld [vmem:[%s28800_s7 + $0xc8] ss:$48 sps:$4 sm:$0xff]  }
 0x231   : > { %14695 = vmatpush1.bf16.msra.mxu0 %v20254_v63  ;;  %v20300_v63 = vld [vmem:[%s28800_s7 + $0x12c] ss:$48 sps:$4 sm:$0xff]  }
 0x232   : > { %14705 = vmatprep.subr.bf16.mxu0 %v20256_v10  ;;  %v20303_v10 = vld [vmem:[%s28800_s7 + $0x128] ss:$48 sps:$4 sm:$0xff]  }
 0x2f7   : > { %v3770_v19 = vpop.f32.mrb[42].mxu1 }
 0x2f8   : > { %v14079_v26 = vpop.f32.mrb[43].mxu1 }
 0x2f9   : > { %v20308_v26 = vld [vmem:[%s28800_s7 + $0x180] ss:$48 sps:$4 sm:$0xff]  }
 0x2ff   : > { %v13768_v34 = vpop.f32.mrb[48].mxu0 }
 0x300   : > { %v13769_v8 = vpop.f32.mrb[49].mxu0 }
 0x301   : > { %v13770_v13 = vadd.f32 %v13769_v8, %v13768_v34  ;;  %v20309_v34 = vld [vmem:[%s28800_s7 + $0x188] ss:$48 sps:$4 sm:$0xff]   ;;  %v20310_v8 = vld [vmem:[%s28800_s7 + $0x1e4] ss:$48 sps:$4 sm:$0xff]  }
 0x303   : > { %v3701_v20 = vadd.f32 %v13770_v13, %v13549_v12  ;;  %v20312_v12 = vld [vmem:[%s28800_s7 + $0x1ec] ss:$48 sps:$4 sm:$0xff]   ;;  %v20314_v13 = vld [vmem:[%s28800_s7 + $0x1e0] ss:$48 sps:$4 sm:$0xff]  }
 0x305   : > { %v3771_v35 = vadd.f32 %v3770_v19, %v3701_v20  ;;  %v20306_v19 = vld [vmem:[%s28800_s7 + $0x18c] ss:$48 sps:$4 sm:$0xff]   ;;  %v20315_v20 = vld [vmem:[%s28800_s7 + $0x1e8] ss:$48 sps:$4 sm:$0xff]  }
 0x307   : > { %v3774_v23 = vmax.f32 %v3771_v35, 0.0  ;;  %v20316_v35 = vld [vmem:[%s28800_s7 + $0x244] ss:$48 sps:$4 sm:$0xff]  }
 0x309   : > { %13550 = vmatmul.mubr.msk.f32.vlgmr.msra.gmra.mrb[12].mxu0 %vm1565_vm4, %v3774_v23  ;;  %13551 = vmatmul.mubr.msk.f32.vlgmr.msra.gmra.mrb[6].mxu1 %vm1565_vm4, %v3774_v23 }
 0x30a   : > { %14707 = vmatpush1.bf16.msra.mxu0 %v20260_v21  ;;  %14715 = vmatpush1.bf16.msra.mxu1 %v20261_v22  ;;  %v20318_v21 = vld [vmem:[%s28800_s7 + $0x24c] ss:$48 sps:$4 sm:$0xff]   ;;  %v20320_v22 = vld [vmem:[%s28800_s7 + $0x240] ss:$48 sps:$4 sm:$0xff]  }
 0x30b   : > { %14709 = vmatprep.subr.bf16.mxu0 %v20262_v24  ;;  %14717 = vmatprep.subr.bf16.mxu1 %v20264_v47  ;;  %v20322_v24 = vld [vmem:[%s28800_s7 + $0x2a4] ss:$48 sps:$4 sm:$0xff]   ;;  %v20324_v47 = vld [vmem:[%s28800_s7 + $0x2ac] ss:$48 sps:$4 sm:$0xff]  }
 0x30c   : > { %3996 = vmatprep.mubr.f32.mxu0 %v28811_v9  ;;  %4067 = vmatprep.mubr.f32.mxu1 %v28811_v9 }
 0x30e   : > { %14711 = vmatpush1.bf16.msra.mxu0 %v20266_v29  ;;  %14719 = vmatpush1.bf16.msra.mxu1 %v20267_v30  ;;  %v20326_v29 = vld [vmem:[%s28800_s7 + $0x2a0] ss:$48 sps:$4 sm:$0xff]   ;;  %v20327_v30 = vld [vmem:[%s28800_s7 + $0x2a8] ss:$48 sps:$4 sm:$0xff]  }
 0x30f   : > { %14721 = vmatprep.subr.bf16.mxu0 %v20268_v31  ;;  %14729 = vmatprep.subr.bf16.mxu1 %v20270_v38  ;;  %v20328_v31 = vld [vmem:[%s28800_s7 + $0x304] ss:$48 sps:$4 sm:$0xff]   ;;  %v20330_v38 = vld [vmem:[%s28800_s7 + $0x30c] ss:$48 sps:$4 sm:$0xff]  }
 0x311   : > { %13552 = vmatmul.mubr.msk.f32.vlgmr.msra.gmra.mrb[24].mxu0 %vm1565_vm4, %v3774_v23  ;;  %13553 = vmatmul.mubr.msk.f32.vlgmr.msra.gmra.mrb[18].mxu1 %vm1565_vm4, %v3774_v23 }
 0x312   : > { %14723 = vmatpush1.bf16.msra.mxu0 %v20272_v52  ;;  %14731 = vmatpush1.bf16.msra.mxu1 %v20273_v41  ;;  %v20332_v52 = vld [vmem:[%s28800_s7 + $0x300] ss:$48 sps:$4 sm:$0xff]   ;;  %v20333_v41 = vld [vmem:[%s28800_s7 + $0x308] ss:$48 sps:$4 sm:$0xff]  }
 0x313   : > { %14725 = vmatprep.subr.bf16.mxu0 %v20274_v43  ;;  %14733 = vmatprep.subr.bf16.mxu1 %v20276_v46  ;;  %v20334_v43 = vld [vmem:[%s28800_s7 + $0x364] ss:$48 sps:$4 sm:$0xff]   ;;  %v20336_v46 = vld [vmem:[%s28800_s7 + $0x36c] ss:$48 sps:$4 sm:$0xff]  }
 0x314   : > { %4138 = vmatprep.mubr.f32.mxu0 %v28811_v9  ;;  %4209 = vmatprep.mubr.f32.mxu1 %v28811_v9 }
 0x316   : > { %14727 = vmatpush1.bf16.msra.mxu0 %v20278_v58  ;;  %14735 = vmatpush1.bf16.msra.mxu1 %v20279_v48  ;;  %v20338_v58 = vld [vmem:[%s28800_s7 + $0x360] ss:$48 sps:$4 sm:$0xff]   ;;  %v20339_v48 = vld [vmem:[%s28800_s7 + $0x368] ss:$48 sps:$4 sm:$0xff]  }
 0x317   : > { %14737 = vmatprep.subr.bf16.mxu0 %v20280_v50  ;;  %14809 = vmatprep.subr.bf16.mxu1 %v20282_v55  ;;  %v20340_v50 = vld [vmem:[%s28800_s7 + $0x3c4] ss:$48 sps:$4 sm:$0xff]   ;;  %v20342_v55 = vld [vmem:[%s28800_s7 + $0x3cc] ss:$48 sps:$4 sm:$0xff]  }
 0x319   : > { %13554 = vmatmul.mubr.msk.f32.vlgmr.msra.gmra.mrb[36].mxu0 %vm1565_vm4, %v3774_v23  ;;  %13555 = vmatmul.mubr.msk.f32.vlgmr.msra.gmra.mrb[30].mxu1 %vm1565_vm4, %v3774_v23  ;;  %v20321_v23 = vld [vmem:[%s28800_s7 + $0x248] ss:$48 sps:$4 sm:$0xff]  }
 0x31a   : > { %14739 = vmatpush1.bf16.msra.mxu0 %v20284_v3  ;;  %14811 = vmatpush1.bf16.msra.mxu1 %v20285_v56  ;;  %v20344_v3 = vld [vmem:[%s28800_s7 + $0x3c0] ss:$48 sps:$4 sm:$0xff]   ;;  %v20345_v56 = vld [vmem:[%s28800_s7 + $0x3c8] ss:$48 sps:$4 sm:$0xff]  }
 0x31b   : > { %14741 = vmatprep.subr.bf16.mxu0 %v20286_v57  ;;  %14813 = vmatprep.subr.bf16.mxu1 %v20288_v62  ;;  %v20346_v57 = vld [vmem:[%s28800_s7 + $0x424] ss:$48 sps:$4 sm:$0xff]   ;;  %v20348_v62 = vld [vmem:[%s28800_s7 + $0x42c] ss:$48 sps:$4 sm:$0xff]  }
 0x31c   : > { %4292 = vmatprep.mubr.f32.mxu0 %v28811_v9  ;;  %4434 = vmatprep.mubr.f32.mxu1 %v28811_v9 }
 0x31e   : > { %14743 = vmatpush1.bf16.msra.mxu0 %v20290_v0  ;;  %14815 = vmatpush1.bf16.msra.mxu1 %v20291_v1  ;;  %v20350_v0 = vld [vmem:[%s28800_s7 + $0x420] ss:$48 sps:$4 sm:$0xff]   ;;  %v20351_v1 = vld [vmem:[%s28800_s7 + $0x428] ss:$48 sps:$4 sm:$0xff]  }
 0x31f   : > { %14745 = vmatprep.subr.bf16.mxu0 %v20292_v2  ;;  %14817 = vmatprep.subr.bf16.mxu1 %v20294_v4  ;;  %v20352_v2 = vld [vmem:[%s28800_s7 + $0x484] ss:$48 sps:$4 sm:$0xff]   ;;  %v20354_v4 = vld [vmem:[%s28800_s7 + $0x48c] ss:$48 sps:$4 sm:$0xff]  }
 0x322   : > { %14747 = vmatpush1.bf16.msra.mxu0 %v20296_v5  ;;  %14819 = vmatpush1.bf16.msra.mxu1 %v20297_v53  ;;  %v20356_v5 = vld [vmem:[%s28800_s7 + $0x480] ss:$48 sps:$4 sm:$0xff]   ;;  %v20357_v53 = vld [vmem:[%s28800_s7 + $0x488] ss:$48 sps:$4 sm:$0xff]  }
 0x323   : > { %14749 = vmatprep.subr.bf16.mxu0 %v20298_v6  ;;  %14821 = vmatprep.subr.bf16.mxu1 %v20300_v63  ;;  %v20358_v6 = vld [vmem:[%s28800_s7 + $0x4e4] ss:$48 sps:$4 sm:$0xff]   ;;  %v20360_v63 = vld [vmem:[%s28800_s7 + $0x4ec] ss:$48 sps:$4 sm:$0xff]  }
 0x326   : > { %14751 = vmatpush1.bf16.msra.mxu0 %v20302_v7  ;;  %14823 = vmatpush1.bf16.msra.mxu1 %v20303_v10  ;;  %v20362_v7 = vld [vmem:[%s28800_s7 + $0x4e0] ss:$48 sps:$4 sm:$0xff]   ;;  %v20363_v10 = vld [vmem:[%s28800_s7 + $0x4e8] ss:$48 sps:$4 sm:$0xff]  }
 0x327   : > { %14753 = vmatprep.subr.bf16.mxu0 %v20304_v17  ;;  %14825 = vmatprep.subr.bf16.mxu1 %v20306_v19  ;;  %v20364_v17 = vld [vmem:[%s28800_s7 + $0x544] ss:$48 sps:$4 sm:$0xff]   ;;  %v20366_v19 = vld [vmem:[%s28800_s7 + $0x54c] ss:$48 sps:$4 sm:$0xff]  }
 0x32a   : > { %14755 = vmatpush1.bf16.msra.mxu0 %v20308_v26  ;;  %14827 = vmatpush1.bf16.msra.mxu1 %v20309_v34  ;;  %v20368_v26 = vld [vmem:[%s28800_s7 + $0x540] ss:$48 sps:$4 sm:$0xff]   ;;  %v20369_v34 = vld [vmem:[%s28800_s7 + $0x548] ss:$48 sps:$4 sm:$0xff]  }
 0x32b   : > { %14757 = vmatprep.subr.bf16.mxu0 %v20310_v8  ;;  %14829 = vmatprep.subr.bf16.mxu1 %v20312_v12  ;;  %v20370_v8 = vld [vmem:[%s28800_s7 + $0x5a4] ss:$48 sps:$4 sm:$0xff]   ;;  %v20372_v12 = vld [vmem:[%s28800_s7 + $0x5ac] ss:$48 sps:$4 sm:$0xff]  }
 0x32e   : > { %14759 = vmatpush1.bf16.msra.mxu0 %v20314_v13  ;;  %14831 = vmatpush1.bf16.msra.mxu1 %v20315_v20  ;;  %v20374_v13 = vld [vmem:[%s28800_s7 + $0x5a0] ss:$48 sps:$4 sm:$0xff]   ;;  %v20375_v20 = vld [vmem:[%s28800_s7 + $0x5a8] ss:$48 sps:$4 sm:$0xff]  }
 0x32f   : > { %14761 = vmatprep.subr.bf16.mxu0 %v20316_v35  ;;  %14833 = vmatprep.subr.bf16.mxu1 %v20318_v21  ;;  %v20376_v35 = vld [vmem:[%s28800_s7 + $0x604] ss:$48 sps:$4 sm:$0xff]   ;;  %v20378_v21 = vld [vmem:[%s28800_s7 + $0x60c] ss:$48 sps:$4 sm:$0xff]  }
 0x332   : > { %14763 = vmatpush1.bf16.msra.mxu0 %v20320_v22  ;;  %14835 = vmatpush1.bf16.msra.mxu1 %v20321_v23  ;;  %v20380_v22 = vld [vmem:[%s28800_s7 + $0x600] ss:$48 sps:$4 sm:$0xff]   ;;  %v20381_v23 = vld [vmem:[%s28800_s7 + $0x608] ss:$48 sps:$4 sm:$0xff]  }
 0x333   : > { %14765 = vmatprep.subr.bf16.mxu0 %v20322_v24  ;;  %14837 = vmatprep.subr.bf16.mxu1 %v20324_v47  ;;  %v20382_v24 = vld [vmem:[%s28800_s7 + $0x664] ss:$48 sps:$4 sm:$0xff]   ;;  %v20384_v47 = vld [vmem:[%s28800_s7 + $0x66c] ss:$48 sps:$4 sm:$0xff]  }
 0x336   : > { %14767 = vmatpush1.bf16.msra.mxu0 %v20326_v29  ;;  %14839 = vmatpush1.bf16.msra.mxu1 %v20327_v30  ;;  %v20386_v29 = vld [vmem:[%s28800_s7 + $0x660] ss:$48 sps:$4 sm:$0xff]   ;;  %v20387_v30 = vld [vmem:[%s28800_s7 + $0x668] ss:$48 sps:$4 sm:$0xff]  }
 0x337   : > { %14769 = vmatprep.subr.bf16.mxu0 %v20328_v31  ;;  %14841 = vmatprep.subr.bf16.mxu1 %v20330_v38  ;;  %v20388_v31 = vld [vmem:[%s28800_s7 + $0x14] ss:$48 sps:$4 sm:$0xff]   ;;  %v20390_v38 = vld [vmem:[%s28800_s7 + $0x1c] ss:$48 sps:$4 sm:$0xff]  }
 0x33a   : > { %14771 = vmatpush1.bf16.msra.mxu0 %v20332_v52  ;;  %14843 = vmatpush1.bf16.msra.mxu1 %v20333_v41  ;;  %v20392_v52 = vld [vmem:[%s28800_s7 + $0x10] ss:$48 sps:$4 sm:$0xff]   ;;  %v20393_v41 = vld [vmem:[%s28800_s7 + $0x18] ss:$48 sps:$4 sm:$0xff]  }
 0x33b   : > { %14773 = vmatprep.subr.bf16.mxu0 %v20334_v43  ;;  %14845 = vmatprep.subr.bf16.mxu1 %v20336_v46  ;;  %v20394_v43 = vld [vmem:[%s28800_s7 + $0x74] ss:$48 sps:$4 sm:$0xff]   ;;  %v20396_v46 = vld [vmem:[%s28800_s7 + $0x7c] ss:$48 sps:$4 sm:$0xff]  }
 0x33e   : > { %14775 = vmatpush1.bf16.msra.mxu0 %v20338_v58  ;;  %14847 = vmatpush1.bf16.msra.mxu1 %v20339_v48  ;;  %v20398_v58 = vld [vmem:[%s28800_s7 + $0x70] ss:$48 sps:$4 sm:$0xff]   ;;  %v20399_v48 = vld [vmem:[%s28800_s7 + $0x78] ss:$48 sps:$4 sm:$0xff]  }
 0x33f   : > { %14777 = vmatprep.subr.bf16.mxu0 %v20340_v50  ;;  %14849 = vmatprep.subr.bf16.mxu1 %v20342_v55  ;;  %v20400_v50 = vld [vmem:[%s28800_s7 + $0xd4] ss:$48 sps:$4 sm:$0xff]   ;;  %v20402_v55 = vld [vmem:[%s28800_s7 + $0xdc] ss:$48 sps:$4 sm:$0xff]  }
 0x342   : > { %14779 = vmatpush1.bf16.msra.mxu0 %v20344_v3  ;;  %14851 = vmatpush1.bf16.msra.mxu1 %v20345_v56  ;;  %v20404_v3 = vld [vmem:[%s28800_s7 + $0xd0] ss:$48 sps:$4 sm:$0xff]   ;;  %v20405_v56 = vld [vmem:[%s28800_s7 + $0xd8] ss:$48 sps:$4 sm:$0xff]  }
 0x343   : > { %14781 = vmatprep.subr.bf16.mxu0 %v20346_v57  ;;  %14853 = vmatprep.subr.bf16.mxu1 %v20348_v62  ;;  %v20406_v57 = vld [vmem:[%s28800_s7 + $0x134] ss:$48 sps:$4 sm:$0xff]   ;;  %v20408_v62 = vld [vmem:[%s28800_s7 + $0x13c] ss:$48 sps:$4 sm:$0xff]  }
 0x346   : > { %14783 = vmatpush1.bf16.msra.mxu0 %v20350_v0  ;;  %14855 = vmatpush1.bf16.msra.mxu1 %v20351_v1  ;;  %v20410_v0 = vld [vmem:[%s28800_s7 + $0x130] ss:$48 sps:$4 sm:$0xff]   ;;  %v20411_v1 = vld [vmem:[%s28800_s7 + $0x138] ss:$48 sps:$4 sm:$0xff]  }
 0x347   : > { %14785 = vmatprep.subr.bf16.mxu0 %v20352_v2  ;;  %14857 = vmatprep.subr.bf16.mxu1 %v20354_v4  ;;  %v20412_v2 = vld [vmem:[%s28800_s7 + $0x194] ss:$48 sps:$4 sm:$0xff]   ;;  %v20414_v4 = vld [vmem:[%s28800_s7 + $0x19c] ss:$48 sps:$4 sm:$0xff]  }
 0x34a   : > { %14787 = vmatpush1.bf16.msra.mxu0 %v20356_v5  ;;  %14859 = vmatpush1.bf16.msra.mxu1 %v20357_v53  ;;  %v20416_v5 = vld [vmem:[%s28800_s7 + $0x190] ss:$48 sps:$4 sm:$0xff]   ;;  %v20417_v53 = vld [vmem:[%s28800_s7 + $0x198] ss:$48 sps:$4 sm:$0xff]  }
 0x34b   : > { %14789 = vmatprep.subr.bf16.mxu0 %v20358_v6  ;;  %14861 = vmatprep.subr.bf16.mxu1 %v20360_v63  ;;  %v20418_v6 = vld [vmem:[%s28800_s7 + $0x1f4] ss:$48 sps:$4 sm:$0xff]   ;;  %v20420_v63 = vld [vmem:[%s28800_s7 + $0x1fc] ss:$48 sps:$4 sm:$0xff]  }
 0x34e   : > { %14791 = vmatpush1.bf16.msra.mxu0 %v20362_v7  ;;  %14863 = vmatpush1.bf16.msra.mxu1 %v20363_v10  ;;  %v20422_v7 = vld [vmem:[%s28800_s7 + $0x1f0] ss:$48 sps:$4 sm:$0xff]   ;;  %v20423_v10 = vld [vmem:[%s28800_s7 + $0x1f8] ss:$48 sps:$4 sm:$0xff]  }
 0x34f   : > { %14793 = vmatprep.subr.bf16.mxu0 %v20364_v17  ;;  %14865 = vmatprep.subr.bf16.mxu1 %v20366_v19  ;;  %v20424_v17 = vld [vmem:[%s28800_s7 + $0x254] ss:$48 sps:$4 sm:$0xff]   ;;  %v20426_v19 = vld [vmem:[%s28800_s7 + $0x25c] ss:$48 sps:$4 sm:$0xff]  }
 0x352   : > { %14795 = vmatpush1.bf16.msra.mxu0 %v20368_v26  ;;  %14867 = vmatpush1.bf16.msra.mxu1 %v20369_v34  ;;  %v20428_v26 = vld [vmem:[%s28800_s7 + $0x250] ss:$48 sps:$4 sm:$0xff]   ;;  %v20429_v34 = vld [vmem:[%s28800_s7 + $0x258] ss:$48 sps:$4 sm:$0xff]  }
 0x353   : > { %14797 = vmatprep.subr.bf16.mxu0 %v20370_v8  ;;  %14869 = vmatprep.subr.bf16.mxu1 %v20372_v12  ;;  %v20430_v8 = vld [vmem:[%s28800_s7 + $0x2b4] ss:$48 sps:$4 sm:$0xff]   ;;  %v20432_v12 = vld [vmem:[%s28800_s7 + $0x2bc] ss:$48 sps:$4 sm:$0xff]  }
 0x356   : > { %14799 = vmatpush1.bf16.msra.mxu0 %v20374_v13  ;;  %14871 = vmatpush1.bf16.msra.mxu1 %v20375_v20  ;;  %v20434_v13 = vld [vmem:[%s28800_s7 + $0x2b0] ss:$48 sps:$4 sm:$0xff]   ;;  %v20435_v20 = vld [vmem:[%s28800_s7 + $0x2b8] ss:$48 sps:$4 sm:$0xff]  }
 0x357   : > { %14801 = vmatprep.subr.bf16.mxu0 %v20376_v35  ;;  %14873 = vmatprep.subr.bf16.mxu1 %v20378_v21  ;;  %v20436_v35 = vld [vmem:[%s28800_s7 + $0x314] ss:$48 sps:$4 sm:$0xff]   ;;  %v20438_v21 = vld [vmem:[%s28800_s7 + $0x31c] ss:$48 sps:$4 sm:$0xff]  }
 0x359   : > { %4293 = vmatmul.mubr.f32.vlgmr.msra.gmra.mrb[12].mxu0 %v28811_v9  ;;  %4435 = vmatmul.mubr.f32.vlgmr.msra.gmra.mrb[6].mxu1 %v28811_v9 }
 0x35a   : > { %14803 = vmatpush1.bf16.msra.mxu0 %v20380_v22  ;;  %14875 = vmatpush1.bf16.msra.mxu1 %v20381_v23  ;;  %v20440_v22 = vld [vmem:[%s28800_s7 + $0x310] ss:$48 sps:$4 sm:$0xff]   ;;  %v20441_v23 = vld [vmem:[%s28800_s7 + $0x318] ss:$48 sps:$4 sm:$0xff]  }
 0x35b   : > { %14805 = vmatprep.subr.bf16.mxu0 %v20382_v24  ;;  %14877 = vmatprep.subr.bf16.mxu1 %v20384_v47  ;;  %v20442_v24 = vld [vmem:[%s28800_s7 + $0x374] ss:$48 sps:$4 sm:$0xff]   ;;  %v20444_v47 = vld [vmem:[%s28800_s7 + $0x37c] ss:$48 sps:$4 sm:$0xff]  }
 0x35c   : > { %4363 = vmatprep.mubr.f32.mxu0 %v28811_v9  ;;  %4505 = vmatprep.mubr.f32.mxu1 %v28811_v9 }
 0x35e   : > { %14807 = vmatpush1.bf16.msra.mxu0 %v20386_v29  ;;  %14879 = vmatpush1.bf16.msra.mxu1 %v20387_v30  ;;  %v20446_v29 = vld [vmem:[%s28800_s7 + $0x370] ss:$48 sps:$4 sm:$0xff]   ;;  %v20447_v30 = vld [vmem:[%s28800_s7 + $0x378] ss:$48 sps:$4 sm:$0xff]  }
 0x35f   : > { %14881 = vmatprep.subr.bf16.mxu0 %v20388_v31  ;;  %14953 = vmatprep.subr.bf16.mxu1 %v20390_v38  ;;  %v20448_v31 = vld [vmem:[%s28800_s7 + $0x3d4] ss:$48 sps:$4 sm:$0xff]   ;;  %v20450_v38 = vld [vmem:[%s28800_s7 + $0x3dc] ss:$48 sps:$4 sm:$0xff]  }
 0x361   : > { %4364 = vmatmul.mubr.f32.vlgmr.msra.gmra.mrb[12].mxu0 %v28811_v9  ;;  %4506 = vmatmul.mubr.f32.vlgmr.msra.gmra.mrb[6].mxu1 %v28811_v9 }
 0x362   : > { %14883 = vmatpush1.bf16.msra.mxu0 %v20392_v52  ;;  %14955 = vmatpush1.bf16.msra.mxu1 %v20393_v41  ;;  %v20452_v52 = vld [vmem:[%s28800_s7 + $0x3d0] ss:$48 sps:$4 sm:$0xff]   ;;  %v20453_v41 = vld [vmem:[%s28800_s7 + $0x3d8] ss:$48 sps:$4 sm:$0xff]  }
 0x363   : > { %14885 = vmatprep.subr.bf16.mxu0 %v20394_v43  ;;  %14957 = vmatprep.subr.bf16.mxu1 %v20396_v46  ;;  %v20454_v43 = vld [vmem:[%s28800_s7 + $0x434] ss:$48 sps:$4 sm:$0xff]   ;;  %v20456_v46 = vld [vmem:[%s28800_s7 + $0x43c] ss:$48 sps:$4 sm:$0xff]  }
 0x364   : > { %4576 = vmatprep.mubr.f32.mxu0 %v28811_v9  ;;  %4718 = vmatprep.mubr.f32.mxu1 %v28811_v9 }
 0x366   : > { %14887 = vmatpush1.bf16.msra.mxu0 %v20398_v58  ;;  %14959 = vmatpush1.bf16.msra.mxu1 %v20399_v48  ;;  %v20458_v58 = vld [vmem:[%s28800_s7 + $0x430] ss:$48 sps:$4 sm:$0xff]   ;;  %v20459_v48 = vld [vmem:[%s28800_s7 + $0x438] ss:$48 sps:$4 sm:$0xff]  }
 0x367   : > { %14889 = vmatprep.subr.bf16.mxu0 %v20400_v50  ;;  %14961 = vmatprep.subr.bf16.mxu1 %v20402_v55  ;;  %v20460_v50 = vld [vmem:[%s28800_s7 + $0x494] ss:$48 sps:$4 sm:$0xff]   ;;  %v20462_v55 = vld [vmem:[%s28800_s7 + $0x49c] ss:$48 sps:$4 sm:$0xff]  }
 0x36a   : > { %14891 = vmatpush1.bf16.msra.mxu0 %v20404_v3  ;;  %14963 = vmatpush1.bf16.msra.mxu1 %v20405_v56  ;;  %v20464_v3 = vld [vmem:[%s28800_s7 + $0x490] ss:$48 sps:$4 sm:$0xff]   ;;  %v20465_v56 = vld [vmem:[%s28800_s7 + $0x498] ss:$48 sps:$4 sm:$0xff]  }
 0x36b   : > { %14893 = vmatprep.subr.bf16.mxu0 %v20406_v57  ;;  %14965 = vmatprep.subr.bf16.mxu1 %v20408_v62  ;;  %v20466_v57 = vld [vmem:[%s28800_s7 + $0x4f4] ss:$48 sps:$4 sm:$0xff]   ;;  %v20468_v62 = vld [vmem:[%s28800_s7 + $0x4fc] ss:$48 sps:$4 sm:$0xff]  }
 0x36e   : > { %14895 = vmatpush1.bf16.msra.mxu0 %v20410_v0  ;;  %14967 = vmatpush1.bf16.msra.mxu1 %v20411_v1  ;;  %v20470_v0 = vld [vmem:[%s28800_s7 + $0x4f0] ss:$48 sps:$4 sm:$0xff]   ;;  %v20471_v1 = vld [vmem:[%s28800_s7 + $0x4f8] ss:$48 sps:$4 sm:$0xff]  }
 0x36f   : > { %14897 = vmatprep.subr.bf16.mxu0 %v20412_v2  ;;  %14969 = vmatprep.subr.bf16.mxu1 %v20414_v4  ;;  %v20472_v2 = vld [vmem:[%s28800_s7 + $0x554] ss:$48 sps:$4 sm:$0xff]   ;;  %v20474_v4 = vld [vmem:[%s28800_s7 + $0x55c] ss:$48 sps:$4 sm:$0xff]  }
 0x372   : > { %14899 = vmatpush1.bf16.msra.mxu0 %v20416_v5  ;;  %14971 = vmatpush1.bf16.msra.mxu1 %v20417_v53  ;;  %v20476_v5 = vld [vmem:[%s28800_s7 + $0x550] ss:$48 sps:$4 sm:$0xff]   ;;  %v20477_v53 = vld [vmem:[%s28800_s7 + $0x558] ss:$48 sps:$4 sm:$0xff]  }
 0x373   : > { %14901 = vmatprep.subr.bf16.mxu0 %v20418_v6  ;;  %14973 = vmatprep.subr.bf16.mxu1 %v20420_v63  ;;  %v20478_v6 = vld [vmem:[%s28800_s7 + $0x5b4] ss:$48 sps:$4 sm:$0xff]   ;;  %v20480_v63 = vld [vmem:[%s28800_s7 + $0x5bc] ss:$48 sps:$4 sm:$0xff]  }
 0x376   : > { %14903 = vmatpush1.bf16.msra.mxu0 %v20422_v7  ;;  %14975 = vmatpush1.bf16.msra.mxu1 %v20423_v10  ;;  %v20482_v7 = vld [vmem:[%s28800_s7 + $0x5b0] ss:$48 sps:$4 sm:$0xff]   ;;  %v20483_v10 = vld [vmem:[%s28800_s7 + $0x5b8] ss:$48 sps:$4 sm:$0xff]  }
 0x377   : > { %14905 = vmatprep.subr.bf16.mxu0 %v20424_v17  ;;  %14977 = vmatprep.subr.bf16.mxu1 %v20426_v19  ;;  %v23454_v17 = vld [vmem:[%s28800_s7 + $0x614] ss:$48 sps:$4 sm:$0xff]   ;;  %v23459_v19 = vld [vmem:[%s28800_s7 + $0x61c] ss:$48 sps:$4 sm:$0xff]  }
 0x37a   : > { %14907 = vmatpush1.bf16.msra.mxu0 %v20428_v26  ;;  %14979 = vmatpush1.bf16.msra.mxu1 %v20429_v34  ;;  %v23464_v26 = vld [vmem:[%s28800_s7 + $0x610] ss:$48 sps:$4 sm:$0xff]   ;;  %v23469_v34 = vld [vmem:[%s28800_s7 + $0x618] ss:$48 sps:$4 sm:$0xff]  }
 0x37b   : > { %14909 = vmatprep.subr.bf16.mxu0 %v20430_v8  ;;  %14981 = vmatprep.subr.bf16.mxu1 %v20432_v12  ;;  %v23476_v8 = vld [vmem:[%s28800_s7 + $0x674] ss:$48 sps:$4 sm:$0xff]   ;;  %v23481_v12 = vld [vmem:[%s28800_s7 + $0x67c] ss:$48 sps:$4 sm:$0xff]  }
 0x37e   : > { %14911 = vmatpush1.bf16.msra.mxu0 %v20434_v13  ;;  %14983 = vmatpush1.bf16.msra.mxu1 %v20435_v20  ;;  %v23490_v13 = vld [vmem:[%s28800_s7 + $0x670] ss:$48 sps:$4 sm:$0xff]   ;;  %v23495_v20 = vld [vmem:[%s28800_s7 + $0x678] ss:$48 sps:$4 sm:$0xff]  }
 0x37f   : > { %14913 = vmatprep.subr.bf16.mxu0 %v20436_v35  ;;  %14985 = vmatprep.subr.bf16.mxu1 %v20438_v21  ;;  %v23502_v35 = vld [vmem:[%s28800_s7 + $0x24] ss:$48 sps:$4 sm:$0xff]   ;;  %v23507_v21 = vld [vmem:[%s28800_s7 + $0x2c] ss:$48 sps:$4 sm:$0xff]  }
 0x382   : > { %14915 = vmatpush1.bf16.msra.mxu0 %v20440_v22  ;;  %14987 = vmatpush1.bf16.msra.mxu1 %v20441_v23  ;;  %v23516_v22 = vld [vmem:[%s28800_s7 + $0x20] ss:$48 sps:$4 sm:$0xff]   ;;  %v23521_v23 = vld [vmem:[%s28800_s7 + $0x28] ss:$48 sps:$4 sm:$0xff]  }
 0x383   : > { %14917 = vmatprep.subr.bf16.mxu0 %v20442_v24  ;;  %14989 = vmatprep.subr.bf16.mxu1 %v20444_v47  ;;  %v23528_v24 = vld [vmem:[%s28800_s7 + $0x84] ss:$48 sps:$4 sm:$0xff]   ;;  %v23533_v47 = vld [vmem:[%s28800_s7 + $0x8c] ss:$48 sps:$4 sm:$0xff]  }
 0x386   : > { %14919 = vmatpush1.bf16.msra.mxu0 %v20446_v29  ;;  %14991 = vmatpush1.bf16.msra.mxu1 %v20447_v30  ;;  %v23542_v29 = vld [vmem:[%s28800_s7 + $0x80] ss:$48 sps:$4 sm:$0xff]   ;;  %v23547_v30 = vld [vmem:[%s28800_s7 + $0x88] ss:$48 sps:$4 sm:$0xff]  }
 0x387   : > { %14921 = vmatprep.subr.bf16.mxu0 %v20448_v31  ;;  %14993 = vmatprep.subr.bf16.mxu1 %v20450_v38  ;;  %v23554_v31 = vld [vmem:[%s28800_s7 + $0xe4] ss:$48 sps:$4 sm:$0xff]   ;;  %v23559_v38 = vld [vmem:[%s28800_s7 + $0xec] ss:$48 sps:$4 sm:$0xff]  }
 0x38a   : > { %14923 = vmatpush1.bf16.msra.mxu0 %v20452_v52  ;;  %14995 = vmatpush1.bf16.msra.mxu1 %v20453_v41  ;;  %v23568_v52 = vld [vmem:[%s28800_s7 + $0xe0] ss:$48 sps:$4 sm:$0xff]   ;;  %v23573_v41 = vld [vmem:[%s28800_s7 + $0xe8] ss:$48 sps:$4 sm:$0xff]  }
 0x38b   : > { %14925 = vmatprep.subr.bf16.mxu0 %v20454_v43  ;;  %14997 = vmatprep.subr.bf16.mxu1 %v20456_v46  ;;  %v23580_v43 = vld [vmem:[%s28800_s7 + $0x144] ss:$48 sps:$4 sm:$0xff]   ;;  %v23585_v46 = vld [vmem:[%s28800_s7 + $0x14c] ss:$48 sps:$4 sm:$0xff]  }
 0x38e   : > { %14927 = vmatpush1.bf16.msra.mxu0 %v20458_v58  ;;  %14999 = vmatpush1.bf16.msra.mxu1 %v20459_v48  ;;  %v23592_v58 = vld [vmem:[%s28800_s7 + $0x140] ss:$48 sps:$4 sm:$0xff]   ;;  %v23597_v48 = vld [vmem:[%s28800_s7 + $0x148] ss:$48 sps:$4 sm:$0xff]  }
 0x38f   : > { %14929 = vmatprep.subr.bf16.mxu0 %v20460_v50  ;;  %15001 = vmatprep.subr.bf16.mxu1 %v20462_v55  ;;  %v23604_v50 = vld [vmem:[%s28800_s7 + $0x1a4] ss:$48 sps:$4 sm:$0xff]   ;;  %v23609_v55 = vld [vmem:[%s28800_s7 + $0x1ac] ss:$48 sps:$4 sm:$0xff]  }
 0x392   : > { %14931 = vmatpush1.bf16.msra.mxu0 %v20464_v3  ;;  %15003 = vmatpush1.bf16.msra.mxu1 %v20465_v56  ;;  %v23616_v3 = vld [vmem:[%s28800_s7 + $0x1a0] ss:$48 sps:$4 sm:$0xff]   ;;  %v23621_v56 = vld [vmem:[%s28800_s7 + $0x1a8] ss:$48 sps:$4 sm:$0xff]  }
 0x393   : > { %14933 = vmatprep.subr.bf16.mxu0 %v20466_v57  ;;  %15005 = vmatprep.subr.bf16.mxu1 %v20468_v62  ;;  %v23628_v57 = vld [vmem:[%s28800_s7 + $0x204] ss:$48 sps:$4 sm:$0xff]   ;;  %v23633_v62 = vld [vmem:[%s28800_s7 + $0x20c] ss:$48 sps:$4 sm:$0xff]  }
 0x396   : > { %14935 = vmatpush1.bf16.msra.mxu0 %v20470_v0  ;;  %15007 = vmatpush1.bf16.msra.mxu1 %v20471_v1  ;;  %v23640_v0 = vld [vmem:[%s28800_s7 + $0x200] ss:$48 sps:$4 sm:$0xff]   ;;  %v23645_v1 = vld [vmem:[%s28800_s7 + $0x208] ss:$48 sps:$4 sm:$0xff]  }
 0x397   : > { %14937 = vmatprep.subr.bf16.mxu0 %v20472_v2  ;;  %15009 = vmatprep.subr.bf16.mxu1 %v20474_v4  ;;  %v23652_v2 = vld [vmem:[%s28800_s7 + $0x264] ss:$48 sps:$4 sm:$0xff]   ;;  %v23657_v4 = vld [vmem:[%s28800_s7 + $0x26c] ss:$48 sps:$4 sm:$0xff]  }
 0x39a   : > { %14939 = vmatpush1.bf16.msra.mxu0 %v20476_v5  ;;  %15011 = vmatpush1.bf16.msra.mxu1 %v20477_v53  ;;  %v23664_v5 = vld [vmem:[%s28800_s7 + $0x260] ss:$48 sps:$4 sm:$0xff]   ;;  %v23669_v53 = vld [vmem:[%s28800_s7 + $0x268] ss:$48 sps:$4 sm:$0xff]  }
 0x39b   : > { %14941 = vmatprep.subr.bf16.mxu0 %v20478_v6  ;;  %15013 = vmatprep.subr.bf16.mxu1 %v20480_v63  ;;  %29369 = vst [vmem:[#allocation30_spill] sm:$0xff] %v23669_v53  ;;  %v23676_v6 = vld [vmem:[%s28800_s7 + $0x2c4] ss:$48 sps:$4 sm:$0xff]   ;;  %v23681_v63 = vld [vmem:[%s28800_s7 + $0x2cc] ss:$48 sps:$4 sm:$0xff]  }
 0x39c   : > { %29370 = vst [vmem:[#allocation31_spill] sm:$0xff] %v23676_v6  ;;  %29371 = vst [vmem:[#allocation32_spill] sm:$0xff] %v23681_v63 }
 0x39e   : > { %14943 = vmatpush1.bf16.msra.mxu0 %v20482_v7  ;;  %15015 = vmatpush1.bf16.msra.mxu1 %v20483_v10  ;;  %v23688_v7 = vld [vmem:[%s28800_s7 + $0x2c0] ss:$48 sps:$4 sm:$0xff]   ;;  %v23693_v10 = vld [vmem:[%s28800_s7 + $0x2c8] ss:$48 sps:$4 sm:$0xff]  }
 0x39f   : > { %14945 = vmatprep.subr.bf16.mxu0 %v23454_v17  ;;  %15017 = vmatprep.subr.bf16.mxu1 %v23459_v19  ;;  %29372 = vst [vmem:[#allocation33_spill] sm:$0xff] %v23688_v7  ;;  %29373 = vst [vmem:[#allocation34_spill] sm:$0xff] %v23693_v10 }
 0x3a1   : > { %4577 = vmatmul.mubr.f32.vlgmr.msra.gmra.mrb[24].mxu0 %v28811_v9  ;;  %4719 = vmatmul.mubr.f32.vlgmr.msra.gmra.mrb[18].mxu1 %v28811_v9 }
 0x3a2   : > { %14947 = vmatpush1.bf16.msra.mxu0 %v23464_v26  ;;  %15019 = vmatpush1.bf16.msra.mxu1 %v23469_v34 }
 0x3a3   : > { %14949 = vmatprep.subr.bf16.mxu0 %v23476_v8  ;;  %15021 = vmatprep.subr.bf16.mxu1 %v23481_v12 }
 0x3a4   : > { %4647 = vmatprep.mubr.f32.mxu0 %v28811_v9  ;;  %4789 = vmatprep.mubr.f32.mxu1 %v28811_v9 }
 0x3a6   : > { %14951 = vmatpush1.bf16.msra.mxu0 %v23490_v13  ;;  %15023 = vmatpush1.bf16.msra.mxu1 %v23495_v20 }
 0x3a7   : > { %15025 = vmatprep.subr.bf16.mxu0 %v23502_v35  ;;  %15097 = vmatprep.subr.bf16.mxu1 %v23507_v21 }
 0x3a9   : > { %4648 = vmatmul.mubr.f32.vlgmr.msra.gmra.mrb[24].mxu0 %v28811_v9  ;;  %4790 = vmatmul.mubr.f32.vlgmr.msra.gmra.mrb[18].mxu1 %v28811_v9 }
 0x3aa   : > { %15027 = vmatpush1.bf16.msra.mxu0 %v23516_v22  ;;  %15099 = vmatpush1.bf16.msra.mxu1 %v23521_v23 }
 0x3ab   : > { %15029 = vmatprep.subr.bf16.mxu0 %v23528_v24  ;;  %15101 = vmatprep.subr.bf16.mxu1 %v23533_v47 }
 0x3ac   : > { %4860 = vmatprep.mubr.f32.mxu0 %v28811_v9  ;;  %5002 = vmatprep.mubr.f32.mxu1 %v28811_v9  ;;  %v23705_v9 = vld [vmem:[%s28800_s7 + $0x32c] ss:$48 sps:$4 sm:$0xff]  }
 0x3ad   : > { %29375 = vst [vmem:[#allocation36_spill] sm:$0xff] %v23705_v9 }
 0x3ae   : > { %15031 = vmatpush1.bf16.msra.mxu0 %v23542_v29  ;;  %15103 = vmatpush1.bf16.msra.mxu1 %v23547_v30 }
 0x3af   : > { %15033 = vmatprep.subr.bf16.mxu0 %v23554_v31  ;;  %15105 = vmatprep.subr.bf16.mxu1 %v23559_v38 }
 0x3b2   : > { %15035 = vmatpush1.bf16.msra.mxu0 %v23568_v52  ;;  %15107 = vmatpush1.bf16.msra.mxu1 %v23573_v41 }
 0x3b3   : > { %15037 = vmatprep.subr.bf16.mxu0 %v23580_v43  ;;  %15109 = vmatprep.subr.bf16.mxu1 %v23585_v46 }
 0x3b6   : > { %15039 = vmatpush1.bf16.msra.mxu0 %v23592_v58  ;;  %15111 = vmatpush1.bf16.msra.mxu1 %v23597_v48 }
 0x3b7   : > { %15041 = vmatprep.subr.bf16.mxu0 %v23604_v50  ;;  %15113 = vmatprep.subr.bf16.mxu1 %v23609_v55 }
 0x3ba   : > { %15043 = vmatpush1.bf16.msra.mxu0 %v23616_v3  ;;  %15115 = vmatpush1.bf16.msra.mxu1 %v23621_v56 }
 0x3bb   : > { %15045 = vmatprep.subr.bf16.mxu0 %v23628_v57  ;;  %15117 = vmatprep.subr.bf16.mxu1 %v23633_v62 }
 0x3be   : > { %15047 = vmatpush1.bf16.msra.mxu0 %v23640_v0  ;;  %15119 = vmatpush1.bf16.msra.mxu1 %v23645_v1 }
 0x3bf   : > { %15049 = vmatprep.subr.bf16.mxu0 %v23652_v2  ;;  %15121 = vmatprep.subr.bf16.mxu1 %v23657_v4 }
 0x3c2   : > { %15051 = vmatpush1.bf16.msra.mxu0 %v23664_v5  ;;  %15123 = vmatpush1.bf16.msra.mxu1 %v23669_v53  ;;  %v29410_v53 = vmov 0.0  }
 0x3c3   : > { %15053 = vmatprep.subr.bf16.mxu0 %v23676_v6  ;;  %15125 = vmatprep.subr.bf16.mxu1 %v23681_v63  ;;  %v23712_v6 = vld [vmem:[%s28800_s7 + $0x320] ss:$48 sps:$4 sm:$0xff]   ;;  %v23717_v63 = vld [vmem:[%s28800_s7 + $0x328] ss:$48 sps:$4 sm:$0xff]  }
 0x3c4   : > { %29376 = vst [vmem:[#allocation37_spill] sm:$0xff] %v23712_v6  ;;  %29377 = vst [vmem:[#allocation38_spill] sm:$0xff] %v23717_v63 }
 0x3c6   : > { %15055 = vmatpush1.bf16.msra.mxu0 %v23688_v7  ;;  %15127 = vmatpush1.bf16.msra.mxu1 %v23693_v10  ;;  %v23724_v7 = vld [vmem:[%s28800_s7 + $0x384] ss:$48 sps:$4 sm:$0xff]   ;;  %v23729_v10 = vld [vmem:[%s28800_s7 + $0x38c] ss:$48 sps:$4 sm:$0xff]  }
 0x3c7   : > { %15057 = vmatprep.subr.bf16.mxu0 %v23700_v59  ;;  %15129 = vmatprep.subr.bf16.mxu1 %v23705_v9  ;;  %29378 = vst [vmem:[#allocation39_spill] sm:$0xff] %v23724_v7  ;;  %29379 = vst [vmem:[#allocation40_spill] sm:$0xff] %v23729_v10  ;;  %v23736_v59 = vld [vmem:[%s28800_s7 + $0x380] ss:$48 sps:$4 sm:$0xff]   ;;  %v23741_v9 = vld [vmem:[%s28800_s7 + $0x388] ss:$48 sps:$4 sm:$0xff]  }
 0x3c8   : > { %29380 = vst [vmem:[#allocation41_spill] sm:$0xff] %v23736_v59  ;;  %29381 = vst [vmem:[#allocation42_spill] sm:$0xff] %v23741_v9 }
 0x3ca   : > { %15059 = vmatpush1.bf16.msra.mxu0 %v23712_v6  ;;  %15131 = vmatpush1.bf16.msra.mxu1 %v23717_v63  ;;  %v23748_v6 = vld [vmem:[%s28800_s7 + $0x3e4] ss:$48 sps:$4 sm:$0xff]   ;;  %v23753_v63 = vld [vmem:[%s28800_s7 + $0x3ec] ss:$48 sps:$4 sm:$0xff]  }
 0x3cb   : > { %15061 = vmatprep.subr.bf16.mxu0 %v23724_v7  ;;  %15133 = vmatprep.subr.bf16.mxu1 %v23729_v10  ;;  %29382 = vst [vmem:[#allocation43_spill] sm:$0xff] %v23748_v6  ;;  %29383 = vst [vmem:[#allocation44_spill] sm:$0xff] %v23753_v63  ;;  %v23760_v7 = vld [vmem:[%s28800_s7 + $0x3e0] ss:$48 sps:$4 sm:$0xff]   ;;  %v23765_v10 = vld [vmem:[%s28800_s7 + $0x3e8] ss:$48 sps:$4 sm:$0xff]  }
 0x3cc   : > { %29384 = vst [vmem:[#allocation45_spill] sm:$0xff] %v23760_v7  ;;  %29385 = vst [vmem:[#allocation46_spill] sm:$0xff] %v23765_v10 }
 0x3ce   : > { %15063 = vmatpush1.bf16.msra.mxu0 %v23736_v59  ;;  %15135 = vmatpush1.bf16.msra.mxu1 %v23741_v9  ;;  %v23772_v59 = vld [vmem:[%s28800_s7 + $0x444] ss:$48 sps:$4 sm:$0xff]   ;;  %v23777_v9 = vld [vmem:[%s28800_s7 + $0x44c] ss:$48 sps:$4 sm:$0xff]  }
 0x3cf   : > { %15065 = vmatprep.subr.bf16.mxu0 %v23748_v6  ;;  %15137 = vmatprep.subr.bf16.mxu1 %v23753_v63  ;;  %29386 = vst [vmem:[#allocation47_spill] sm:$0xff] %v23772_v59  ;;  %29387 = vst [vmem:[#allocation48_spill] sm:$0xff] %v23777_v9  ;;  %v23784_v6 = vld [vmem:[%s28800_s7 + $0x440] ss:$48 sps:$4 sm:$0xff]   ;;  %v23789_v63 = vld [vmem:[%s28800_s7 + $0x448] ss:$48 sps:$4 sm:$0xff]  }
 0x3d0   : > { %29388 = vst [vmem:[#allocation49_spill] sm:$0xff] %v23784_v6  ;;  %29389 = vst [vmem:[#allocation50_spill] sm:$0xff] %v23789_v63 }
 0x3d2   : > { %15067 = vmatpush1.bf16.msra.mxu0 %v23760_v7  ;;  %15139 = vmatpush1.bf16.msra.mxu1 %v23765_v10  ;;  %v23796_v7 = vld [vmem:[%s28800_s7 + $0x4a4] ss:$48 sps:$4 sm:$0xff]   ;;  %v23801_v10 = vld [vmem:[%s28800_s7 + $0x4ac] ss:$48 sps:$4 sm:$0xff]  }
 0x3d3   : > { %15069 = vmatprep.subr.bf16.mxu0 %v23772_v59  ;;  %15141 = vmatprep.subr.bf16.mxu1 %v23777_v9  ;;  %29390 = vst [vmem:[#allocation51_spill] sm:$0xff] %v23796_v7  ;;  %29391 = vst [vmem:[#allocation52_spill] sm:$0xff] %v23801_v10  ;;  %v23808_v59 = vld [vmem:[%s28800_s7 + $0x4a0] ss:$48 sps:$4 sm:$0xff]   ;;  %v23813_v9 = vld [vmem:[%s28800_s7 + $0x4a8] ss:$48 sps:$4 sm:$0xff]  }
 0x3d4   : > { %29392 = vst [vmem:[#allocation53_spill] sm:$0xff] %v23808_v59  ;;  %29393 = vst [vmem:[#allocation54_spill] sm:$0xff] %v23813_v9 }
 0x3d6   : > { %15071 = vmatpush1.bf16.msra.mxu0 %v23784_v6  ;;  %15143 = vmatpush1.bf16.msra.mxu1 %v23789_v63  ;;  %v23820_v6 = vld [vmem:[%s28800_s7 + $0x504] ss:$48 sps:$4 sm:$0xff]   ;;  %v23825_v63 = vld [vmem:[%s28800_s7 + $0x50c] ss:$48 sps:$4 sm:$0xff]  }
 0x3d7   : > { %15073 = vmatprep.subr.bf16.mxu0 %v23796_v7  ;;  %15145 = vmatprep.subr.bf16.mxu1 %v23801_v10  ;;  %29394 = vst [vmem:[#allocation55_spill] sm:$0xff] %v23820_v6  ;;  %29395 = vst [vmem:[#allocation56_spill] sm:$0xff] %v23825_v63  ;;  %v23832_v7 = vld [vmem:[%s28800_s7 + $0x500] ss:$48 sps:$4 sm:$0xff]   ;;  %v23837_v10 = vld [vmem:[%s28800_s7 + $0x508] ss:$48 sps:$4 sm:$0xff]  }
 0x3d8   : > { %29396 = vst [vmem:[#allocation57_spill] sm:$0xff] %v23832_v7  ;;  %29397 = vst [vmem:[#allocation58_spill] sm:$0xff] %v23837_v10 }
 0x3da   : > { %15075 = vmatpush1.bf16.msra.mxu0 %v23808_v59  ;;  %15147 = vmatpush1.bf16.msra.mxu1 %v23813_v9  ;;  %v23844_v59 = vld [vmem:[%s28800_s7 + $0x564] ss:$48 sps:$4 sm:$0xff]   ;;  %v23849_v9 = vld [vmem:[%s28800_s7 + $0x56c] ss:$48 sps:$4 sm:$0xff]  }
 0x3db   : > { %15077 = vmatprep.subr.bf16.mxu0 %v23820_v6  ;;  %15149 = vmatprep.subr.bf16.mxu1 %v23825_v63  ;;  %29398 = vst [vmem:[#allocation59_spill] sm:$0xff] %v23844_v59  ;;  %29399 = vst [vmem:[#allocation60_spill] sm:$0xff] %v23849_v9  ;;  %v23856_v6 = vld [vmem:[%s28800_s7 + $0x560] ss:$48 sps:$4 sm:$0xff]   ;;  %v23861_v63 = vld [vmem:[%s28800_s7 + $0x568] ss:$48 sps:$4 sm:$0xff]  }
 0x3dc   : > { %29400 = vst [vmem:[#allocation61_spill] sm:$0xff] %v23856_v6  ;;  %29401 = vst [vmem:[#allocation62_spill] sm:$0xff] %v23861_v63 }
 0x3de   : > { %15079 = vmatpush1.bf16.msra.mxu0 %v23832_v7  ;;  %15151 = vmatpush1.bf16.msra.mxu1 %v23837_v10  ;;  %v23868_v7 = vld [vmem:[%s28800_s7 + $0x5c4] ss:$48 sps:$4 sm:$0xff]   ;;  %v23873_v10 = vld [vmem:[%s28800_s7 + $0x5cc] ss:$48 sps:$4 sm:$0xff]  }
 0x3df   : > { %15081 = vmatprep.subr.bf16.mxu0 %v23844_v59  ;;  %15153 = vmatprep.subr.bf16.mxu1 %v23849_v9  ;;  %29402 = vst [vmem:[#allocation63_spill] sm:$0xff] %v23868_v7  ;;  %29403 = vst [vmem:[#allocation64_spill] sm:$0xff] %v23873_v10  ;;  %v23880_v59 = vld [vmem:[%s28800_s7 + $0x5c0] ss:$48 sps:$4 sm:$0xff]   ;;  %v23885_v9 = vld [vmem:[%s28800_s7 + $0x5c8] ss:$48 sps:$4 sm:$0xff]  }
 0x3e0   : > { %29404 = vst [vmem:[#allocation65_spill] sm:$0xff] %v23880_v59  ;;  %29405 = vst [vmem:[#allocation66_spill] sm:$0xff] %v23885_v9 }
 0x3e2   : > { %15083 = vmatpush1.bf16.msra.mxu0 %v23856_v6  ;;  %15155 = vmatpush1.bf16.msra.mxu1 %v23861_v63  ;;  %v23892_v6 = vld [vmem:[%s28800_s7 + $0x624] ss:$48 sps:$4 sm:$0xff]   ;;  %v23897_v63 = vld [vmem:[%s28800_s7 + $0x62c] ss:$48 sps:$4 sm:$0xff]  }
 0x3e3   : > { %15085 = vmatprep.subr.bf16.mxu0 %v23868_v7  ;;  %15157 = vmatprep.subr.bf16.mxu1 %v23873_v10  ;;  %29406 = vst [vmem:[#allocation67_spill] sm:$0xff] %v23892_v6  ;;  %29407 = vst [vmem:[#allocation68_spill] sm:$0xff] %v23897_v63  ;;  %v23904_v7 = vld [vmem:[%s28800_s7 + $0x620] ss:$48 sps:$4 sm:$0xff]   ;;  %v23909_v10 = vld [vmem:[%s28800_s7 + $0x628] ss:$48 sps:$4 sm:$0xff]  }
 0x3e4   : > { %29408 = vst [vmem:[#allocation69_spill] sm:$0xff] %v23909_v10 }
 0x3e6   : > { %15087 = vmatpush1.bf16.msra.mxu0 %v23880_v59  ;;  %15159 = vmatpush1.bf16.msra.mxu1 %v23885_v9  ;;  %v23916_v59 = vld [vmem:[%s28800_s7 + $0x684] ss:$48 sps:$4 sm:$0xff]   ;;  %v23921_v9 = vld [vmem:[%s28800_s7 + $0x68c] ss:$48 sps:$4 sm:$0xff]  }
 0x3e7   : > { %15089 = vmatprep.subr.bf16.mxu0 %v23892_v6  ;;  %15161 = vmatprep.subr.bf16.mxu1 %v23897_v63  ;;  %29409 = vst [vmem:[#allocation70_spill] sm:$0xff] %v23921_v9  ;;  %v23930_v63 = vld [vmem:[%s28800_s7 + $0x680] ss:$48 sps:$4 sm:$0xff]   ;;  %v23935_v6 = vld [vmem:[%s28800_s7 + $0x688] ss:$48 sps:$4 sm:$0xff]  }
 0x3e8   : > { %29411 = vst [vmem:[#allocation71_spill] sm:$0xff] %v23930_v63  ;;  %29412 = vst [vmem:[#allocation72_spill] sm:$0xff] %v23935_v6 }
 0x3e9   : > { %4861 = vmatmul.mubr.f32.vlgmr.msra.gmra.mrb[36].mxu0 %v29410_v53  ;;  %5003 = vmatmul.mubr.f32.vlgmr.msra.gmra.mrb[30].mxu1 %v29410_v53 }
 0x3ea   : > { %15091 = vmatpush1.bf16.msra.mxu0 %v23904_v7  ;;  %15163 = vmatpush1.bf16.msra.mxu1 %v23909_v10  ;;  %v29413_v10 = vmov 0.0|0.0  }
 0x3eb   : > { %15093 = vmatprep.subr.bf16.mxu0 %v23916_v59  ;;  %15165 = vmatprep.subr.bf16.mxu1 %v23921_v9 }
 0x3ec   : > { %4931 = vmatprep.mubr.f32.mxu0 %v29410_v53  ;;  %5073 = vmatprep.mubr.f32.mxu1 %v29410_v53 }
 0x3ee   : > { %15095 = vmatpush1.bf16.msra.mxu0 %v23930_v63  ;;  %15167 = vmatpush1.bf16.msra.mxu1 %v23935_v6 }
 0x3ef   : > { %15169 = vmatprep.subr.bf16.mxu1 %v22729_v49  ;;  %15200 = vmatprep.subr.bf16.mxu0 %v29413_v10  ;;  %v23959_v49 = vld [vmem:[%s28799_s6 + $0x4] ss:$48 sps:$4 sm:$0xff]  }
 0x3f0   : > { %29414 = vst [vmem:[#allocation73_spill] sm:$0xff] %v23959_v49 }
 0x3f1   : > { %4932 = vmatmul.mubr.f32.vlgmr.msra.gmra.mrb[36].mxu0 %v29410_v53  ;;  %5074 = vmatmul.mubr.f32.vlgmr.msra.gmra.mrb[30].mxu1 %v29410_v53 }
 0x3f2   : > { %15171 = vmatpush3.bf16.msra.mxu1 %v22771_v28  ;;  %15202 = vmatpush3.bf16.msra.mxu0 %v22787_v14 }
 0x3f3   : > { %15173 = vmatprep.subr.bf16.mxu1 %v22773_v33  ;;  %15203 = vmatprep.subr.bf16.mxu0 %v29413_v10  ;;  %v1523_v33 = vsub.s32 4, %v22062_v39  ;;  %v1535_v10 = vsub.s32 7, %v22062_v39 }
 0x3f4   : > { %14088 = vmatprep.mubr.msk.f32.mxu0 %vm21602_vm5, %v29410_v53 }
 0x3f6   : > { %15175 = vmatpush3.bf16.msra.mxu1 %v22795_v16  ;;  %15205 = vmatpush3.bf16.msra.mxu0 %v22845_v32 }
 0x3f7   : > { %15177 = vmatprep.subr.bf16.mxu1 %v22799_v18  ;;  %15207 = vmatprep.subr.bf16.mxu0 %v23959_v49  ;;  %v23976_v49 = vld [vmem:[%s28799_s6 + $0xc] ss:$48 sps:$4 sm:$0xff]  }
 0x3f8   : > { %29415 = vst [vmem:[#allocation74_spill] sm:$0xff] %v23976_v49 }
 0x3fa   : > { %15179 = vmatpush3.bf16.msra.mxu1 %v22826_v25 }
 0x3fb   : > { %15181 = vmatprep.subr.bf16.mxu1 %v22830_v27 }
 0x3fe   : > { %15183 = vmatpush3.bf16.msra.mxu1 %v22853_v36 }
 0x3ff   : > { %15185 = vmatprep.subr.bf16.mxu1 %v22857_v37 }
 0x402   : > { %15187 = vmatpush3.bf16.msra.mxu1 %v22878_v44 }
 0x403   : > { %15189 = vmatprep.subr.bf16.mxu1 %v22882_v45 }
 0x406   : > { %15191 = vmatpush3.bf16.msra.mxu1 %v22902_v51 }
 0x407   : > { %15193 = vmatprep.subr.bf16.mxu1 %v22906_v54  ;;  %v1501_v54 = vld [vmem:[%s28801_s8] sm:$0xff] }
 0x408   : > { %v23991_v51 = vrot.slane %v1501_v54, %v22073_v42 }
 0x40a   : > { %15195 = vmatpush3.bf16.msra.mxu1 %v22925_v60  ;;  %v28889_v60 = vsub.s32 3, %v22062_v39  ;;  %29418 = vst [vmem:[#allocation77_spill] sm:$0xff] %v23991_v51 }
 0x40b   : > { %15197 = vmatprep.subr.bf16.mxu1 %v22929_v61  ;;  %v23984_v61 = vrot.slane %v1501_v54, %v22065_v40 }
 0x40d   : > { %29416 = vst [vmem:[#allocation75_spill] sm:$0xff] %v23984_v61 }
 0x40e   : > { %15199 = vmatpush3.bf16.msra.mxu1 %v22941_v11  ;;  %v23988_v11 = vrot.slane %v1501_v54, %v28889_v60  ;;  %v1531_v60 = vsub.s32 6, %v22062_v39 }
 0x40f   : > { %15215 = vmatprep.subr.bf16.mxu1 %v23976_v49 }
 0x410   : > { %29417 = vst [vmem:[#allocation76_spill] sm:$0xff] %v23988_v11 }
 0x434   : > { %v4365_v44 = vpop.f32.mrb[12].mxu0  ;;  %v4507_v37 = vpop.f32.mrb[6].mxu1 }
 0x435   : > { %v4367_v45 = vpop.f32.mrb[13].mxu0  ;;  %v4509_v36 = vpop.f32.mrb[7].mxu1  ;;  %v17796_v27 = vadd.f32 %v4365_v44, %v23984_v61 }
 0x436   : > { %v17809_v25 = vadd.f32 %v4509_v36, %v23988_v11  ;;  %v17797_v49 = vadd.f32 %v4367_v45, %v23991_v51  ;;  %v23999_v36 = vrot.slane %v1501_v54, %v1523_v33  ;;  %v24001_v45 = vrot.slane %v1501_v54, %v1531_v60 }
 0x437   : > { %v13556_v32 = vmul.f32 -1.442695, %v17796_v27 }
 0x438   : > { %v13559_v18 = vmul.f32 -1.442695, %v17809_v25  ;;  %v13557_v16 = vmul.f32 -1.442695, %v17797_v49  ;;  %29419 = vst [vmem:[#allocation78_spill] sm:$0xff] %v23999_v36  ;;  %29420 = vst [vmem:[#allocation79_spill] sm:$0xff] %v24001_v45  ;;  %v24003_v49 = vrot.slane %v1501_v54, %v1535_v10 }
 0x439   : > { %20604 = vpow2.f32 %v13556_v32 }
 0x43a   : > { %20606 = vpow2.f32 %v13559_v18  ;;  %29421 = vst [vmem:[#allocation80_spill] sm:$0xff] %v24003_v49 }
 0x43b   : > { %20608 = vpow2.f32 %v13557_v16 }
 0x443   : > { %v20605_v14 = vpop.eup %20604 }
 0x444   : > { %v20607_v28 = vpop.eup %20606  ;;  %v5101_v44 = vadd.f32 1.0, %v20605_v14 }
 0x445   : > { %v20609_v6 = vpop.eup %20608  ;;  %v5119_v61 = vadd.f32 1.0, %v20607_v28 }
 0x446   : > { %v5102_v25 = vadd.f32 1.0, %v20609_v6  ;;  %20610 = vrcp.f32 %v5101_v44 }
 0x447   : > { %20612 = vrcp.f32 %v5119_v61 }
 0x448   : > { %20614 = vrcp.f32 %v5102_v25 }
 0x450   : > { %v20611_v14 = vpop.eup %20610 }
 0x451   : > { %v20613_v60 = vpop.eup %20612 }
 0x452   : > { %v20615_v6 = vpop.eup %20614  ;;  %v5149_v63 = vmul.f32 0.0, %v20613_v60 }
 0x47c   : > { %v4649_v16 = vpop.f32.mrb[24].mxu0  ;;  %v4791_v18 = vpop.f32.mrb[18].mxu1 }
 0x47d   : > { %v17820_v27 = vadd.f32 %v4649_v16, %v23999_v36  ;;  %v17832_v32 = vadd.f32 %v4791_v18, %v24001_v45  ;;  %v4651_v51 = vpop.f32.mrb[25].mxu0  ;;  %v4793_v11 = vpop.f32.mrb[19].mxu1 }
 0x47e   : > { %v17833_v28 = vadd.f32 %v4793_v11, %v24003_v49 }
 0x47f   : > { %v13560_v33 = vmul.f32 -1.442695, %v17820_v27  ;;  %20616 = vtanh.f32 %v17832_v32  ;;  %v1527_v27 = vsub.s32 5, %v22062_v39 }
 0x480   : > { %20618 = vtanh.f32 %v17833_v28  ;;  %v24016_v28 = vrot.slane %v1501_v54, %v22140_v15 }
 0x481   : > { %20620 = vpow2.f32 %v13560_v33  ;;  %v24013_v32 = vrot.slane %v1501_v54, %v1527_v27 }
 0x483   : > { %v17821_v33 = vadd.f32 %v4651_v51, %v24013_v32 }
 0x485   : > { %v13561_v60 = vmul.f32 -1.442695, %v17821_v33 }
 0x489   : > { %v20617_v10 = vpop.eup %20616 }
 0x48a   : > { %v20619_v44 = vpop.eup %20618  ;;  %v5152_v61 = vmul.f32 %v20617_v10, %v20611_v14  ;;  %v17808_v14 = vadd.f32 %v4507_v37, %v24016_v28 }
 0x48b   : > { %v20621_v9 = vpop.eup %20620  ;;  %v5153_v16 = vmul.f32 %v20619_v44, %v20615_v6  ;;  %v29422_v44 = vsub.s32 3, %v22062_v39 }
 0x48c   : > { %v5120_v36 = vadd.f32 1.0, %v20621_v9  ;;  %v24008_v18 = vadd.f32 %v5152_v61, %v5149_v63  ;;  %v13558_v9 = vmul.f32 -1.442695, %v17808_v14 }
 0x48e   : > { %20622 = vrcp.f32 %v5120_v36  ;;  %v1502_v36 = vld [vmem:[%s28801_s8 + $0x8] sm:$0xf] }
 0x48f   : > { %20624 = vpow2.f32 %v13561_v60  ;;  %v24024_v10 = vrot.slane %v1502_v36, %v22065_v40  ;;  %v24027_v54 = vrot.slane %v1502_v36, %v22140_v15  ;;  %v24030_v37 = vrot.slane %v1502_v36, %v22073_v42 }
 0x490   : > { %20626 = vpow2.f32 %v13558_v9  ;;  %v24034_v61 = vrot.slane %v1502_v36, %v29422_v44 }
 0x498   : > { %v20623_v25 = vpop.eup %20622 }
 0x499   : > { %v5150_v45 = vmul.f32 0.0, %v20623_v25  ;;  %v20625_v63 = vpop.eup %20624 }
 0x49a   : > { %v5121_v6 = vadd.f32 1.0, %v20625_v63 }
 0x49b   : > { %v24010_v11 = vadd.f32 %v5153_v16, %v5150_v45  ;;  %v20627_v45 = vpop.eup %20626 }
 0x49c   : > { %v5103_v51 = vadd.f32 1.0, %v20627_v45  ;;  %20628 = vrcp.f32 %v5121_v6 }
 0x49e   : > { %20630 = vrcp.f32 %v5103_v51 }
 0x4a6   : > { %v20629_v63 = vpop.eup %20628 }
 0x4a7   : > { %v5151_v6 = vmul.f32 0.0, %v20629_v63 }
 0x4a8   : > { %v20631_v36 = vpop.eup %20630 }
 0x4c4   : > { %v4933_v16 = vpop.f32.mrb[36].mxu0  ;;  %v5075_v25 = vpop.f32.mrb[30].mxu1 }
 0x4c5   : > { %v17844_v27 = vadd.f32 %v4933_v16, %v24024_v10  ;;  %v17856_v33 = vadd.f32 %v5075_v25, %v24027_v54  ;;  %v4935_v40 = vpop.f32.mrb[37].mxu0  ;;  %v5077_v14 = vpop.f32.mrb[31].mxu1 }
 0x4c6   : > { %v17845_v15 = vadd.f32 %v4935_v40, %v24030_v37  ;;  %v17857_v60 = vadd.f32 %v5077_v14, %v24034_v61 }
 0x4c7   : > { %20632 = vtanh.f32 %v17844_v27  ;;  %v13563_v42 = vmul.f32 -1.442695, %v17856_v33 }
 0x4c8   : > { %v13562_v9 = vmul.f32 -1.442695, %v17845_v15  ;;  %v13564_v39 = vmul.f32 -1.442695, %v17857_v60 }
 0x4c9   : > { %20634 = vpow2.f32 %v13563_v42 }
 0x4ca   : > { %20636 = vpow2.f32 %v13562_v9 }
 0x4cb   : > { %20638 = vpow2.f32 %v13564_v39 }
 0x4cc   : > { %20640 = vtanh.f32 %v24008_v18 }
 0x4cd   : > { %20642 = vtanh.f32 %v24010_v11 }
 0x4d1   : > { %v20633_v45 = vpop.eup %20632 }
 0x4d2   : > { %v5154_v44 = vmul.f32 %v20633_v45, %v20631_v36 }
 0x4d3   : > { %v20635_v16 = vpop.eup %20634 }
 0x4d4   : > { %v20637_v25 = vpop.eup %20636  ;;  %v24041_v51 = vadd.f32 %v5154_v44, %v5151_v6  ;;  %v5141_v40 = vadd.f32 1.0, %v20635_v16  ;;  %v24058_v44 = vld [vmem:[%s28799_s6 + $0x8] ss:$48 sps:$4 sm:$0xff]   ;;  %v24064_v16 = vld [vmem:[%s28799_s6] ss:$48 sps:$4 sm:$0xff]  }
 0x4d5   : > { %v20639_v14 = vpop.eup %20638  ;;  %v5140_v27 = vadd.f32 1.0, %v20637_v25  ;;  %v24070_v25 = vld [vmem:[%s28799_s6 + $0x6c] ss:$48 sps:$4 sm:$0xff]  }
 0x4d6   : > { %20644 = vtanh.f32 %v24041_v51  ;;  %v5142_v33 = vadd.f32 1.0, %v20639_v14  ;;  %v20641_v15 = vpop.eup %20640  ;;  %29426 = vst [vmem:[#allocation84_spill] sm:$0xff] %v24070_v25  ;;  %v24084_v14 = vld [vmem:[%s28799_s6 + $0x68] ss:$48 sps:$4 sm:$0xff]  }
 0x4d7   : > { %20646 = vrcp.f32 %v5141_v40  ;;  %v20643_v60 = vpop.eup %20642  ;;  %v24076_v40 = vld [vmem:[%s28799_s6 + $0x64] ss:$48 sps:$4 sm:$0xff]   ;;  %29427 = vst [vmem:[#allocation85_spill] sm:$0xff] %v24084_v14 }
 0x4d8   : > { %20648 = vrcp.f32 %v5140_v27  ;;  %v24090_v27 = vld [vmem:[%s28799_s6 + $0x60] ss:$48 sps:$4 sm:$0xff]  }
 0x4d9   : > { %20650 = vrcp.f32 %v5142_v33  ;;  %29428 = vst [vmem:[#allocation86_spill] sm:$0xff] %v24090_v27  ;;  %v24096_v33 = vld [vmem:[%s28799_s6 + $0x1c] ss:$48 sps:$4 sm:$0xff]  }
 0x4da   : > { %29429 = vst [vmem:[#allocation87_spill] sm:$0xff] %v24096_v33 }
 0x4e0   : > { %v20645_v42 = vpop.eup %20644 }
 0x4e1   : > { %v20647_v9 = vpop.eup %20646 }
 0x4e2   : > { %v20649_v39 = vpop.eup %20648  ;;  %v24045_v63 = vmul.f32 %v20647_v9, %v20643_v60 }
 0x4e3   : > { %v20651_v36 = vpop.eup %20650  ;;  %v24047_v45 = vmul.f32 %v20649_v39, %v20641_v15  ;;  %v24102_v15 = vld [vmem:[%s28799_s6 + $0x14] ss:$48 sps:$4 sm:$0xff]  }
 0x4e4   : > { %29423 = vst [vmem:[#allocation81_spill] sm:$0xff] %v24045_v63  ;;  %v24049_v6 = vmul.f32 %v20651_v36, %v20645_v42  ;;  %5231 = vmatprep.mubr.f32.mxu1 %v24045_v63  ;;  %29430 = vst [vmem:[#allocation88_spill] sm:$0xff] %v24102_v15 }
 0x4e5   : > { %29424 = vst [vmem:[#allocation82_spill] sm:$0xff] %v24047_v45  ;;  %5232 = vmatmul.mubr.f32.vlgmr.msra.gmra.mrb[44].mxu1 %v24047_v45 }
 0x4e6   : > { %29425 = vst [vmem:[#allocation83_spill] sm:$0xff] %v24049_v6  ;;  %14089 = vmatmul.mubr.msk.f32.vlgmr.msra.gmra.mrb[50].mxu0 %vm1565_vm4, %v24049_v6  ;;  %15217 = vmatpush1.bf16.msra.mxu1 %v24058_v44 }
 0x4e7   : > { %15209 = vmatpush1.bf16.msra.mxu0 %v24064_v16  ;;  %15219 = vmatprep.subr.bf16.mxu1 %v24070_v25 }
 0x4e8   : > { %15211 = vmatprep.subr.bf16.mxu0 %v24076_v40  ;;  %5388 = vmatprep.mubr.f32.mxu0 %v29410_v53 }
 0x4e9   : > { %5459 = vmatprep.mubr.f32.mxu1 %v29410_v53 }
 0x4ea   : > { %15221 = vmatpush1.bf16.msra.mxu1 %v24084_v14  ;;  %v24108_v14 = vld [vmem:[%s28797_s4] ss:$0 sm:$0xff] }
 0x4eb   : > { %15213 = vmatpush1.bf16.msra.mxu0 %v24090_v27  ;;  %15231 = vmatprep.subr.bf16.mxu1 %v24096_v33 }
 0x4ec   : > { %15223 = vmatprep.subr.bf16.mxu0 %v24102_v15  ;;  %v24116_v15 = vld [vmem:[%s28799_s6 + $0x10] ss:$48 sps:$4 sm:$0xff]  }
 0x5b8   : > { %v13808_v60 = vpop.f32.mrb[44].mxu1 }
 0x5b9   : > { %v5303_v42 = vpop.f32.mrb[50].mxu0  ;;  %v13809_v9 = vpop.f32.mrb[45].mxu1 }
 0x5ba   : > { %v13810_v39 = vadd.f32 %v13809_v9, %v13808_v60  ;;  %v14090_v36 = vpop.f32.mrb[51].mxu0  ;;  %v24122_v60 = vld [vmem:[%s28799_s6 + $0x18] ss:$48 sps:$4 sm:$0xff]  }
 0x5bb   : > { %v24148_v9 = vld [vmem:[%s28799_s6 + $0x78] ss:$48 sps:$4 sm:$0xff]   ;;  %v24160_v36 = vld [vmem:[%s28799_s6 + $0x2c] ss:$48 sps:$4 sm:$0xff]  }
 0x5bc   : > { %v5234_v27 = vadd.f32 %v24108_v14, %v13810_v39  ;;  %29432 = vst [vmem:[#allocation90_spill] sm:$0xff] %v24148_v9  ;;  %v24154_v39 = vld [vmem:[%s28799_s6 + $0x24] ss:$48 sps:$4 sm:$0xff]   ;;  %29434 = vst [vmem:[#allocation92_spill] sm:$0xff] %v24160_v36 }
 0x5bd   : > { %29433 = vst [vmem:[#allocation91_spill] sm:$0xff] %v24154_v39 }
 0x5be   : > { %v5304_v33 = vadd.f32 %v5303_v42, %v5234_v27  ;;  %v24128_v27 = vld [vmem:[%s28799_s6 + $0x74] ss:$48 sps:$4 sm:$0xff]   ;;  %v24142_v42 = vld [vmem:[%s28799_s6 + $0x70] ss:$48 sps:$4 sm:$0xff]  }
 0x5bf   : > { %29431 = vst [vmem:[#allocation89_spill] sm:$0xff] %v24142_v42 }
 0x5c0   : > { %v5307_v25 = vmax.f32 %v5304_v33, 0.0  ;;  %v24134_v33 = vld [vmem:[%s28799_s6 + $0x7c] ss:$48 sps:$4 sm:$0xff]  }
 0x5c2   : > { %13566 = vmatmul.mubr.msk.f32.vlgmr.msra.gmra.mrb[14].mxu0 %vm1565_vm4, %v5307_v25  ;;  %13567 = vmatmul.mubr.msk.f32.vlgmr.msra.gmra.mrb[8].mxu1 %vm1565_vm4, %v5307_v25 }
 0x5c3   : > { %15225 = vmatpush1.bf16.msra.mxu0 %v24116_v15  ;;  %15233 = vmatpush1.bf16.msra.mxu1 %v24122_v60 }
 0x5c4   : > { %15227 = vmatprep.subr.bf16.mxu0 %v24128_v27  ;;  %15235 = vmatprep.subr.bf16.mxu1 %v24134_v33 }
 0x5c5   : > { %5530 = vmatprep.mubr.f32.mxu0 %v29410_v53  ;;  %5601 = vmatprep.mubr.f32.mxu1 %v29410_v53 }
 0x5c7   : > { %15229 = vmatpush1.bf16.msra.mxu0 %v24142_v42  ;;  %15237 = vmatpush1.bf16.msra.mxu1 %v24148_v9  ;;  %v24168_v9 = vld [vmem:[%s28799_s6 + $0x20] ss:$48 sps:$4 sm:$0xff]   ;;  %v24186_v42 = vld [vmem:[%s28799_s6 + $0x8c] ss:$48 sps:$4 sm:$0xff]  }
 0x5c8   : > { %15239 = vmatprep.subr.bf16.mxu0 %v24154_v39  ;;  %15247 = vmatprep.subr.bf16.mxu1 %v24160_v36  ;;  %29435 = vst [vmem:[#allocation93_spill] sm:$0xff] %v24168_v9  ;;  %v24174_v39 = vld [vmem:[%s28799_s6 + $0x28] ss:$48 sps:$4 sm:$0xff]   ;;  %v24180_v36 = vld [vmem:[%s28799_s6 + $0x84] ss:$48 sps:$4 sm:$0xff]   ;;  %29438 = vst [vmem:[#allocation96_spill] sm:$0xff] %v24186_v42 }
 0x5c9   : > { %29436 = vst [vmem:[#allocation94_spill] sm:$0xff] %v24174_v39  ;;  %29437 = vst [vmem:[#allocation95_spill] sm:$0xff] %v24180_v36 }
 0x5ca   : > { %13568 = vmatmul.mubr.msk.f32.vlgmr.msra.gmra.mrb[26].mxu0 %vm1565_vm4, %v5307_v25  ;;  %13569 = vmatmul.mubr.msk.f32.vlgmr.msra.gmra.mrb[20].mxu1 %vm1565_vm4, %v5307_v25 }
 0x5cb   : > { %15241 = vmatpush1.bf16.msra.mxu0 %v24168_v9  ;;  %15249 = vmatpush1.bf16.msra.mxu1 %v24174_v39  ;;  %v24194_v39 = vld [vmem:[%s28799_s6 + $0x80] ss:$48 sps:$4 sm:$0xff]   ;;  %v24212_v9 = vld [vmem:[%s28800_s7 + $0xc] ss:$48 sps:$4 sm:$0xff]  }
 0x5cc   : > { %15243 = vmatprep.subr.bf16.mxu0 %v24180_v36  ;;  %15251 = vmatprep.subr.bf16.mxu1 %v24186_v42  ;;  %v24200_v36 = vld [vmem:[%s28799_s6 + $0x88] ss:$48 sps:$4 sm:$0xff]   ;;  %v24206_v42 = vld [vmem:[%s28800_s7 + $0x4] ss:$48 sps:$4 sm:$0xff]   ;;  %29441 = vst [vmem:[#allocation99_spill] sm:$0xff] %v24212_v9 }
 0x5cd   : > { %5672 = vmatprep.mubr.f32.mxu0 %v29410_v53  ;;  %5743 = vmatprep.mubr.f32.mxu1 %v29410_v53  ;;  %29439 = vst [vmem:[#allocation97_spill] sm:$0xff] %v24200_v36  ;;  %29440 = vst [vmem:[#allocation98_spill] sm:$0xff] %v24206_v42 }
 0x5cf   : > { %15245 = vmatpush1.bf16.msra.mxu0 %v24194_v39  ;;  %15253 = vmatpush1.bf16.msra.mxu1 %v24200_v36  ;;  %v24220_v36 = vld [vmem:[%s28800_s7] ss:$48 sps:$4 sm:$0xff]  }
 0x5d0   : > { %15255 = vmatprep.subr.bf16.mxu0 %v24206_v42  ;;  %15327 = vmatprep.subr.bf16.mxu1 %v24212_v9  ;;  %29442 = vst [vmem:[#allocation100_spill] sm:$0xff] %v24220_v36  ;;  %v24227_v42 = vld [vmem:[%s28800_s7 + $0x8] ss:$48 sps:$4 sm:$0xff]  }
 0x5d1   : > { %29443 = vst [vmem:[#allocation101_spill] sm:$0xff] %v24227_v42  ;;  %v24252_v9 = vld [vmem:[%s28800_s7 + $0x68] ss:$48 sps:$4 sm:$0xff]  }
 0x5d2   : > { %13570 = vmatmul.mubr.msk.f32.vlgmr.msra.gmra.mrb[38].mxu0 %vm1565_vm4, %v5307_v25  ;;  %13571 = vmatmul.mubr.msk.f32.vlgmr.msra.gmra.mrb[32].mxu1 %vm1565_vm4, %v5307_v25  ;;  %v24234_v25 = vld [vmem:[%s28800_s7 + $0x64] ss:$48 sps:$4 sm:$0xff]   ;;  %29447 = vst [vmem:[#allocation105_spill] sm:$0xff] %v24252_v9 }
 0x5d3   : > { %15257 = vmatpush1.bf16.msra.mxu0 %v24220_v36  ;;  %5826 = vmatprep.mubr.f32.mxu0 %v24045_v63  ;;  %29444 = vst [vmem:[#allocation102_spill] sm:$0xff] %v24234_v25  ;;  %v24240_v36 = vld [vmem:[%s28800_s7 + $0x6c] ss:$48 sps:$4 sm:$0xff]  }
 0x5d4   : > { %15329 = vmatpush1.bf16.msra.mxu1 %v24227_v42  ;;  %5968 = vmatprep.mubr.f32.mxu1 %v24045_v63  ;;  %29445 = vst [vmem:[#allocation103_spill] sm:$0xff] %v24240_v36  ;;  %v24246_v42 = vld [vmem:[%s28800_s7 + $0x60] ss:$48 sps:$4 sm:$0xff]  }
 0x5d5   : > { %15259 = vmatprep.subr.bf16.mxu0 %v24234_v25  ;;  %15331 = vmatprep.subr.bf16.mxu1 %v24240_v36  ;;  %29446 = vst [vmem:[#allocation104_spill] sm:$0xff] %v24246_v42  ;;  %v24258_v25 = vld [vmem:[%s28800_s7 + $0xc4] ss:$48 sps:$4 sm:$0xff]   ;;  %v24264_v36 = vld [vmem:[%s28800_s7 + $0xcc] ss:$48 sps:$4 sm:$0xff]  }
 0x5d6   : > { %29448 = vst [vmem:[#allocation106_spill] sm:$0xff] %v24258_v25  ;;  %29449 = vst [vmem:[#allocation107_spill] sm:$0xff] %v24264_v36 }
 0x5d7   : > { %15261 = vmatpush1.bf16.msra.mxu0 %v24246_v42  ;;  %v24270_v42 = vld [vmem:[%s28800_s7 + $0xc0] ss:$48 sps:$4 sm:$0xff]  }
 0x5d8   : > { %15333 = vmatpush1.bf16.msra.mxu1 %v24252_v9  ;;  %15263 = vmatprep.subr.bf16.mxu0 %v24258_v25  ;;  %29450 = vst [vmem:[#allocation108_spill] sm:$0xff] %v24270_v42  ;;  %v24276_v9 = vld [vmem:[%s28800_s7 + $0xc8] ss:$48 sps:$4 sm:$0xff]   ;;  %v24282_v25 = vld [vmem:[%s28800_s7 + $0x124] ss:$48 sps:$4 sm:$0xff]  }
 0x5d9   : > { %15335 = vmatprep.subr.bf16.mxu1 %v24264_v36  ;;  %29451 = vst [vmem:[#allocation109_spill] sm:$0xff] %v24276_v9  ;;  %29452 = vst [vmem:[#allocation110_spill] sm:$0xff] %v24282_v25  ;;  %v24288_v36 = vld [vmem:[%s28800_s7 + $0x12c] ss:$48 sps:$4 sm:$0xff]  }
 0x5da   : > { %29453 = vst [vmem:[#allocation111_spill] sm:$0xff] %v24288_v36 }
 0x5db   : > { %15265 = vmatpush1.bf16.msra.mxu0 %v24270_v42  ;;  %v24294_v42 = vld [vmem:[%s28800_s7 + $0x120] ss:$48 sps:$4 sm:$0xff]  }
 0x5dc   : > { %15337 = vmatpush1.bf16.msra.mxu1 %v24276_v9  ;;  %15267 = vmatprep.subr.bf16.mxu0 %v24282_v25  ;;  %29454 = vst [vmem:[#allocation112_spill] sm:$0xff] %v24294_v42  ;;  %v24300_v9 = vld [vmem:[%s28800_s7 + $0x128] ss:$48 sps:$4 sm:$0xff]   ;;  %v24306_v25 = vld [vmem:[%s28800_s7 + $0x184] ss:$48 sps:$4 sm:$0xff]  }
 0x5dd   : > { %15339 = vmatprep.subr.bf16.mxu1 %v24288_v36  ;;  %29455 = vst [vmem:[#allocation113_spill] sm:$0xff] %v24300_v9  ;;  %29456 = vst [vmem:[#allocation114_spill] sm:$0xff] %v24306_v25  ;;  %v24312_v36 = vld [vmem:[%s28800_s7 + $0x18c] ss:$48 sps:$4 sm:$0xff]  }
 0x5de   : > { %29457 = vst [vmem:[#allocation115_spill] sm:$0xff] %v24312_v36 }
 0x5df   : > { %15269 = vmatpush1.bf16.msra.mxu0 %v24294_v42  ;;  %v24318_v42 = vld [vmem:[%s28800_s7 + $0x180] ss:$48 sps:$4 sm:$0xff]  }
 0x5e0   : > { %15341 = vmatpush1.bf16.msra.mxu1 %v24300_v9  ;;  %15271 = vmatprep.subr.bf16.mxu0 %v24306_v25  ;;  %29458 = vst [vmem:[#allocation116_spill] sm:$0xff] %v24318_v42  ;;  %v24324_v9 = vld [vmem:[%s28800_s7 + $0x188] ss:$48 sps:$4 sm:$0xff]   ;;  %v24330_v25 = vld [vmem:[%s28800_s7 + $0x1e4] ss:$48 sps:$4 sm:$0xff]  }
 0x5e1   : > { %15343 = vmatprep.subr.bf16.mxu1 %v24312_v36  ;;  %29459 = vst [vmem:[#allocation117_spill] sm:$0xff] %v24324_v9  ;;  %29460 = vst [vmem:[#allocation118_spill] sm:$0xff] %v24330_v25  ;;  %v24336_v36 = vld [vmem:[%s28800_s7 + $0x1ec] ss:$48 sps:$4 sm:$0xff]  }
 0x5e2   : > { %29461 = vst [vmem:[#allocation119_spill] sm:$0xff] %v24336_v36 }
 0x5e3   : > { %15273 = vmatpush1.bf16.msra.mxu0 %v24318_v42  ;;  %v24342_v42 = vld [vmem:[%s28800_s7 + $0x1e0] ss:$48 sps:$4 sm:$0xff]  }
 0x5e4   : > { %15345 = vmatpush1.bf16.msra.mxu1 %v24324_v9  ;;  %15275 = vmatprep.subr.bf16.mxu0 %v24330_v25  ;;  %29462 = vst [vmem:[#allocation120_spill] sm:$0xff] %v24342_v42  ;;  %v24348_v9 = vld [vmem:[%s28800_s7 + $0x1e8] ss:$48 sps:$4 sm:$0xff]   ;;  %v24354_v25 = vld [vmem:[%s28800_s7 + $0x244] ss:$48 sps:$4 sm:$0xff]  }
 0x5e5   : > { %15347 = vmatprep.subr.bf16.mxu1 %v24336_v36  ;;  %29463 = vst [vmem:[#allocation121_spill] sm:$0xff] %v24348_v9  ;;  %29464 = vst [vmem:[#allocation122_spill] sm:$0xff] %v24354_v25  ;;  %v24360_v36 = vld [vmem:[%s28800_s7 + $0x24c] ss:$48 sps:$4 sm:$0xff]  }
 0x5e6   : > { %29465 = vst [vmem:[#allocation123_spill] sm:$0xff] %v24360_v36 }
 0x5e7   : > { %15277 = vmatpush1.bf16.msra.mxu0 %v24342_v42  ;;  %v24366_v42 = vld [vmem:[%s28800_s7 + $0x240] ss:$48 sps:$4 sm:$0xff]  }
 0x5e8   : > { %15349 = vmatpush1.bf16.msra.mxu1 %v24348_v9  ;;  %15279 = vmatprep.subr.bf16.mxu0 %v24354_v25  ;;  %29466 = vst [vmem:[#allocation124_spill] sm:$0xff] %v24366_v42  ;;  %v24372_v9 = vld [vmem:[%s28800_s7 + $0x248] ss:$48 sps:$4 sm:$0xff]   ;;  %v24378_v25 = vld [vmem:[%s28800_s7 + $0x2a4] ss:$48 sps:$4 sm:$0xff]  }
 0x5e9   : > { %15351 = vmatprep.subr.bf16.mxu1 %v24360_v36  ;;  %29467 = vst [vmem:[#allocation125_spill] sm:$0xff] %v24372_v9  ;;  %29468 = vst [vmem:[#allocation126_spill] sm:$0xff] %v24378_v25  ;;  %v24384_v36 = vld [vmem:[%s28800_s7 + $0x2ac] ss:$48 sps:$4 sm:$0xff]  }
 0x5ea   : > { %29469 = vst [vmem:[#allocation127_spill] sm:$0xff] %v24384_v36 }
 0x5eb   : > { %15281 = vmatpush1.bf16.msra.mxu0 %v24366_v42  ;;  %v24390_v42 = vld [vmem:[%s28800_s7 + $0x2a0] ss:$48 sps:$4 sm:$0xff]  }
 0x5ec   : > { %15353 = vmatpush1.bf16.msra.mxu1 %v24372_v9  ;;  %15283 = vmatprep.subr.bf16.mxu0 %v24378_v25  ;;  %29470 = vst [vmem:[#allocation128_spill] sm:$0xff] %v24390_v42  ;;  %v24396_v9 = vld [vmem:[%s28800_s7 + $0x2a8] ss:$48 sps:$4 sm:$0xff]   ;;  %v24402_v25 = vld [vmem:[%s28800_s7 + $0x304] ss:$48 sps:$4 sm:$0xff]  }
 0x5ed   : > { %15355 = vmatprep.subr.bf16.mxu1 %v24384_v36  ;;  %29471 = vst [vmem:[#allocation129_spill] sm:$0xff] %v24396_v9  ;;  %29472 = vst [vmem:[#allocation130_spill] sm:$0xff] %v24402_v25  ;;  %v24408_v36 = vld [vmem:[%s28800_s7 + $0x30c] ss:$48 sps:$4 sm:$0xff]  }
 0x5ee   : > { %29473 = vst [vmem:[#allocation131_spill] sm:$0xff] %v24408_v36 }
 0x5ef   : > { %15285 = vmatpush1.bf16.msra.mxu0 %v24390_v42  ;;  %v24414_v42 = vld [vmem:[%s28800_s7 + $0x300] ss:$48 sps:$4 sm:$0xff]  }
 0x5f0   : > { %15357 = vmatpush1.bf16.msra.mxu1 %v24396_v9  ;;  %15287 = vmatprep.subr.bf16.mxu0 %v24402_v25  ;;  %29474 = vst [vmem:[#allocation132_spill] sm:$0xff] %v24414_v42  ;;  %v24420_v9 = vld [vmem:[%s28800_s7 + $0x308] ss:$48 sps:$4 sm:$0xff]   ;;  %v24426_v25 = vld [vmem:[%s28800_s7 + $0x364] ss:$48 sps:$4 sm:$0xff]  }
 0x5f1   : > { %15359 = vmatprep.subr.bf16.mxu1 %v24408_v36  ;;  %29475 = vst [vmem:[#allocation133_spill] sm:$0xff] %v24420_v9  ;;  %29476 = vst [vmem:[#allocation134_spill] sm:$0xff] %v24426_v25  ;;  %v24432_v36 = vld [vmem:[%s28800_s7 + $0x36c] ss:$48 sps:$4 sm:$0xff]  }
 0x5f2   : > { %29477 = vst [vmem:[#allocation135_spill] sm:$0xff] %v24432_v36 }
 0x5f3   : > { %15289 = vmatpush1.bf16.msra.mxu0 %v24414_v42  ;;  %v24438_v42 = vld [vmem:[%s28800_s7 + $0x360] ss:$48 sps:$4 sm:$0xff]  }
 0x5f4   : > { %15361 = vmatpush1.bf16.msra.mxu1 %v24420_v9  ;;  %15291 = vmatprep.subr.bf16.mxu0 %v24426_v25  ;;  %29478 = vst [vmem:[#allocation136_spill] sm:$0xff] %v24438_v42  ;;  %v24444_v9 = vld [vmem:[%s28800_s7 + $0x368] ss:$48 sps:$4 sm:$0xff]   ;;  %v24450_v25 = vld [vmem:[%s28800_s7 + $0x3c4] ss:$48 sps:$4 sm:$0xff]  }
 0x5f5   : > { %15363 = vmatprep.subr.bf16.mxu1 %v24432_v36  ;;  %29479 = vst [vmem:[#allocation137_spill] sm:$0xff] %v24444_v9  ;;  %29480 = vst [vmem:[#allocation138_spill] sm:$0xff] %v24450_v25  ;;  %v24456_v36 = vld [vmem:[%s28800_s7 + $0x3cc] ss:$48 sps:$4 sm:$0xff]  }
 0x5f6   : > { %29481 = vst [vmem:[#allocation139_spill] sm:$0xff] %v24456_v36 }
 0x5f7   : > { %15293 = vmatpush1.bf16.msra.mxu0 %v24438_v42  ;;  %v24462_v42 = vld [vmem:[%s28800_s7 + $0x3c0] ss:$48 sps:$4 sm:$0xff]  }
 0x5f8   : > { %15365 = vmatpush1.bf16.msra.mxu1 %v24444_v9  ;;  %15295 = vmatprep.subr.bf16.mxu0 %v24450_v25  ;;  %29482 = vst [vmem:[#allocation140_spill] sm:$0xff] %v24462_v42  ;;  %v24468_v9 = vld [vmem:[%s28800_s7 + $0x3c8] ss:$48 sps:$4 sm:$0xff]   ;;  %v24474_v25 = vld [vmem:[%s28800_s7 + $0x424] ss:$48 sps:$4 sm:$0xff]  }
 0x5f9   : > { %15367 = vmatprep.subr.bf16.mxu1 %v24456_v36  ;;  %29483 = vst [vmem:[#allocation141_spill] sm:$0xff] %v24468_v9  ;;  %29484 = vst [vmem:[#allocation142_spill] sm:$0xff] %v24474_v25  ;;  %v24480_v36 = vld [vmem:[%s28800_s7 + $0x42c] ss:$48 sps:$4 sm:$0xff]  }
 0x5fa   : > { %29485 = vst [vmem:[#allocation143_spill] sm:$0xff] %v24480_v36 }
 0x5fb   : > { %15297 = vmatpush1.bf16.msra.mxu0 %v24462_v42  ;;  %v24486_v42 = vld [vmem:[%s28800_s7 + $0x420] ss:$48 sps:$4 sm:$0xff]  }
 0x5fc   : > { %15369 = vmatpush1.bf16.msra.mxu1 %v24468_v9  ;;  %15299 = vmatprep.subr.bf16.mxu0 %v24474_v25  ;;  %29486 = vst [vmem:[#allocation144_spill] sm:$0xff] %v24486_v42  ;;  %v24492_v9 = vld [vmem:[%s28800_s7 + $0x428] ss:$48 sps:$4 sm:$0xff]   ;;  %v24498_v25 = vld [vmem:[%s28800_s7 + $0x484] ss:$48 sps:$4 sm:$0xff]  }
 0x5fd   : > { %15371 = vmatprep.subr.bf16.mxu1 %v24480_v36  ;;  %29487 = vst [vmem:[#allocation145_spill] sm:$0xff] %v24492_v9  ;;  %29488 = vst [vmem:[#allocation146_spill] sm:$0xff] %v24498_v25  ;;  %v24504_v36 = vld [vmem:[%s28800_s7 + $0x48c] ss:$48 sps:$4 sm:$0xff]  }
 0x5fe   : > { %29489 = vst [vmem:[#allocation147_spill] sm:$0xff] %v24504_v36 }
 0x5ff   : > { %15301 = vmatpush1.bf16.msra.mxu0 %v24486_v42  ;;  %v24510_v42 = vld [vmem:[%s28800_s7 + $0x480] ss:$48 sps:$4 sm:$0xff]  }
 0x600   : > { %15373 = vmatpush1.bf16.msra.mxu1 %v24492_v9  ;;  %15303 = vmatprep.subr.bf16.mxu0 %v24498_v25  ;;  %29490 = vst [vmem:[#allocation148_spill] sm:$0xff] %v24510_v42  ;;  %v24516_v9 = vld [vmem:[%s28800_s7 + $0x488] ss:$48 sps:$4 sm:$0xff]   ;;  %v24522_v25 = vld [vmem:[%s28800_s7 + $0x4e4] ss:$48 sps:$4 sm:$0xff]  }
 0x601   : > { %15375 = vmatprep.subr.bf16.mxu1 %v24504_v36  ;;  %29491 = vst [vmem:[#allocation149_spill] sm:$0xff] %v24516_v9  ;;  %29492 = vst [vmem:[#allocation150_spill] sm:$0xff] %v24522_v25  ;;  %v24528_v36 = vld [vmem:[%s28800_s7 + $0x4ec] ss:$48 sps:$4 sm:$0xff]  }
 0x602   : > { %29493 = vst [vmem:[#allocation151_spill] sm:$0xff] %v24528_v36 }
 0x603   : > { %15305 = vmatpush1.bf16.msra.mxu0 %v24510_v42  ;;  %v24534_v42 = vld [vmem:[%s28800_s7 + $0x4e0] ss:$48 sps:$4 sm:$0xff]  }
 0x604   : > { %15377 = vmatpush1.bf16.msra.mxu1 %v24516_v9  ;;  %15307 = vmatprep.subr.bf16.mxu0 %v24522_v25  ;;  %29494 = vst [vmem:[#allocation152_spill] sm:$0xff] %v24534_v42  ;;  %v24540_v9 = vld [vmem:[%s28800_s7 + $0x4e8] ss:$48 sps:$4 sm:$0xff]   ;;  %v24546_v25 = vld [vmem:[%s28800_s7 + $0x544] ss:$48 sps:$4 sm:$0xff]  }
 0x605   : > { %15379 = vmatprep.subr.bf16.mxu1 %v24528_v36  ;;  %29495 = vst [vmem:[#allocation153_spill] sm:$0xff] %v24540_v9  ;;  %29496 = vst [vmem:[#allocation154_spill] sm:$0xff] %v24546_v25  ;;  %v24552_v36 = vld [vmem:[%s28800_s7 + $0x54c] ss:$48 sps:$4 sm:$0xff]  }
 0x606   : > { %29497 = vst [vmem:[#allocation155_spill] sm:$0xff] %v24552_v36 }
 0x607   : > { %15309 = vmatpush1.bf16.msra.mxu0 %v24534_v42  ;;  %v24558_v42 = vld [vmem:[%s28800_s7 + $0x540] ss:$48 sps:$4 sm:$0xff]  }
 0x608   : > { %15381 = vmatpush1.bf16.msra.mxu1 %v24540_v9  ;;  %15311 = vmatprep.subr.bf16.mxu0 %v24546_v25  ;;  %29498 = vst [vmem:[#allocation156_spill] sm:$0xff] %v24558_v42  ;;  %v24564_v9 = vld [vmem:[%s28800_s7 + $0x548] ss:$48 sps:$4 sm:$0xff]   ;;  %v24570_v25 = vld [vmem:[%s28800_s7 + $0x5a4] ss:$48 sps:$4 sm:$0xff]  }
 0x609   : > { %15383 = vmatprep.subr.bf16.mxu1 %v24552_v36  ;;  %29499 = vst [vmem:[#allocation157_spill] sm:$0xff] %v24564_v9  ;;  %29500 = vst [vmem:[#allocation158_spill] sm:$0xff] %v24570_v25  ;;  %v24576_v36 = vld [vmem:[%s28800_s7 + $0x5ac] ss:$48 sps:$4 sm:$0xff]  }
 0x60a   : > { %29501 = vst [vmem:[#allocation159_spill] sm:$0xff] %v24576_v36 }
 0x60b   : > { %15313 = vmatpush1.bf16.msra.mxu0 %v24558_v42  ;;  %v24582_v42 = vld [vmem:[%s28800_s7 + $0x5a0] ss:$48 sps:$4 sm:$0xff]  }
 0x60c   : > { %15385 = vmatpush1.bf16.msra.mxu1 %v24564_v9  ;;  %15315 = vmatprep.subr.bf16.mxu0 %v24570_v25  ;;  %29502 = vst [vmem:[#allocation160_spill] sm:$0xff] %v24582_v42  ;;  %v24588_v9 = vld [vmem:[%s28800_s7 + $0x5a8] ss:$48 sps:$4 sm:$0xff]   ;;  %v24594_v25 = vld [vmem:[%s28800_s7 + $0x604] ss:$48 sps:$4 sm:$0xff]  }
 0x60d   : > { %15387 = vmatprep.subr.bf16.mxu1 %v24576_v36  ;;  %29503 = vst [vmem:[#allocation161_spill] sm:$0xff] %v24588_v9  ;;  %29504 = vst [vmem:[#allocation162_spill] sm:$0xff] %v24594_v25  ;;  %v24600_v36 = vld [vmem:[%s28800_s7 + $0x60c] ss:$48 sps:$4 sm:$0xff]  }
 0x60e   : > { %29505 = vst [vmem:[#allocation163_spill] sm:$0xff] %v24600_v36 }
 0x60f   : > { %15317 = vmatpush1.bf16.msra.mxu0 %v24582_v42  ;;  %v24626_v42 = vld [vmem:[%s28800_s7 + $0x66c] ss:$48 sps:$4 sm:$0xff]  }
 0x610   : > { %15389 = vmatpush1.bf16.msra.mxu1 %v24588_v9  ;;  %15319 = vmatprep.subr.bf16.mxu0 %v24594_v25  ;;  %v24608_v9 = vld [vmem:[%s28800_s7 + $0x600] ss:$48 sps:$4 sm:$0xff]   ;;  %v24614_v25 = vld [vmem:[%s28800_s7 + $0x608] ss:$48 sps:$4 sm:$0xff]   ;;  %29509 = vst [vmem:[#allocation167_spill] sm:$0xff] %v24626_v42 }
 0x611   : > { %15391 = vmatprep.subr.bf16.mxu1 %v24600_v36  ;;  %29506 = vst [vmem:[#allocation164_spill] sm:$0xff] %v24608_v9  ;;  %29507 = vst [vmem:[#allocation165_spill] sm:$0xff] %v24614_v25  ;;  %v24620_v36 = vld [vmem:[%s28800_s7 + $0x664] ss:$48 sps:$4 sm:$0xff]  }
 0x612   : > { %5827 = vmatmul.mubr.f32.vlgmr.msra.gmra.mrb[14].mxu0 %v24047_v45  ;;  %29508 = vst [vmem:[#allocation166_spill] sm:$0xff] %v24620_v36 }
 0x613   : > { %5969 = vmatmul.mubr.f32.vlgmr.msra.gmra.mrb[8].mxu1 %v24047_v45  ;;  %15321 = vmatpush1.bf16.msra.mxu0 %v24608_v9  ;;  %v24652_v9 = vld [vmem:[%s28800_s7 + $0x1c] ss:$48 sps:$4 sm:$0xff]  }
 0x614   : > { %15393 = vmatpush1.bf16.msra.mxu1 %v24614_v25  ;;  %15323 = vmatprep.subr.bf16.mxu0 %v24620_v36  ;;  %v24634_v25 = vld [vmem:[%s28800_s7 + $0x660] ss:$48 sps:$4 sm:$0xff]   ;;  %v24640_v36 = vld [vmem:[%s28800_s7 + $0x668] ss:$48 sps:$4 sm:$0xff]   ;;  %29513 = vst [vmem:[#allocation171_spill] sm:$0xff] %v24652_v9 }
 0x615   : > { %15395 = vmatprep.subr.bf16.mxu1 %v24626_v42  ;;  %5897 = vmatprep.mubr.f32.mxu0 %v29410_v53  ;;  %29510 = vst [vmem:[#allocation168_spill] sm:$0xff] %v24634_v25  ;;  %29511 = vst [vmem:[#allocation169_spill] sm:$0xff] %v24640_v36  ;;  %v24646_v42 = vld [vmem:[%s28800_s7 + $0x14] ss:$48 sps:$4 sm:$0xff]  }
 0x616   : > { %6039 = vmatprep.mubr.f32.mxu1 %v29410_v53  ;;  %29512 = vst [vmem:[#allocation170_spill] sm:$0xff] %v24646_v42 }
 0x617   : > { %15325 = vmatpush1.bf16.msra.mxu0 %v24634_v25  ;;  %v24694_v25 = vld [vmem:[%s28800_s7 + $0x78] ss:$48 sps:$4 sm:$0xff]  }
 0x618   : > { %15397 = vmatpush1.bf16.msra.mxu1 %v24640_v36  ;;  %15399 = vmatprep.subr.bf16.mxu0 %v24646_v42  ;;  %v24662_v36 = vld [vmem:[%s28800_s7 + $0x10] ss:$48 sps:$4 sm:$0xff]   ;;  %v24669_v42 = vld [vmem:[%s28800_s7 + $0x18] ss:$48 sps:$4 sm:$0xff]   ;;  %29519 = vst [vmem:[#allocation177_spill] sm:$0xff] %v24694_v25 }
 0x619   : > { %15471 = vmatprep.subr.bf16.mxu1 %v24652_v9  ;;  %29514 = vst [vmem:[#allocation172_spill] sm:$0xff] %v24662_v36  ;;  %29515 = vst [vmem:[#allocation173_spill] sm:$0xff] %v24669_v42  ;;  %v24676_v9 = vld [vmem:[%s28800_s7 + $0x74] ss:$48 sps:$4 sm:$0xff]  }
 0x61a   : > { %13572 = vmatmul.mubr.msk.f32.vlgmr.msra.gmra.mrb[14].mxu0 %vm1565_vm4, %v24049_v6  ;;  %29516 = vst [vmem:[#allocation174_spill] sm:$0xff] %v24676_v9 }
 0x61b   : > { %13573 = vmatmul.mubr.msk.f32.vlgmr.msra.gmra.mrb[8].mxu1 %vm1565_vm4, %v24049_v6  ;;  %15401 = vmatpush1.bf16.msra.mxu0 %v24662_v36  ;;  %v24682_v36 = vld [vmem:[%s28800_s7 + $0x7c] ss:$48 sps:$4 sm:$0xff]  }
 0x61c   : > { %6110 = vmatprep.mubr.f32.mxu0 %v24045_v63  ;;  %15473 = vmatpush1.bf16.msra.mxu1 %v24669_v42  ;;  %29517 = vst [vmem:[#allocation175_spill] sm:$0xff] %v24682_v36  ;;  %v24688_v42 = vld [vmem:[%s28800_s7 + $0x70] ss:$48 sps:$4 sm:$0xff]  }
 0x61d   : > { %6252 = vmatprep.mubr.f32.mxu1 %v24045_v63  ;;  %15403 = vmatprep.subr.bf16.mxu0 %v24676_v9  ;;  %29518 = vst [vmem:[#allocation176_spill] sm:$0xff] %v24688_v42  ;;  %v24700_v9 = vld [vmem:[%s28800_s7 + $0xd4] ss:$48 sps:$4 sm:$0xff]  }
 0x61e   : > { %15475 = vmatprep.subr.bf16.mxu1 %v24682_v36  ;;  %29520 = vst [vmem:[#allocation178_spill] sm:$0xff] %v24700_v9  ;;  %v24706_v36 = vld [vmem:[%s28800_s7 + $0xdc] ss:$48 sps:$4 sm:$0xff]  }
 0x61f   : > { %15405 = vmatpush1.bf16.msra.mxu0 %v24688_v42  ;;  %29521 = vst [vmem:[#allocation179_spill] sm:$0xff] %v24706_v36  ;;  %v24712_v42 = vld [vmem:[%s28800_s7 + $0xd0] ss:$48 sps:$4 sm:$0xff]  }
 0x620   : > { %15477 = vmatpush1.bf16.msra.mxu1 %v24694_v25  ;;  %15407 = vmatprep.subr.bf16.mxu0 %v24700_v9  ;;  %29522 = vst [vmem:[#allocation180_spill] sm:$0xff] %v24712_v42  ;;  %v24718_v25 = vld [vmem:[%s28800_s7 + $0xd8] ss:$48 sps:$4 sm:$0xff]   ;;  %v24724_v9 = vld [vmem:[%s28800_s7 + $0x134] ss:$48 sps:$4 sm:$0xff]  }
 0x621   : > { %15479 = vmatprep.subr.bf16.mxu1 %v24706_v36  ;;  %29523 = vst [vmem:[#allocation181_spill] sm:$0xff] %v24718_v25  ;;  %29524 = vst [vmem:[#allocation182_spill] sm:$0xff] %v24724_v9  ;;  %v24730_v36 = vld [vmem:[%s28800_s7 + $0x13c] ss:$48 sps:$4 sm:$0xff]  }
 0x622   : > { %29525 = vst [vmem:[#allocation183_spill] sm:$0xff] %v24730_v36 }
 0x623   : > { %15409 = vmatpush1.bf16.msra.mxu0 %v24712_v42  ;;  %v24736_v42 = vld [vmem:[%s28800_s7 + $0x130] ss:$48 sps:$4 sm:$0xff]  }
 0x624   : > { %15481 = vmatpush1.bf16.msra.mxu1 %v24718_v25  ;;  %15411 = vmatprep.subr.bf16.mxu0 %v24724_v9  ;;  %29526 = vst [vmem:[#allocation184_spill] sm:$0xff] %v24736_v42  ;;  %v24742_v25 = vld [vmem:[%s28800_s7 + $0x138] ss:$48 sps:$4 sm:$0xff]   ;;  %v24748_v9 = vld [vmem:[%s28800_s7 + $0x194] ss:$48 sps:$4 sm:$0xff]  }
 0x625   : > { %15483 = vmatprep.subr.bf16.mxu1 %v24730_v36  ;;  %29527 = vst [vmem:[#allocation185_spill] sm:$0xff] %v24742_v25  ;;  %29528 = vst [vmem:[#allocation186_spill] sm:$0xff] %v24748_v9  ;;  %v24754_v36 = vld [vmem:[%s28800_s7 + $0x19c] ss:$48 sps:$4 sm:$0xff]  }
 0x626   : > { %29529 = vst [vmem:[#allocation187_spill] sm:$0xff] %v24754_v36 }
 0x627   : > { %15413 = vmatpush1.bf16.msra.mxu0 %v24736_v42  ;;  %v24760_v42 = vld [vmem:[%s28800_s7 + $0x190] ss:$48 sps:$4 sm:$0xff]  }
 0x628   : > { %15485 = vmatpush1.bf16.msra.mxu1 %v24742_v25  ;;  %15415 = vmatprep.subr.bf16.mxu0 %v24748_v9  ;;  %29530 = vst [vmem:[#allocation188_spill] sm:$0xff] %v24760_v42  ;;  %v24766_v25 = vld [vmem:[%s28800_s7 + $0x198] ss:$48 sps:$4 sm:$0xff]   ;;  %v24772_v9 = vld [vmem:[%s28800_s7 + $0x1f4] ss:$48 sps:$4 sm:$0xff]  }
 0x629   : > { %15487 = vmatprep.subr.bf16.mxu1 %v24754_v36  ;;  %29531 = vst [vmem:[#allocation189_spill] sm:$0xff] %v24766_v25  ;;  %29532 = vst [vmem:[#allocation190_spill] sm:$0xff] %v24772_v9  ;;  %v24778_v36 = vld [vmem:[%s28800_s7 + $0x1fc] ss:$48 sps:$4 sm:$0xff]  }
 0x62a   : > { %29533 = vst [vmem:[#allocation191_spill] sm:$0xff] %v24778_v36 }
 0x62b   : > { %15417 = vmatpush1.bf16.msra.mxu0 %v24760_v42  ;;  %v24784_v42 = vld [vmem:[%s28800_s7 + $0x1f0] ss:$48 sps:$4 sm:$0xff]  }
 0x62c   : > { %15489 = vmatpush1.bf16.msra.mxu1 %v24766_v25  ;;  %15419 = vmatprep.subr.bf16.mxu0 %v24772_v9  ;;  %29534 = vst [vmem:[#allocation192_spill] sm:$0xff] %v24784_v42  ;;  %v24790_v25 = vld [vmem:[%s28800_s7 + $0x1f8] ss:$48 sps:$4 sm:$0xff]   ;;  %v24796_v9 = vld [vmem:[%s28800_s7 + $0x254] ss:$48 sps:$4 sm:$0xff]  }
 0x62d   : > { %15491 = vmatprep.subr.bf16.mxu1 %v24778_v36  ;;  %29535 = vst [vmem:[#allocation193_spill] sm:$0xff] %v24790_v25  ;;  %29536 = vst [vmem:[#allocation194_spill] sm:$0xff] %v24796_v9  ;;  %v24802_v36 = vld [vmem:[%s28800_s7 + $0x25c] ss:$48 sps:$4 sm:$0xff]  }
 0x62e   : > { %29537 = vst [vmem:[#allocation195_spill] sm:$0xff] %v24802_v36 }
 0x62f   : > { %15421 = vmatpush1.bf16.msra.mxu0 %v24784_v42  ;;  %v24808_v42 = vld [vmem:[%s28800_s7 + $0x250] ss:$48 sps:$4 sm:$0xff]  }
 0x630   : > { %15493 = vmatpush1.bf16.msra.mxu1 %v24790_v25  ;;  %15423 = vmatprep.subr.bf16.mxu0 %v24796_v9  ;;  %29538 = vst [vmem:[#allocation196_spill] sm:$0xff] %v24808_v42  ;;  %v24814_v25 = vld [vmem:[%s28800_s7 + $0x258] ss:$48 sps:$4 sm:$0xff]   ;;  %v24820_v9 = vld [vmem:[%s28800_s7 + $0x2b4] ss:$48 sps:$4 sm:$0xff]  }
 0x631   : > { %15495 = vmatprep.subr.bf16.mxu1 %v24802_v36  ;;  %29539 = vst [vmem:[#allocation197_spill] sm:$0xff] %v24814_v25  ;;  %29540 = vst [vmem:[#allocation198_spill] sm:$0xff] %v24820_v9  ;;  %v24826_v36 = vld [vmem:[%s28800_s7 + $0x2bc] ss:$48 sps:$4 sm:$0xff]  }
 0x632   : > { %29541 = vst [vmem:[#allocation199_spill] sm:$0xff] %v24826_v36 }
 0x633   : > { %15425 = vmatpush1.bf16.msra.mxu0 %v24808_v42  ;;  %v24832_v42 = vld [vmem:[%s28800_s7 + $0x2b0] ss:$48 sps:$4 sm:$0xff]  }
 0x634   : > { %15497 = vmatpush1.bf16.msra.mxu1 %v24814_v25  ;;  %15427 = vmatprep.subr.bf16.mxu0 %v24820_v9  ;;  %29542 = vst [vmem:[#allocation200_spill] sm:$0xff] %v24832_v42  ;;  %v24838_v25 = vld [vmem:[%s28800_s7 + $0x2b8] ss:$48 sps:$4 sm:$0xff]   ;;  %v24844_v9 = vld [vmem:[%s28800_s7 + $0x314] ss:$48 sps:$4 sm:$0xff]  }
 0x635   : > { %15499 = vmatprep.subr.bf16.mxu1 %v24826_v36  ;;  %29543 = vst [vmem:[#allocation201_spill] sm:$0xff] %v24838_v25  ;;  %29544 = vst [vmem:[#allocation202_spill] sm:$0xff] %v24844_v9  ;;  %v24850_v36 = vld [vmem:[%s28800_s7 + $0x31c] ss:$48 sps:$4 sm:$0xff]  }
 0x636   : > { %29545 = vst [vmem:[#allocation203_spill] sm:$0xff] %v24850_v36 }
 0x637   : > { %15429 = vmatpush1.bf16.msra.mxu0 %v24832_v42  ;;  %v24856_v42 = vld [vmem:[%s28800_s7 + $0x310] ss:$48 sps:$4 sm:$0xff]  }
 0x638   : > { %15501 = vmatpush1.bf16.msra.mxu1 %v24838_v25  ;;  %15431 = vmatprep.subr.bf16.mxu0 %v24844_v9  ;;  %29546 = vst [vmem:[#allocation204_spill] sm:$0xff] %v24856_v42  ;;  %v24862_v25 = vld [vmem:[%s28800_s7 + $0x318] ss:$48 sps:$4 sm:$0xff]   ;;  %v24868_v9 = vld [vmem:[%s28800_s7 + $0x374] ss:$48 sps:$4 sm:$0xff]  }
 0x639   : > { %15503 = vmatprep.subr.bf16.mxu1 %v24850_v36  ;;  %29547 = vst [vmem:[#allocation205_spill] sm:$0xff] %v24862_v25  ;;  %29548 = vst [vmem:[#allocation206_spill] sm:$0xff] %v24868_v9  ;;  %v24874_v36 = vld [vmem:[%s28800_s7 + $0x37c] ss:$48 sps:$4 sm:$0xff]  }
 0x63a   : > { %29549 = vst [vmem:[#allocation207_spill] sm:$0xff] %v24874_v36 }
 0x63b   : > { %15433 = vmatpush1.bf16.msra.mxu0 %v24856_v42  ;;  %v24880_v42 = vld [vmem:[%s28800_s7 + $0x370] ss:$48 sps:$4 sm:$0xff]  }
 0x63c   : > { %15505 = vmatpush1.bf16.msra.mxu1 %v24862_v25  ;;  %15435 = vmatprep.subr.bf16.mxu0 %v24868_v9  ;;  %29550 = vst [vmem:[#allocation208_spill] sm:$0xff] %v24880_v42  ;;  %v24886_v25 = vld [vmem:[%s28800_s7 + $0x378] ss:$48 sps:$4 sm:$0xff]   ;;  %v24892_v9 = vld [vmem:[%s28800_s7 + $0x3d4] ss:$48 sps:$4 sm:$0xff]  }
 0x63d   : > { %15507 = vmatprep.subr.bf16.mxu1 %v24874_v36  ;;  %29551 = vst [vmem:[#allocation209_spill] sm:$0xff] %v24886_v25  ;;  %29552 = vst [vmem:[#allocation210_spill] sm:$0xff] %v24892_v9  ;;  %v24898_v36 = vld [vmem:[%s28800_s7 + $0x3dc] ss:$48 sps:$4 sm:$0xff]  }
 0x63e   : > { %29553 = vst [vmem:[#allocation211_spill] sm:$0xff] %v24898_v36 }
 0x63f   : > { %15437 = vmatpush1.bf16.msra.mxu0 %v24880_v42  ;;  %v24904_v42 = vld [vmem:[%s28800_s7 + $0x3d0] ss:$48 sps:$4 sm:$0xff]  }
 0x640   : > { %15509 = vmatpush1.bf16.msra.mxu1 %v24886_v25  ;;  %15439 = vmatprep.subr.bf16.mxu0 %v24892_v9  ;;  %29554 = vst [vmem:[#allocation212_spill] sm:$0xff] %v24904_v42  ;;  %v24910_v25 = vld [vmem:[%s28800_s7 + $0x3d8] ss:$48 sps:$4 sm:$0xff]   ;;  %v24916_v9 = vld [vmem:[%s28800_s7 + $0x434] ss:$48 sps:$4 sm:$0xff]  }
 0x641   : > { %15511 = vmatprep.subr.bf16.mxu1 %v24898_v36  ;;  %29555 = vst [vmem:[#allocation213_spill] sm:$0xff] %v24910_v25  ;;  %29556 = vst [vmem:[#allocation214_spill] sm:$0xff] %v24916_v9  ;;  %v24922_v36 = vld [vmem:[%s28800_s7 + $0x43c] ss:$48 sps:$4 sm:$0xff]  }
 0x642   : > { %29557 = vst [vmem:[#allocation215_spill] sm:$0xff] %v24922_v36 }
 0x643   : > { %15441 = vmatpush1.bf16.msra.mxu0 %v24904_v42  ;;  %v24928_v42 = vld [vmem:[%s28800_s7 + $0x430] ss:$48 sps:$4 sm:$0xff]  }
 0x644   : > { %15513 = vmatpush1.bf16.msra.mxu1 %v24910_v25  ;;  %15443 = vmatprep.subr.bf16.mxu0 %v24916_v9  ;;  %29558 = vst [vmem:[#allocation216_spill] sm:$0xff] %v24928_v42  ;;  %v24934_v25 = vld [vmem:[%s28800_s7 + $0x438] ss:$48 sps:$4 sm:$0xff]   ;;  %v24940_v9 = vld [vmem:[%s28800_s7 + $0x494] ss:$48 sps:$4 sm:$0xff]  }
 0x645   : > { %15515 = vmatprep.subr.bf16.mxu1 %v24922_v36  ;;  %29559 = vst [vmem:[#allocation217_spill] sm:$0xff] %v24934_v25  ;;  %29560 = vst [vmem:[#allocation218_spill] sm:$0xff] %v24940_v9  ;;  %v24946_v36 = vld [vmem:[%s28800_s7 + $0x49c] ss:$48 sps:$4 sm:$0xff]  }
 0x646   : > { %29561 = vst [vmem:[#allocation219_spill] sm:$0xff] %v24946_v36 }
 0x647   : > { %15445 = vmatpush1.bf16.msra.mxu0 %v24928_v42  ;;  %v24952_v42 = vld [vmem:[%s28800_s7 + $0x490] ss:$48 sps:$4 sm:$0xff]  }
 0x648   : > { %15517 = vmatpush1.bf16.msra.mxu1 %v24934_v25  ;;  %15447 = vmatprep.subr.bf16.mxu0 %v24940_v9  ;;  %29562 = vst [vmem:[#allocation220_spill] sm:$0xff] %v24952_v42  ;;  %v24958_v25 = vld [vmem:[%s28800_s7 + $0x498] ss:$48 sps:$4 sm:$0xff]   ;;  %v24964_v9 = vld [vmem:[%s28800_s7 + $0x4f4] ss:$48 sps:$4 sm:$0xff]  }
 0x649   : > { %15519 = vmatprep.subr.bf16.mxu1 %v24946_v36  ;;  %29563 = vst [vmem:[#allocation221_spill] sm:$0xff] %v24958_v25  ;;  %29564 = vst [vmem:[#allocation222_spill] sm:$0xff] %v24964_v9  ;;  %v24970_v36 = vld [vmem:[%s28800_s7 + $0x4fc] ss:$48 sps:$4 sm:$0xff]  }
 0x64a   : > { %29565 = vst [vmem:[#allocation223_spill] sm:$0xff] %v24970_v36 }
 0x64b   : > { %15449 = vmatpush1.bf16.msra.mxu0 %v24952_v42  ;;  %v24976_v42 = vld [vmem:[%s28800_s7 + $0x4f0] ss:$48 sps:$4 sm:$0xff]  }
 0x64c   : > { %15521 = vmatpush1.bf16.msra.mxu1 %v24958_v25  ;;  %15451 = vmatprep.subr.bf16.mxu0 %v24964_v9  ;;  %29566 = vst [vmem:[#allocation224_spill] sm:$0xff] %v24976_v42  ;;  %v24982_v25 = vld [vmem:[%s28800_s7 + $0x4f8] ss:$48 sps:$4 sm:$0xff]   ;;  %v24988_v9 = vld [vmem:[%s28800_s7 + $0x554] ss:$48 sps:$4 sm:$0xff]  }
 0x64d   : > { %15523 = vmatprep.subr.bf16.mxu1 %v24970_v36  ;;  %29567 = vst [vmem:[#allocation225_spill] sm:$0xff] %v24982_v25  ;;  %29568 = vst [vmem:[#allocation226_spill] sm:$0xff] %v24988_v9  ;;  %v24994_v36 = vld [vmem:[%s28800_s7 + $0x55c] ss:$48 sps:$4 sm:$0xff]  }
 0x64e   : > { %29569 = vst [vmem:[#allocation227_spill] sm:$0xff] %v24994_v36 }
 0x64f   : > { %15453 = vmatpush1.bf16.msra.mxu0 %v24976_v42  ;;  %v25000_v42 = vld [vmem:[%s28800_s7 + $0x550] ss:$48 sps:$4 sm:$0xff]  }
 0x650   : > { %15525 = vmatpush1.bf16.msra.mxu1 %v24982_v25  ;;  %15455 = vmatprep.subr.bf16.mxu0 %v24988_v9  ;;  %29570 = vst [vmem:[#allocation228_spill] sm:$0xff] %v25000_v42  ;;  %v25006_v25 = vld [vmem:[%s28800_s7 + $0x558] ss:$48 sps:$4 sm:$0xff]   ;;  %v25012_v9 = vld [vmem:[%s28800_s7 + $0x5b4] ss:$48 sps:$4 sm:$0xff]  }
 0x651   : > { %15527 = vmatprep.subr.bf16.mxu1 %v24994_v36  ;;  %29571 = vst [vmem:[#allocation229_spill] sm:$0xff] %v25006_v25  ;;  %v25018_v36 = vld [vmem:[%s28800_s7 + $0x5bc] ss:$48 sps:$4 sm:$0xff]  }
 0x653   : > { %15457 = vmatpush1.bf16.msra.mxu0 %v25000_v42  ;;  %v25024_v42 = vld [vmem:[%s28800_s7 + $0x5b0] ss:$48 sps:$4 sm:$0xff]  }
 0x654   : > { %15529 = vmatpush1.bf16.msra.mxu1 %v25006_v25  ;;  %15459 = vmatprep.subr.bf16.mxu0 %v25012_v9  ;;  %v25030_v25 = vld [vmem:[%s28800_s7 + $0x5b8] ss:$48 sps:$4 sm:$0xff]  }
 0x655   : > { %15531 = vmatprep.subr.bf16.mxu1 %v25018_v36 }
 0x657   : > { %15461 = vmatpush1.bf16.msra.mxu0 %v25024_v42 }
 0x658   : > { %15533 = vmatpush1.bf16.msra.mxu1 %v25030_v25  ;;  %15463 = vmatprep.subr.bf16.mxu0 %v23454_v17  ;;  %v29572_v17 = vld [vmem:[#allocation30_spill] sm:$0xff] }
 0x659   : > { %15535 = vmatprep.subr.bf16.mxu1 %v23459_v19  ;;  %v29573_v19 = vld [vmem:[#allocation31_spill] sm:$0xff] }
 0x65a   : > { %6111 = vmatmul.mubr.f32.vlgmr.msra.gmra.mrb[26].mxu0 %v24047_v45 }
 0x65b   : > { %6253 = vmatmul.mubr.f32.vlgmr.msra.gmra.mrb[20].mxu1 %v24047_v45  ;;  %15465 = vmatpush1.bf16.msra.mxu0 %v23464_v26  ;;  %v29574_v26 = vld [vmem:[#allocation32_spill] sm:$0xff] }
 0x65c   : > { %15537 = vmatpush1.bf16.msra.mxu1 %v23469_v34  ;;  %15467 = vmatprep.subr.bf16.mxu0 %v23476_v8  ;;  %v29575_v34 = vld [vmem:[#allocation33_spill] sm:$0xff]  ;;  %v29576_v8 = vld [vmem:[#allocation34_spill] sm:$0xff] }
 0x65d   : > { %15539 = vmatprep.subr.bf16.mxu1 %v23481_v12  ;;  %6181 = vmatprep.mubr.f32.mxu0 %v29410_v53  ;;  %v29577_v12 = vld [vmem:[#allocation35_spill] sm:$0xff] }
 0x65e   : > { %6323 = vmatprep.mubr.f32.mxu1 %v29410_v53 }
 0x65f   : > { %15469 = vmatpush1.bf16.msra.mxu0 %v23490_v13  ;;  %v29578_v13 = vld [vmem:[#allocation36_spill] sm:$0xff] }
 0x660   : > { %15541 = vmatpush1.bf16.msra.mxu1 %v23495_v20  ;;  %15543 = vmatprep.subr.bf16.mxu0 %v23502_v35  ;;  %v29579_v20 = vld [vmem:[#allocation37_spill] sm:$0xff]  ;;  %v29580_v35 = vld [vmem:[#allocation38_spill] sm:$0xff] }
 0x661   : > { %15615 = vmatprep.subr.bf16.mxu1 %v23507_v21  ;;  %v29581_v21 = vld [vmem:[#allocation39_spill] sm:$0xff] }
 0x662   : > { %13574 = vmatmul.mubr.msk.f32.vlgmr.msra.gmra.mrb[26].mxu0 %vm1565_vm4, %v24049_v6 }
 0x663   : > { %13575 = vmatmul.mubr.msk.f32.vlgmr.msra.gmra.mrb[20].mxu1 %vm1565_vm4, %v24049_v6  ;;  %15545 = vmatpush1.bf16.msra.mxu0 %v23516_v22  ;;  %v29582_v22 = vld [vmem:[#allocation40_spill] sm:$0xff] }
 0x664   : > { %6394 = vmatprep.mubr.f32.mxu0 %v24045_v63  ;;  %15617 = vmatpush1.bf16.msra.mxu1 %v23521_v23  ;;  %v29583_v23 = vld [vmem:[#allocation41_spill] sm:$0xff] }
 0x665   : > { %6536 = vmatprep.mubr.f32.mxu1 %v24045_v63  ;;  %15547 = vmatprep.subr.bf16.mxu0 %v23528_v24  ;;  %v29584_v24 = vld [vmem:[#allocation42_spill] sm:$0xff] }
 0x666   : > { %15619 = vmatprep.subr.bf16.mxu1 %v23533_v47  ;;  %v29585_v47 = vld [vmem:[#allocation43_spill] sm:$0xff] }
 0x667   : > { %15549 = vmatpush1.bf16.msra.mxu0 %v23542_v29  ;;  %v29586_v29 = vld [vmem:[#allocation44_spill] sm:$0xff] }
 0x668   : > { %15621 = vmatpush1.bf16.msra.mxu1 %v23547_v30  ;;  %15551 = vmatprep.subr.bf16.mxu0 %v23554_v31  ;;  %v29587_v30 = vld [vmem:[#allocation45_spill] sm:$0xff]  ;;  %v29588_v31 = vld [vmem:[#allocation46_spill] sm:$0xff] }
 0x669   : > { %15623 = vmatprep.subr.bf16.mxu1 %v23559_v38  ;;  %v29589_v38 = vld [vmem:[#allocation47_spill] sm:$0xff] }
 0x66b   : > { %15553 = vmatpush1.bf16.msra.mxu0 %v23568_v52  ;;  %v29590_v52 = vld [vmem:[#allocation48_spill] sm:$0xff] }
 0x66c   : > { %15625 = vmatpush1.bf16.msra.mxu1 %v23573_v41  ;;  %15555 = vmatprep.subr.bf16.mxu0 %v23580_v43  ;;  %v29591_v41 = vld [vmem:[#allocation49_spill] sm:$0xff]  ;;  %v29592_v43 = vld [vmem:[#allocation50_spill] sm:$0xff] }
 0x66d   : > { %15627 = vmatprep.subr.bf16.mxu1 %v23585_v46  ;;  %v29593_v46 = vld [vmem:[#allocation51_spill] sm:$0xff] }
 0x66f   : > { %15557 = vmatpush1.bf16.msra.mxu0 %v23592_v58  ;;  %v29594_v58 = vld [vmem:[#allocation52_spill] sm:$0xff] }
 0x670   : > { %15629 = vmatpush1.bf16.msra.mxu1 %v23597_v48  ;;  %15559 = vmatprep.subr.bf16.mxu0 %v23604_v50  ;;  %v29595_v48 = vld [vmem:[#allocation53_spill] sm:$0xff]  ;;  %v29596_v50 = vld [vmem:[#allocation54_spill] sm:$0xff] }
 0x671   : > { %15631 = vmatprep.subr.bf16.mxu1 %v23609_v55  ;;  %v29597_v55 = vld [vmem:[#allocation55_spill] sm:$0xff] }
 0x673   : > { %15561 = vmatpush1.bf16.msra.mxu0 %v23616_v3  ;;  %v29598_v3 = vld [vmem:[#allocation56_spill] sm:$0xff] }
 0x674   : > { %15633 = vmatpush1.bf16.msra.mxu1 %v23621_v56  ;;  %15563 = vmatprep.subr.bf16.mxu0 %v23628_v57  ;;  %v29599_v56 = vld [vmem:[#allocation57_spill] sm:$0xff]  ;;  %v29600_v57 = vld [vmem:[#allocation58_spill] sm:$0xff] }
 0x675   : > { %15635 = vmatprep.subr.bf16.mxu1 %v23633_v62  ;;  %v29601_v62 = vld [vmem:[#allocation59_spill] sm:$0xff] }
 0x677   : > { %15565 = vmatpush1.bf16.msra.mxu0 %v23640_v0  ;;  %v29602_v0 = vld [vmem:[#allocation60_spill] sm:$0xff] }
 0x678   : > { %15637 = vmatpush1.bf16.msra.mxu1 %v23645_v1  ;;  %15567 = vmatprep.subr.bf16.mxu0 %v23652_v2  ;;  %v29603_v1 = vld [vmem:[#allocation61_spill] sm:$0xff]  ;;  %v29604_v2 = vld [vmem:[#allocation62_spill] sm:$0xff] }
 0x679   : > { %15639 = vmatprep.subr.bf16.mxu1 %v23657_v4  ;;  %v29605_v4 = vld [vmem:[#allocation63_spill] sm:$0xff] }
 0x67b   : > { %15569 = vmatpush1.bf16.msra.mxu0 %v23664_v5  ;;  %v29606_v5 = vld [vmem:[#allocation64_spill] sm:$0xff] }
 0x67c   : > { %15641 = vmatpush1.bf16.msra.mxu1 %v29572_v17  ;;  %15571 = vmatprep.subr.bf16.mxu0 %v29573_v19  ;;  %v29607_v17 = vld [vmem:[#allocation65_spill] sm:$0xff]  ;;  %v29608_v19 = vld [vmem:[#allocation66_spill] sm:$0xff] }
 0x67d   : > { %15643 = vmatprep.subr.bf16.mxu1 %v29574_v26  ;;  %v29609_v26 = vld [vmem:[#allocation67_spill] sm:$0xff] }
 0x67f   : > { %15573 = vmatpush1.bf16.msra.mxu0 %v29575_v34  ;;  %v29610_v34 = vld [vmem:[#allocation68_spill] sm:$0xff] }
 0x680   : > { %15645 = vmatpush1.bf16.msra.mxu1 %v29576_v8  ;;  %15575 = vmatprep.subr.bf16.mxu0 %v29577_v12  ;;  %v29611_v8 = vld [vmem:[#allocation69_spill] sm:$0xff]  ;;  %v29612_v12 = vld [vmem:[#allocation70_spill] sm:$0xff] }
 0x681   : > { %15647 = vmatprep.subr.bf16.mxu1 %v29578_v13  ;;  %v29613_v13 = vld [vmem:[#allocation71_spill] sm:$0xff] }
 0x683   : > { %15577 = vmatpush1.bf16.msra.mxu0 %v29579_v20  ;;  %v29614_v20 = vld [vmem:[#allocation72_spill] sm:$0xff] }
 0x684   : > { %15649 = vmatpush1.bf16.msra.mxu1 %v29580_v35  ;;  %15579 = vmatprep.subr.bf16.mxu0 %v29581_v21  ;;  %v29615_v35 = vld [vmem:[#allocation12_spill] sm:$0xff]  ;;  %v29616_v21 = vmov 0.0|0.0  }
 0x685   : > { %15651 = vmatprep.subr.bf16.mxu1 %v29582_v22  ;;  %v29619_v22 = vld [vmem:[#allocation15_spill] sm:$0xff] }
 0x687   : > { %15581 = vmatpush1.bf16.msra.mxu0 %v29583_v23  ;;  %v29620_v23 = vld [vmem:[#allocation16_spill] sm:$0xff] }
 0x688   : > { %15653 = vmatpush1.bf16.msra.mxu1 %v29584_v24  ;;  %15583 = vmatprep.subr.bf16.mxu0 %v29585_v47  ;;  %v29621_v24 = vld [vmem:[#allocation17_spill] sm:$0xff]  ;;  %v29622_v47 = vld [vmem:[#allocation20_spill] sm:$0xff] }
 0x689   : > { %15655 = vmatprep.subr.bf16.mxu1 %v29586_v29  ;;  %v29623_v29 = vld [vmem:[#allocation74_spill] sm:$0xff] }
 0x68b   : > { %15585 = vmatpush1.bf16.msra.mxu0 %v29587_v30  ;;  %v29624_v30 = vld [vmem:[#allocation18_spill] sm:$0xff] }
 0x68c   : > { %15657 = vmatpush1.bf16.msra.mxu1 %v29588_v31  ;;  %15587 = vmatprep.subr.bf16.mxu0 %v29589_v38  ;;  %v29625_v31 = vld [vmem:[#allocation19_spill] sm:$0xff]  ;;  %v29626_v38 = vld [vmem:[#allocation21_spill] sm:$0xff] }
 0x68d   : > { %15659 = vmatprep.subr.bf16.mxu1 %v29590_v52  ;;  %v29627_v52 = vld [vmem:[#allocation22_spill] sm:$0xff] }
 0x68f   : > { %15589 = vmatpush1.bf16.msra.mxu0 %v29591_v41  ;;  %v29628_v41 = vld [vmem:[#allocation23_spill] sm:$0xff] }
 0x690   : > { %15661 = vmatpush1.bf16.msra.mxu1 %v29592_v43  ;;  %15591 = vmatprep.subr.bf16.mxu0 %v29593_v46  ;;  %v29629_v43 = vld [vmem:[#allocation24_spill] sm:$0xff]  ;;  %v29630_v46 = vld [vmem:[#allocation25_spill] sm:$0xff] }
 0x691   : > { %15663 = vmatprep.subr.bf16.mxu1 %v29594_v58  ;;  %v29631_v58 = vld [vmem:[#allocation26_spill] sm:$0xff] }
 0x693   : > { %15593 = vmatpush1.bf16.msra.mxu0 %v29595_v48  ;;  %v29632_v48 = vld [vmem:[#allocation27_spill] sm:$0xff] }
 0x694   : > { %15665 = vmatpush1.bf16.msra.mxu1 %v29596_v50  ;;  %15595 = vmatprep.subr.bf16.mxu0 %v29597_v55  ;;  %v29633_v50 = vld [vmem:[#allocation28_spill] sm:$0xff]  ;;  %v29634_v55 = vld [vmem:[#allocation29_spill] sm:$0xff] }
 0x695   : > { %15667 = vmatprep.subr.bf16.mxu1 %v29598_v3  ;;  %v29635_v3 = vld [vmem:[#allocation73_spill] sm:$0xff] }
 0x697   : > { %15597 = vmatpush1.bf16.msra.mxu0 %v29599_v56 }
 0x698   : > { %15669 = vmatpush1.bf16.msra.mxu1 %v29600_v57  ;;  %15599 = vmatprep.subr.bf16.mxu0 %v29601_v62 }
 0x699   : > { %15671 = vmatprep.subr.bf16.mxu1 %v29602_v0 }
 0x69b   : > { %15601 = vmatpush1.bf16.msra.mxu0 %v29603_v1  ;;  %v29636_v1 = vld [vmem:[#allocation76_spill] sm:$0xff] }
 0x69c   : > { %15673 = vmatpush1.bf16.msra.mxu1 %v29604_v2  ;;  %15603 = vmatprep.subr.bf16.mxu0 %v29605_v4  ;;  %v29637_v4 = vld [vmem:[#allocation75_spill] sm:$0xff] }
 0x69d   : > { %15675 = vmatprep.subr.bf16.mxu1 %v29606_v5 }
 0x69f   : > { %15605 = vmatpush1.bf16.msra.mxu0 %v29607_v17  ;;  %v29638_v17 = vld [vmem:[#allocation77_spill] sm:$0xff] }
 0x6a0   : > { %15677 = vmatpush1.bf16.msra.mxu1 %v29608_v19  ;;  %15607 = vmatprep.subr.bf16.mxu0 %v29609_v26 }
 0x6a1   : > { %15679 = vmatprep.subr.bf16.mxu1 %v29610_v34 }
 0x6a2   : > { %6395 = vmatmul.mubr.f32.vlgmr.msra.gmra.mrb[38].mxu0 %v24047_v45 }
 0x6a3   : > { %6537 = vmatmul.mubr.f32.vlgmr.msra.gmra.mrb[32].mxu1 %v24047_v45  ;;  %15609 = vmatpush1.bf16.msra.mxu0 %v23904_v7  ;;  %v29618_v7 = vld [vmem:[#allocation14_spill] sm:$0xff] }
 0x6a4   : > { %15681 = vmatpush1.bf16.msra.mxu1 %v29611_v8  ;;  %15611 = vmatprep.subr.bf16.mxu0 %v23916_v59  ;;  %v29617_v59 = vld [vmem:[#allocation13_spill] sm:$0xff]  ;;  %v29639_v45 = vld [vmem:[#allocation78_spill] sm:$0xff] }
 0x6a5   : > { %15683 = vmatprep.subr.bf16.mxu1 %v29612_v12  ;;  %6465 = vmatprep.mubr.f32.mxu0 %v29410_v53 }
 0x6a6   : > { %6607 = vmatprep.mubr.f32.mxu1 %v29410_v53 }
 0x6a7   : > { %15613 = vmatpush1.bf16.msra.mxu0 %v29613_v13 }
 0x6a8   : > { %15685 = vmatpush1.bf16.msra.mxu1 %v29614_v20  ;;  %15687 = vmatprep.subr.bf16.mxu0 %v29615_v35 }
 0x6a9   : > { %15718 = vmatprep.subr.bf16.mxu1 %v29616_v21 }
 0x6aa   : > { %13576 = vmatmul.mubr.msk.f32.vlgmr.msra.gmra.mrb[38].mxu0 %vm1565_vm4, %v24049_v6 }
 0x6ab   : > { %13577 = vmatmul.mubr.msk.f32.vlgmr.msra.gmra.mrb[32].mxu1 %vm1565_vm4, %v24049_v6  ;;  %15689 = vmatpush3.bf16.msra.mxu0 %v29617_v59 }
 0x6ac   : > { %15691 = vmatprep.subr.bf16.mxu0 %v29618_v7  ;;  %15720 = vmatpush3.bf16.msra.mxu1 %v29619_v22 }
 0x6ad   : > { %15721 = vmatprep.subr.bf16.mxu1 %v29616_v21  ;;  %14099 = vmatprep.mubr.msk.f32.mxu1 %vm21602_vm5, %v29410_v53 }
 0x6af   : > { %15693 = vmatpush3.bf16.msra.mxu0 %v29620_v23 }
 0x6b0   : > { %15695 = vmatprep.subr.bf16.mxu0 %v29621_v24  ;;  %15723 = vmatpush3.bf16.msra.mxu1 %v29622_v47 }
 0x6b1   : > { %15733 = vmatprep.subr.bf16.mxu1 %v29623_v29 }
 0x6b3   : > { %15697 = vmatpush3.bf16.msra.mxu0 %v29624_v30 }
 0x6b4   : > { %15699 = vmatprep.subr.bf16.mxu0 %v29625_v31 }
 0x6b7   : > { %15701 = vmatpush3.bf16.msra.mxu0 %v29626_v38 }
 0x6b8   : > { %15703 = vmatprep.subr.bf16.mxu0 %v29627_v52 }
 0x6bb   : > { %15705 = vmatpush3.bf16.msra.mxu0 %v29628_v41 }
 0x6bc   : > { %15707 = vmatprep.subr.bf16.mxu0 %v29629_v43 }
 0x6bf   : > { %15709 = vmatpush3.bf16.msra.mxu0 %v29630_v46 }
 0x6c0   : > { %15711 = vmatprep.subr.bf16.mxu0 %v29631_v58 }
 0x6c3   : > { %15713 = vmatpush3.bf16.msra.mxu0 %v29632_v48 }
 0x6c4   : > { %15715 = vmatprep.subr.bf16.mxu0 %v29633_v50 }
 0x6c7   : > { %15717 = vmatpush3.bf16.msra.mxu0 %v29634_v55 }
 0x6c8   : > { %15725 = vmatprep.subr.bf16.mxu0 %v29635_v3 }
 0x6ed   : > { %v5899_v56 = vpop.f32.mrb[14].mxu0 }
 0x6ee   : > { %v6041_v57 = vpop.f32.mrb[8].mxu1  ;;  %v5901_v62 = vpop.f32.mrb[15].mxu0  ;;  %v17798_v5 = vadd.f32 %v5899_v56, %v29637_v4  ;;  %v29640_v56 = vld [vmem:[#allocation79_spill] sm:$0xff] }
 0x6ef   : > { %v6043_v0 = vpop.f32.mrb[9].mxu1  ;;  %v17799_v19 = vadd.f32 %v5901_v62, %v29638_v17 }
 0x6f0   : > { %v17811_v2 = vadd.f32 %v6043_v0, %v29636_v1  ;;  %v13578_v34 = vmul.f32 -1.442695, %v17798_v5 }
 0x6f1   : > { %v13579_v8 = vmul.f32 -1.442695, %v17799_v19 }
 0x6f2   : > { %v13581_v26 = vmul.f32 -1.442695, %v17811_v2 }
 0x6f4   : > { %20652 = vpow2.f32 %v13581_v26 }
 0x6f5   : > { %20654 = vpow2.f32 %v13578_v34 }
 0x6f6   : > { %20656 = vpow2.f32 %v13579_v8 }
 0x6fe   : > { %v20653_v12 = vpop.eup %20652 }
 0x6ff   : > { %v20655_v13 = vpop.eup %20654  ;;  %v6653_v20 = vadd.f32 1.0, %v20653_v12 }
 0x700   : > { %v20657_v29 = vpop.eup %20656  ;;  %v6635_v3 = vadd.f32 1.0, %v20655_v13 }
 0x701   : > { %v6636_v1 = vadd.f32 1.0, %v20657_v29  ;;  %20658 = vrcp.f32 %v6653_v20 }
 0x702   : > { %20660 = vrcp.f32 %v6635_v3 }
 0x70b   : > { %v20659_v26 = vpop.eup %20658 }
 0x70c   : > { %v20661_v34 = vpop.eup %20660 }
 0x735   : > { %v6183_v6 = vpop.f32.mrb[26].mxu0 }
 0x736   : > { %v17822_v63 = vadd.f32 %v6183_v6, %v29639_v45  ;;  %v6325_v55 = vpop.f32.mrb[20].mxu1  ;;  %v6185_v0 = vpop.f32.mrb[27].mxu0  ;;  %v6683_v6 = vmul.f32 %v20659_v26, %v24008_v18 }
 0x737   : > { %v17834_v62 = vadd.f32 %v6325_v55, %v29640_v56  ;;  %v6327_v2 = vpop.f32.mrb[21].mxu1 }
 0x738   : > { %v13582_v5 = vmul.f32 -1.442695, %v17822_v63  ;;  %v17835_v19 = vadd.f32 %v6327_v2, %v24003_v49 }
 0x739   : > { %20662 = vtanh.f32 %v17834_v62 }
 0x73a   : > { %20664 = vpow2.f32 %v13582_v5  ;;  %v17810_v5 = vadd.f32 %v6041_v57, %v24016_v28 }
 0x73b   : > { %20666 = vrcp.f32 %v6636_v1  ;;  %v17823_v1 = vadd.f32 %v6185_v0, %v24013_v32 }
 0x73c   : > { %20668 = vtanh.f32 %v17835_v19  ;;  %v13580_v49 = vmul.f32 -1.442695, %v17810_v5 }
 0x73d   : > { %v13583_v19 = vmul.f32 -1.442695, %v17823_v1 }
 0x743   : > { %v20663_v8 = vpop.eup %20662 }
 0x744   : > { %v20665_v12 = vpop.eup %20664  ;;  %v6686_v13 = vmul.f32 %v20663_v8, %v20661_v34 }
 0x745   : > { %v20667_v29 = vpop.eup %20666  ;;  %v6654_v20 = vadd.f32 1.0, %v20665_v12 }
 0x746   : > { %v20669_v45 = vpop.eup %20668  ;;  %v25162_v55 = vadd.f32 %v6686_v13, %v6683_v6 }
 0x747   : > { %20670 = vrcp.f32 %v6654_v20  ;;  %v6687_v63 = vmul.f32 %v20669_v45, %v20667_v29 }
 0x748   : > { %20672 = vpow2.f32 %v13583_v19 }
 0x749   : > { %20674 = vpow2.f32 %v13580_v49 }
 0x751   : > { %v20671_v3 = vpop.eup %20670 }
 0x752   : > { %v6684_v62 = vmul.f32 %v20671_v3, %v24010_v11  ;;  %v20673_v18 = vpop.eup %20672 }
 0x753   : > { %v20675_v26 = vpop.eup %20674  ;;  %v6655_v34 = vadd.f32 1.0, %v20673_v18 }
 0x754   : > { %v25165_v2 = vadd.f32 %v6687_v63, %v6684_v62  ;;  %v6637_v8 = vadd.f32 1.0, %v20675_v26 }
 0x755   : > { %20676 = vrcp.f32 %v6655_v34 }
 0x756   : > { %20678 = vrcp.f32 %v6637_v8 }
 0x75f   : > { %v20677_v3 = vpop.eup %20676 }
 0x760   : > { %v20679_v62 = vpop.eup %20678  ;;  %v6685_v5 = vmul.f32 %v20677_v3, %v24041_v51  ;;  %v29644_v3 = vld [vmem:[#allocation84_spill] sm:$0xff] }
 0x77d   : > { %v6467_v12 = vpop.f32.mrb[38].mxu0 }
 0x77e   : > { %v17846_v45 = vadd.f32 %v6467_v12, %v24024_v10  ;;  %v6609_v6 = vpop.f32.mrb[32].mxu1  ;;  %v6469_v11 = vpop.f32.mrb[39].mxu0 }
 0x77f   : > { %v17858_v13 = vadd.f32 %v6609_v6, %v24027_v54  ;;  %v17847_v0 = vadd.f32 %v6469_v11, %v24030_v37  ;;  %v6611_v57 = vpop.f32.mrb[33].mxu1 }
 0x780   : > { %20680 = vtanh.f32 %v17846_v45  ;;  %v17859_v29 = vadd.f32 %v6611_v57, %v24034_v61 }
 0x781   : > { %v13585_v49 = vmul.f32 -1.442695, %v17858_v13  ;;  %v13584_v20 = vmul.f32 -1.442695, %v17847_v0 }
 0x782   : > { %v13586_v63 = vmul.f32 -1.442695, %v17859_v29 }
 0x783   : > { %20682 = vpow2.f32 %v13585_v49 }
 0x784   : > { %20684 = vpow2.f32 %v13584_v20 }
 0x785   : > { %20686 = vpow2.f32 %v13586_v63 }
 0x786   : > { %20688 = vtanh.f32 %v25162_v55 }
 0x787   : > { %20690 = vtanh.f32 %v25165_v2 }
 0x78a   : > { %v20681_v1 = vpop.eup %20680 }
 0x78b   : > { %v6688_v19 = vmul.f32 %v20681_v1, %v20679_v62  ;;  %v29645_v62 = vld [vmem:[#allocation86_spill] sm:$0xff]  ;;  %v29646_v1 = vld [vmem:[#allocation85_spill] sm:$0xff] }
 0x78d   : > { %v20683_v18 = vpop.eup %20682  ;;  %v25175_v26 = vadd.f32 %v6688_v19, %v6685_v5  ;;  %v29647_v5 = vld [vmem:[#allocation88_spill] sm:$0xff]  ;;  %v29648_v19 = vld [vmem:[#allocation87_spill] sm:$0xff] }
 0x78e   : > { %v20685_v34 = vpop.eup %20684  ;;  %v6675_v8 = vadd.f32 1.0, %v20683_v18 }
 0x78f   : > { %v20687_v12 = vpop.eup %20686  ;;  %20692 = vtanh.f32 %v25175_v26  ;;  %v6674_v45 = vadd.f32 1.0, %v20685_v34 }
 0x790   : > { %20694 = vrcp.f32 %v6675_v8  ;;  %v6676_v6 = vadd.f32 1.0, %v20687_v12  ;;  %v20689_v11 = vpop.eup %20688 }
 0x791   : > { %20696 = vrcp.f32 %v6674_v45  ;;  %v20691_v51 = vpop.eup %20690 }
 0x792   : > { %20698 = vrcp.f32 %v6676_v6  ;;  %v29649_v6 = vld [vmem:[#allocation89_spill] sm:$0xff] }
 0x799   : > { %v20693_v13 = vpop.eup %20692 }
 0x79a   : > { %v20695_v0 = vpop.eup %20694 }
 0x79b   : > { %v20697_v57 = vpop.eup %20696  ;;  %v25179_v29 = vmul.f32 %v20695_v0, %v20691_v51  ;;  %v29652_v51 = vld [vmem:[#allocation92_spill] sm:$0xff]  ;;  %v29658_v0 = vld [vmem:[#allocation98_spill] sm:$0xff] }
 0x79c   : > { %v20699_v49 = vpop.eup %20698  ;;  %v25181_v20 = vmul.f32 %v20697_v57, %v20689_v11  ;;  %v29651_v11 = vld [vmem:[#allocation91_spill] sm:$0xff] }
 0x79d   : > { %29641 = vst [vmem:[#allocation30_spill] sm:$0xff] %v25179_v29  ;;  %v25183_v63 = vmul.f32 %v20699_v49, %v20693_v13  ;;  %6765 = vmatprep.mubr.f32.mxu0 %v25179_v29  ;;  %v29657_v13 = vld [vmem:[#allocation97_spill] sm:$0xff]  ;;  %v29659_v57 = vld [vmem:[#allocation99_spill] sm:$0xff]  ;;  %v29660_v49 = vld [vmem:[#allocation100_spill] sm:$0xff] }
 0x79e   : > { %29642 = vst [vmem:[#allocation31_spill] sm:$0xff] %v25181_v20  ;;  %6766 = vmatmul.mubr.f32.vlgmr.msra.gmra.mrb[52].mxu0 %v25181_v20 }
 0x79f   : > { %29643 = vst [vmem:[#allocation32_spill] sm:$0xff] %v25183_v63  ;;  %14100 = vmatmul.mubr.msk.f32.vlgmr.msra.gmra.mrb[46].mxu1 %vm1565_vm4, %v25183_v63  ;;  %15727 = vmatpush1.bf16.msra.mxu0 %v24064_v16 }
 0x7a0   : > { %15735 = vmatpush1.bf16.msra.mxu1 %v24058_v44  ;;  %15729 = vmatprep.subr.bf16.mxu0 %v24076_v40 }
 0x7a1   : > { %15737 = vmatprep.subr.bf16.mxu1 %v29644_v3  ;;  %6922 = vmatprep.mubr.f32.mxu0 %v29410_v53  ;;  %v29661_v3 = vld [vmem:[#allocation101_spill] sm:$0xff] }
 0x7a2   : > { %6993 = vmatprep.mubr.f32.mxu1 %v29410_v53 }
 0x7a3   : > { %15731 = vmatpush1.bf16.msra.mxu0 %v29645_v62  ;;  %v29662_v62 = vld [vmem:[#allocation102_spill] sm:$0xff] }
 0x7a4   : > { %15739 = vmatpush1.bf16.msra.mxu1 %v29646_v1  ;;  %15741 = vmatprep.subr.bf16.mxu0 %v29647_v5  ;;  %v29664_v1 = vld [vmem:[#allocation104_spill] sm:$0xff]  ;;  %v29665_v5 = vld [vmem:[#allocation105_spill] sm:$0xff] }
 0x7a5   : > { %15749 = vmatprep.subr.bf16.mxu1 %v29648_v19  ;;  %v29666_v19 = vld [vmem:[#allocation106_spill] sm:$0xff] }
 0x871   : > { %v13848_v18 = vpop.f32.mrb[52].mxu0 }
 0x872   : > { %v6837_v16 = vpop.f32.mrb[46].mxu1  ;;  %v13849_v34 = vpop.f32.mrb[53].mxu0 }
 0x873   : > { %v13850_v44 = vadd.f32 %v13849_v34, %v13848_v18  ;;  %v14101_v8 = vpop.f32.mrb[47].mxu1  ;;  %v29667_v18 = vld [vmem:[#allocation107_spill] sm:$0xff]  ;;  %v29669_v34 = vld [vmem:[#allocation109_spill] sm:$0xff] }
 0x874   : > { %v29671_v8 = vld [vmem:[#allocation111_spill] sm:$0xff] }
 0x875   : > { %v6768_v40 = vadd.f32 %v24108_v14, %v13850_v44  ;;  %v29650_v14 = vld [vmem:[#allocation90_spill] sm:$0xff] }
 0x876   : > { %v29670_v44 = vld [vmem:[#allocation110_spill] sm:$0xff] }
 0x877   : > { %v6838_v12 = vadd.f32 %v6837_v16, %v6768_v40  ;;  %v29668_v16 = vld [vmem:[#allocation108_spill] sm:$0xff] }
 0x878   : > { %v29672_v40 = vld [vmem:[#allocation112_spill] sm:$0xff] }
 0x879   : > { %v6841_v45 = vmax.f32 %v6838_v12, 0.0  ;;  %v29673_v12 = vld [vmem:[#allocation113_spill] sm:$0xff] }
 0x87b   : > { %13588 = vmatmul.mubr.msk.f32.vlgmr.msra.gmra.mrb[16].mxu0 %vm1565_vm4, %v6841_v45  ;;  %13589 = vmatmul.mubr.msk.f32.vlgmr.msra.gmra.mrb[10].mxu1 %vm1565_vm4, %v6841_v45 }
 0x87c   : > { %15743 = vmatpush1.bf16.msra.mxu0 %v24116_v15  ;;  %15751 = vmatpush1.bf16.msra.mxu1 %v24122_v60  ;;  %v29653_v15 = vld [vmem:[#allocation93_spill] sm:$0xff]  ;;  %v29654_v60 = vld [vmem:[#allocation94_spill] sm:$0xff] }
 0x87d   : > { %15745 = vmatprep.subr.bf16.mxu0 %v24128_v27  ;;  %15753 = vmatprep.subr.bf16.mxu1 %v24134_v33  ;;  %v29655_v27 = vld [vmem:[#allocation95_spill] sm:$0xff]  ;;  %v29656_v33 = vld [vmem:[#allocation96_spill] sm:$0xff] }
 0x87e   : > { %7064 = vmatprep.mubr.f32.mxu0 %v29410_v53  ;;  %7135 = vmatprep.mubr.f32.mxu1 %v29410_v53 }
 0x880   : > { %15747 = vmatpush1.bf16.msra.mxu0 %v29649_v6  ;;  %15755 = vmatpush1.bf16.msra.mxu1 %v29650_v14  ;;  %v29675_v6 = vld [vmem:[#allocation115_spill] sm:$0xff]  ;;  %v29676_v14 = vld [vmem:[#allocation116_spill] sm:$0xff] }
 0x881   : > { %15757 = vmatprep.subr.bf16.mxu0 %v29651_v11  ;;  %15765 = vmatprep.subr.bf16.mxu1 %v29652_v51  ;;  %v29677_v11 = vld [vmem:[#allocation117_spill] sm:$0xff]  ;;  %v29678_v51 = vld [vmem:[#allocation118_spill] sm:$0xff] }
 0x883   : > { %13590 = vmatmul.mubr.msk.f32.vlgmr.msra.gmra.mrb[28].mxu0 %vm1565_vm4, %v6841_v45  ;;  %13591 = vmatmul.mubr.msk.f32.vlgmr.msra.gmra.mrb[22].mxu1 %vm1565_vm4, %v6841_v45 }
 0x884   : > { %15759 = vmatpush1.bf16.msra.mxu0 %v29653_v15  ;;  %15767 = vmatpush1.bf16.msra.mxu1 %v29654_v60  ;;  %v29679_v15 = vld [vmem:[#allocation119_spill] sm:$0xff]  ;;  %v29680_v60 = vld [vmem:[#allocation120_spill] sm:$0xff] }
 0x885   : > { %15761 = vmatprep.subr.bf16.mxu0 %v29655_v27  ;;  %15769 = vmatprep.subr.bf16.mxu1 %v29656_v33  ;;  %v29681_v27 = vld [vmem:[#allocation121_spill] sm:$0xff]  ;;  %v29682_v33 = vld [vmem:[#allocation122_spill] sm:$0xff] }
 0x886   : > { %7206 = vmatprep.mubr.f32.mxu0 %v29410_v53  ;;  %7277 = vmatprep.mubr.f32.mxu1 %v29410_v53 }
 0x888   : > { %15763 = vmatpush1.bf16.msra.mxu0 %v24194_v39  ;;  %15771 = vmatpush1.bf16.msra.mxu1 %v29657_v13  ;;  %v29663_v39 = vld [vmem:[#allocation103_spill] sm:$0xff] }
 0x889   : > { %15773 = vmatprep.subr.bf16.mxu0 %v29658_v0  ;;  %15845 = vmatprep.subr.bf16.mxu1 %v29659_v57  ;;  %v29683_v13 = vld [vmem:[#allocation123_spill] sm:$0xff]  ;;  %v29684_v0 = vld [vmem:[#allocation124_spill] sm:$0xff]  ;;  %v29685_v57 = vld [vmem:[#allocation125_spill] sm:$0xff] }
 0x88b   : > { %13592 = vmatmul.mubr.msk.f32.vlgmr.msra.gmra.mrb[40].mxu0 %vm1565_vm4, %v6841_v45  ;;  %13593 = vmatmul.mubr.msk.f32.vlgmr.msra.gmra.mrb[34].mxu1 %vm1565_vm4, %v6841_v45  ;;  %v29674_v45 = vld [vmem:[#allocation114_spill] sm:$0xff] }
 0x88c   : > { %15775 = vmatpush1.bf16.msra.mxu0 %v29660_v49  ;;  %7360 = vmatprep.mubr.f32.mxu0 %v25179_v29  ;;  %v29686_v49 = vld [vmem:[#allocation126_spill] sm:$0xff] }
 0x88d   : > { %15847 = vmatpush1.bf16.msra.mxu1 %v29661_v3  ;;  %7502 = vmatprep.mubr.f32.mxu1 %v25179_v29  ;;  %v29687_v3 = vld [vmem:[#allocation127_spill] sm:$0xff] }
 0x88e   : > { %15777 = vmatprep.subr.bf16.mxu0 %v29662_v62  ;;  %15849 = vmatprep.subr.bf16.mxu1 %v29663_v39  ;;  %v29688_v62 = vld [vmem:[#allocation128_spill] sm:$0xff]  ;;  %v29689_v39 = vld [vmem:[#allocation129_spill] sm:$0xff] }
 0x890   : > { %15779 = vmatpush1.bf16.msra.mxu0 %v29664_v1  ;;  %v29690_v1 = vld [vmem:[#allocation130_spill] sm:$0xff] }
 0x891   : > { %15851 = vmatpush1.bf16.msra.mxu1 %v29665_v5  ;;  %15781 = vmatprep.subr.bf16.mxu0 %v29666_v19  ;;  %v29691_v5 = vld [vmem:[#allocation131_spill] sm:$0xff]  ;;  %v29692_v19 = vld [vmem:[#allocation132_spill] sm:$0xff] }
 0x892   : > { %15853 = vmatprep.subr.bf16.mxu1 %v29667_v18  ;;  %v29693_v18 = vld [vmem:[#allocation133_spill] sm:$0xff] }
 0x894   : > { %15783 = vmatpush1.bf16.msra.mxu0 %v29668_v16  ;;  %v29694_v16 = vld [vmem:[#allocation134_spill] sm:$0xff] }
 0x895   : > { %15855 = vmatpush1.bf16.msra.mxu1 %v29669_v34  ;;  %15785 = vmatprep.subr.bf16.mxu0 %v29670_v44  ;;  %v29695_v34 = vld [vmem:[#allocation135_spill] sm:$0xff]  ;;  %v29696_v44 = vld [vmem:[#allocation136_spill] sm:$0xff] }
 0x896   : > { %15857 = vmatprep.subr.bf16.mxu1 %v29671_v8  ;;  %v29697_v8 = vld [vmem:[#allocation137_spill] sm:$0xff] }
 0x898   : > { %15787 = vmatpush1.bf16.msra.mxu0 %v29672_v40  ;;  %v29698_v40 = vld [vmem:[#allocation138_spill] sm:$0xff] }
 0x899   : > { %15859 = vmatpush1.bf16.msra.mxu1 %v29673_v12  ;;  %15789 = vmatprep.subr.bf16.mxu0 %v29674_v45  ;;  %v29699_v12 = vld [vmem:[#allocation139_spill] sm:$0xff]  ;;  %v29700_v45 = vld [vmem:[#allocation140_spill] sm:$0xff] }
 0x89a   : > { %15861 = vmatprep.subr.bf16.mxu1 %v29675_v6  ;;  %v29701_v6 = vld [vmem:[#allocation141_spill] sm:$0xff] }
 0x89c   : > { %15791 = vmatpush1.bf16.msra.mxu0 %v29676_v14  ;;  %v29702_v14 = vld [vmem:[#allocation142_spill] sm:$0xff] }
 0x89d   : > { %15863 = vmatpush1.bf16.msra.mxu1 %v29677_v11  ;;  %15793 = vmatprep.subr.bf16.mxu0 %v29678_v51  ;;  %v29703_v11 = vld [vmem:[#allocation143_spill] sm:$0xff]  ;;  %v29704_v51 = vld [vmem:[#allocation144_spill] sm:$0xff] }
 0x89e   : > { %15865 = vmatprep.subr.bf16.mxu1 %v29679_v15  ;;  %v29705_v15 = vld [vmem:[#allocation145_spill] sm:$0xff] }
 0x8a0   : > { %15795 = vmatpush1.bf16.msra.mxu0 %v29680_v60  ;;  %v29706_v60 = vld [vmem:[#allocation146_spill] sm:$0xff] }
 0x8a1   : > { %15867 = vmatpush1.bf16.msra.mxu1 %v29681_v27  ;;  %15797 = vmatprep.subr.bf16.mxu0 %v29682_v33  ;;  %v29707_v27 = vld [vmem:[#allocation147_spill] sm:$0xff]  ;;  %v29708_v33 = vld [vmem:[#allocation148_spill] sm:$0xff] }
 0x8a2   : > { %15869 = vmatprep.subr.bf16.mxu1 %v29683_v13  ;;  %v29709_v13 = vld [vmem:[#allocation149_spill] sm:$0xff] }
 0x8a4   : > { %15799 = vmatpush1.bf16.msra.mxu0 %v29684_v0  ;;  %v29710_v0 = vld [vmem:[#allocation150_spill] sm:$0xff] }
 0x8a5   : > { %15871 = vmatpush1.bf16.msra.mxu1 %v29685_v57  ;;  %15801 = vmatprep.subr.bf16.mxu0 %v29686_v49  ;;  %v29711_v57 = vld [vmem:[#allocation151_spill] sm:$0xff]  ;;  %v29712_v49 = vld [vmem:[#allocation152_spill] sm:$0xff] }
 0x8a6   : > { %15873 = vmatprep.subr.bf16.mxu1 %v29687_v3  ;;  %v29713_v3 = vld [vmem:[#allocation153_spill] sm:$0xff] }
 0x8a8   : > { %15803 = vmatpush1.bf16.msra.mxu0 %v29688_v62  ;;  %v29714_v62 = vld [vmem:[#allocation154_spill] sm:$0xff] }
 0x8a9   : > { %15875 = vmatpush1.bf16.msra.mxu1 %v29689_v39  ;;  %15805 = vmatprep.subr.bf16.mxu0 %v29690_v1  ;;  %v29715_v39 = vld [vmem:[#allocation155_spill] sm:$0xff]  ;;  %v29716_v1 = vld [vmem:[#allocation156_spill] sm:$0xff] }
 0x8aa   : > { %15877 = vmatprep.subr.bf16.mxu1 %v29691_v5  ;;  %v29717_v5 = vld [vmem:[#allocation157_spill] sm:$0xff] }
 0x8ac   : > { %15807 = vmatpush1.bf16.msra.mxu0 %v29692_v19  ;;  %v29718_v19 = vld [vmem:[#allocation158_spill] sm:$0xff] }
 0x8ad   : > { %15879 = vmatpush1.bf16.msra.mxu1 %v29693_v18  ;;  %15809 = vmatprep.subr.bf16.mxu0 %v29694_v16  ;;  %v29719_v18 = vld [vmem:[#allocation159_spill] sm:$0xff]  ;;  %v29720_v16 = vld [vmem:[#allocation160_spill] sm:$0xff] }
 0x8ae   : > { %15881 = vmatprep.subr.bf16.mxu1 %v29695_v34  ;;  %v29721_v34 = vld [vmem:[#allocation161_spill] sm:$0xff] }
 0x8b0   : > { %15811 = vmatpush1.bf16.msra.mxu0 %v29696_v44  ;;  %v29722_v44 = vld [vmem:[#allocation162_spill] sm:$0xff] }
 0x8b1   : > { %15883 = vmatpush1.bf16.msra.mxu1 %v29697_v8  ;;  %15813 = vmatprep.subr.bf16.mxu0 %v29698_v40  ;;  %v29723_v8 = vld [vmem:[#allocation163_spill] sm:$0xff]  ;;  %v29724_v40 = vld [vmem:[#allocation164_spill] sm:$0xff] }
 0x8b2   : > { %15885 = vmatprep.subr.bf16.mxu1 %v29699_v12  ;;  %v29725_v12 = vld [vmem:[#allocation165_spill] sm:$0xff] }
 0x8b4   : > { %15815 = vmatpush1.bf16.msra.mxu0 %v29700_v45  ;;  %v29726_v45 = vld [vmem:[#allocation166_spill] sm:$0xff] }
 0x8b5   : > { %15887 = vmatpush1.bf16.msra.mxu1 %v29701_v6  ;;  %15817 = vmatprep.subr.bf16.mxu0 %v29702_v14  ;;  %v29727_v6 = vld [vmem:[#allocation167_spill] sm:$0xff]  ;;  %v29728_v14 = vld [vmem:[#allocation168_spill] sm:$0xff] }
 0x8b6   : > { %15889 = vmatprep.subr.bf16.mxu1 %v29703_v11  ;;  %v29729_v11 = vld [vmem:[#allocation169_spill] sm:$0xff] }
 0x8b8   : > { %15819 = vmatpush1.bf16.msra.mxu0 %v29704_v51  ;;  %v29730_v51 = vld [vmem:[#allocation170_spill] sm:$0xff] }
 0x8b9   : > { %15891 = vmatpush1.bf16.msra.mxu1 %v29705_v15  ;;  %15821 = vmatprep.subr.bf16.mxu0 %v29706_v60  ;;  %v29731_v15 = vld [vmem:[#allocation171_spill] sm:$0xff]  ;;  %v29732_v60 = vld [vmem:[#allocation172_spill] sm:$0xff] }
 0x8ba   : > { %15893 = vmatprep.subr.bf16.mxu1 %v29707_v27  ;;  %v29733_v27 = vld [vmem:[#allocation173_spill] sm:$0xff] }
 0x8bc   : > { %15823 = vmatpush1.bf16.msra.mxu0 %v29708_v33  ;;  %v29734_v33 = vld [vmem:[#allocation174_spill] sm:$0xff] }
 0x8bd   : > { %15895 = vmatpush1.bf16.msra.mxu1 %v29709_v13  ;;  %15825 = vmatprep.subr.bf16.mxu0 %v29710_v0  ;;  %v29735_v13 = vld [vmem:[#allocation175_spill] sm:$0xff]  ;;  %v29736_v0 = vld [vmem:[#allocation176_spill] sm:$0xff] }
 0x8be   : > { %15897 = vmatprep.subr.bf16.mxu1 %v29711_v57  ;;  %v29737_v57 = vld [vmem:[#allocation177_spill] sm:$0xff] }
 0x8c0   : > { %15827 = vmatpush1.bf16.msra.mxu0 %v29712_v49  ;;  %v29738_v49 = vld [vmem:[#allocation178_spill] sm:$0xff] }
 0x8c1   : > { %15899 = vmatpush1.bf16.msra.mxu1 %v29713_v3  ;;  %15829 = vmatprep.subr.bf16.mxu0 %v29714_v62  ;;  %v29739_v3 = vld [vmem:[#allocation179_spill] sm:$0xff]  ;;  %v29740_v62 = vld [vmem:[#allocation180_spill] sm:$0xff] }
 0x8c2   : > { %15901 = vmatprep.subr.bf16.mxu1 %v29715_v39  ;;  %v29741_v39 = vld [vmem:[#allocation181_spill] sm:$0xff] }
 0x8c4   : > { %15831 = vmatpush1.bf16.msra.mxu0 %v29716_v1  ;;  %v29742_v1 = vld [vmem:[#allocation182_spill] sm:$0xff] }
 0x8c5   : > { %15903 = vmatpush1.bf16.msra.mxu1 %v29717_v5  ;;  %15833 = vmatprep.subr.bf16.mxu0 %v29718_v19  ;;  %v29743_v5 = vld [vmem:[#allocation183_spill] sm:$0xff]  ;;  %v29744_v19 = vld [vmem:[#allocation184_spill] sm:$0xff] }
 0x8c6   : > { %15905 = vmatprep.subr.bf16.mxu1 %v29719_v18  ;;  %v29745_v18 = vld [vmem:[#allocation185_spill] sm:$0xff] }
 0x8c8   : > { %15835 = vmatpush1.bf16.msra.mxu0 %v29720_v16  ;;  %v29746_v16 = vld [vmem:[#allocation186_spill] sm:$0xff] }
 0x8c9   : > { %15907 = vmatpush1.bf16.msra.mxu1 %v29721_v34  ;;  %15837 = vmatprep.subr.bf16.mxu0 %v29722_v44  ;;  %v29747_v34 = vld [vmem:[#allocation187_spill] sm:$0xff]  ;;  %v29748_v44 = vld [vmem:[#allocation188_spill] sm:$0xff] }
 0x8ca   : > { %15909 = vmatprep.subr.bf16.mxu1 %v29723_v8  ;;  %v29749_v8 = vld [vmem:[#allocation189_spill] sm:$0xff] }
 0x8cb   : > { %7361 = vmatmul.mubr.f32.vlgmr.msra.gmra.mrb[16].mxu0 %v25181_v20 }
 0x8cc   : > { %7503 = vmatmul.mubr.f32.vlgmr.msra.gmra.mrb[10].mxu1 %v25181_v20  ;;  %15839 = vmatpush1.bf16.msra.mxu0 %v29724_v40  ;;  %v29750_v40 = vld [vmem:[#allocation190_spill] sm:$0xff] }
 0x8cd   : > { %15911 = vmatpush1.bf16.msra.mxu1 %v29725_v12  ;;  %15841 = vmatprep.subr.bf16.mxu0 %v29726_v45  ;;  %v29751_v12 = vld [vmem:[#allocation191_spill] sm:$0xff]  ;;  %v29752_v45 = vld [vmem:[#allocation192_spill] sm:$0xff] }
 0x8ce   : > { %15913 = vmatprep.subr.bf16.mxu1 %v29727_v6  ;;  %7431 = vmatprep.mubr.f32.mxu0 %v29410_v53  ;;  %v29753_v6 = vld [vmem:[#allocation193_spill] sm:$0xff] }
 0x8cf   : > { %7573 = vmatprep.mubr.f32.mxu1 %v29410_v53 }
 0x8d0   : > { %15843 = vmatpush1.bf16.msra.mxu0 %v29728_v14  ;;  %v29754_v14 = vld [vmem:[#allocation194_spill] sm:$0xff] }
 0x8d1   : > { %15915 = vmatpush1.bf16.msra.mxu1 %v29729_v11  ;;  %15917 = vmatprep.subr.bf16.mxu0 %v29730_v51  ;;  %v29755_v11 = vld [vmem:[#allocation195_spill] sm:$0xff]  ;;  %v29756_v51 = vld [vmem:[#allocation196_spill] sm:$0xff] }
 0x8d2   : > { %15989 = vmatprep.subr.bf16.mxu1 %v29731_v15  ;;  %v29757_v15 = vld [vmem:[#allocation197_spill] sm:$0xff] }
 0x8d3   : > { %13594 = vmatmul.mubr.msk.f32.vlgmr.msra.gmra.mrb[16].mxu0 %vm1565_vm4, %v25183_v63 }
 0x8d4   : > { %13595 = vmatmul.mubr.msk.f32.vlgmr.msra.gmra.mrb[10].mxu1 %vm1565_vm4, %v25183_v63  ;;  %15919 = vmatpush1.bf16.msra.mxu0 %v29732_v60  ;;  %v29758_v60 = vld [vmem:[#allocation198_spill] sm:$0xff] }
 0x8d5   : > { %7644 = vmatprep.mubr.f32.mxu0 %v25179_v29  ;;  %15991 = vmatpush1.bf16.msra.mxu1 %v29733_v27  ;;  %v29759_v27 = vld [vmem:[#allocation199_spill] sm:$0xff] }
 0x8d6   : > { %7786 = vmatprep.mubr.f32.mxu1 %v25179_v29  ;;  %15921 = vmatprep.subr.bf16.mxu0 %v29734_v33  ;;  %v29760_v33 = vld [vmem:[#allocation200_spill] sm:$0xff] }
 0x8d7   : > { %15993 = vmatprep.subr.bf16.mxu1 %v29735_v13  ;;  %v29761_v13 = vld [vmem:[#allocation201_spill] sm:$0xff] }
 0x8d8   : > { %15923 = vmatpush1.bf16.msra.mxu0 %v29736_v0  ;;  %v29762_v0 = vld [vmem:[#allocation202_spill] sm:$0xff] }
 0x8d9   : > { %15995 = vmatpush1.bf16.msra.mxu1 %v29737_v57  ;;  %15925 = vmatprep.subr.bf16.mxu0 %v29738_v49  ;;  %v29763_v57 = vld [vmem:[#allocation203_spill] sm:$0xff]  ;;  %v29764_v49 = vld [vmem:[#allocation204_spill] sm:$0xff] }
 0x8da   : > { %15997 = vmatprep.subr.bf16.mxu1 %v29739_v3  ;;  %v29765_v3 = vld [vmem:[#allocation205_spill] sm:$0xff] }
 0x8dc   : > { %15927 = vmatpush1.bf16.msra.mxu0 %v29740_v62  ;;  %v29766_v62 = vld [vmem:[#allocation206_spill] sm:$0xff] }
 0x8dd   : > { %15999 = vmatpush1.bf16.msra.mxu1 %v29741_v39  ;;  %15929 = vmatprep.subr.bf16.mxu0 %v29742_v1  ;;  %v29767_v39 = vld [vmem:[#allocation207_spill] sm:$0xff]  ;;  %v29768_v1 = vld [vmem:[#allocation208_spill] sm:$0xff] }
 0x8de   : > { %16001 = vmatprep.subr.bf16.mxu1 %v29743_v5  ;;  %v29769_v5 = vld [vmem:[#allocation209_spill] sm:$0xff] }
 0x8e0   : > { %15931 = vmatpush1.bf16.msra.mxu0 %v29744_v19  ;;  %v29770_v19 = vld [vmem:[#allocation210_spill] sm:$0xff] }
 0x8e1   : > { %16003 = vmatpush1.bf16.msra.mxu1 %v29745_v18  ;;  %15933 = vmatprep.subr.bf16.mxu0 %v29746_v16  ;;  %v29771_v18 = vld [vmem:[#allocation211_spill] sm:$0xff]  ;;  %v29772_v16 = vld [vmem:[#allocation212_spill] sm:$0xff] }
 0x8e2   : > { %16005 = vmatprep.subr.bf16.mxu1 %v29747_v34  ;;  %v29773_v34 = vld [vmem:[#allocation213_spill] sm:$0xff] }
 0x8e4   : > { %15935 = vmatpush1.bf16.msra.mxu0 %v29748_v44  ;;  %v29774_v44 = vld [vmem:[#allocation214_spill] sm:$0xff] }
 0x8e5   : > { %16007 = vmatpush1.bf16.msra.mxu1 %v29749_v8  ;;  %15937 = vmatprep.subr.bf16.mxu0 %v29750_v40  ;;  %v29775_v8 = vld [vmem:[#allocation215_spill] sm:$0xff]  ;;  %v29776_v40 = vld [vmem:[#allocation216_spill] sm:$0xff] }
 0x8e6   : > { %16009 = vmatprep.subr.bf16.mxu1 %v29751_v12  ;;  %v29777_v12 = vld [vmem:[#allocation217_spill] sm:$0xff] }
 0x8e8   : > { %15939 = vmatpush1.bf16.msra.mxu0 %v29752_v45  ;;  %v29778_v45 = vld [vmem:[#allocation218_spill] sm:$0xff] }
 0x8e9   : > { %16011 = vmatpush1.bf16.msra.mxu1 %v29753_v6  ;;  %15941 = vmatprep.subr.bf16.mxu0 %v29754_v14  ;;  %v29779_v6 = vld [vmem:[#allocation219_spill] sm:$0xff]  ;;  %v29780_v14 = vld [vmem:[#allocation220_spill] sm:$0xff] }
 0x8ea   : > { %16013 = vmatprep.subr.bf16.mxu1 %v29755_v11  ;;  %v29781_v11 = vld [vmem:[#allocation221_spill] sm:$0xff] }
 0x8ec   : > { %15943 = vmatpush1.bf16.msra.mxu0 %v29756_v51  ;;  %v29782_v51 = vld [vmem:[#allocation222_spill] sm:$0xff] }
 0x8ed   : > { %16015 = vmatpush1.bf16.msra.mxu1 %v29757_v15  ;;  %15945 = vmatprep.subr.bf16.mxu0 %v29758_v60  ;;  %v29783_v15 = vld [vmem:[#allocation223_spill] sm:$0xff]  ;;  %v29784_v60 = vld [vmem:[#allocation224_spill] sm:$0xff] }
 0x8ee   : > { %16017 = vmatprep.subr.bf16.mxu1 %v29759_v27  ;;  %v29785_v27 = vld [vmem:[#allocation225_spill] sm:$0xff] }
 0x8f0   : > { %15947 = vmatpush1.bf16.msra.mxu0 %v29760_v33  ;;  %v29786_v33 = vld [vmem:[#allocation226_spill] sm:$0xff] }
 0x8f1   : > { %16019 = vmatpush1.bf16.msra.mxu1 %v29761_v13  ;;  %15949 = vmatprep.subr.bf16.mxu0 %v29762_v0  ;;  %v29787_v13 = vld [vmem:[#allocation227_spill] sm:$0xff]  ;;  %v29788_v0 = vld [vmem:[#allocation228_spill] sm:$0xff] }
 0x8f2   : > { %16021 = vmatprep.subr.bf16.mxu1 %v29763_v57  ;;  %v29789_v57 = vld [vmem:[#allocation229_spill] sm:$0xff] }
 0x8f4   : > { %15951 = vmatpush1.bf16.msra.mxu0 %v29764_v49  ;;  %v25375_v49 = vld [vmem:[%s28800_s7 + $0x614] ss:$48 sps:$4 sm:$0xff]  }
 0x8f5   : > { %16023 = vmatpush1.bf16.msra.mxu1 %v29765_v3  ;;  %15953 = vmatprep.subr.bf16.mxu0 %v29766_v62  ;;  %v25381_v3 = vld [vmem:[%s28800_s7 + $0x61c] ss:$48 sps:$4 sm:$0xff]   ;;  %v25415_v62 = vld [vmem:[%s28800_s7 + $0x670] ss:$48 sps:$4 sm:$0xff]  }
 0x8f6   : > { %16025 = vmatprep.subr.bf16.mxu1 %v29767_v39  ;;  %v25421_v39 = vld [vmem:[%s28800_s7 + $0x678] ss:$48 sps:$4 sm:$0xff]  }
 0x8f8   : > { %15955 = vmatpush1.bf16.msra.mxu0 %v29768_v1  ;;  %v25427_v1 = vld [vmem:[%s28800_s7 + $0x24] ss:$48 sps:$4 sm:$0xff]  }
 0x8f9   : > { %16027 = vmatpush1.bf16.msra.mxu1 %v29769_v5  ;;  %15957 = vmatprep.subr.bf16.mxu0 %v29770_v19  ;;  %v25433_v5 = vld [vmem:[%s28800_s7 + $0x2c] ss:$48 sps:$4 sm:$0xff]   ;;  %v25443_v19 = vld [vmem:[%s28800_s7 + $0x20] ss:$48 sps:$4 sm:$0xff]  }
 0x8fa   : > { %16029 = vmatprep.subr.bf16.mxu1 %v29771_v18  ;;  %v25450_v18 = vld [vmem:[%s28800_s7 + $0x28] ss:$48 sps:$4 sm:$0xff]  }
 0x8fc   : > { %15959 = vmatpush1.bf16.msra.mxu0 %v29772_v16  ;;  %v25457_v16 = vld [vmem:[%s28800_s7 + $0x84] ss:$48 sps:$4 sm:$0xff]  }
 0x8fd   : > { %16031 = vmatpush1.bf16.msra.mxu1 %v29773_v34  ;;  %15961 = vmatprep.subr.bf16.mxu0 %v29774_v44  ;;  %v25463_v34 = vld [vmem:[%s28800_s7 + $0x8c] ss:$48 sps:$4 sm:$0xff]   ;;  %v25469_v44 = vld [vmem:[%s28800_s7 + $0x80] ss:$48 sps:$4 sm:$0xff]  }
 0x8fe   : > { %16033 = vmatprep.subr.bf16.mxu1 %v29775_v8  ;;  %v25475_v8 = vld [vmem:[%s28800_s7 + $0x88] ss:$48 sps:$4 sm:$0xff]  }
 0x900   : > { %15963 = vmatpush1.bf16.msra.mxu0 %v29776_v40  ;;  %v25481_v40 = vld [vmem:[%s28800_s7 + $0xe4] ss:$48 sps:$4 sm:$0xff]  }
 0x901   : > { %16035 = vmatpush1.bf16.msra.mxu1 %v29777_v12  ;;  %15965 = vmatprep.subr.bf16.mxu0 %v29778_v45  ;;  %v25487_v12 = vld [vmem:[%s28800_s7 + $0xec] ss:$48 sps:$4 sm:$0xff]   ;;  %v25493_v45 = vld [vmem:[%s28800_s7 + $0xe0] ss:$48 sps:$4 sm:$0xff]  }
 0x902   : > { %16037 = vmatprep.subr.bf16.mxu1 %v29779_v6  ;;  %v25499_v6 = vld [vmem:[%s28800_s7 + $0xe8] ss:$48 sps:$4 sm:$0xff]  }
 0x904   : > { %15967 = vmatpush1.bf16.msra.mxu0 %v29780_v14  ;;  %v25505_v14 = vld [vmem:[%s28800_s7 + $0x144] ss:$48 sps:$4 sm:$0xff]  }
 0x905   : > { %16039 = vmatpush1.bf16.msra.mxu1 %v29781_v11  ;;  %15969 = vmatprep.subr.bf16.mxu0 %v29782_v51  ;;  %v25511_v11 = vld [vmem:[%s28800_s7 + $0x14c] ss:$48 sps:$4 sm:$0xff]   ;;  %v25517_v51 = vld [vmem:[%s28800_s7 + $0x140] ss:$48 sps:$4 sm:$0xff]  }
 0x906   : > { %16041 = vmatprep.subr.bf16.mxu1 %v29783_v15  ;;  %v25523_v15 = vld [vmem:[%s28800_s7 + $0x148] ss:$48 sps:$4 sm:$0xff]  }
 0x908   : > { %15971 = vmatpush1.bf16.msra.mxu0 %v29784_v60  ;;  %v25529_v60 = vld [vmem:[%s28800_s7 + $0x1a4] ss:$48 sps:$4 sm:$0xff]  }
 0x909   : > { %16043 = vmatpush1.bf16.msra.mxu1 %v29785_v27  ;;  %15973 = vmatprep.subr.bf16.mxu0 %v29786_v33  ;;  %v25535_v27 = vld [vmem:[%s28800_s7 + $0x1ac] ss:$48 sps:$4 sm:$0xff]   ;;  %v25541_v33 = vld [vmem:[%s28800_s7 + $0x1a0] ss:$48 sps:$4 sm:$0xff]  }
 0x90a   : > { %16045 = vmatprep.subr.bf16.mxu1 %v29787_v13  ;;  %v25547_v13 = vld [vmem:[%s28800_s7 + $0x1a8] ss:$48 sps:$4 sm:$0xff]  }
 0x90b   : > { %29790 = vst [vmem:[#allocation33_spill] sm:$0xff] %v25547_v13 }
 0x90c   : > { %15975 = vmatpush1.bf16.msra.mxu0 %v29788_v0  ;;  %v25553_v0 = vld [vmem:[%s28800_s7 + $0x204] ss:$48 sps:$4 sm:$0xff]  }
 0x90d   : > { %16047 = vmatpush1.bf16.msra.mxu1 %v29789_v57  ;;  %15977 = vmatprep.subr.bf16.mxu0 %v25012_v9  ;;  %v25395_v9 = vld [vmem:[%s28800_s7 + $0x618] ss:$48 sps:$4 sm:$0xff]   ;;  %29791 = vst [vmem:[#allocation34_spill] sm:$0xff] %v25553_v0  ;;  %v25559_v57 = vld [vmem:[%s28800_s7 + $0x20c] ss:$48 sps:$4 sm:$0xff]  }
 0x90e   : > { %16049 = vmatprep.subr.bf16.mxu1 %v25018_v36  ;;  %v25401_v36 = vld [vmem:[%s28800_s7 + $0x674] ss:$48 sps:$4 sm:$0xff]   ;;  %29792 = vst [vmem:[#allocation35_spill] sm:$0xff] %v25559_v57 }
 0x910   : > { %15979 = vmatpush1.bf16.msra.mxu0 %v25024_v42  ;;  %v25389_v42 = vld [vmem:[%s28800_s7 + $0x610] ss:$48 sps:$4 sm:$0xff]  }
 0x911   : > { %16051 = vmatpush1.bf16.msra.mxu1 %v25030_v25  ;;  %15981 = vmatprep.subr.bf16.mxu0 %v25375_v49  ;;  %v25407_v25 = vld [vmem:[%s28800_s7 + $0x67c] ss:$48 sps:$4 sm:$0xff]  }
 0x912   : > { %16053 = vmatprep.subr.bf16.mxu1 %v25381_v3 }
 0x913   : > { %7645 = vmatmul.mubr.f32.vlgmr.msra.gmra.mrb[28].mxu0 %v25181_v20 }
 0x914   : > { %7787 = vmatmul.mubr.f32.vlgmr.msra.gmra.mrb[22].mxu1 %v25181_v20  ;;  %15983 = vmatpush1.bf16.msra.mxu0 %v25389_v42 }
 0x915   : > { %16055 = vmatpush1.bf16.msra.mxu1 %v25395_v9  ;;  %15985 = vmatprep.subr.bf16.mxu0 %v25401_v36 }
 0x916   : > { %16057 = vmatprep.subr.bf16.mxu1 %v25407_v25  ;;  %7715 = vmatprep.mubr.f32.mxu0 %v29410_v53 }
 0x917   : > { %7857 = vmatprep.mubr.f32.mxu1 %v29410_v53 }
 0x918   : > { %15987 = vmatpush1.bf16.msra.mxu0 %v25415_v62 }
 0x919   : > { %16059 = vmatpush1.bf16.msra.mxu1 %v25421_v39  ;;  %16061 = vmatprep.subr.bf16.mxu0 %v25427_v1 }
 0x91a   : > { %16133 = vmatprep.subr.bf16.mxu1 %v25433_v5 }
 0x91b   : > { %13596 = vmatmul.mubr.msk.f32.vlgmr.msra.gmra.mrb[28].mxu0 %vm1565_vm4, %v25183_v63 }
 0x91c   : > { %13597 = vmatmul.mubr.msk.f32.vlgmr.msra.gmra.mrb[22].mxu1 %vm1565_vm4, %v25183_v63  ;;  %16063 = vmatpush1.bf16.msra.mxu0 %v25443_v19 }
 0x91d   : > { %7928 = vmatprep.mubr.f32.mxu0 %v25179_v29  ;;  %16135 = vmatpush1.bf16.msra.mxu1 %v25450_v18 }
 0x91e   : > { %8070 = vmatprep.mubr.f32.mxu1 %v25179_v29  ;;  %16065 = vmatprep.subr.bf16.mxu0 %v25457_v16  ;;  %v25565_v29 = vld [vmem:[%s28800_s7 + $0x200] ss:$48 sps:$4 sm:$0xff]  }
 0x91f   : > { %16137 = vmatprep.subr.bf16.mxu1 %v25463_v34  ;;  %29793 = vst [vmem:[#allocation36_spill] sm:$0xff] %v25565_v29 }
 0x920   : > { %16067 = vmatpush1.bf16.msra.mxu0 %v25469_v44 }
 0x921   : > { %16139 = vmatpush1.bf16.msra.mxu1 %v25475_v8  ;;  %16069 = vmatprep.subr.bf16.mxu0 %v25481_v40 }
 0x922   : > { %16141 = vmatprep.subr.bf16.mxu1 %v25487_v12 }
 0x924   : > { %16071 = vmatpush1.bf16.msra.mxu0 %v25493_v45 }
 0x925   : > { %16143 = vmatpush1.bf16.msra.mxu1 %v25499_v6  ;;  %16073 = vmatprep.subr.bf16.mxu0 %v25505_v14 }
 0x926   : > { %16145 = vmatprep.subr.bf16.mxu1 %v25511_v11 }
 0x928   : > { %16075 = vmatpush1.bf16.msra.mxu0 %v25517_v51 }
 0x929   : > { %16147 = vmatpush1.bf16.msra.mxu1 %v25523_v15  ;;  %16077 = vmatprep.subr.bf16.mxu0 %v25529_v60 }
 0x92a   : > { %16149 = vmatprep.subr.bf16.mxu1 %v25535_v27 }
 0x92c   : > { %16079 = vmatpush1.bf16.msra.mxu0 %v25541_v33 }
 0x92d   : > { %16151 = vmatpush1.bf16.msra.mxu1 %v25547_v13  ;;  %16081 = vmatprep.subr.bf16.mxu0 %v25553_v0  ;;  %v25571_v13 = vld [vmem:[%s28800_s7 + $0x208] ss:$48 sps:$4 sm:$0xff]   ;;  %v25577_v0 = vld [vmem:[%s28800_s7 + $0x264] ss:$48 sps:$4 sm:$0xff]  }
 0x92e   : > { %16153 = vmatprep.subr.bf16.mxu1 %v25559_v57  ;;  %29794 = vst [vmem:[#allocation37_spill] sm:$0xff] %v25571_v13  ;;  %29795 = vst [vmem:[#allocation38_spill] sm:$0xff] %v25577_v0  ;;  %v25583_v57 = vld [vmem:[%s28800_s7 + $0x26c] ss:$48 sps:$4 sm:$0xff]  }
 0x92f   : > { %29796 = vst [vmem:[#allocation39_spill] sm:$0xff] %v25583_v57 }
 0x930   : > { %16083 = vmatpush1.bf16.msra.mxu0 %v25565_v29  ;;  %v25589_v29 = vld [vmem:[%s28800_s7 + $0x260] ss:$48 sps:$4 sm:$0xff]  }
 0x931   : > { %16155 = vmatpush1.bf16.msra.mxu1 %v25571_v13  ;;  %16085 = vmatprep.subr.bf16.mxu0 %v25577_v0  ;;  %29797 = vst [vmem:[#allocation40_spill] sm:$0xff] %v25589_v29  ;;  %v25595_v13 = vld [vmem:[%s28800_s7 + $0x268] ss:$48 sps:$4 sm:$0xff]   ;;  %v25601_v0 = vld [vmem:[%s28800_s7 + $0x2c4] ss:$48 sps:$4 sm:$0xff]  }
 0x932   : > { %16157 = vmatprep.subr.bf16.mxu1 %v25583_v57  ;;  %29798 = vst [vmem:[#allocation41_spill] sm:$0xff] %v25595_v13  ;;  %29799 = vst [vmem:[#allocation42_spill] sm:$0xff] %v25601_v0  ;;  %v25607_v57 = vld [vmem:[%s28800_s7 + $0x2cc] ss:$48 sps:$4 sm:$0xff]  }
 0x933   : > { %29800 = vst [vmem:[#allocation43_spill] sm:$0xff] %v25607_v57 }
 0x934   : > { %16087 = vmatpush1.bf16.msra.mxu0 %v25589_v29  ;;  %v25613_v29 = vld [vmem:[%s28800_s7 + $0x2c0] ss:$48 sps:$4 sm:$0xff]  }
 0x935   : > { %16159 = vmatpush1.bf16.msra.mxu1 %v25595_v13  ;;  %16089 = vmatprep.subr.bf16.mxu0 %v25601_v0  ;;  %29801 = vst [vmem:[#allocation44_spill] sm:$0xff] %v25613_v29  ;;  %v25619_v13 = vld [vmem:[%s28800_s7 + $0x2c8] ss:$48 sps:$4 sm:$0xff]   ;;  %v25625_v0 = vld [vmem:[%s28800_s7 + $0x324] ss:$48 sps:$4 sm:$0xff]  }
 0x936   : > { %16161 = vmatprep.subr.bf16.mxu1 %v25607_v57  ;;  %29802 = vst [vmem:[#allocation45_spill] sm:$0xff] %v25619_v13  ;;  %29803 = vst [vmem:[#allocation46_spill] sm:$0xff] %v25625_v0  ;;  %v25631_v57 = vld [vmem:[%s28800_s7 + $0x32c] ss:$48 sps:$4 sm:$0xff]  }
 0x937   : > { %29804 = vst [vmem:[#allocation47_spill] sm:$0xff] %v25631_v57 }
 0x938   : > { %16091 = vmatpush1.bf16.msra.mxu0 %v25613_v29  ;;  %v25637_v29 = vld [vmem:[%s28800_s7 + $0x320] ss:$48 sps:$4 sm:$0xff]  }
 0x939   : > { %16163 = vmatpush1.bf16.msra.mxu1 %v25619_v13  ;;  %16093 = vmatprep.subr.bf16.mxu0 %v25625_v0  ;;  %29805 = vst [vmem:[#allocation48_spill] sm:$0xff] %v25637_v29  ;;  %v25643_v13 = vld [vmem:[%s28800_s7 + $0x328] ss:$48 sps:$4 sm:$0xff]   ;;  %v25649_v0 = vld [vmem:[%s28800_s7 + $0x384] ss:$48 sps:$4 sm:$0xff]  }
 0x93a   : > { %16165 = vmatprep.subr.bf16.mxu1 %v25631_v57  ;;  %29806 = vst [vmem:[#allocation49_spill] sm:$0xff] %v25643_v13  ;;  %29807 = vst [vmem:[#allocation50_spill] sm:$0xff] %v25649_v0  ;;  %v25655_v57 = vld [vmem:[%s28800_s7 + $0x38c] ss:$48 sps:$4 sm:$0xff]  }
 0x93b   : > { %29808 = vst [vmem:[#allocation51_spill] sm:$0xff] %v25655_v57 }
 0x93c   : > { %16095 = vmatpush1.bf16.msra.mxu0 %v25637_v29  ;;  %v25661_v29 = vld [vmem:[%s28800_s7 + $0x380] ss:$48 sps:$4 sm:$0xff]  }
 0x93d   : > { %16167 = vmatpush1.bf16.msra.mxu1 %v25643_v13  ;;  %16097 = vmatprep.subr.bf16.mxu0 %v25649_v0  ;;  %29809 = vst [vmem:[#allocation52_spill] sm:$0xff] %v25661_v29  ;;  %v25667_v13 = vld [vmem:[%s28800_s7 + $0x388] ss:$48 sps:$4 sm:$0xff]   ;;  %v25673_v0 = vld [vmem:[%s28800_s7 + $0x3e4] ss:$48 sps:$4 sm:$0xff]  }
 0x93e   : > { %16169 = vmatprep.subr.bf16.mxu1 %v25655_v57  ;;  %29810 = vst [vmem:[#allocation53_spill] sm:$0xff] %v25667_v13  ;;  %29811 = vst [vmem:[#allocation54_spill] sm:$0xff] %v25673_v0  ;;  %v25679_v57 = vld [vmem:[%s28800_s7 + $0x3ec] ss:$48 sps:$4 sm:$0xff]  }
 0x93f   : > { %29812 = vst [vmem:[#allocation55_spill] sm:$0xff] %v25679_v57 }
 0x940   : > { %16099 = vmatpush1.bf16.msra.mxu0 %v25661_v29  ;;  %v25685_v29 = vld [vmem:[%s28800_s7 + $0x3e0] ss:$48 sps:$4 sm:$0xff]  }
 0x941   : > { %16171 = vmatpush1.bf16.msra.mxu1 %v25667_v13  ;;  %16101 = vmatprep.subr.bf16.mxu0 %v25673_v0  ;;  %29813 = vst [vmem:[#allocation56_spill] sm:$0xff] %v25685_v29  ;;  %v25691_v13 = vld [vmem:[%s28800_s7 + $0x3e8] ss:$48 sps:$4 sm:$0xff]   ;;  %v25697_v0 = vld [vmem:[%s28800_s7 + $0x444] ss:$48 sps:$4 sm:$0xff]  }
 0x942   : > { %16173 = vmatprep.subr.bf16.mxu1 %v25679_v57  ;;  %29814 = vst [vmem:[#allocation57_spill] sm:$0xff] %v25691_v13  ;;  %29815 = vst [vmem:[#allocation58_spill] sm:$0xff] %v25697_v0  ;;  %v25703_v57 = vld [vmem:[%s28800_s7 + $0x44c] ss:$48 sps:$4 sm:$0xff]  }
 0x943   : > { %29816 = vst [vmem:[#allocation59_spill] sm:$0xff] %v25703_v57 }
 0x944   : > { %16103 = vmatpush1.bf16.msra.mxu0 %v25685_v29  ;;  %v25709_v29 = vld [vmem:[%s28800_s7 + $0x440] ss:$48 sps:$4 sm:$0xff]  }
 0x945   : > { %16175 = vmatpush1.bf16.msra.mxu1 %v25691_v13  ;;  %16105 = vmatprep.subr.bf16.mxu0 %v25697_v0  ;;  %29817 = vst [vmem:[#allocation60_spill] sm:$0xff] %v25709_v29  ;;  %v25715_v13 = vld [vmem:[%s28800_s7 + $0x448] ss:$48 sps:$4 sm:$0xff]   ;;  %v25721_v0 = vld [vmem:[%s28800_s7 + $0x4a4] ss:$48 sps:$4 sm:$0xff]  }
 0x946   : > { %16177 = vmatprep.subr.bf16.mxu1 %v25703_v57  ;;  %29818 = vst [vmem:[#allocation61_spill] sm:$0xff] %v25715_v13  ;;  %29819 = vst [vmem:[#allocation62_spill] sm:$0xff] %v25721_v0  ;;  %v25727_v57 = vld [vmem:[%s28800_s7 + $0x4ac] ss:$48 sps:$4 sm:$0xff]  }
 0x947   : > { %29820 = vst [vmem:[#allocation63_spill] sm:$0xff] %v25727_v57 }
 0x948   : > { %16107 = vmatpush1.bf16.msra.mxu0 %v25709_v29  ;;  %v25733_v29 = vld [vmem:[%s28800_s7 + $0x4a0] ss:$48 sps:$4 sm:$0xff]  }
 0x949   : > { %16179 = vmatpush1.bf16.msra.mxu1 %v25715_v13  ;;  %16109 = vmatprep.subr.bf16.mxu0 %v25721_v0  ;;  %29821 = vst [vmem:[#allocation64_spill] sm:$0xff] %v25733_v29  ;;  %v25739_v13 = vld [vmem:[%s28800_s7 + $0x4a8] ss:$48 sps:$4 sm:$0xff]   ;;  %v25745_v0 = vld [vmem:[%s28800_s7 + $0x504] ss:$48 sps:$4 sm:$0xff]  }
 0x94a   : > { %16181 = vmatprep.subr.bf16.mxu1 %v25727_v57  ;;  %29822 = vst [vmem:[#allocation65_spill] sm:$0xff] %v25739_v13  ;;  %29823 = vst [vmem:[#allocation66_spill] sm:$0xff] %v25745_v0  ;;  %v25751_v57 = vld [vmem:[%s28800_s7 + $0x50c] ss:$48 sps:$4 sm:$0xff]  }
 0x94b   : > { %29824 = vst [vmem:[#allocation67_spill] sm:$0xff] %v25751_v57 }
 0x94c   : > { %16111 = vmatpush1.bf16.msra.mxu0 %v25733_v29  ;;  %v25757_v29 = vld [vmem:[%s28800_s7 + $0x500] ss:$48 sps:$4 sm:$0xff]  }
 0x94d   : > { %16183 = vmatpush1.bf16.msra.mxu1 %v25739_v13  ;;  %16113 = vmatprep.subr.bf16.mxu0 %v25745_v0  ;;  %29825 = vst [vmem:[#allocation68_spill] sm:$0xff] %v25757_v29  ;;  %v25763_v13 = vld [vmem:[%s28800_s7 + $0x508] ss:$48 sps:$4 sm:$0xff]   ;;  %v25769_v0 = vld [vmem:[%s28800_s7 + $0x564] ss:$48 sps:$4 sm:$0xff]  }
 0x94e   : > { %16185 = vmatprep.subr.bf16.mxu1 %v25751_v57  ;;  %29826 = vst [vmem:[#allocation69_spill] sm:$0xff] %v25763_v13  ;;  %29827 = vst [vmem:[#allocation70_spill] sm:$0xff] %v25769_v0  ;;  %v25775_v57 = vld [vmem:[%s28800_s7 + $0x56c] ss:$48 sps:$4 sm:$0xff]  }
 0x94f   : > { %29828 = vst [vmem:[#allocation71_spill] sm:$0xff] %v25775_v57 }
 0x950   : > { %16115 = vmatpush1.bf16.msra.mxu0 %v25757_v29  ;;  %v25781_v29 = vld [vmem:[%s28800_s7 + $0x560] ss:$48 sps:$4 sm:$0xff]  }
 0x951   : > { %16187 = vmatpush1.bf16.msra.mxu1 %v25763_v13  ;;  %16117 = vmatprep.subr.bf16.mxu0 %v25769_v0  ;;  %29829 = vst [vmem:[#allocation72_spill] sm:$0xff] %v25781_v29  ;;  %v25787_v13 = vld [vmem:[%s28800_s7 + $0x568] ss:$48 sps:$4 sm:$0xff]   ;;  %v25793_v0 = vld [vmem:[%s28800_s7 + $0x5c4] ss:$48 sps:$4 sm:$0xff]  }
 0x952   : > { %16189 = vmatprep.subr.bf16.mxu1 %v25775_v57  ;;  %29830 = vst [vmem:[#allocation74_spill] sm:$0xff] %v25787_v13  ;;  %29831 = vst [vmem:[#allocation73_spill] sm:$0xff] %v25793_v0  ;;  %v25799_v57 = vld [vmem:[%s28800_s7 + $0x5cc] ss:$48 sps:$4 sm:$0xff]  }
 0x953   : > { %29832 = vst [vmem:[#allocation75_spill] sm:$0xff] %v25799_v57 }
 0x954   : > { %16119 = vmatpush1.bf16.msra.mxu0 %v25781_v29  ;;  %v25805_v29 = vld [vmem:[%s28800_s7 + $0x5c0] ss:$48 sps:$4 sm:$0xff]  }
 0x955   : > { %16191 = vmatpush1.bf16.msra.mxu1 %v25787_v13  ;;  %16121 = vmatprep.subr.bf16.mxu0 %v25793_v0  ;;  %v25811_v13 = vld [vmem:[%s28800_s7 + $0x5c8] ss:$48 sps:$4 sm:$0xff]   ;;  %v25817_v0 = vld [vmem:[%s28800_s7 + $0x624] ss:$48 sps:$4 sm:$0xff]  }
 0x956   : > { %16193 = vmatprep.subr.bf16.mxu1 %v25799_v57  ;;  %29833 = vst [vmem:[#allocation77_spill] sm:$0xff] %v25811_v13  ;;  %29834 = vst [vmem:[#allocation79_spill] sm:$0xff] %v25817_v0  ;;  %v25823_v57 = vld [vmem:[%s28800_s7 + $0x62c] ss:$48 sps:$4 sm:$0xff]  }
 0x957   : > { %29835 = vst [vmem:[#allocation84_spill] sm:$0xff] %v25823_v57 }
 0x958   : > { %16123 = vmatpush1.bf16.msra.mxu0 %v25805_v29 }
 0x959   : > { %16195 = vmatpush1.bf16.msra.mxu1 %v25811_v13  ;;  %16125 = vmatprep.subr.bf16.mxu0 %v25817_v0  ;;  %v25831_v13 = vld [vmem:[%s28800_s7 + $0x620] ss:$48 sps:$4 sm:$0xff]   ;;  %v25837_v0 = vld [vmem:[%s28800_s7 + $0x628] ss:$48 sps:$4 sm:$0xff]  }
 0x95a   : > { %16197 = vmatprep.subr.bf16.mxu1 %v25823_v57  ;;  %29836 = vst [vmem:[#allocation86_spill] sm:$0xff] %v25837_v0  ;;  %v25843_v57 = vld [vmem:[%s28800_s7 + $0x684] ss:$48 sps:$4 sm:$0xff]  }
 0x95b   : > { %7929 = vmatmul.mubr.f32.vlgmr.msra.gmra.mrb[40].mxu0 %v25181_v20  ;;  %29837 = vst [vmem:[#allocation85_spill] sm:$0xff] %v25843_v57 }
 0x95c   : > { %8071 = vmatmul.mubr.f32.vlgmr.msra.gmra.mrb[34].mxu1 %v25181_v20  ;;  %16127 = vmatpush1.bf16.msra.mxu0 %v25831_v13  ;;  %v25849_v20 = vld [vmem:[%s28800_s7 + $0x68c] ss:$48 sps:$4 sm:$0xff]  }
 0x95d   : > { %16199 = vmatpush1.bf16.msra.mxu1 %v25837_v0  ;;  %16129 = vmatprep.subr.bf16.mxu0 %v25843_v57  ;;  %v25857_v0 = vld [vmem:[%s28800_s7 + $0x680] ss:$48 sps:$4 sm:$0xff]   ;;  %v25863_v57 = vld [vmem:[%s28800_s7 + $0x688] ss:$48 sps:$4 sm:$0xff]  }
 0x95e   : > { %16201 = vmatprep.subr.bf16.mxu1 %v25849_v20  ;;  %7999 = vmatprep.mubr.f32.mxu0 %v29410_v53  ;;  %29838 = vst [vmem:[#allocation88_spill] sm:$0xff] %v25863_v57 }
 0x95f   : > { %8141 = vmatprep.mubr.f32.mxu1 %v29410_v53 }
 0x960   : > { %16131 = vmatpush1.bf16.msra.mxu0 %v25857_v0 }
 0x961   : > { %16203 = vmatpush1.bf16.msra.mxu1 %v25863_v57  ;;  %16236 = vmatprep.subr.bf16.mxu0 %v29616_v21 }
 0x962   : > { %16205 = vmatprep.subr.bf16.mxu1 %v29615_v35  ;;  %v25883_v35 = vld [vmem:[%s28799_s6 + $0x4] ss:$48 sps:$4 sm:$0xff]  }
 0x963   : > { %13598 = vmatmul.mubr.msk.f32.vlgmr.msra.gmra.mrb[40].mxu0 %vm1565_vm4, %v25183_v63  ;;  %29839 = vst [vmem:[#allocation87_spill] sm:$0xff] %v25883_v35 }
 0x964   : > { %13599 = vmatmul.mubr.msk.f32.vlgmr.msra.gmra.mrb[34].mxu1 %vm1565_vm4, %v25183_v63  ;;  %16238 = vmatpush3.bf16.msra.mxu0 %v29619_v22  ;;  %v29840_v63 = vld [vmem:[#allocation29_spill] sm:$0xff] }
 0x965   : > { %16207 = vmatpush3.bf16.msra.mxu1 %v29617_v59  ;;  %16239 = vmatprep.subr.bf16.mxu0 %v29616_v21  ;;  %v29843_v59 = vld [vmem:[#allocation78_spill] sm:$0xff] }
 0x966   : > { %16209 = vmatprep.subr.bf16.mxu1 %v29618_v7  ;;  %14110 = vmatprep.mubr.msk.f32.mxu0 %vm21602_vm5, %v29410_v53 }
 0x968   : > { %16241 = vmatpush3.bf16.msra.mxu0 %v29622_v47 }
 0x969   : > { %16211 = vmatpush3.bf16.msra.mxu1 %v29620_v23  ;;  %16243 = vmatprep.subr.bf16.mxu0 %v25883_v35  ;;  %v25901_v35 = vld [vmem:[%s28799_s6 + $0xc] ss:$48 sps:$4 sm:$0xff]  }
 0x96a   : > { %16213 = vmatprep.subr.bf16.mxu1 %v29621_v24  ;;  %29841 = vst [vmem:[#allocation89_spill] sm:$0xff] %v25901_v35 }
 0x96d   : > { %16215 = vmatpush3.bf16.msra.mxu1 %v29624_v30 }
 0x96e   : > { %16217 = vmatprep.subr.bf16.mxu1 %v29625_v31 }
 0x971   : > { %16219 = vmatpush3.bf16.msra.mxu1 %v29626_v38 }
 0x972   : > { %16221 = vmatprep.subr.bf16.mxu1 %v29627_v52 }
 0x975   : > { %16223 = vmatpush3.bf16.msra.mxu1 %v29628_v41 }
 0x976   : > { %16225 = vmatprep.subr.bf16.mxu1 %v29629_v43 }
 0x979   : > { %16227 = vmatpush3.bf16.msra.mxu1 %v29630_v46  ;;  %v29842_v46 = vld [vmem:[#allocation76_spill] sm:$0xff] }
 0x97a   : > { %16229 = vmatprep.subr.bf16.mxu1 %v29631_v58 }
 0x97d   : > { %16231 = vmatpush3.bf16.msra.mxu1 %v29632_v48 }
 0x97e   : > { %16233 = vmatprep.subr.bf16.mxu1 %v29633_v50 }
 0x981   : > { %16235 = vmatpush3.bf16.msra.mxu1 %v29840_v63 }
 0x982   : > { %16251 = vmatprep.subr.bf16.mxu1 %v25901_v35 }
 0x9a6   : > { %v7433_v41 = vpop.f32.mrb[16].mxu0 }
 0x9a7   : > { %v7575_v52 = vpop.f32.mrb[10].mxu1  ;;  %v7435_v43 = vpop.f32.mrb[17].mxu0  ;;  %v17800_v58 = vadd.f32 %v7433_v41, %v29637_v4 }
 0x9a8   : > { %v7577_v38 = vpop.f32.mrb[11].mxu1  ;;  %v17801_v48 = vadd.f32 %v7435_v43, %v29638_v17 }
 0x9a9   : > { %v17813_v31 = vadd.f32 %v7577_v38, %v29842_v46  ;;  %v13600_v30 = vmul.f32 -1.442695, %v17800_v58  ;;  %v29844_v58 = vld [vmem:[#allocation80_spill] sm:$0xff] }
 0x9aa   : > { %v13601_v63 = vmul.f32 -1.442695, %v17801_v48 }
 0x9ab   : > { %v13603_v50 = vmul.f32 -1.442695, %v17813_v31 }
 0x9ad   : > { %20700 = vpow2.f32 %v13603_v50 }
 0x9ae   : > { %20702 = vpow2.f32 %v13600_v30 }
 0x9af   : > { %20704 = vpow2.f32 %v13601_v63 }
 0x9b7   : > { %v20701_v47 = vpop.eup %20700 }
 0x9b8   : > { %v20703_v24 = vpop.eup %20702  ;;  %v8187_v23 = vadd.f32 1.0, %v20701_v47 }
 0x9b9   : > { %v20705_v35 = vpop.eup %20704  ;;  %v8169_v22 = vadd.f32 1.0, %v20703_v24 }
 0x9ba   : > { %v8170_v46 = vadd.f32 1.0, %v20705_v35  ;;  %20706 = vrcp.f32 %v8187_v23 }
 0x9bb   : > { %20708 = vrcp.f32 %v8169_v22 }
 0x9c4   : > { %v20707_v47 = vpop.eup %20706 }
 0x9c5   : > { %v20709_v24 = vpop.eup %20708 }
 0x9ee   : > { %v7717_v7 = vpop.f32.mrb[28].mxu0 }
 0x9ef   : > { %v17824_v21 = vadd.f32 %v7717_v7, %v29843_v59  ;;  %v7859_v57 = vpop.f32.mrb[22].mxu1  ;;  %v7719_v38 = vpop.f32.mrb[29].mxu0  ;;  %v8217_v7 = vmul.f32 %v20707_v47, %v25162_v55 }
 0x9f0   : > { %v17836_v41 = vadd.f32 %v7859_v57, %v29640_v56  ;;  %v7861_v31 = vpop.f32.mrb[23].mxu1 }
 0x9f1   : > { %v13604_v43 = vmul.f32 -1.442695, %v17824_v21  ;;  %v17837_v30 = vadd.f32 %v7861_v31, %v29844_v58 }
 0x9f2   : > { %20710 = vtanh.f32 %v17836_v41 }
 0x9f3   : > { %20712 = vpow2.f32 %v13604_v43  ;;  %v17812_v43 = vadd.f32 %v7575_v52, %v24016_v28 }
 0x9f4   : > { %20714 = vrcp.f32 %v8170_v46  ;;  %v17825_v46 = vadd.f32 %v7719_v38, %v24013_v32 }
 0x9f5   : > { %20716 = vtanh.f32 %v17837_v30  ;;  %v13602_v58 = vmul.f32 -1.442695, %v17812_v43 }
 0x9f6   : > { %v13605_v30 = vmul.f32 -1.442695, %v17825_v46 }
 0x9fc   : > { %v20711_v48 = vpop.eup %20710 }
 0x9fd   : > { %v20713_v50 = vpop.eup %20712  ;;  %v8220_v63 = vmul.f32 %v20711_v48, %v20709_v24 }
 0x9fe   : > { %v20715_v35 = vpop.eup %20714  ;;  %v8188_v23 = vadd.f32 1.0, %v20713_v50 }
 0x9ff   : > { %v20717_v59 = vpop.eup %20716  ;;  %v25911_v57 = vadd.f32 %v8220_v63, %v8217_v7 }
 0xa00   : > { %20718 = vrcp.f32 %v8188_v23  ;;  %v8221_v21 = vmul.f32 %v20717_v59, %v20715_v35 }
 0xa01   : > { %20720 = vpow2.f32 %v13605_v30 }
 0xa02   : > { %20722 = vpow2.f32 %v13602_v58 }
 0xa0a   : > { %v20719_v22 = vpop.eup %20718 }
 0xa0b   : > { %v8218_v41 = vmul.f32 %v20719_v22, %v25165_v2  ;;  %v20721_v55 = vpop.eup %20720 }
 0xa0c   : > { %v20723_v47 = vpop.eup %20722  ;;  %v8189_v24 = vadd.f32 1.0, %v20721_v55 }
 0xa0d   : > { %v25914_v31 = vadd.f32 %v8221_v21, %v8218_v41  ;;  %v8171_v48 = vadd.f32 1.0, %v20723_v47 }
 0xa0e   : > { %20724 = vrcp.f32 %v8189_v24 }
 0xa0f   : > { %20726 = vrcp.f32 %v8171_v48 }
 0xa18   : > { %v20725_v22 = vpop.eup %20724 }
 0xa19   : > { %v20727_v41 = vpop.eup %20726  ;;  %v8219_v43 = vmul.f32 %v20725_v22, %v25175_v26  ;;  %v25941_v22 = vld [vmem:[%s28799_s6 + $0x8] ss:$48 sps:$4 sm:$0xff]  }
 0xa36   : > { %v8001_v50 = vpop.f32.mrb[40].mxu0 }
 0xa37   : > { %v17848_v59 = vadd.f32 %v8001_v50, %v24024_v10  ;;  %v8143_v7 = vpop.f32.mrb[34].mxu1  ;;  %v8003_v2 = vpop.f32.mrb[41].mxu0 }
 0xa38   : > { %v17860_v63 = vadd.f32 %v8143_v7, %v24027_v54  ;;  %v17849_v38 = vadd.f32 %v8003_v2, %v24030_v37  ;;  %v8145_v52 = vpop.f32.mrb[35].mxu1 }
 0xa39   : > { %20728 = vtanh.f32 %v17848_v59  ;;  %v17861_v35 = vadd.f32 %v8145_v52, %v24034_v61 }
 0xa3a   : > { %v13607_v58 = vmul.f32 -1.442695, %v17860_v63  ;;  %v13606_v23 = vmul.f32 -1.442695, %v17849_v38 }
 0xa3b   : > { %v13608_v21 = vmul.f32 -1.442695, %v17861_v35 }
 0xa3c   : > { %20730 = vpow2.f32 %v13607_v58 }
 0xa3d   : > { %20732 = vpow2.f32 %v13606_v23 }
 0xa3e   : > { %20734 = vpow2.f32 %v13608_v21 }
 0xa3f   : > { %20736 = vtanh.f32 %v25911_v57 }
 0xa40   : > { %20738 = vtanh.f32 %v25914_v31 }
 0xa43   : > { %v20729_v46 = vpop.eup %20728 }
 0xa44   : > { %v8222_v30 = vmul.f32 %v20729_v46, %v20727_v41  ;;  %v25947_v41 = vld [vmem:[%s28799_s6] ss:$48 sps:$4 sm:$0xff]   ;;  %v25953_v46 = vld [vmem:[%s28799_s6 + $0x6c] ss:$48 sps:$4 sm:$0xff]  }
 0xa46   : > { %v20731_v55 = vpop.eup %20730  ;;  %v25924_v47 = vadd.f32 %v8222_v30, %v8219_v43  ;;  %v25959_v43 = vld [vmem:[%s28799_s6 + $0x64] ss:$48 sps:$4 sm:$0xff]   ;;  %v25967_v30 = vld [vmem:[%s28799_s6 + $0x68] ss:$48 sps:$4 sm:$0xff]  }
 0xa47   : > { %v20733_v24 = vpop.eup %20732  ;;  %v8209_v48 = vadd.f32 1.0, %v20731_v55  ;;  %v25973_v55 = vld [vmem:[%s28799_s6 + $0x60] ss:$48 sps:$4 sm:$0xff]  }
 0xa48   : > { %v20735_v50 = vpop.eup %20734  ;;  %20740 = vtanh.f32 %v25924_v47  ;;  %v8208_v59 = vadd.f32 1.0, %v20733_v24  ;;  %v25979_v24 = vld [vmem:[%s28799_s6 + $0x1c] ss:$48 sps:$4 sm:$0xff]  }
 0xa49   : > { %20742 = vrcp.f32 %v8209_v48  ;;  %v8210_v7 = vadd.f32 1.0, %v20735_v50  ;;  %v20737_v2 = vpop.eup %20736  ;;  %29848 = vst [vmem:[#allocation93_spill] sm:$0xff] %v25979_v24  ;;  %v25985_v48 = vld [vmem:[%s28799_s6 + $0x14] ss:$48 sps:$4 sm:$0xff]  }
 0xa4a   : > { %20744 = vrcp.f32 %v8208_v59  ;;  %v20739_v26 = vpop.eup %20738 }
 0xa4b   : > { %20746 = vrcp.f32 %v8210_v7 }
 0xa52   : > { %v20741_v63 = vpop.eup %20740 }
 0xa53   : > { %v20743_v38 = vpop.eup %20742 }
 0xa54   : > { %v20745_v52 = vpop.eup %20744  ;;  %v25928_v35 = vmul.f32 %v20743_v38, %v20739_v26 }
 0xa55   : > { %v20747_v58 = vpop.eup %20746  ;;  %v25930_v23 = vmul.f32 %v20745_v52, %v20737_v2 }
 0xa56   : > { %29845 = vst [vmem:[#allocation90_spill] sm:$0xff] %v25928_v35  ;;  %v25932_v21 = vmul.f32 %v20747_v58, %v20741_v63  ;;  %8299 = vmatprep.mubr.f32.mxu1 %v25928_v35  ;;  %v25991_v63 = vld [vmem:[%s28797_s4] ss:$0 sm:$0xff] }
 0xa57   : > { %29846 = vst [vmem:[#allocation91_spill] sm:$0xff] %v25930_v23  ;;  %8300 = vmatmul.mubr.f32.vlgmr.msra.gmra.mrb[48].mxu1 %v25930_v23 }
 0xa58   : > { %29847 = vst [vmem:[#allocation92_spill] sm:$0xff] %v25932_v21  ;;  %14111 = vmatmul.mubr.msk.f32.vlgmr.msra.gmra.mrb[54].mxu0 %vm1565_vm4, %v25932_v21  ;;  %16253 = vmatpush1.bf16.msra.mxu1 %v25941_v22 }
 0xa59   : > { %16245 = vmatpush1.bf16.msra.mxu0 %v25947_v41  ;;  %16255 = vmatprep.subr.bf16.mxu1 %v25953_v46 }
 0xa5a   : > { %16247 = vmatprep.subr.bf16.mxu0 %v25959_v43  ;;  %8456 = vmatprep.mubr.f32.mxu0 %v29410_v53 }
 0xa5b   : > { %8527 = vmatprep.mubr.f32.mxu1 %v29410_v53 }
 0xa5c   : > { %16257 = vmatpush1.bf16.msra.mxu1 %v25967_v30 }
 0xa5d   : > { %16249 = vmatpush1.bf16.msra.mxu0 %v25973_v55  ;;  %16267 = vmatprep.subr.bf16.mxu1 %v25979_v24  ;;  %v25999_v24 = vld [vmem:[%s28799_s6 + $0x10] ss:$48 sps:$4 sm:$0xff]  }
 0xa5e   : > { %16259 = vmatprep.subr.bf16.mxu0 %v25985_v48 }
 0xb2a   : > { %v13888_v50 = vpop.f32.mrb[48].mxu1 }
 0xb2b   : > { %v8371_v59 = vpop.f32.mrb[54].mxu0  ;;  %v13889_v7 = vpop.f32.mrb[49].mxu1 }
 0xb2c   : > { %v13890_v2 = vadd.f32 %v13889_v7, %v13888_v50  ;;  %v14112_v26 = vpop.f32.mrb[55].mxu0  ;;  %v26005_v50 = vld [vmem:[%s28799_s6 + $0x18] ss:$48 sps:$4 sm:$0xff]   ;;  %v26017_v7 = vld [vmem:[%s28799_s6 + $0x7c] ss:$48 sps:$4 sm:$0xff]  }
 0xb2d   : > { %v26031_v26 = vld [vmem:[%s28799_s6 + $0x78] ss:$48 sps:$4 sm:$0xff]  }
 0xb2e   : > { %v8302_v38 = vadd.f32 %v25991_v63, %v13890_v2  ;;  %v26025_v2 = vld [vmem:[%s28799_s6 + $0x70] ss:$48 sps:$4 sm:$0xff]   ;;  %29850 = vst [vmem:[#allocation95_spill] sm:$0xff] %v26031_v26 }
 0xb2f   : > { %29849 = vst [vmem:[#allocation94_spill] sm:$0xff] %v26025_v2 }
 0xb30   : > { %v8372_v52 = vadd.f32 %v8371_v59, %v8302_v38  ;;  %v26011_v59 = vld [vmem:[%s28799_s6 + $0x74] ss:$48 sps:$4 sm:$0xff]  }
 0xb31   : > { %v26037_v38 = vld [vmem:[%s28799_s6 + $0x24] ss:$48 sps:$4 sm:$0xff]  }
 0xb32   : > { %v8375_v58 = vmax.f32 %v8372_v52, 0.0  ;;  %29851 = vst [vmem:[#allocation96_spill] sm:$0xff] %v26037_v38  ;;  %v26043_v52 = vld [vmem:[%s28799_s6 + $0x2c] ss:$48 sps:$4 sm:$0xff]  }
 0xb33   : > { %29852 = vst [vmem:[#allocation97_spill] sm:$0xff] %v26043_v52 }
 0xb34   : > { %13610 = vmatmul.mubr.msk.f32.vlgmr.msra.gmra.mrb[18].mxu0 %vm1565_vm4, %v8375_v58  ;;  %13611 = vmatmul.mubr.msk.f32.vlgmr.msra.gmra.mrb[12].mxu1 %vm1565_vm4, %v8375_v58 }
 0xb35   : > { %16261 = vmatpush1.bf16.msra.mxu0 %v25999_v24  ;;  %16269 = vmatpush1.bf16.msra.mxu1 %v26005_v50 }
 0xb36   : > { %16263 = vmatprep.subr.bf16.mxu0 %v26011_v59  ;;  %16271 = vmatprep.subr.bf16.mxu1 %v26017_v7 }
 0xb37   : > { %8598 = vmatprep.mubr.f32.mxu0 %v29410_v53  ;;  %8669 = vmatprep.mubr.f32.mxu1 %v29410_v53 }
 0xb39   : > { %16265 = vmatpush1.bf16.msra.mxu0 %v26025_v2  ;;  %16273 = vmatpush1.bf16.msra.mxu1 %v26031_v26  ;;  %v26051_v26 = vld [vmem:[%s28799_s6 + $0x20] ss:$48 sps:$4 sm:$0xff]   ;;  %v26069_v2 = vld [vmem:[%s28799_s6 + $0x8c] ss:$48 sps:$4 sm:$0xff]  }
 0xb3a   : > { %16275 = vmatprep.subr.bf16.mxu0 %v26037_v38  ;;  %16283 = vmatprep.subr.bf16.mxu1 %v26043_v52  ;;  %29853 = vst [vmem:[#allocation98_spill] sm:$0xff] %v26051_v26  ;;  %v26057_v38 = vld [vmem:[%s28799_s6 + $0x28] ss:$48 sps:$4 sm:$0xff]   ;;  %v26063_v52 = vld [vmem:[%s28799_s6 + $0x84] ss:$48 sps:$4 sm:$0xff]   ;;  %29856 = vst [vmem:[#allocation101_spill] sm:$0xff] %v26069_v2 }
 0xb3b   : > { %29854 = vst [vmem:[#allocation99_spill] sm:$0xff] %v26057_v38  ;;  %29855 = vst [vmem:[#allocation100_spill] sm:$0xff] %v26063_v52 }
 0xb3c   : > { %13612 = vmatmul.mubr.msk.f32.vlgmr.msra.gmra.mrb[30].mxu0 %vm1565_vm4, %v8375_v58  ;;  %13613 = vmatmul.mubr.msk.f32.vlgmr.msra.gmra.mrb[24].mxu1 %vm1565_vm4, %v8375_v58 }
 0xb3d   : > { %16277 = vmatpush1.bf16.msra.mxu0 %v26051_v26  ;;  %16285 = vmatpush1.bf16.msra.mxu1 %v26057_v38  ;;  %v26077_v38 = vld [vmem:[%s28799_s6 + $0x80] ss:$48 sps:$4 sm:$0xff]   ;;  %v26095_v26 = vld [vmem:[%s28800_s7 + $0xc] ss:$48 sps:$4 sm:$0xff]  }
 0xb3e   : > { %16279 = vmatprep.subr.bf16.mxu0 %v26063_v52  ;;  %16287 = vmatprep.subr.bf16.mxu1 %v26069_v2  ;;  %v26083_v52 = vld [vmem:[%s28799_s6 + $0x88] ss:$48 sps:$4 sm:$0xff]   ;;  %v26089_v2 = vld [vmem:[%s28800_s7 + $0x4] ss:$48 sps:$4 sm:$0xff]   ;;  %29859 = vst [vmem:[#allocation104_spill] sm:$0xff] %v26095_v26 }
 0xb3f   : > { %8740 = vmatprep.mubr.f32.mxu0 %v29410_v53  ;;  %8811 = vmatprep.mubr.f32.mxu1 %v29410_v53  ;;  %29857 = vst [vmem:[#allocation102_spill] sm:$0xff] %v26083_v52  ;;  %29858 = vst [vmem:[#allocation103_spill] sm:$0xff] %v26089_v2 }
 0xb41   : > { %16281 = vmatpush1.bf16.msra.mxu0 %v26077_v38  ;;  %16289 = vmatpush1.bf16.msra.mxu1 %v26083_v52  ;;  %v26103_v52 = vld [vmem:[%s28800_s7] ss:$48 sps:$4 sm:$0xff]  }
 0xb42   : > { %16291 = vmatprep.subr.bf16.mxu0 %v26089_v2  ;;  %16363 = vmatprep.subr.bf16.mxu1 %v26095_v26  ;;  %29860 = vst [vmem:[#allocation105_spill] sm:$0xff] %v26103_v52  ;;  %v26110_v2 = vld [vmem:[%s28800_s7 + $0x8] ss:$48 sps:$4 sm:$0xff]  }
 0xb43   : > { %29861 = vst [vmem:[#allocation106_spill] sm:$0xff] %v26110_v2  ;;  %v26135_v26 = vld [vmem:[%s28800_s7 + $0x68] ss:$48 sps:$4 sm:$0xff]  }
 0xb44   : > { %13614 = vmatmul.mubr.msk.f32.vlgmr.msra.gmra.mrb[42].mxu0 %vm1565_vm4, %v8375_v58  ;;  %13615 = vmatmul.mubr.msk.f32.vlgmr.msra.gmra.mrb[36].mxu1 %vm1565_vm4, %v8375_v58  ;;  %v26117_v58 = vld [vmem:[%s28800_s7 + $0x64] ss:$48 sps:$4 sm:$0xff]   ;;  %29865 = vst [vmem:[#allocation110_spill] sm:$0xff] %v26135_v26 }
 0xb45   : > { %16293 = vmatpush1.bf16.msra.mxu0 %v26103_v52  ;;  %8894 = vmatprep.mubr.f32.mxu0 %v25928_v35  ;;  %29862 = vst [vmem:[#allocation107_spill] sm:$0xff] %v26117_v58  ;;  %v26123_v52 = vld [vmem:[%s28800_s7 + $0x6c] ss:$48 sps:$4 sm:$0xff]  }
 0xb46   : > { %16365 = vmatpush1.bf16.msra.mxu1 %v26110_v2  ;;  %9036 = vmatprep.mubr.f32.mxu1 %v25928_v35  ;;  %29863 = vst [vmem:[#allocation108_spill] sm:$0xff] %v26123_v52  ;;  %v26129_v2 = vld [vmem:[%s28800_s7 + $0x60] ss:$48 sps:$4 sm:$0xff]  }
 0xb47   : > { %16295 = vmatprep.subr.bf16.mxu0 %v26117_v58  ;;  %16367 = vmatprep.subr.bf16.mxu1 %v26123_v52  ;;  %29864 = vst [vmem:[#allocation109_spill] sm:$0xff] %v26129_v2  ;;  %v26141_v58 = vld [vmem:[%s28800_s7 + $0xc4] ss:$48 sps:$4 sm:$0xff]   ;;  %v26147_v52 = vld [vmem:[%s28800_s7 + $0xcc] ss:$48 sps:$4 sm:$0xff]  }
 0xb48   : > { %29866 = vst [vmem:[#allocation111_spill] sm:$0xff] %v26141_v58  ;;  %29867 = vst [vmem:[#allocation112_spill] sm:$0xff] %v26147_v52 }
 0xb49   : > { %16297 = vmatpush1.bf16.msra.mxu0 %v26129_v2  ;;  %v26153_v2 = vld [vmem:[%s28800_s7 + $0xc0] ss:$48 sps:$4 sm:$0xff]  }
 0xb4a   : > { %16369 = vmatpush1.bf16.msra.mxu1 %v26135_v26  ;;  %16299 = vmatprep.subr.bf16.mxu0 %v26141_v58  ;;  %29868 = vst [vmem:[#allocation113_spill] sm:$0xff] %v26153_v2  ;;  %v26159_v26 = vld [vmem:[%s28800_s7 + $0xc8] ss:$48 sps:$4 sm:$0xff]   ;;  %v26165_v58 = vld [vmem:[%s28800_s7 + $0x124] ss:$48 sps:$4 sm:$0xff]  }
 0xb4b   : > { %16371 = vmatprep.subr.bf16.mxu1 %v26147_v52  ;;  %29869 = vst [vmem:[#allocation114_spill] sm:$0xff] %v26159_v26  ;;  %29870 = vst [vmem:[#allocation115_spill] sm:$0xff] %v26165_v58  ;;  %v26171_v52 = vld [vmem:[%s28800_s7 + $0x12c] ss:$48 sps:$4 sm:$0xff]  }
 0xb4c   : > { %29871 = vst [vmem:[#allocation116_spill] sm:$0xff] %v26171_v52 }
 0xb4d   : > { %16301 = vmatpush1.bf16.msra.mxu0 %v26153_v2  ;;  %v26177_v2 = vld [vmem:[%s28800_s7 + $0x120] ss:$48 sps:$4 sm:$0xff]  }
 0xb4e   : > { %16373 = vmatpush1.bf16.msra.mxu1 %v26159_v26  ;;  %16303 = vmatprep.subr.bf16.mxu0 %v26165_v58  ;;  %29872 = vst [vmem:[#allocation117_spill] sm:$0xff] %v26177_v2  ;;  %v26183_v26 = vld [vmem:[%s28800_s7 + $0x128] ss:$48 sps:$4 sm:$0xff]   ;;  %v26189_v58 = vld [vmem:[%s28800_s7 + $0x184] ss:$48 sps:$4 sm:$0xff]  }
 0xb4f   : > { %16375 = vmatprep.subr.bf16.mxu1 %v26171_v52  ;;  %29873 = vst [vmem:[#allocation118_spill] sm:$0xff] %v26183_v26  ;;  %29874 = vst [vmem:[#allocation119_spill] sm:$0xff] %v26189_v58  ;;  %v26195_v52 = vld [vmem:[%s28800_s7 + $0x18c] ss:$48 sps:$4 sm:$0xff]  }
 0xb50   : > { %29875 = vst [vmem:[#allocation120_spill] sm:$0xff] %v26195_v52 }
 0xb51   : > { %16305 = vmatpush1.bf16.msra.mxu0 %v26177_v2  ;;  %v26201_v2 = vld [vmem:[%s28800_s7 + $0x180] ss:$48 sps:$4 sm:$0xff]  }
 0xb52   : > { %16377 = vmatpush1.bf16.msra.mxu1 %v26183_v26  ;;  %16307 = vmatprep.subr.bf16.mxu0 %v26189_v58  ;;  %29876 = vst [vmem:[#allocation121_spill] sm:$0xff] %v26201_v2  ;;  %v26207_v26 = vld [vmem:[%s28800_s7 + $0x188] ss:$48 sps:$4 sm:$0xff]   ;;  %v26213_v58 = vld [vmem:[%s28800_s7 + $0x1e4] ss:$48 sps:$4 sm:$0xff]  }
 0xb53   : > { %16379 = vmatprep.subr.bf16.mxu1 %v26195_v52  ;;  %29877 = vst [vmem:[#allocation122_spill] sm:$0xff] %v26207_v26  ;;  %29878 = vst [vmem:[#allocation123_spill] sm:$0xff] %v26213_v58  ;;  %v26219_v52 = vld [vmem:[%s28800_s7 + $0x1ec] ss:$48 sps:$4 sm:$0xff]  }
 0xb54   : > { %29879 = vst [vmem:[#allocation124_spill] sm:$0xff] %v26219_v52 }
 0xb55   : > { %16309 = vmatpush1.bf16.msra.mxu0 %v26201_v2  ;;  %v26225_v2 = vld [vmem:[%s28800_s7 + $0x1e0] ss:$48 sps:$4 sm:$0xff]  }
 0xb56   : > { %16381 = vmatpush1.bf16.msra.mxu1 %v26207_v26  ;;  %16311 = vmatprep.subr.bf16.mxu0 %v26213_v58  ;;  %29880 = vst [vmem:[#allocation125_spill] sm:$0xff] %v26225_v2  ;;  %v26231_v26 = vld [vmem:[%s28800_s7 + $0x1e8] ss:$48 sps:$4 sm:$0xff]   ;;  %v26237_v58 = vld [vmem:[%s28800_s7 + $0x244] ss:$48 sps:$4 sm:$0xff]  }
 0xb57   : > { %16383 = vmatprep.subr.bf16.mxu1 %v26219_v52  ;;  %29881 = vst [vmem:[#allocation126_spill] sm:$0xff] %v26231_v26  ;;  %29882 = vst [vmem:[#allocation127_spill] sm:$0xff] %v26237_v58  ;;  %v26243_v52 = vld [vmem:[%s28800_s7 + $0x24c] ss:$48 sps:$4 sm:$0xff]  }
 0xb58   : > { %29883 = vst [vmem:[#allocation128_spill] sm:$0xff] %v26243_v52 }
 0xb59   : > { %16313 = vmatpush1.bf16.msra.mxu0 %v26225_v2  ;;  %v26249_v2 = vld [vmem:[%s28800_s7 + $0x240] ss:$48 sps:$4 sm:$0xff]  }
 0xb5a   : > { %16385 = vmatpush1.bf16.msra.mxu1 %v26231_v26  ;;  %16315 = vmatprep.subr.bf16.mxu0 %v26237_v58  ;;  %29884 = vst [vmem:[#allocation129_spill] sm:$0xff] %v26249_v2  ;;  %v26255_v26 = vld [vmem:[%s28800_s7 + $0x248] ss:$48 sps:$4 sm:$0xff]   ;;  %v26261_v58 = vld [vmem:[%s28800_s7 + $0x2a4] ss:$48 sps:$4 sm:$0xff]  }
 0xb5b   : > { %16387 = vmatprep.subr.bf16.mxu1 %v26243_v52  ;;  %29885 = vst [vmem:[#allocation130_spill] sm:$0xff] %v26255_v26  ;;  %29886 = vst [vmem:[#allocation131_spill] sm:$0xff] %v26261_v58  ;;  %v26267_v52 = vld [vmem:[%s28800_s7 + $0x2ac] ss:$48 sps:$4 sm:$0xff]  }
 0xb5c   : > { %29887 = vst [vmem:[#allocation132_spill] sm:$0xff] %v26267_v52 }
 0xb5d   : > { %16317 = vmatpush1.bf16.msra.mxu0 %v26249_v2  ;;  %v26273_v2 = vld [vmem:[%s28800_s7 + $0x2a0] ss:$48 sps:$4 sm:$0xff]  }
 0xb5e   : > { %16389 = vmatpush1.bf16.msra.mxu1 %v26255_v26  ;;  %16319 = vmatprep.subr.bf16.mxu0 %v26261_v58  ;;  %29888 = vst [vmem:[#allocation133_spill] sm:$0xff] %v26273_v2  ;;  %v26279_v26 = vld [vmem:[%s28800_s7 + $0x2a8] ss:$48 sps:$4 sm:$0xff]   ;;  %v26285_v58 = vld [vmem:[%s28800_s7 + $0x304] ss:$48 sps:$4 sm:$0xff]  }
 0xb5f   : > { %16391 = vmatprep.subr.bf16.mxu1 %v26267_v52  ;;  %29889 = vst [vmem:[#allocation134_spill] sm:$0xff] %v26279_v26  ;;  %29890 = vst [vmem:[#allocation135_spill] sm:$0xff] %v26285_v58  ;;  %v26291_v52 = vld [vmem:[%s28800_s7 + $0x30c] ss:$48 sps:$4 sm:$0xff]  }
 0xb60   : > { %29891 = vst [vmem:[#allocation136_spill] sm:$0xff] %v26291_v52 }
 0xb61   : > { %16321 = vmatpush1.bf16.msra.mxu0 %v26273_v2  ;;  %v26297_v2 = vld [vmem:[%s28800_s7 + $0x300] ss:$48 sps:$4 sm:$0xff]  }
 0xb62   : > { %16393 = vmatpush1.bf16.msra.mxu1 %v26279_v26  ;;  %16323 = vmatprep.subr.bf16.mxu0 %v26285_v58  ;;  %29892 = vst [vmem:[#allocation137_spill] sm:$0xff] %v26297_v2  ;;  %v26303_v26 = vld [vmem:[%s28800_s7 + $0x308] ss:$48 sps:$4 sm:$0xff]   ;;  %v26309_v58 = vld [vmem:[%s28800_s7 + $0x364] ss:$48 sps:$4 sm:$0xff]  }
 0xb63   : > { %16395 = vmatprep.subr.bf16.mxu1 %v26291_v52  ;;  %29893 = vst [vmem:[#allocation138_spill] sm:$0xff] %v26303_v26  ;;  %29894 = vst [vmem:[#allocation139_spill] sm:$0xff] %v26309_v58  ;;  %v26315_v52 = vld [vmem:[%s28800_s7 + $0x36c] ss:$48 sps:$4 sm:$0xff]  }
 0xb64   : > { %29895 = vst [vmem:[#allocation140_spill] sm:$0xff] %v26315_v52 }
 0xb65   : > { %16325 = vmatpush1.bf16.msra.mxu0 %v26297_v2  ;;  %v26321_v2 = vld [vmem:[%s28800_s7 + $0x360] ss:$48 sps:$4 sm:$0xff]  }
 0xb66   : > { %16397 = vmatpush1.bf16.msra.mxu1 %v26303_v26  ;;  %16327 = vmatprep.subr.bf16.mxu0 %v26309_v58  ;;  %29896 = vst [vmem:[#allocation141_spill] sm:$0xff] %v26321_v2  ;;  %v26327_v26 = vld [vmem:[%s28800_s7 + $0x368] ss:$48 sps:$4 sm:$0xff]   ;;  %v26333_v58 = vld [vmem:[%s28800_s7 + $0x3c4] ss:$48 sps:$4 sm:$0xff]  }
 0xb67   : > { %16399 = vmatprep.subr.bf16.mxu1 %v26315_v52  ;;  %29897 = vst [vmem:[#allocation142_spill] sm:$0xff] %v26327_v26  ;;  %29898 = vst [vmem:[#allocation143_spill] sm:$0xff] %v26333_v58  ;;  %v26339_v52 = vld [vmem:[%s28800_s7 + $0x3cc] ss:$48 sps:$4 sm:$0xff]  }
 0xb68   : > { %29899 = vst [vmem:[#allocation144_spill] sm:$0xff] %v26339_v52 }
 0xb69   : > { %16329 = vmatpush1.bf16.msra.mxu0 %v26321_v2  ;;  %v26345_v2 = vld [vmem:[%s28800_s7 + $0x3c0] ss:$48 sps:$4 sm:$0xff]  }
 0xb6a   : > { %16401 = vmatpush1.bf16.msra.mxu1 %v26327_v26  ;;  %16331 = vmatprep.subr.bf16.mxu0 %v26333_v58  ;;  %29900 = vst [vmem:[#allocation145_spill] sm:$0xff] %v26345_v2  ;;  %v26351_v26 = vld [vmem:[%s28800_s7 + $0x3c8] ss:$48 sps:$4 sm:$0xff]   ;;  %v26357_v58 = vld [vmem:[%s28800_s7 + $0x424] ss:$48 sps:$4 sm:$0xff]  }
 0xb6b   : > { %16403 = vmatprep.subr.bf16.mxu1 %v26339_v52  ;;  %29901 = vst [vmem:[#allocation146_spill] sm:$0xff] %v26351_v26  ;;  %29902 = vst [vmem:[#allocation147_spill] sm:$0xff] %v26357_v58  ;;  %v26363_v52 = vld [vmem:[%s28800_s7 + $0x42c] ss:$48 sps:$4 sm:$0xff]  }
 0xb6c   : > { %29903 = vst [vmem:[#allocation148_spill] sm:$0xff] %v26363_v52 }
 0xb6d   : > { %16333 = vmatpush1.bf16.msra.mxu0 %v26345_v2  ;;  %v26369_v2 = vld [vmem:[%s28800_s7 + $0x420] ss:$48 sps:$4 sm:$0xff]  }
 0xb6e   : > { %16405 = vmatpush1.bf16.msra.mxu1 %v26351_v26  ;;  %16335 = vmatprep.subr.bf16.mxu0 %v26357_v58  ;;  %29904 = vst [vmem:[#allocation149_spill] sm:$0xff] %v26369_v2  ;;  %v26375_v26 = vld [vmem:[%s28800_s7 + $0x428] ss:$48 sps:$4 sm:$0xff]   ;;  %v26381_v58 = vld [vmem:[%s28800_s7 + $0x484] ss:$48 sps:$4 sm:$0xff]  }
 0xb6f   : > { %16407 = vmatprep.subr.bf16.mxu1 %v26363_v52  ;;  %29905 = vst [vmem:[#allocation150_spill] sm:$0xff] %v26375_v26  ;;  %29906 = vst [vmem:[#allocation151_spill] sm:$0xff] %v26381_v58  ;;  %v26387_v52 = vld [vmem:[%s28800_s7 + $0x48c] ss:$48 sps:$4 sm:$0xff]  }
 0xb70   : > { %29907 = vst [vmem:[#allocation152_spill] sm:$0xff] %v26387_v52 }
 0xb71   : > { %16337 = vmatpush1.bf16.msra.mxu0 %v26369_v2  ;;  %v26393_v2 = vld [vmem:[%s28800_s7 + $0x480] ss:$48 sps:$4 sm:$0xff]  }
 0xb72   : > { %16409 = vmatpush1.bf16.msra.mxu1 %v26375_v26  ;;  %16339 = vmatprep.subr.bf16.mxu0 %v26381_v58  ;;  %29908 = vst [vmem:[#allocation153_spill] sm:$0xff] %v26393_v2  ;;  %v26399_v26 = vld [vmem:[%s28800_s7 + $0x488] ss:$48 sps:$4 sm:$0xff]   ;;  %v26405_v58 = vld [vmem:[%s28800_s7 + $0x4e4] ss:$48 sps:$4 sm:$0xff]  }
 0xb73   : > { %16411 = vmatprep.subr.bf16.mxu1 %v26387_v52  ;;  %29909 = vst [vmem:[#allocation154_spill] sm:$0xff] %v26399_v26  ;;  %29910 = vst [vmem:[#allocation155_spill] sm:$0xff] %v26405_v58  ;;  %v26411_v52 = vld [vmem:[%s28800_s7 + $0x4ec] ss:$48 sps:$4 sm:$0xff]  }
 0xb74   : > { %29911 = vst [vmem:[#allocation156_spill] sm:$0xff] %v26411_v52 }
 0xb75   : > { %16341 = vmatpush1.bf16.msra.mxu0 %v26393_v2  ;;  %v26417_v2 = vld [vmem:[%s28800_s7 + $0x4e0] ss:$48 sps:$4 sm:$0xff]  }
 0xb76   : > { %16413 = vmatpush1.bf16.msra.mxu1 %v26399_v26  ;;  %16343 = vmatprep.subr.bf16.mxu0 %v26405_v58  ;;  %29912 = vst [vmem:[#allocation157_spill] sm:$0xff] %v26417_v2  ;;  %v26423_v26 = vld [vmem:[%s28800_s7 + $0x4e8] ss:$48 sps:$4 sm:$0xff]   ;;  %v26429_v58 = vld [vmem:[%s28800_s7 + $0x544] ss:$48 sps:$4 sm:$0xff]  }
 0xb77   : > { %16415 = vmatprep.subr.bf16.mxu1 %v26411_v52  ;;  %29913 = vst [vmem:[#allocation158_spill] sm:$0xff] %v26423_v26  ;;  %29914 = vst [vmem:[#allocation159_spill] sm:$0xff] %v26429_v58  ;;  %v26435_v52 = vld [vmem:[%s28800_s7 + $0x54c] ss:$48 sps:$4 sm:$0xff]  }
 0xb78   : > { %29915 = vst [vmem:[#allocation160_spill] sm:$0xff] %v26435_v52 }
 0xb79   : > { %16345 = vmatpush1.bf16.msra.mxu0 %v26417_v2  ;;  %v26441_v2 = vld [vmem:[%s28800_s7 + $0x540] ss:$48 sps:$4 sm:$0xff]  }
 0xb7a   : > { %16417 = vmatpush1.bf16.msra.mxu1 %v26423_v26  ;;  %16347 = vmatprep.subr.bf16.mxu0 %v26429_v58  ;;  %29916 = vst [vmem:[#allocation161_spill] sm:$0xff] %v26441_v2  ;;  %v26447_v26 = vld [vmem:[%s28800_s7 + $0x548] ss:$48 sps:$4 sm:$0xff]   ;;  %v26453_v58 = vld [vmem:[%s28800_s7 + $0x5a4] ss:$48 sps:$4 sm:$0xff]  }
 0xb7b   : > { %16419 = vmatprep.subr.bf16.mxu1 %v26435_v52  ;;  %29917 = vst [vmem:[#allocation162_spill] sm:$0xff] %v26447_v26  ;;  %29918 = vst [vmem:[#allocation163_spill] sm:$0xff] %v26453_v58  ;;  %v26459_v52 = vld [vmem:[%s28800_s7 + $0x5ac] ss:$48 sps:$4 sm:$0xff]  }
 0xb7c   : > { %29919 = vst [vmem:[#allocation164_spill] sm:$0xff] %v26459_v52 }
 0xb7d   : > { %16349 = vmatpush1.bf16.msra.mxu0 %v26441_v2  ;;  %v26465_v2 = vld [vmem:[%s28800_s7 + $0x5a0] ss:$48 sps:$4 sm:$0xff]  }
 0xb7e   : > { %16421 = vmatpush1.bf16.msra.mxu1 %v26447_v26  ;;  %16351 = vmatprep.subr.bf16.mxu0 %v26453_v58  ;;  %29920 = vst [vmem:[#allocation165_spill] sm:$0xff] %v26465_v2  ;;  %v26471_v26 = vld [vmem:[%s28800_s7 + $0x5a8] ss:$48 sps:$4 sm:$0xff]   ;;  %v26477_v58 = vld [vmem:[%s28800_s7 + $0x604] ss:$48 sps:$4 sm:$0xff]  }
 0xb7f   : > { %16423 = vmatprep.subr.bf16.mxu1 %v26459_v52  ;;  %29921 = vst [vmem:[#allocation166_spill] sm:$0xff] %v26471_v26  ;;  %29922 = vst [vmem:[#allocation167_spill] sm:$0xff] %v26477_v58  ;;  %v26483_v52 = vld [vmem:[%s28800_s7 + $0x60c] ss:$48 sps:$4 sm:$0xff]  }
 0xb80   : > { %29923 = vst [vmem:[#allocation168_spill] sm:$0xff] %v26483_v52 }
 0xb81   : > { %16353 = vmatpush1.bf16.msra.mxu0 %v26465_v2  ;;  %v26509_v2 = vld [vmem:[%s28800_s7 + $0x66c] ss:$48 sps:$4 sm:$0xff]  }
 0xb82   : > { %16425 = vmatpush1.bf16.msra.mxu1 %v26471_v26  ;;  %16355 = vmatprep.subr.bf16.mxu0 %v26477_v58  ;;  %v26491_v26 = vld [vmem:[%s28800_s7 + $0x600] ss:$48 sps:$4 sm:$0xff]   ;;  %v26497_v58 = vld [vmem:[%s28800_s7 + $0x608] ss:$48 sps:$4 sm:$0xff]   ;;  %29927 = vst [vmem:[#allocation172_spill] sm:$0xff] %v26509_v2 }
 0xb83   : > { %16427 = vmatprep.subr.bf16.mxu1 %v26483_v52  ;;  %29924 = vst [vmem:[#allocation169_spill] sm:$0xff] %v26491_v26  ;;  %29925 = vst [vmem:[#allocation170_spill] sm:$0xff] %v26497_v58  ;;  %v26503_v52 = vld [vmem:[%s28800_s7 + $0x664] ss:$48 sps:$4 sm:$0xff]  }
 0xb84   : > { %8895 = vmatmul.mubr.f32.vlgmr.msra.gmra.mrb[18].mxu0 %v25930_v23  ;;  %29926 = vst [vmem:[#allocation171_spill] sm:$0xff] %v26503_v52 }
 0xb85   : > { %9037 = vmatmul.mubr.f32.vlgmr.msra.gmra.mrb[12].mxu1 %v25930_v23  ;;  %16357 = vmatpush1.bf16.msra.mxu0 %v26491_v26  ;;  %v26535_v26 = vld [vmem:[%s28800_s7 + $0x1c] ss:$48 sps:$4 sm:$0xff]  }
 0xb86   : > { %16429 = vmatpush1.bf16.msra.mxu1 %v26497_v58  ;;  %16359 = vmatprep.subr.bf16.mxu0 %v26503_v52  ;;  %v26517_v58 = vld [vmem:[%s28800_s7 + $0x660] ss:$48 sps:$4 sm:$0xff]   ;;  %v26523_v52 = vld [vmem:[%s28800_s7 + $0x668] ss:$48 sps:$4 sm:$0xff]   ;;  %29931 = vst [vmem:[#allocation176_spill] sm:$0xff] %v26535_v26 }
 0xb87   : > { %16431 = vmatprep.subr.bf16.mxu1 %v26509_v2  ;;  %8965 = vmatprep.mubr.f32.mxu0 %v29410_v53  ;;  %29928 = vst [vmem:[#allocation173_spill] sm:$0xff] %v26517_v58  ;;  %29929 = vst [vmem:[#allocation174_spill] sm:$0xff] %v26523_v52  ;;  %v26529_v2 = vld [vmem:[%s28800_s7 + $0x14] ss:$48 sps:$4 sm:$0xff]  }
 0xb88   : > { %9107 = vmatprep.mubr.f32.mxu1 %v29410_v53  ;;  %29930 = vst [vmem:[#allocation175_spill] sm:$0xff] %v26529_v2 }
 0xb89   : > { %16361 = vmatpush1.bf16.msra.mxu0 %v26517_v58  ;;  %v26577_v58 = vld [vmem:[%s28800_s7 + $0x78] ss:$48 sps:$4 sm:$0xff]  }
 0xb8a   : > { %16433 = vmatpush1.bf16.msra.mxu1 %v26523_v52  ;;  %16435 = vmatprep.subr.bf16.mxu0 %v26529_v2  ;;  %v26545_v52 = vld [vmem:[%s28800_s7 + $0x10] ss:$48 sps:$4 sm:$0xff]   ;;  %v26552_v2 = vld [vmem:[%s28800_s7 + $0x18] ss:$48 sps:$4 sm:$0xff]   ;;  %29937 = vst [vmem:[#allocation182_spill] sm:$0xff] %v26577_v58 }
 0xb8b   : > { %16507 = vmatprep.subr.bf16.mxu1 %v26535_v26  ;;  %29932 = vst [vmem:[#allocation177_spill] sm:$0xff] %v26545_v52  ;;  %29933 = vst [vmem:[#allocation178_spill] sm:$0xff] %v26552_v2  ;;  %v26559_v26 = vld [vmem:[%s28800_s7 + $0x74] ss:$48 sps:$4 sm:$0xff]  }
 0xb8c   : > { %13616 = vmatmul.mubr.msk.f32.vlgmr.msra.gmra.mrb[18].mxu0 %vm1565_vm4, %v25932_v21  ;;  %29934 = vst [vmem:[#allocation179_spill] sm:$0xff] %v26559_v26 }
 0xb8d   : > { %13617 = vmatmul.mubr.msk.f32.vlgmr.msra.gmra.mrb[12].mxu1 %vm1565_vm4, %v25932_v21  ;;  %16437 = vmatpush1.bf16.msra.mxu0 %v26545_v52  ;;  %v26565_v52 = vld [vmem:[%s28800_s7 + $0x7c] ss:$48 sps:$4 sm:$0xff]  }
 0xb8e   : > { %9178 = vmatprep.mubr.f32.mxu0 %v25928_v35  ;;  %16509 = vmatpush1.bf16.msra.mxu1 %v26552_v2  ;;  %29935 = vst [vmem:[#allocation180_spill] sm:$0xff] %v26565_v52  ;;  %v26571_v2 = vld [vmem:[%s28800_s7 + $0x70] ss:$48 sps:$4 sm:$0xff]  }
 0xb8f   : > { %9320 = vmatprep.mubr.f32.mxu1 %v25928_v35  ;;  %16439 = vmatprep.subr.bf16.mxu0 %v26559_v26  ;;  %29936 = vst [vmem:[#allocation181_spill] sm:$0xff] %v26571_v2  ;;  %v26583_v26 = vld [vmem:[%s28800_s7 + $0xd4] ss:$48 sps:$4 sm:$0xff]  }
 0xb90   : > { %16511 = vmatprep.subr.bf16.mxu1 %v26565_v52  ;;  %29938 = vst [vmem:[#allocation183_spill] sm:$0xff] %v26583_v26  ;;  %v26589_v52 = vld [vmem:[%s28800_s7 + $0xdc] ss:$48 sps:$4 sm:$0xff]  }
 0xb91   : > { %16441 = vmatpush1.bf16.msra.mxu0 %v26571_v2  ;;  %29939 = vst [vmem:[#allocation184_spill] sm:$0xff] %v26589_v52  ;;  %v26595_v2 = vld [vmem:[%s28800_s7 + $0xd0] ss:$48 sps:$4 sm:$0xff]  }
 0xb92   : > { %16513 = vmatpush1.bf16.msra.mxu1 %v26577_v58  ;;  %16443 = vmatprep.subr.bf16.mxu0 %v26583_v26  ;;  %29940 = vst [vmem:[#allocation185_spill] sm:$0xff] %v26595_v2  ;;  %v26601_v58 = vld [vmem:[%s28800_s7 + $0xd8] ss:$48 sps:$4 sm:$0xff]   ;;  %v26607_v26 = vld [vmem:[%s28800_s7 + $0x134] ss:$48 sps:$4 sm:$0xff]  }
 0xb93   : > { %16515 = vmatprep.subr.bf16.mxu1 %v26589_v52  ;;  %29941 = vst [vmem:[#allocation186_spill] sm:$0xff] %v26601_v58  ;;  %29942 = vst [vmem:[#allocation187_spill] sm:$0xff] %v26607_v26  ;;  %v26613_v52 = vld [vmem:[%s28800_s7 + $0x13c] ss:$48 sps:$4 sm:$0xff]  }
 0xb94   : > { %29943 = vst [vmem:[#allocation188_spill] sm:$0xff] %v26613_v52 }
 0xb95   : > { %16445 = vmatpush1.bf16.msra.mxu0 %v26595_v2  ;;  %v26619_v2 = vld [vmem:[%s28800_s7 + $0x130] ss:$48 sps:$4 sm:$0xff]  }
 0xb96   : > { %16517 = vmatpush1.bf16.msra.mxu1 %v26601_v58  ;;  %16447 = vmatprep.subr.bf16.mxu0 %v26607_v26  ;;  %29944 = vst [vmem:[#allocation189_spill] sm:$0xff] %v26619_v2  ;;  %v26625_v58 = vld [vmem:[%s28800_s7 + $0x138] ss:$48 sps:$4 sm:$0xff]   ;;  %v26631_v26 = vld [vmem:[%s28800_s7 + $0x194] ss:$48 sps:$4 sm:$0xff]  }
 0xb97   : > { %16519 = vmatprep.subr.bf16.mxu1 %v26613_v52  ;;  %29945 = vst [vmem:[#allocation190_spill] sm:$0xff] %v26625_v58  ;;  %29946 = vst [vmem:[#allocation191_spill] sm:$0xff] %v26631_v26  ;;  %v26637_v52 = vld [vmem:[%s28800_s7 + $0x19c] ss:$48 sps:$4 sm:$0xff]  }
 0xb98   : > { %29947 = vst [vmem:[#allocation192_spill] sm:$0xff] %v26637_v52 }
 0xb99   : > { %16449 = vmatpush1.bf16.msra.mxu0 %v26619_v2  ;;  %v26643_v2 = vld [vmem:[%s28800_s7 + $0x190] ss:$48 sps:$4 sm:$0xff]  }
 0xb9a   : > { %16521 = vmatpush1.bf16.msra.mxu1 %v26625_v58  ;;  %16451 = vmatprep.subr.bf16.mxu0 %v26631_v26  ;;  %29948 = vst [vmem:[#allocation193_spill] sm:$0xff] %v26643_v2  ;;  %v26649_v58 = vld [vmem:[%s28800_s7 + $0x198] ss:$48 sps:$4 sm:$0xff]   ;;  %v26655_v26 = vld [vmem:[%s28800_s7 + $0x1f4] ss:$48 sps:$4 sm:$0xff]  }
 0xb9b   : > { %16523 = vmatprep.subr.bf16.mxu1 %v26637_v52  ;;  %29949 = vst [vmem:[#allocation194_spill] sm:$0xff] %v26649_v58  ;;  %29950 = vst [vmem:[#allocation195_spill] sm:$0xff] %v26655_v26  ;;  %v26661_v52 = vld [vmem:[%s28800_s7 + $0x1fc] ss:$48 sps:$4 sm:$0xff]  }
 0xb9c   : > { %29951 = vst [vmem:[#allocation196_spill] sm:$0xff] %v26661_v52 }
 0xb9d   : > { %16453 = vmatpush1.bf16.msra.mxu0 %v26643_v2  ;;  %v26667_v2 = vld [vmem:[%s28800_s7 + $0x1f0] ss:$48 sps:$4 sm:$0xff]  }
 0xb9e   : > { %16525 = vmatpush1.bf16.msra.mxu1 %v26649_v58  ;;  %16455 = vmatprep.subr.bf16.mxu0 %v26655_v26  ;;  %29952 = vst [vmem:[#allocation197_spill] sm:$0xff] %v26667_v2  ;;  %v26673_v58 = vld [vmem:[%s28800_s7 + $0x1f8] ss:$48 sps:$4 sm:$0xff]   ;;  %v26679_v26 = vld [vmem:[%s28800_s7 + $0x254] ss:$48 sps:$4 sm:$0xff]  }
 0xb9f   : > { %16527 = vmatprep.subr.bf16.mxu1 %v26661_v52  ;;  %29953 = vst [vmem:[#allocation198_spill] sm:$0xff] %v26673_v58  ;;  %29954 = vst [vmem:[#allocation199_spill] sm:$0xff] %v26679_v26  ;;  %v26685_v52 = vld [vmem:[%s28800_s7 + $0x25c] ss:$48 sps:$4 sm:$0xff]  }
 0xba0   : > { %29955 = vst [vmem:[#allocation200_spill] sm:$0xff] %v26685_v52 }
 0xba1   : > { %16457 = vmatpush1.bf16.msra.mxu0 %v26667_v2  ;;  %v26691_v2 = vld [vmem:[%s28800_s7 + $0x250] ss:$48 sps:$4 sm:$0xff]  }
 0xba2   : > { %16529 = vmatpush1.bf16.msra.mxu1 %v26673_v58  ;;  %16459 = vmatprep.subr.bf16.mxu0 %v26679_v26  ;;  %29956 = vst [vmem:[#allocation201_spill] sm:$0xff] %v26691_v2  ;;  %v26697_v58 = vld [vmem:[%s28800_s7 + $0x258] ss:$48 sps:$4 sm:$0xff]   ;;  %v26703_v26 = vld [vmem:[%s28800_s7 + $0x2b4] ss:$48 sps:$4 sm:$0xff]  }
 0xba3   : > { %16531 = vmatprep.subr.bf16.mxu1 %v26685_v52  ;;  %29957 = vst [vmem:[#allocation202_spill] sm:$0xff] %v26697_v58  ;;  %29958 = vst [vmem:[#allocation203_spill] sm:$0xff] %v26703_v26  ;;  %v26709_v52 = vld [vmem:[%s28800_s7 + $0x2bc] ss:$48 sps:$4 sm:$0xff]  }
 0xba4   : > { %29959 = vst [vmem:[#allocation204_spill] sm:$0xff] %v26709_v52 }
 0xba5   : > { %16461 = vmatpush1.bf16.msra.mxu0 %v26691_v2  ;;  %v26715_v2 = vld [vmem:[%s28800_s7 + $0x2b0] ss:$48 sps:$4 sm:$0xff]  }
 0xba6   : > { %16533 = vmatpush1.bf16.msra.mxu1 %v26697_v58  ;;  %16463 = vmatprep.subr.bf16.mxu0 %v26703_v26  ;;  %29960 = vst [vmem:[#allocation205_spill] sm:$0xff] %v26715_v2  ;;  %v26721_v58 = vld [vmem:[%s28800_s7 + $0x2b8] ss:$48 sps:$4 sm:$0xff]   ;;  %v26727_v26 = vld [vmem:[%s28800_s7 + $0x314] ss:$48 sps:$4 sm:$0xff]  }
 0xba7   : > { %16535 = vmatprep.subr.bf16.mxu1 %v26709_v52  ;;  %29961 = vst [vmem:[#allocation206_spill] sm:$0xff] %v26721_v58  ;;  %29962 = vst [vmem:[#allocation207_spill] sm:$0xff] %v26727_v26  ;;  %v26733_v52 = vld [vmem:[%s28800_s7 + $0x31c] ss:$48 sps:$4 sm:$0xff]  }
 0xba8   : > { %29963 = vst [vmem:[#allocation208_spill] sm:$0xff] %v26733_v52 }
 0xba9   : > { %16465 = vmatpush1.bf16.msra.mxu0 %v26715_v2  ;;  %v26739_v2 = vld [vmem:[%s28800_s7 + $0x310] ss:$48 sps:$4 sm:$0xff]  }
 0xbaa   : > { %16537 = vmatpush1.bf16.msra.mxu1 %v26721_v58  ;;  %16467 = vmatprep.subr.bf16.mxu0 %v26727_v26  ;;  %29964 = vst [vmem:[#allocation209_spill] sm:$0xff] %v26739_v2  ;;  %v26745_v58 = vld [vmem:[%s28800_s7 + $0x318] ss:$48 sps:$4 sm:$0xff]   ;;  %v26751_v26 = vld [vmem:[%s28800_s7 + $0x374] ss:$48 sps:$4 sm:$0xff]  }
 0xbab   : > { %16539 = vmatprep.subr.bf16.mxu1 %v26733_v52  ;;  %29965 = vst [vmem:[#allocation210_spill] sm:$0xff] %v26745_v58  ;;  %29966 = vst [vmem:[#allocation211_spill] sm:$0xff] %v26751_v26  ;;  %v26757_v52 = vld [vmem:[%s28800_s7 + $0x37c] ss:$48 sps:$4 sm:$0xff]  }
 0xbac   : > { %29967 = vst [vmem:[#allocation212_spill] sm:$0xff] %v26757_v52 }
 0xbad   : > { %16469 = vmatpush1.bf16.msra.mxu0 %v26739_v2  ;;  %v26763_v2 = vld [vmem:[%s28800_s7 + $0x370] ss:$48 sps:$4 sm:$0xff]  }
 0xbae   : > { %16541 = vmatpush1.bf16.msra.mxu1 %v26745_v58  ;;  %16471 = vmatprep.subr.bf16.mxu0 %v26751_v26  ;;  %29968 = vst [vmem:[#allocation213_spill] sm:$0xff] %v26763_v2  ;;  %v26769_v58 = vld [vmem:[%s28800_s7 + $0x378] ss:$48 sps:$4 sm:$0xff]   ;;  %v26775_v26 = vld [vmem:[%s28800_s7 + $0x3d4] ss:$48 sps:$4 sm:$0xff]  }
 0xbaf   : > { %16543 = vmatprep.subr.bf16.mxu1 %v26757_v52  ;;  %29969 = vst [vmem:[#allocation214_spill] sm:$0xff] %v26769_v58  ;;  %29970 = vst [vmem:[#allocation215_spill] sm:$0xff] %v26775_v26  ;;  %v26781_v52 = vld [vmem:[%s28800_s7 + $0x3dc] ss:$48 sps:$4 sm:$0xff]  }
 0xbb0   : > { %29971 = vst [vmem:[#allocation216_spill] sm:$0xff] %v26781_v52 }
 0xbb1   : > { %16473 = vmatpush1.bf16.msra.mxu0 %v26763_v2  ;;  %v26787_v2 = vld [vmem:[%s28800_s7 + $0x3d0] ss:$48 sps:$4 sm:$0xff]  }
 0xbb2   : > { %16545 = vmatpush1.bf16.msra.mxu1 %v26769_v58  ;;  %16475 = vmatprep.subr.bf16.mxu0 %v26775_v26  ;;  %29972 = vst [vmem:[#allocation217_spill] sm:$0xff] %v26787_v2  ;;  %v26793_v58 = vld [vmem:[%s28800_s7 + $0x3d8] ss:$48 sps:$4 sm:$0xff]   ;;  %v26799_v26 = vld [vmem:[%s28800_s7 + $0x434] ss:$48 sps:$4 sm:$0xff]  }
 0xbb3   : > { %16547 = vmatprep.subr.bf16.mxu1 %v26781_v52  ;;  %29973 = vst [vmem:[#allocation218_spill] sm:$0xff] %v26793_v58  ;;  %29974 = vst [vmem:[#allocation219_spill] sm:$0xff] %v26799_v26  ;;  %v26805_v52 = vld [vmem:[%s28800_s7 + $0x43c] ss:$48 sps:$4 sm:$0xff]  }
 0xbb4   : > { %29975 = vst [vmem:[#allocation220_spill] sm:$0xff] %v26805_v52 }
 0xbb5   : > { %16477 = vmatpush1.bf16.msra.mxu0 %v26787_v2  ;;  %v26811_v2 = vld [vmem:[%s28800_s7 + $0x430] ss:$48 sps:$4 sm:$0xff]  }
 0xbb6   : > { %16549 = vmatpush1.bf16.msra.mxu1 %v26793_v58  ;;  %16479 = vmatprep.subr.bf16.mxu0 %v26799_v26  ;;  %29976 = vst [vmem:[#allocation221_spill] sm:$0xff] %v26811_v2  ;;  %v26817_v58 = vld [vmem:[%s28800_s7 + $0x438] ss:$48 sps:$4 sm:$0xff]   ;;  %v26823_v26 = vld [vmem:[%s28800_s7 + $0x494] ss:$48 sps:$4 sm:$0xff]  }
 0xbb7   : > { %16551 = vmatprep.subr.bf16.mxu1 %v26805_v52  ;;  %29977 = vst [vmem:[#allocation222_spill] sm:$0xff] %v26817_v58  ;;  %29978 = vst [vmem:[#allocation223_spill] sm:$0xff] %v26823_v26  ;;  %v26829_v52 = vld [vmem:[%s28800_s7 + $0x49c] ss:$48 sps:$4 sm:$0xff]  }
 0xbb8   : > { %29979 = vst [vmem:[#allocation224_spill] sm:$0xff] %v26829_v52 }
 0xbb9   : > { %16481 = vmatpush1.bf16.msra.mxu0 %v26811_v2  ;;  %v26835_v2 = vld [vmem:[%s28800_s7 + $0x490] ss:$48 sps:$4 sm:$0xff]  }
 0xbba   : > { %16553 = vmatpush1.bf16.msra.mxu1 %v26817_v58  ;;  %16483 = vmatprep.subr.bf16.mxu0 %v26823_v26  ;;  %29980 = vst [vmem:[#allocation225_spill] sm:$0xff] %v26835_v2  ;;  %v26841_v58 = vld [vmem:[%s28800_s7 + $0x498] ss:$48 sps:$4 sm:$0xff]   ;;  %v26847_v26 = vld [vmem:[%s28800_s7 + $0x4f4] ss:$48 sps:$4 sm:$0xff]  }
 0xbbb   : > { %16555 = vmatprep.subr.bf16.mxu1 %v26829_v52  ;;  %29981 = vst [vmem:[#allocation226_spill] sm:$0xff] %v26841_v58  ;;  %29982 = vst [vmem:[#allocation227_spill] sm:$0xff] %v26847_v26  ;;  %v26853_v52 = vld [vmem:[%s28800_s7 + $0x4fc] ss:$48 sps:$4 sm:$0xff]  }
 0xbbc   : > { %29983 = vst [vmem:[#allocation228_spill] sm:$0xff] %v26853_v52 }
 0xbbd   : > { %16485 = vmatpush1.bf16.msra.mxu0 %v26835_v2  ;;  %v26859_v2 = vld [vmem:[%s28800_s7 + $0x4f0] ss:$48 sps:$4 sm:$0xff]  }
 0xbbe   : > { %16557 = vmatpush1.bf16.msra.mxu1 %v26841_v58  ;;  %16487 = vmatprep.subr.bf16.mxu0 %v26847_v26  ;;  %29984 = vst [vmem:[#allocation229_spill] sm:$0xff] %v26859_v2  ;;  %v26865_v58 = vld [vmem:[%s28800_s7 + $0x4f8] ss:$48 sps:$4 sm:$0xff]   ;;  %v26871_v26 = vld [vmem:[%s28800_s7 + $0x554] ss:$48 sps:$4 sm:$0xff]  }
 0xbbf   : > { %16559 = vmatprep.subr.bf16.mxu1 %v26853_v52  ;;  %29985 = vst [vmem:[#allocation230_spill] sm:$0xff] %v26865_v58  ;;  %29986 = vst [vmem:[#allocation231_spill] sm:$0xff] %v26871_v26  ;;  %v26877_v52 = vld [vmem:[%s28800_s7 + $0x55c] ss:$48 sps:$4 sm:$0xff]  }
 0xbc0   : > { %29987 = vst [vmem:[#allocation232_spill] sm:$0xff] %v26877_v52 }
 0xbc1   : > { %16489 = vmatpush1.bf16.msra.mxu0 %v26859_v2  ;;  %v26883_v2 = vld [vmem:[%s28800_s7 + $0x550] ss:$48 sps:$4 sm:$0xff]  }
 0xbc2   : > { %16561 = vmatpush1.bf16.msra.mxu1 %v26865_v58  ;;  %16491 = vmatprep.subr.bf16.mxu0 %v26871_v26  ;;  %29988 = vst [vmem:[#allocation233_spill] sm:$0xff] %v26883_v2  ;;  %v26889_v58 = vld [vmem:[%s28800_s7 + $0x558] ss:$48 sps:$4 sm:$0xff]   ;;  %v26895_v26 = vld [vmem:[%s28800_s7 + $0x5b4] ss:$48 sps:$4 sm:$0xff]  }
 0xbc3   : > { %16563 = vmatprep.subr.bf16.mxu1 %v26877_v52  ;;  %29989 = vst [vmem:[#allocation234_spill] sm:$0xff] %v26889_v58  ;;  %v26901_v52 = vld [vmem:[%s28800_s7 + $0x5bc] ss:$48 sps:$4 sm:$0xff]  }
 0xbc5   : > { %16493 = vmatpush1.bf16.msra.mxu0 %v26883_v2  ;;  %v26907_v2 = vld [vmem:[%s28800_s7 + $0x5b0] ss:$48 sps:$4 sm:$0xff]  }
 0xbc6   : > { %16565 = vmatpush1.bf16.msra.mxu1 %v26889_v58  ;;  %16495 = vmatprep.subr.bf16.mxu0 %v26895_v26  ;;  %v26913_v58 = vld [vmem:[%s28800_s7 + $0x5b8] ss:$48 sps:$4 sm:$0xff]  }
 0xbc7   : > { %16567 = vmatprep.subr.bf16.mxu1 %v26901_v52 }
 0xbc9   : > { %16497 = vmatpush1.bf16.msra.mxu0 %v26907_v2 }
 0xbca   : > { %16569 = vmatpush1.bf16.msra.mxu1 %v26913_v58  ;;  %16499 = vmatprep.subr.bf16.mxu0 %v25375_v49  ;;  %v29990_v49 = vld [vmem:[#allocation33_spill] sm:$0xff] }
 0xbcb   : > { %16571 = vmatprep.subr.bf16.mxu1 %v25381_v3  ;;  %v29991_v3 = vld [vmem:[#allocation34_spill] sm:$0xff] }
 0xbcc   : > { %9179 = vmatmul.mubr.f32.vlgmr.msra.gmra.mrb[30].mxu0 %v25930_v23 }
 0xbcd   : > { %9321 = vmatmul.mubr.f32.vlgmr.msra.gmra.mrb[24].mxu1 %v25930_v23  ;;  %16501 = vmatpush1.bf16.msra.mxu0 %v25389_v42  ;;  %v29992_v42 = vld [vmem:[#allocation35_spill] sm:$0xff] }
 0xbce   : > { %16573 = vmatpush1.bf16.msra.mxu1 %v25395_v9  ;;  %16503 = vmatprep.subr.bf16.mxu0 %v25401_v36  ;;  %v29993_v9 = vld [vmem:[#allocation36_spill] sm:$0xff]  ;;  %v29994_v36 = vld [vmem:[#allocation37_spill] sm:$0xff] }
 0xbcf   : > { %16575 = vmatprep.subr.bf16.mxu1 %v25407_v25  ;;  %9249 = vmatprep.mubr.f32.mxu0 %v29410_v53  ;;  %v29995_v25 = vld [vmem:[#allocation38_spill] sm:$0xff] }
 0xbd0   : > { %9391 = vmatprep.mubr.f32.mxu1 %v29410_v53 }
 0xbd1   : > { %16505 = vmatpush1.bf16.msra.mxu0 %v25415_v62  ;;  %v29996_v62 = vld [vmem:[#allocation39_spill] sm:$0xff] }
 0xbd2   : > { %16577 = vmatpush1.bf16.msra.mxu1 %v25421_v39  ;;  %16579 = vmatprep.subr.bf16.mxu0 %v25427_v1  ;;  %v29997_v39 = vld [vmem:[#allocation40_spill] sm:$0xff]  ;;  %v29998_v1 = vld [vmem:[#allocation41_spill] sm:$0xff] }
 0xbd3   : > { %16651 = vmatprep.subr.bf16.mxu1 %v25433_v5  ;;  %v29999_v5 = vld [vmem:[#allocation42_spill] sm:$0xff] }
 0xbd4   : > { %13618 = vmatmul.mubr.msk.f32.vlgmr.msra.gmra.mrb[30].mxu0 %vm1565_vm4, %v25932_v21 }
 0xbd5   : > { %13619 = vmatmul.mubr.msk.f32.vlgmr.msra.gmra.mrb[24].mxu1 %vm1565_vm4, %v25932_v21  ;;  %16581 = vmatpush1.bf16.msra.mxu0 %v25443_v19  ;;  %v30000_v19 = vld [vmem:[#allocation43_spill] sm:$0xff] }
 0xbd6   : > { %9462 = vmatprep.mubr.f32.mxu0 %v25928_v35  ;;  %16653 = vmatpush1.bf16.msra.mxu1 %v25450_v18  ;;  %v30001_v18 = vld [vmem:[#allocation44_spill] sm:$0xff] }
 0xbd7   : > { %9604 = vmatprep.mubr.f32.mxu1 %v25928_v35  ;;  %16583 = vmatprep.subr.bf16.mxu0 %v25457_v16  ;;  %v30002_v16 = vld [vmem:[#allocation45_spill] sm:$0xff] }
 0xbd8   : > { %16655 = vmatprep.subr.bf16.mxu1 %v25463_v34  ;;  %v30003_v34 = vld [vmem:[#allocation46_spill] sm:$0xff] }
 0xbd9   : > { %16585 = vmatpush1.bf16.msra.mxu0 %v25469_v44  ;;  %v30004_v44 = vld [vmem:[#allocation47_spill] sm:$0xff] }
 0xbda   : > { %16657 = vmatpush1.bf16.msra.mxu1 %v25475_v8  ;;  %16587 = vmatprep.subr.bf16.mxu0 %v25481_v40  ;;  %v30005_v8 = vld [vmem:[#allocation48_spill] sm:$0xff]  ;;  %v30006_v40 = vld [vmem:[#allocation49_spill] sm:$0xff] }
 0xbdb   : > { %16659 = vmatprep.subr.bf16.mxu1 %v25487_v12  ;;  %v30007_v12 = vld [vmem:[#allocation50_spill] sm:$0xff] }
 0xbdd   : > { %16589 = vmatpush1.bf16.msra.mxu0 %v25493_v45  ;;  %v30008_v45 = vld [vmem:[#allocation51_spill] sm:$0xff] }
 0xbde   : > { %16661 = vmatpush1.bf16.msra.mxu1 %v25499_v6  ;;  %16591 = vmatprep.subr.bf16.mxu0 %v25505_v14  ;;  %v30009_v6 = vld [vmem:[#allocation52_spill] sm:$0xff]  ;;  %v30010_v14 = vld [vmem:[#allocation53_spill] sm:$0xff] }
 0xbdf   : > { %16663 = vmatprep.subr.bf16.mxu1 %v25511_v11  ;;  %v30011_v11 = vld [vmem:[#allocation54_spill] sm:$0xff] }
 0xbe1   : > { %16593 = vmatpush1.bf16.msra.mxu0 %v25517_v51  ;;  %v30012_v51 = vld [vmem:[#allocation55_spill] sm:$0xff] }
 0xbe2   : > { %16665 = vmatpush1.bf16.msra.mxu1 %v25523_v15  ;;  %16595 = vmatprep.subr.bf16.mxu0 %v25529_v60  ;;  %v30013_v15 = vld [vmem:[#allocation56_spill] sm:$0xff]  ;;  %v30014_v60 = vld [vmem:[#allocation57_spill] sm:$0xff] }
 0xbe3   : > { %16667 = vmatprep.subr.bf16.mxu1 %v25535_v27  ;;  %v30015_v27 = vld [vmem:[#allocation58_spill] sm:$0xff] }
 0xbe5   : > { %16597 = vmatpush1.bf16.msra.mxu0 %v25541_v33  ;;  %v30016_v33 = vld [vmem:[#allocation59_spill] sm:$0xff] }
 0xbe6   : > { %16669 = vmatpush1.bf16.msra.mxu1 %v29990_v49  ;;  %16599 = vmatprep.subr.bf16.mxu0 %v29991_v3  ;;  %v30017_v49 = vld [vmem:[#allocation60_spill] sm:$0xff]  ;;  %v30018_v3 = vld [vmem:[#allocation61_spill] sm:$0xff] }
 0xbe7   : > { %16671 = vmatprep.subr.bf16.mxu1 %v29992_v42  ;;  %v30019_v42 = vld [vmem:[#allocation62_spill] sm:$0xff] }
 0xbe9   : > { %16601 = vmatpush1.bf16.msra.mxu0 %v29993_v9  ;;  %v30020_v9 = vld [vmem:[#allocation63_spill] sm:$0xff] }
 0xbea   : > { %16673 = vmatpush1.bf16.msra.mxu1 %v29994_v36  ;;  %16603 = vmatprep.subr.bf16.mxu0 %v29995_v25  ;;  %v30021_v36 = vld [vmem:[#allocation64_spill] sm:$0xff]  ;;  %v30022_v25 = vld [vmem:[#allocation65_spill] sm:$0xff] }
 0xbeb   : > { %16675 = vmatprep.subr.bf16.mxu1 %v29996_v62  ;;  %v30023_v62 = vld [vmem:[#allocation66_spill] sm:$0xff] }
 0xbed   : > { %16605 = vmatpush1.bf16.msra.mxu0 %v29997_v39  ;;  %v30024_v39 = vld [vmem:[#allocation67_spill] sm:$0xff] }
 0xbee   : > { %16677 = vmatpush1.bf16.msra.mxu1 %v29998_v1  ;;  %16607 = vmatprep.subr.bf16.mxu0 %v29999_v5  ;;  %v30025_v1 = vld [vmem:[#allocation68_spill] sm:$0xff]  ;;  %v30026_v5 = vld [vmem:[#allocation69_spill] sm:$0xff] }
 0xbef   : > { %16679 = vmatprep.subr.bf16.mxu1 %v30000_v19  ;;  %v30027_v19 = vld [vmem:[#allocation70_spill] sm:$0xff] }
 0xbf1   : > { %16609 = vmatpush1.bf16.msra.mxu0 %v30001_v18  ;;  %v30028_v18 = vld [vmem:[#allocation71_spill] sm:$0xff] }
 0xbf2   : > { %16681 = vmatpush1.bf16.msra.mxu1 %v30002_v16  ;;  %16611 = vmatprep.subr.bf16.mxu0 %v30003_v34  ;;  %v30029_v16 = vld [vmem:[#allocation72_spill] sm:$0xff]  ;;  %v30030_v34 = vld [vmem:[#allocation74_spill] sm:$0xff] }
 0xbf3   : > { %16683 = vmatprep.subr.bf16.mxu1 %v30004_v44  ;;  %v30031_v44 = vld [vmem:[#allocation73_spill] sm:$0xff] }
 0xbf5   : > { %16613 = vmatpush1.bf16.msra.mxu0 %v30005_v8  ;;  %v30032_v8 = vld [vmem:[#allocation75_spill] sm:$0xff] }
 0xbf6   : > { %16685 = vmatpush1.bf16.msra.mxu1 %v30006_v40  ;;  %16615 = vmatprep.subr.bf16.mxu0 %v30007_v12  ;;  %v30033_v40 = vld [vmem:[#allocation77_spill] sm:$0xff]  ;;  %v30034_v12 = vld [vmem:[#allocation79_spill] sm:$0xff] }
 0xbf7   : > { %16687 = vmatprep.subr.bf16.mxu1 %v30008_v45  ;;  %v30035_v45 = vld [vmem:[#allocation84_spill] sm:$0xff] }
 0xbf9   : > { %16617 = vmatpush1.bf16.msra.mxu0 %v30009_v6  ;;  %v30036_v6 = vld [vmem:[#allocation86_spill] sm:$0xff] }
 0xbfa   : > { %16689 = vmatpush1.bf16.msra.mxu1 %v30010_v14  ;;  %16619 = vmatprep.subr.bf16.mxu0 %v30011_v11  ;;  %v30037_v14 = vld [vmem:[#allocation85_spill] sm:$0xff]  ;;  %v30039_v11 = vld [vmem:[#allocation12_spill] sm:$0xff] }
 0xbfb   : > { %16691 = vmatprep.subr.bf16.mxu1 %v30012_v51  ;;  %v30040_v51 = vmov 0.0|0.0  }
 0xbfd   : > { %16621 = vmatpush1.bf16.msra.mxu0 %v30013_v15  ;;  %v30043_v15 = vld [vmem:[#allocation15_spill] sm:$0xff] }
 0xbfe   : > { %16693 = vmatpush1.bf16.msra.mxu1 %v30014_v60  ;;  %16623 = vmatprep.subr.bf16.mxu0 %v30015_v27  ;;  %v30045_v60 = vld [vmem:[#allocation17_spill] sm:$0xff]  ;;  %v30046_v27 = vld [vmem:[#allocation20_spill] sm:$0xff] }
 0xbff   : > { %16695 = vmatprep.subr.bf16.mxu1 %v30016_v33  ;;  %v30047_v33 = vld [vmem:[#allocation89_spill] sm:$0xff] }
 0xc01   : > { %16625 = vmatpush1.bf16.msra.mxu0 %v30017_v49  ;;  %v30048_v49 = vld [vmem:[#allocation18_spill] sm:$0xff] }
 0xc02   : > { %16697 = vmatpush1.bf16.msra.mxu1 %v30018_v3  ;;  %16627 = vmatprep.subr.bf16.mxu0 %v30019_v42  ;;  %v30049_v3 = vld [vmem:[#allocation19_spill] sm:$0xff]  ;;  %v30050_v42 = vld [vmem:[#allocation21_spill] sm:$0xff] }
 0xc03   : > { %16699 = vmatprep.subr.bf16.mxu1 %v30020_v9  ;;  %v30051_v9 = vld [vmem:[#allocation22_spill] sm:$0xff] }
 0xc05   : > { %16629 = vmatpush1.bf16.msra.mxu0 %v30021_v36  ;;  %v30052_v36 = vld [vmem:[#allocation23_spill] sm:$0xff] }
 0xc06   : > { %16701 = vmatpush1.bf16.msra.mxu1 %v30022_v25  ;;  %16631 = vmatprep.subr.bf16.mxu0 %v30023_v62  ;;  %v30053_v25 = vld [vmem:[#allocation24_spill] sm:$0xff]  ;;  %v30054_v62 = vld [vmem:[#allocation25_spill] sm:$0xff] }
 0xc07   : > { %16703 = vmatprep.subr.bf16.mxu1 %v30024_v39  ;;  %v30055_v39 = vld [vmem:[#allocation26_spill] sm:$0xff] }
 0xc09   : > { %16633 = vmatpush1.bf16.msra.mxu0 %v30025_v1  ;;  %v30056_v1 = vld [vmem:[#allocation27_spill] sm:$0xff] }
 0xc0a   : > { %16705 = vmatpush1.bf16.msra.mxu1 %v30026_v5  ;;  %16635 = vmatprep.subr.bf16.mxu0 %v30027_v19  ;;  %v30057_v5 = vld [vmem:[#allocation28_spill] sm:$0xff]  ;;  %v30058_v19 = vld [vmem:[#allocation29_spill] sm:$0xff] }
 0xc0b   : > { %16707 = vmatprep.subr.bf16.mxu1 %v30028_v18  ;;  %v30059_v18 = vld [vmem:[#allocation87_spill] sm:$0xff] }
 0xc0d   : > { %16637 = vmatpush1.bf16.msra.mxu0 %v30029_v16 }
 0xc0e   : > { %16709 = vmatpush1.bf16.msra.mxu1 %v30030_v34  ;;  %16639 = vmatprep.subr.bf16.mxu0 %v30031_v44 }
 0xc0f   : > { %16711 = vmatprep.subr.bf16.mxu1 %v30032_v8 }
 0xc11   : > { %16641 = vmatpush1.bf16.msra.mxu0 %v25805_v29  ;;  %v30038_v29 = vld [vmem:[#allocation88_spill] sm:$0xff] }
 0xc12   : > { %16713 = vmatpush1.bf16.msra.mxu1 %v30033_v40  ;;  %16643 = vmatprep.subr.bf16.mxu0 %v30034_v12  ;;  %v30060_v40 = vld [vmem:[#allocation76_spill] sm:$0xff] }
 0xc13   : > { %16715 = vmatprep.subr.bf16.mxu1 %v30035_v45 }
 0xc14   : > { %9463 = vmatmul.mubr.f32.vlgmr.msra.gmra.mrb[42].mxu0 %v25930_v23 }
 0xc15   : > { %9605 = vmatmul.mubr.f32.vlgmr.msra.gmra.mrb[36].mxu1 %v25930_v23  ;;  %16645 = vmatpush1.bf16.msra.mxu0 %v25831_v13  ;;  %v30041_v13 = vld [vmem:[#allocation13_spill] sm:$0xff] }
 0xc16   : > { %16717 = vmatpush1.bf16.msra.mxu1 %v30036_v6  ;;  %16647 = vmatprep.subr.bf16.mxu0 %v30037_v14 }
 0xc17   : > { %16719 = vmatprep.subr.bf16.mxu1 %v25849_v20  ;;  %9533 = vmatprep.mubr.f32.mxu0 %v29410_v53  ;;  %v30042_v20 = vld [vmem:[#allocation14_spill] sm:$0xff] }
 0xc18   : > { %9675 = vmatprep.mubr.f32.mxu1 %v29410_v53 }
 0xc19   : > { %16649 = vmatpush1.bf16.msra.mxu0 %v25857_v0  ;;  %v30044_v0 = vld [vmem:[#allocation16_spill] sm:$0xff] }
 0xc1a   : > { %16721 = vmatpush1.bf16.msra.mxu1 %v30038_v29  ;;  %16723 = vmatprep.subr.bf16.mxu0 %v30039_v11 }
 0xc1b   : > { %16754 = vmatprep.subr.bf16.mxu1 %v30040_v51 }
 0xc1c   : > { %13620 = vmatmul.mubr.msk.f32.vlgmr.msra.gmra.mrb[42].mxu0 %vm1565_vm4, %v25932_v21 }
 0xc1d   : > { %13621 = vmatmul.mubr.msk.f32.vlgmr.msra.gmra.mrb[36].mxu1 %vm1565_vm4, %v25932_v21  ;;  %16725 = vmatpush3.bf16.msra.mxu0 %v30041_v13 }
 0xc1e   : > { %16727 = vmatprep.subr.bf16.mxu0 %v30042_v20  ;;  %16756 = vmatpush3.bf16.msra.mxu1 %v30043_v15 }
 0xc1f   : > { %16757 = vmatprep.subr.bf16.mxu1 %v30040_v51  ;;  %14121 = vmatprep.mubr.msk.f32.mxu1 %vm21602_vm5, %v29410_v53 }
 0xc21   : > { %16729 = vmatpush3.bf16.msra.mxu0 %v30044_v0 }
 0xc22   : > { %16731 = vmatprep.subr.bf16.mxu0 %v30045_v60  ;;  %16759 = vmatpush3.bf16.msra.mxu1 %v30046_v27 }
 0xc23   : > { %16769 = vmatprep.subr.bf16.mxu1 %v30047_v33 }
 0xc25   : > { %16733 = vmatpush3.bf16.msra.mxu0 %v30048_v49 }
 0xc26   : > { %16735 = vmatprep.subr.bf16.mxu0 %v30049_v3 }
 0xc29   : > { %16737 = vmatpush3.bf16.msra.mxu0 %v30050_v42 }
 0xc2a   : > { %16739 = vmatprep.subr.bf16.mxu0 %v30051_v9 }
 0xc2d   : > { %16741 = vmatpush3.bf16.msra.mxu0 %v30052_v36 }
 0xc2e   : > { %16743 = vmatprep.subr.bf16.mxu0 %v30053_v25 }
 0xc31   : > { %16745 = vmatpush3.bf16.msra.mxu0 %v30054_v62 }
 0xc32   : > { %16747 = vmatprep.subr.bf16.mxu0 %v30055_v39 }
 0xc35   : > { %16749 = vmatpush3.bf16.msra.mxu0 %v30056_v1  ;;  %v30061_v1 = vld [vmem:[#allocation78_spill] sm:$0xff] }
 0xc36   : > { %16751 = vmatprep.subr.bf16.mxu0 %v30057_v5 }
 0xc39   : > { %16753 = vmatpush3.bf16.msra.mxu0 %v30058_v19 }
 0xc3a   : > { %16761 = vmatprep.subr.bf16.mxu0 %v30059_v18 }
 0xc5f   : > { %v8967_v16 = vpop.f32.mrb[18].mxu0 }
 0xc60   : > { %v9109_v34 = vpop.f32.mrb[12].mxu1  ;;  %v8969_v44 = vpop.f32.mrb[19].mxu0  ;;  %v17802_v45 = vadd.f32 %v8967_v16, %v29637_v4 }
 0xc61   : > { %v9111_v8 = vpop.f32.mrb[13].mxu1  ;;  %v17803_v6 = vadd.f32 %v8969_v44, %v29638_v17 }
 0xc62   : > { %v17815_v12 = vadd.f32 %v9111_v8, %v30060_v40  ;;  %v13622_v29 = vmul.f32 -1.442695, %v17802_v45  ;;  %v30062_v45 = vld [vmem:[#allocation80_spill] sm:$0xff] }
 0xc63   : > { %v13623_v33 = vmul.f32 -1.442695, %v17803_v6 }
 0xc64   : > { %v13625_v14 = vmul.f32 -1.442695, %v17815_v12 }
 0xc66   : > { %20748 = vpow2.f32 %v13625_v14 }
 0xc67   : > { %20750 = vpow2.f32 %v13622_v29 }
 0xc68   : > { %20752 = vpow2.f32 %v13623_v33 }
 0xc70   : > { %v20749_v21 = vpop.eup %20748 }
 0xc71   : > { %v20751_v23 = vpop.eup %20750  ;;  %v9721_v35 = vadd.f32 1.0, %v20749_v21 }
 0xc72   : > { %v20753_v18 = vpop.eup %20752  ;;  %v9703_v19 = vadd.f32 1.0, %v20751_v23 }
 0xc73   : > { %v9704_v40 = vadd.f32 1.0, %v20753_v18  ;;  %20754 = vrcp.f32 %v9721_v35 }
 0xc74   : > { %20756 = vrcp.f32 %v9703_v19 }
 0xc7d   : > { %v20755_v21 = vpop.eup %20754 }
 0xc7e   : > { %v20757_v23 = vpop.eup %20756 }
 0xca7   : > { %v9251_v5 = vpop.f32.mrb[30].mxu0 }
 0xca8   : > { %v17826_v39 = vadd.f32 %v9251_v5, %v30061_v1  ;;  %v9393_v62 = vpop.f32.mrb[24].mxu1  ;;  %v9253_v8 = vpop.f32.mrb[31].mxu0  ;;  %v9751_v5 = vmul.f32 %v20755_v21, %v25911_v57 }
 0xca9   : > { %v17838_v16 = vadd.f32 %v9393_v62, %v29640_v56  ;;  %v9395_v44 = vpop.f32.mrb[25].mxu1 }
 0xcaa   : > { %v13626_v12 = vmul.f32 -1.442695, %v17826_v39  ;;  %v17839_v6 = vadd.f32 %v9395_v44, %v30062_v45 }
 0xcab   : > { %20758 = vtanh.f32 %v17838_v16 }
 0xcac   : > { %20760 = vpow2.f32 %v13626_v12  ;;  %v17814_v12 = vadd.f32 %v9109_v34, %v24016_v28 }
 0xcad   : > { %20762 = vrcp.f32 %v9704_v40  ;;  %v17827_v40 = vadd.f32 %v9253_v8, %v24013_v32 }
 0xcae   : > { %20764 = vtanh.f32 %v17839_v6  ;;  %v13624_v45 = vmul.f32 -1.442695, %v17814_v12 }
 0xcaf   : > { %v13627_v6 = vmul.f32 -1.442695, %v17827_v40 }
 0xcb5   : > { %v20759_v14 = vpop.eup %20758 }
 0xcb6   : > { %v20761_v29 = vpop.eup %20760  ;;  %v9754_v33 = vmul.f32 %v20759_v14, %v20757_v23 }
 0xcb7   : > { %v20763_v18 = vpop.eup %20762  ;;  %v9722_v35 = vadd.f32 1.0, %v20761_v29 }
 0xcb8   : > { %v20765_v1 = vpop.eup %20764  ;;  %v27045_v62 = vadd.f32 %v9754_v33, %v9751_v5 }
 0xcb9   : > { %20766 = vrcp.f32 %v9722_v35  ;;  %v9755_v39 = vmul.f32 %v20765_v1, %v20763_v18 }
 0xcba   : > { %20768 = vpow2.f32 %v13627_v6 }
 0xcbb   : > { %20770 = vpow2.f32 %v13624_v45 }
 0xcc3   : > { %v20767_v19 = vpop.eup %20766 }
 0xcc4   : > { %v9752_v16 = vmul.f32 %v20767_v19, %v25914_v31  ;;  %v20769_v57 = vpop.eup %20768 }
 0xcc5   : > { %v20771_v21 = vpop.eup %20770  ;;  %v9723_v23 = vadd.f32 1.0, %v20769_v57 }
 0xcc6   : > { %v27048_v44 = vadd.f32 %v9755_v39, %v9752_v16  ;;  %v9705_v14 = vadd.f32 1.0, %v20771_v21 }
 0xcc7   : > { %20772 = vrcp.f32 %v9723_v23 }
 0xcc8   : > { %20774 = vrcp.f32 %v9705_v14 }
 0xcd1   : > { %v20773_v19 = vpop.eup %20772 }
 0xcd2   : > { %v20775_v16 = vpop.eup %20774  ;;  %v9753_v12 = vmul.f32 %v20773_v19, %v25924_v47  ;;  %v30066_v19 = vld [vmem:[#allocation93_spill] sm:$0xff] }
 0xcef   : > { %v9535_v29 = vpop.f32.mrb[42].mxu0 }
 0xcf0   : > { %v17850_v1 = vadd.f32 %v9535_v29, %v24024_v10  ;;  %v9677_v5 = vpop.f32.mrb[36].mxu1  ;;  %v9537_v31 = vpop.f32.mrb[43].mxu0 }
 0xcf1   : > { %v17862_v33 = vadd.f32 %v9677_v5, %v24027_v54  ;;  %v17851_v8 = vadd.f32 %v9537_v31, %v24030_v37  ;;  %v9679_v34 = vpop.f32.mrb[37].mxu1 }
 0xcf2   : > { %20776 = vtanh.f32 %v17850_v1  ;;  %v17863_v18 = vadd.f32 %v9679_v34, %v24034_v61 }
 0xcf3   : > { %v13629_v45 = vmul.f32 -1.442695, %v17862_v33  ;;  %v13628_v35 = vmul.f32 -1.442695, %v17851_v8 }
 0xcf4   : > { %v13630_v39 = vmul.f32 -1.442695, %v17863_v18 }
 0xcf5   : > { %20778 = vpow2.f32 %v13629_v45 }
 0xcf6   : > { %20780 = vpow2.f32 %v13628_v35 }
 0xcf7   : > { %20782 = vpow2.f32 %v13630_v39 }
 0xcf8   : > { %20784 = vtanh.f32 %v27045_v62 }
 0xcf9   : > { %20786 = vtanh.f32 %v27048_v44 }
 0xcfc   : > { %v20777_v40 = vpop.eup %20776 }
 0xcfd   : > { %v9756_v6 = vmul.f32 %v20777_v40, %v20775_v16 }
 0xcff   : > { %v20779_v57 = vpop.eup %20778  ;;  %v27058_v21 = vadd.f32 %v9756_v6, %v9753_v12 }
 0xd00   : > { %v20781_v23 = vpop.eup %20780  ;;  %v9743_v14 = vadd.f32 1.0, %v20779_v57  ;;  %v30075_v57 = vld [vmem:[#allocation102_spill] sm:$0xff] }
 0xd01   : > { %v20783_v29 = vpop.eup %20782  ;;  %20788 = vtanh.f32 %v27058_v21  ;;  %v9742_v1 = vadd.f32 1.0, %v20781_v23  ;;  %v30076_v23 = vld [vmem:[#allocation103_spill] sm:$0xff] }
 0xd02   : > { %20790 = vrcp.f32 %v9743_v14  ;;  %v9744_v5 = vadd.f32 1.0, %v20783_v29  ;;  %v20785_v31 = vpop.eup %20784  ;;  %v30077_v14 = vld [vmem:[#allocation104_spill] sm:$0xff]  ;;  %v30078_v29 = vld [vmem:[#allocation105_spill] sm:$0xff] }
 0xd03   : > { %20792 = vrcp.f32 %v9742_v1  ;;  %v20787_v47 = vpop.eup %20786  ;;  %v30079_v1 = vld [vmem:[#allocation106_spill] sm:$0xff] }
 0xd04   : > { %20794 = vrcp.f32 %v9744_v5  ;;  %v30080_v5 = vld [vmem:[#allocation107_spill] sm:$0xff] }
 0xd0b   : > { %v20789_v33 = vpop.eup %20788 }
 0xd0c   : > { %v20791_v8 = vpop.eup %20790 }
 0xd0d   : > { %v20793_v34 = vpop.eup %20792  ;;  %v27062_v18 = vmul.f32 %v20791_v8, %v20787_v47  ;;  %v30083_v47 = vld [vmem:[#allocation110_spill] sm:$0xff]  ;;  %v30085_v8 = vld [vmem:[#allocation112_spill] sm:$0xff] }
 0xd0e   : > { %v20795_v45 = vpop.eup %20794  ;;  %v27064_v35 = vmul.f32 %v20793_v34, %v20785_v31  ;;  %v30082_v31 = vld [vmem:[#allocation109_spill] sm:$0xff] }
 0xd0f   : > { %30063 = vst [vmem:[#allocation33_spill] sm:$0xff] %v27062_v18  ;;  %v27066_v39 = vmul.f32 %v20795_v45, %v20789_v33  ;;  %9833 = vmatprep.mubr.f32.mxu0 %v27062_v18  ;;  %v30084_v33 = vld [vmem:[#allocation111_spill] sm:$0xff]  ;;  %v30086_v34 = vld [vmem:[#allocation113_spill] sm:$0xff]  ;;  %v30087_v45 = vld [vmem:[#allocation114_spill] sm:$0xff] }
 0xd10   : > { %30064 = vst [vmem:[#allocation34_spill] sm:$0xff] %v27064_v35  ;;  %9834 = vmatmul.mubr.f32.vlgmr.msra.gmra.mrb[56].mxu0 %v27064_v35 }
 0xd11   : > { %30065 = vst [vmem:[#allocation35_spill] sm:$0xff] %v27066_v39  ;;  %14122 = vmatmul.mubr.msk.f32.vlgmr.msra.gmra.mrb[50].mxu1 %vm1565_vm4, %v27066_v39  ;;  %16763 = vmatpush1.bf16.msra.mxu0 %v25947_v41 }
 0xd12   : > { %16771 = vmatpush1.bf16.msra.mxu1 %v25941_v22  ;;  %16765 = vmatprep.subr.bf16.mxu0 %v25959_v43 }
 0xd13   : > { %16773 = vmatprep.subr.bf16.mxu1 %v25953_v46  ;;  %9990 = vmatprep.mubr.f32.mxu0 %v29410_v53 }
 0xd14   : > { %10061 = vmatprep.mubr.f32.mxu1 %v29410_v53 }
 0xd15   : > { %16767 = vmatpush1.bf16.msra.mxu0 %v25973_v55  ;;  %v30068_v55 = vld [vmem:[#allocation95_spill] sm:$0xff] }
 0xd16   : > { %16775 = vmatpush1.bf16.msra.mxu1 %v25967_v30  ;;  %16777 = vmatprep.subr.bf16.mxu0 %v25985_v48  ;;  %v30067_v30 = vld [vmem:[#allocation94_spill] sm:$0xff]  ;;  %v30069_v48 = vld [vmem:[#allocation96_spill] sm:$0xff] }
 0xd17   : > { %16785 = vmatprep.subr.bf16.mxu1 %v30066_v19  ;;  %v30088_v19 = vld [vmem:[#allocation115_spill] sm:$0xff] }
 0xde3   : > { %v13928_v16 = vpop.f32.mrb[56].mxu0 }
 0xde4   : > { %v9905_v41 = vpop.f32.mrb[50].mxu1  ;;  %v13929_v40 = vpop.f32.mrb[57].mxu0 }
 0xde5   : > { %v13930_v22 = vadd.f32 %v13929_v40, %v13928_v16  ;;  %v14123_v12 = vpop.f32.mrb[51].mxu1  ;;  %v30089_v16 = vld [vmem:[#allocation116_spill] sm:$0xff]  ;;  %v30091_v40 = vld [vmem:[#allocation118_spill] sm:$0xff] }
 0xde6   : > { %v30093_v12 = vld [vmem:[#allocation120_spill] sm:$0xff] }
 0xde7   : > { %v9836_v43 = vadd.f32 %v25991_v63, %v13930_v22  ;;  %v30070_v63 = vld [vmem:[#allocation97_spill] sm:$0xff]  ;;  %v30092_v22 = vld [vmem:[#allocation119_spill] sm:$0xff] }
 0xde9   : > { %v9906_v46 = vadd.f32 %v9905_v41, %v9836_v43  ;;  %v30090_v41 = vld [vmem:[#allocation117_spill] sm:$0xff] }
 0xdea   : > { %v30094_v43 = vld [vmem:[#allocation121_spill] sm:$0xff] }
 0xdeb   : > { %v9909_v6 = vmax.f32 %v9906_v46, 0.0  ;;  %v30095_v46 = vld [vmem:[#allocation122_spill] sm:$0xff] }
 0xded   : > { %13632 = vmatmul.mubr.msk.f32.vlgmr.msra.gmra.mrb[20].mxu0 %vm1565_vm4, %v9909_v6  ;;  %13633 = vmatmul.mubr.msk.f32.vlgmr.msra.gmra.mrb[14].mxu1 %vm1565_vm4, %v9909_v6 }
 0xdee   : > { %16779 = vmatpush1.bf16.msra.mxu0 %v25999_v24  ;;  %16787 = vmatpush1.bf16.msra.mxu1 %v26005_v50  ;;  %v30071_v24 = vld [vmem:[#allocation98_spill] sm:$0xff]  ;;  %v30072_v50 = vld [vmem:[#allocation99_spill] sm:$0xff] }
 0xdef   : > { %16781 = vmatprep.subr.bf16.mxu0 %v26011_v59  ;;  %16789 = vmatprep.subr.bf16.mxu1 %v26017_v7  ;;  %v30073_v59 = vld [vmem:[#allocation100_spill] sm:$0xff]  ;;  %v30074_v7 = vld [vmem:[#allocation101_spill] sm:$0xff] }
 0xdf0   : > { %10132 = vmatprep.mubr.f32.mxu0 %v29410_v53  ;;  %10203 = vmatprep.mubr.f32.mxu1 %v29410_v53 }
 0xdf2   : > { %16783 = vmatpush1.bf16.msra.mxu0 %v30067_v30  ;;  %16791 = vmatpush1.bf16.msra.mxu1 %v30068_v55  ;;  %v30097_v30 = vld [vmem:[#allocation124_spill] sm:$0xff]  ;;  %v30098_v55 = vld [vmem:[#allocation125_spill] sm:$0xff] }
 0xdf3   : > { %16793 = vmatprep.subr.bf16.mxu0 %v30069_v48  ;;  %16801 = vmatprep.subr.bf16.mxu1 %v30070_v63  ;;  %v30099_v48 = vld [vmem:[#allocation126_spill] sm:$0xff]  ;;  %v30100_v63 = vld [vmem:[#allocation127_spill] sm:$0xff] }
 0xdf5   : > { %13634 = vmatmul.mubr.msk.f32.vlgmr.msra.gmra.mrb[32].mxu0 %vm1565_vm4, %v9909_v6  ;;  %13635 = vmatmul.mubr.msk.f32.vlgmr.msra.gmra.mrb[26].mxu1 %vm1565_vm4, %v9909_v6 }
 0xdf6   : > { %16795 = vmatpush1.bf16.msra.mxu0 %v30071_v24  ;;  %16803 = vmatpush1.bf16.msra.mxu1 %v30072_v50  ;;  %v30101_v24 = vld [vmem:[#allocation128_spill] sm:$0xff]  ;;  %v30102_v50 = vld [vmem:[#allocation129_spill] sm:$0xff] }
 0xdf7   : > { %16797 = vmatprep.subr.bf16.mxu0 %v30073_v59  ;;  %16805 = vmatprep.subr.bf16.mxu1 %v30074_v7  ;;  %v30103_v59 = vld [vmem:[#allocation130_spill] sm:$0xff]  ;;  %v30104_v7 = vld [vmem:[#allocation131_spill] sm:$0xff] }
 0xdf8   : > { %10274 = vmatprep.mubr.f32.mxu0 %v29410_v53  ;;  %10345 = vmatprep.mubr.f32.mxu1 %v29410_v53 }
 0xdfa   : > { %16799 = vmatpush1.bf16.msra.mxu0 %v26077_v38  ;;  %16807 = vmatpush1.bf16.msra.mxu1 %v30075_v57  ;;  %v30081_v38 = vld [vmem:[#allocation108_spill] sm:$0xff] }
 0xdfb   : > { %16809 = vmatprep.subr.bf16.mxu0 %v30076_v23  ;;  %16881 = vmatprep.subr.bf16.mxu1 %v30077_v14  ;;  %v30105_v57 = vld [vmem:[#allocation132_spill] sm:$0xff]  ;;  %v30106_v23 = vld [vmem:[#allocation133_spill] sm:$0xff]  ;;  %v30107_v14 = vld [vmem:[#allocation134_spill] sm:$0xff] }
 0xdfd   : > { %13636 = vmatmul.mubr.msk.f32.vlgmr.msra.gmra.mrb[44].mxu0 %vm1565_vm4, %v9909_v6  ;;  %13637 = vmatmul.mubr.msk.f32.vlgmr.msra.gmra.mrb[38].mxu1 %vm1565_vm4, %v9909_v6  ;;  %v30096_v6 = vld [vmem:[#allocation123_spill] sm:$0xff] }
 0xdfe   : > { %16811 = vmatpush1.bf16.msra.mxu0 %v30078_v29  ;;  %10428 = vmatprep.mubr.f32.mxu0 %v27062_v18  ;;  %v30108_v29 = vld [vmem:[#allocation135_spill] sm:$0xff] }
 0xdff   : > { %16883 = vmatpush1.bf16.msra.mxu1 %v30079_v1  ;;  %10570 = vmatprep.mubr.f32.mxu1 %v27062_v18  ;;  %v30109_v1 = vld [vmem:[#allocation136_spill] sm:$0xff] }
 0xe00   : > { %16813 = vmatprep.subr.bf16.mxu0 %v30080_v5  ;;  %16885 = vmatprep.subr.bf16.mxu1 %v30081_v38  ;;  %v30110_v5 = vld [vmem:[#allocation137_spill] sm:$0xff]  ;;  %v30111_v38 = vld [vmem:[#allocation138_spill] sm:$0xff] }
 0xe02   : > { %16815 = vmatpush1.bf16.msra.mxu0 %v30082_v31  ;;  %v30112_v31 = vld [vmem:[#allocation139_spill] sm:$0xff] }
 0xe03   : > { %16887 = vmatpush1.bf16.msra.mxu1 %v30083_v47  ;;  %16817 = vmatprep.subr.bf16.mxu0 %v30084_v33  ;;  %v30113_v47 = vld [vmem:[#allocation140_spill] sm:$0xff]  ;;  %v30114_v33 = vld [vmem:[#allocation141_spill] sm:$0xff] }
 0xe04   : > { %16889 = vmatprep.subr.bf16.mxu1 %v30085_v8  ;;  %v30115_v8 = vld [vmem:[#allocation142_spill] sm:$0xff] }
 0xe06   : > { %16819 = vmatpush1.bf16.msra.mxu0 %v30086_v34  ;;  %v30116_v34 = vld [vmem:[#allocation143_spill] sm:$0xff] }
 0xe07   : > { %16891 = vmatpush1.bf16.msra.mxu1 %v30087_v45  ;;  %16821 = vmatprep.subr.bf16.mxu0 %v30088_v19  ;;  %v30117_v45 = vld [vmem:[#allocation144_spill] sm:$0xff]  ;;  %v30118_v19 = vld [vmem:[#allocation145_spill] sm:$0xff] }
 0xe08   : > { %16893 = vmatprep.subr.bf16.mxu1 %v30089_v16  ;;  %v30119_v16 = vld [vmem:[#allocation146_spill] sm:$0xff] }
 0xe0a   : > { %16823 = vmatpush1.bf16.msra.mxu0 %v30090_v41  ;;  %v30120_v41 = vld [vmem:[#allocation147_spill] sm:$0xff] }
 0xe0b   : > { %16895 = vmatpush1.bf16.msra.mxu1 %v30091_v40  ;;  %16825 = vmatprep.subr.bf16.mxu0 %v30092_v22  ;;  %v30121_v40 = vld [vmem:[#allocation148_spill] sm:$0xff]  ;;  %v30122_v22 = vld [vmem:[#allocation149_spill] sm:$0xff] }
 0xe0c   : > { %16897 = vmatprep.subr.bf16.mxu1 %v30093_v12  ;;  %v30123_v12 = vld [vmem:[#allocation150_spill] sm:$0xff] }
 0xe0e   : > { %16827 = vmatpush1.bf16.msra.mxu0 %v30094_v43  ;;  %v30124_v43 = vld [vmem:[#allocation151_spill] sm:$0xff] }
 0xe0f   : > { %16899 = vmatpush1.bf16.msra.mxu1 %v30095_v46  ;;  %16829 = vmatprep.subr.bf16.mxu0 %v30096_v6  ;;  %v30125_v46 = vld [vmem:[#allocation152_spill] sm:$0xff]  ;;  %v30126_v6 = vld [vmem:[#allocation153_spill] sm:$0xff] }
 0xe10   : > { %16901 = vmatprep.subr.bf16.mxu1 %v30097_v30  ;;  %v30127_v30 = vld [vmem:[#allocation154_spill] sm:$0xff] }
 0xe12   : > { %16831 = vmatpush1.bf16.msra.mxu0 %v30098_v55  ;;  %v30128_v55 = vld [vmem:[#allocation155_spill] sm:$0xff] }
 0xe13   : > { %16903 = vmatpush1.bf16.msra.mxu1 %v30099_v48  ;;  %16833 = vmatprep.subr.bf16.mxu0 %v30100_v63  ;;  %v30129_v48 = vld [vmem:[#allocation156_spill] sm:$0xff]  ;;  %v30130_v63 = vld [vmem:[#allocation157_spill] sm:$0xff] }
 0xe14   : > { %16905 = vmatprep.subr.bf16.mxu1 %v30101_v24  ;;  %v30131_v24 = vld [vmem:[#allocation158_spill] sm:$0xff] }
 0xe16   : > { %16835 = vmatpush1.bf16.msra.mxu0 %v30102_v50  ;;  %v30132_v50 = vld [vmem:[#allocation159_spill] sm:$0xff] }
 0xe17   : > { %16907 = vmatpush1.bf16.msra.mxu1 %v30103_v59  ;;  %16837 = vmatprep.subr.bf16.mxu0 %v30104_v7  ;;  %v30133_v59 = vld [vmem:[#allocation160_spill] sm:$0xff]  ;;  %v30134_v7 = vld [vmem:[#allocation161_spill] sm:$0xff] }
 0xe18   : > { %16909 = vmatprep.subr.bf16.mxu1 %v30105_v57  ;;  %v30135_v57 = vld [vmem:[#allocation162_spill] sm:$0xff] }
 0xe1a   : > { %16839 = vmatpush1.bf16.msra.mxu0 %v30106_v23  ;;  %v30136_v23 = vld [vmem:[#allocation163_spill] sm:$0xff] }
 0xe1b   : > { %16911 = vmatpush1.bf16.msra.mxu1 %v30107_v14  ;;  %16841 = vmatprep.subr.bf16.mxu0 %v30108_v29  ;;  %v30137_v14 = vld [vmem:[#allocation164_spill] sm:$0xff]  ;;  %v30138_v29 = vld [vmem:[#allocation165_spill] sm:$0xff] }
 0xe1c   : > { %16913 = vmatprep.subr.bf16.mxu1 %v30109_v1  ;;  %v30139_v1 = vld [vmem:[#allocation166_spill] sm:$0xff] }
 0xe1e   : > { %16843 = vmatpush1.bf16.msra.mxu0 %v30110_v5  ;;  %v30140_v5 = vld [vmem:[#allocation167_spill] sm:$0xff] }
 0xe1f   : > { %16915 = vmatpush1.bf16.msra.mxu1 %v30111_v38  ;;  %16845 = vmatprep.subr.bf16.mxu0 %v30112_v31  ;;  %v30141_v38 = vld [vmem:[#allocation168_spill] sm:$0xff]  ;;  %v30142_v31 = vld [vmem:[#allocation169_spill] sm:$0xff] }
 0xe20   : > { %16917 = vmatprep.subr.bf16.mxu1 %v30113_v47  ;;  %v30143_v47 = vld [vmem:[#allocation170_spill] sm:$0xff] }
 0xe22   : > { %16847 = vmatpush1.bf16.msra.mxu0 %v30114_v33  ;;  %v30144_v33 = vld [vmem:[#allocation171_spill] sm:$0xff] }
 0xe23   : > { %16919 = vmatpush1.bf16.msra.mxu1 %v30115_v8  ;;  %16849 = vmatprep.subr.bf16.mxu0 %v30116_v34  ;;  %v30145_v8 = vld [vmem:[#allocation172_spill] sm:$0xff]  ;;  %v30146_v34 = vld [vmem:[#allocation173_spill] sm:$0xff] }
 0xe24   : > { %16921 = vmatprep.subr.bf16.mxu1 %v30117_v45  ;;  %v30147_v45 = vld [vmem:[#allocation174_spill] sm:$0xff] }
 0xe26   : > { %16851 = vmatpush1.bf16.msra.mxu0 %v30118_v19  ;;  %v30148_v19 = vld [vmem:[#allocation175_spill] sm:$0xff] }
 0xe27   : > { %16923 = vmatpush1.bf16.msra.mxu1 %v30119_v16  ;;  %16853 = vmatprep.subr.bf16.mxu0 %v30120_v41  ;;  %v30149_v16 = vld [vmem:[#allocation176_spill] sm:$0xff]  ;;  %v30150_v41 = vld [vmem:[#allocation177_spill] sm:$0xff] }
 0xe28   : > { %16925 = vmatprep.subr.bf16.mxu1 %v30121_v40  ;;  %v30151_v40 = vld [vmem:[#allocation178_spill] sm:$0xff] }
 0xe2a   : > { %16855 = vmatpush1.bf16.msra.mxu0 %v30122_v22  ;;  %v30152_v22 = vld [vmem:[#allocation179_spill] sm:$0xff] }
 0xe2b   : > { %16927 = vmatpush1.bf16.msra.mxu1 %v30123_v12  ;;  %16857 = vmatprep.subr.bf16.mxu0 %v30124_v43  ;;  %v30153_v12 = vld [vmem:[#allocation180_spill] sm:$0xff]  ;;  %v30154_v43 = vld [vmem:[#allocation181_spill] sm:$0xff] }
 0xe2c   : > { %16929 = vmatprep.subr.bf16.mxu1 %v30125_v46  ;;  %v30155_v46 = vld [vmem:[#allocation182_spill] sm:$0xff] }
 0xe2e   : > { %16859 = vmatpush1.bf16.msra.mxu0 %v30126_v6  ;;  %v30156_v6 = vld [vmem:[#allocation183_spill] sm:$0xff] }
 0xe2f   : > { %16931 = vmatpush1.bf16.msra.mxu1 %v30127_v30  ;;  %16861 = vmatprep.subr.bf16.mxu0 %v30128_v55  ;;  %v30157_v30 = vld [vmem:[#allocation184_spill] sm:$0xff]  ;;  %v30158_v55 = vld [vmem:[#allocation185_spill] sm:$0xff] }
 0xe30   : > { %16933 = vmatprep.subr.bf16.mxu1 %v30129_v48  ;;  %v30159_v48 = vld [vmem:[#allocation186_spill] sm:$0xff] }
 0xe32   : > { %16863 = vmatpush1.bf16.msra.mxu0 %v30130_v63  ;;  %v30160_v63 = vld [vmem:[#allocation187_spill] sm:$0xff] }
 0xe33   : > { %16935 = vmatpush1.bf16.msra.mxu1 %v30131_v24  ;;  %16865 = vmatprep.subr.bf16.mxu0 %v30132_v50  ;;  %v30161_v24 = vld [vmem:[#allocation188_spill] sm:$0xff]  ;;  %v30162_v50 = vld [vmem:[#allocation189_spill] sm:$0xff] }
 0xe34   : > { %16937 = vmatprep.subr.bf16.mxu1 %v30133_v59  ;;  %v30163_v59 = vld [vmem:[#allocation190_spill] sm:$0xff] }
 0xe36   : > { %16867 = vmatpush1.bf16.msra.mxu0 %v30134_v7  ;;  %v30164_v7 = vld [vmem:[#allocation191_spill] sm:$0xff] }
 0xe37   : > { %16939 = vmatpush1.bf16.msra.mxu1 %v30135_v57  ;;  %16869 = vmatprep.subr.bf16.mxu0 %v30136_v23  ;;  %v30165_v57 = vld [vmem:[#allocation192_spill] sm:$0xff]  ;;  %v30166_v23 = vld [vmem:[#allocation193_spill] sm:$0xff] }
 0xe38   : > { %16941 = vmatprep.subr.bf16.mxu1 %v30137_v14  ;;  %v30167_v14 = vld [vmem:[#allocation194_spill] sm:$0xff] }
 0xe3a   : > { %16871 = vmatpush1.bf16.msra.mxu0 %v30138_v29  ;;  %v30168_v29 = vld [vmem:[#allocation195_spill] sm:$0xff] }
 0xe3b   : > { %16943 = vmatpush1.bf16.msra.mxu1 %v30139_v1  ;;  %16873 = vmatprep.subr.bf16.mxu0 %v30140_v5  ;;  %v30169_v1 = vld [vmem:[#allocation196_spill] sm:$0xff]  ;;  %v30170_v5 = vld [vmem:[#allocation197_spill] sm:$0xff] }
 0xe3c   : > { %16945 = vmatprep.subr.bf16.mxu1 %v30141_v38  ;;  %v30171_v38 = vld [vmem:[#allocation198_spill] sm:$0xff] }
 0xe3d   : > { %10429 = vmatmul.mubr.f32.vlgmr.msra.gmra.mrb[20].mxu0 %v27064_v35 }
 0xe3e   : > { %10571 = vmatmul.mubr.f32.vlgmr.msra.gmra.mrb[14].mxu1 %v27064_v35  ;;  %16875 = vmatpush1.bf16.msra.mxu0 %v30142_v31  ;;  %v30172_v31 = vld [vmem:[#allocation199_spill] sm:$0xff] }
 0xe3f   : > { %16947 = vmatpush1.bf16.msra.mxu1 %v30143_v47  ;;  %16877 = vmatprep.subr.bf16.mxu0 %v30144_v33  ;;  %v30173_v47 = vld [vmem:[#allocation200_spill] sm:$0xff]  ;;  %v30174_v33 = vld [vmem:[#allocation201_spill] sm:$0xff] }
 0xe40   : > { %16949 = vmatprep.subr.bf16.mxu1 %v30145_v8  ;;  %10499 = vmatprep.mubr.f32.mxu0 %v29410_v53  ;;  %v30175_v8 = vld [vmem:[#allocation202_spill] sm:$0xff] }
 0xe41   : > { %10641 = vmatprep.mubr.f32.mxu1 %v29410_v53 }
 0xe42   : > { %16879 = vmatpush1.bf16.msra.mxu0 %v30146_v34  ;;  %v30176_v34 = vld [vmem:[#allocation203_spill] sm:$0xff] }
 0xe43   : > { %16951 = vmatpush1.bf16.msra.mxu1 %v30147_v45  ;;  %16953 = vmatprep.subr.bf16.mxu0 %v30148_v19  ;;  %v30177_v45 = vld [vmem:[#allocation204_spill] sm:$0xff]  ;;  %v30178_v19 = vld [vmem:[#allocation205_spill] sm:$0xff] }
 0xe44   : > { %17025 = vmatprep.subr.bf16.mxu1 %v30149_v16  ;;  %v30179_v16 = vld [vmem:[#allocation206_spill] sm:$0xff] }
 0xe45   : > { %13638 = vmatmul.mubr.msk.f32.vlgmr.msra.gmra.mrb[20].mxu0 %vm1565_vm4, %v27066_v39 }
 0xe46   : > { %13639 = vmatmul.mubr.msk.f32.vlgmr.msra.gmra.mrb[14].mxu1 %vm1565_vm4, %v27066_v39  ;;  %16955 = vmatpush1.bf16.msra.mxu0 %v30150_v41  ;;  %v30180_v41 = vld [vmem:[#allocation207_spill] sm:$0xff] }
 0xe47   : > { %10712 = vmatprep.mubr.f32.mxu0 %v27062_v18  ;;  %17027 = vmatpush1.bf16.msra.mxu1 %v30151_v40  ;;  %v30181_v40 = vld [vmem:[#allocation208_spill] sm:$0xff] }
 0xe48   : > { %10854 = vmatprep.mubr.f32.mxu1 %v27062_v18  ;;  %16957 = vmatprep.subr.bf16.mxu0 %v30152_v22  ;;  %v30182_v22 = vld [vmem:[#allocation209_spill] sm:$0xff] }
 0xe49   : > { %17029 = vmatprep.subr.bf16.mxu1 %v30153_v12  ;;  %v30183_v12 = vld [vmem:[#allocation210_spill] sm:$0xff] }
 0xe4a   : > { %16959 = vmatpush1.bf16.msra.mxu0 %v30154_v43  ;;  %v30184_v43 = vld [vmem:[#allocation211_spill] sm:$0xff] }
 0xe4b   : > { %17031 = vmatpush1.bf16.msra.mxu1 %v30155_v46  ;;  %16961 = vmatprep.subr.bf16.mxu0 %v30156_v6  ;;  %v30185_v46 = vld [vmem:[#allocation212_spill] sm:$0xff]  ;;  %v30186_v6 = vld [vmem:[#allocation213_spill] sm:$0xff] }
 0xe4c   : > { %17033 = vmatprep.subr.bf16.mxu1 %v30157_v30  ;;  %v30187_v30 = vld [vmem:[#allocation214_spill] sm:$0xff] }
 0xe4e   : > { %16963 = vmatpush1.bf16.msra.mxu0 %v30158_v55  ;;  %v30188_v55 = vld [vmem:[#allocation215_spill] sm:$0xff] }
 0xe4f   : > { %17035 = vmatpush1.bf16.msra.mxu1 %v30159_v48  ;;  %16965 = vmatprep.subr.bf16.mxu0 %v30160_v63  ;;  %v30189_v48 = vld [vmem:[#allocation216_spill] sm:$0xff]  ;;  %v30190_v63 = vld [vmem:[#allocation217_spill] sm:$0xff] }
 0xe50   : > { %17037 = vmatprep.subr.bf16.mxu1 %v30161_v24  ;;  %v30191_v24 = vld [vmem:[#allocation218_spill] sm:$0xff] }
 0xe52   : > { %16967 = vmatpush1.bf16.msra.mxu0 %v30162_v50  ;;  %v30192_v50 = vld [vmem:[#allocation219_spill] sm:$0xff] }
 0xe53   : > { %17039 = vmatpush1.bf16.msra.mxu1 %v30163_v59  ;;  %16969 = vmatprep.subr.bf16.mxu0 %v30164_v7  ;;  %v30193_v59 = vld [vmem:[#allocation220_spill] sm:$0xff]  ;;  %v30194_v7 = vld [vmem:[#allocation221_spill] sm:$0xff] }
 0xe54   : > { %17041 = vmatprep.subr.bf16.mxu1 %v30165_v57  ;;  %v30195_v57 = vld [vmem:[#allocation222_spill] sm:$0xff] }
 0xe56   : > { %16971 = vmatpush1.bf16.msra.mxu0 %v30166_v23  ;;  %v30196_v23 = vld [vmem:[#allocation223_spill] sm:$0xff] }
 0xe57   : > { %17043 = vmatpush1.bf16.msra.mxu1 %v30167_v14  ;;  %16973 = vmatprep.subr.bf16.mxu0 %v30168_v29  ;;  %v30197_v14 = vld [vmem:[#allocation224_spill] sm:$0xff]  ;;  %v30198_v29 = vld [vmem:[#allocation225_spill] sm:$0xff] }
 0xe58   : > { %17045 = vmatprep.subr.bf16.mxu1 %v30169_v1  ;;  %v30199_v1 = vld [vmem:[#allocation226_spill] sm:$0xff] }
 0xe5a   : > { %16975 = vmatpush1.bf16.msra.mxu0 %v30170_v5  ;;  %v30200_v5 = vld [vmem:[#allocation227_spill] sm:$0xff] }
 0xe5b   : > { %17047 = vmatpush1.bf16.msra.mxu1 %v30171_v38  ;;  %16977 = vmatprep.subr.bf16.mxu0 %v30172_v31  ;;  %v30201_v38 = vld [vmem:[#allocation228_spill] sm:$0xff]  ;;  %v30202_v31 = vld [vmem:[#allocation229_spill] sm:$0xff] }
 0xe5c   : > { %17049 = vmatprep.subr.bf16.mxu1 %v30173_v47  ;;  %v30203_v47 = vld [vmem:[#allocation230_spill] sm:$0xff] }
 0xe5e   : > { %16979 = vmatpush1.bf16.msra.mxu0 %v30174_v33  ;;  %v30204_v33 = vld [vmem:[#allocation231_spill] sm:$0xff] }
 0xe5f   : > { %17051 = vmatpush1.bf16.msra.mxu1 %v30175_v8  ;;  %16981 = vmatprep.subr.bf16.mxu0 %v30176_v34  ;;  %v30205_v8 = vld [vmem:[#allocation232_spill] sm:$0xff]  ;;  %v30206_v34 = vld [vmem:[#allocation233_spill] sm:$0xff] }
 0xe60   : > { %17053 = vmatprep.subr.bf16.mxu1 %v30177_v45  ;;  %v30207_v45 = vld [vmem:[#allocation234_spill] sm:$0xff] }
 0xe62   : > { %16983 = vmatpush1.bf16.msra.mxu0 %v30178_v19  ;;  %v27258_v19 = vld [vmem:[%s28800_s7 + $0x614] ss:$48 sps:$4 sm:$0xff]  }
 0xe63   : > { %17055 = vmatpush1.bf16.msra.mxu1 %v30179_v16  ;;  %16985 = vmatprep.subr.bf16.mxu0 %v30180_v41  ;;  %v27264_v16 = vld [vmem:[%s28800_s7 + $0x61c] ss:$48 sps:$4 sm:$0xff]   ;;  %v27298_v41 = vld [vmem:[%s28800_s7 + $0x670] ss:$48 sps:$4 sm:$0xff]  }
 0xe64   : > { %17057 = vmatprep.subr.bf16.mxu1 %v30181_v40  ;;  %v27304_v40 = vld [vmem:[%s28800_s7 + $0x678] ss:$48 sps:$4 sm:$0xff]  }
 0xe66   : > { %16987 = vmatpush1.bf16.msra.mxu0 %v30182_v22  ;;  %v27310_v22 = vld [vmem:[%s28800_s7 + $0x24] ss:$48 sps:$4 sm:$0xff]  }
 0xe67   : > { %17059 = vmatpush1.bf16.msra.mxu1 %v30183_v12  ;;  %16989 = vmatprep.subr.bf16.mxu0 %v30184_v43  ;;  %v27316_v12 = vld [vmem:[%s28800_s7 + $0x2c] ss:$48 sps:$4 sm:$0xff]   ;;  %v27326_v43 = vld [vmem:[%s28800_s7 + $0x20] ss:$48 sps:$4 sm:$0xff]  }
 0xe68   : > { %17061 = vmatprep.subr.bf16.mxu1 %v30185_v46  ;;  %v27333_v46 = vld [vmem:[%s28800_s7 + $0x28] ss:$48 sps:$4 sm:$0xff]  }
 0xe6a   : > { %16991 = vmatpush1.bf16.msra.mxu0 %v30186_v6  ;;  %v27340_v6 = vld [vmem:[%s28800_s7 + $0x84] ss:$48 sps:$4 sm:$0xff]  }
 0xe6b   : > { %17063 = vmatpush1.bf16.msra.mxu1 %v30187_v30  ;;  %16993 = vmatprep.subr.bf16.mxu0 %v30188_v55  ;;  %v27346_v30 = vld [vmem:[%s28800_s7 + $0x8c] ss:$48 sps:$4 sm:$0xff]   ;;  %v27352_v55 = vld [vmem:[%s28800_s7 + $0x80] ss:$48 sps:$4 sm:$0xff]  }
 0xe6c   : > { %17065 = vmatprep.subr.bf16.mxu1 %v30189_v48  ;;  %v27358_v48 = vld [vmem:[%s28800_s7 + $0x88] ss:$48 sps:$4 sm:$0xff]  }
 0xe6e   : > { %16995 = vmatpush1.bf16.msra.mxu0 %v30190_v63  ;;  %v27364_v63 = vld [vmem:[%s28800_s7 + $0xe4] ss:$48 sps:$4 sm:$0xff]  }
 0xe6f   : > { %17067 = vmatpush1.bf16.msra.mxu1 %v30191_v24  ;;  %16997 = vmatprep.subr.bf16.mxu0 %v30192_v50  ;;  %v27370_v24 = vld [vmem:[%s28800_s7 + $0xec] ss:$48 sps:$4 sm:$0xff]   ;;  %v27376_v50 = vld [vmem:[%s28800_s7 + $0xe0] ss:$48 sps:$4 sm:$0xff]  }
 0xe70   : > { %17069 = vmatprep.subr.bf16.mxu1 %v30193_v59  ;;  %v27382_v59 = vld [vmem:[%s28800_s7 + $0xe8] ss:$48 sps:$4 sm:$0xff]  }
 0xe72   : > { %16999 = vmatpush1.bf16.msra.mxu0 %v30194_v7  ;;  %v27388_v7 = vld [vmem:[%s28800_s7 + $0x144] ss:$48 sps:$4 sm:$0xff]  }
 0xe73   : > { %17071 = vmatpush1.bf16.msra.mxu1 %v30195_v57  ;;  %17001 = vmatprep.subr.bf16.mxu0 %v30196_v23  ;;  %v27394_v57 = vld [vmem:[%s28800_s7 + $0x14c] ss:$48 sps:$4 sm:$0xff]   ;;  %v27400_v23 = vld [vmem:[%s28800_s7 + $0x140] ss:$48 sps:$4 sm:$0xff]  }
 0xe74   : > { %17073 = vmatprep.subr.bf16.mxu1 %v30197_v14  ;;  %v27406_v14 = vld [vmem:[%s28800_s7 + $0x148] ss:$48 sps:$4 sm:$0xff]  }
 0xe76   : > { %17003 = vmatpush1.bf16.msra.mxu0 %v30198_v29  ;;  %v27412_v29 = vld [vmem:[%s28800_s7 + $0x1a4] ss:$48 sps:$4 sm:$0xff]  }
 0xe77   : > { %17075 = vmatpush1.bf16.msra.mxu1 %v30199_v1  ;;  %17005 = vmatprep.subr.bf16.mxu0 %v30200_v5  ;;  %v27418_v1 = vld [vmem:[%s28800_s7 + $0x1ac] ss:$48 sps:$4 sm:$0xff]   ;;  %v27424_v5 = vld [vmem:[%s28800_s7 + $0x1a0] ss:$48 sps:$4 sm:$0xff]  }
 0xe78   : > { %17077 = vmatprep.subr.bf16.mxu1 %v30201_v38  ;;  %v27430_v38 = vld [vmem:[%s28800_s7 + $0x1a8] ss:$48 sps:$4 sm:$0xff]  }
 0xe7a   : > { %17007 = vmatpush1.bf16.msra.mxu0 %v30202_v31  ;;  %v27436_v31 = vld [vmem:[%s28800_s7 + $0x204] ss:$48 sps:$4 sm:$0xff]  }
 0xe7b   : > { %17079 = vmatpush1.bf16.msra.mxu1 %v30203_v47  ;;  %17009 = vmatprep.subr.bf16.mxu0 %v30204_v33  ;;  %v27442_v47 = vld [vmem:[%s28800_s7 + $0x20c] ss:$48 sps:$4 sm:$0xff]   ;;  %v27448_v33 = vld [vmem:[%s28800_s7 + $0x200] ss:$48 sps:$4 sm:$0xff]  }
 0xe7c   : > { %17081 = vmatprep.subr.bf16.mxu1 %v30205_v8  ;;  %v27454_v8 = vld [vmem:[%s28800_s7 + $0x208] ss:$48 sps:$4 sm:$0xff]  }
 0xe7d   : > { %30208 = vst [vmem:[#allocation36_spill] sm:$0xff] %v27454_v8 }
 0xe7e   : > { %17011 = vmatpush1.bf16.msra.mxu0 %v30206_v34  ;;  %v27460_v34 = vld [vmem:[%s28800_s7 + $0x264] ss:$48 sps:$4 sm:$0xff]  }
 0xe7f   : > { %17083 = vmatpush1.bf16.msra.mxu1 %v30207_v45  ;;  %17013 = vmatprep.subr.bf16.mxu0 %v26895_v26  ;;  %v27278_v26 = vld [vmem:[%s28800_s7 + $0x618] ss:$48 sps:$4 sm:$0xff]   ;;  %30209 = vst [vmem:[#allocation37_spill] sm:$0xff] %v27460_v34  ;;  %v27466_v45 = vld [vmem:[%s28800_s7 + $0x26c] ss:$48 sps:$4 sm:$0xff]  }
 0xe80   : > { %17085 = vmatprep.subr.bf16.mxu1 %v26901_v52  ;;  %v27284_v52 = vld [vmem:[%s28800_s7 + $0x674] ss:$48 sps:$4 sm:$0xff]   ;;  %30210 = vst [vmem:[#allocation38_spill] sm:$0xff] %v27466_v45 }
 0xe82   : > { %17015 = vmatpush1.bf16.msra.mxu0 %v26907_v2  ;;  %v27272_v2 = vld [vmem:[%s28800_s7 + $0x610] ss:$48 sps:$4 sm:$0xff]  }
 0xe83   : > { %17087 = vmatpush1.bf16.msra.mxu1 %v26913_v58  ;;  %17017 = vmatprep.subr.bf16.mxu0 %v27258_v19  ;;  %v27290_v58 = vld [vmem:[%s28800_s7 + $0x67c] ss:$48 sps:$4 sm:$0xff]  }
 0xe84   : > { %17089 = vmatprep.subr.bf16.mxu1 %v27264_v16 }
 0xe85   : > { %10713 = vmatmul.mubr.f32.vlgmr.msra.gmra.mrb[32].mxu0 %v27064_v35 }
 0xe86   : > { %10855 = vmatmul.mubr.f32.vlgmr.msra.gmra.mrb[26].mxu1 %v27064_v35  ;;  %17019 = vmatpush1.bf16.msra.mxu0 %v27272_v2 }
 0xe87   : > { %17091 = vmatpush1.bf16.msra.mxu1 %v27278_v26  ;;  %17021 = vmatprep.subr.bf16.mxu0 %v27284_v52 }
 0xe88   : > { %17093 = vmatprep.subr.bf16.mxu1 %v27290_v58  ;;  %10783 = vmatprep.mubr.f32.mxu0 %v29410_v53 }
 0xe89   : > { %10925 = vmatprep.mubr.f32.mxu1 %v29410_v53 }
 0xe8a   : > { %17023 = vmatpush1.bf16.msra.mxu0 %v27298_v41 }
 0xe8b   : > { %17095 = vmatpush1.bf16.msra.mxu1 %v27304_v40  ;;  %17097 = vmatprep.subr.bf16.mxu0 %v27310_v22 }
 0xe8c   : > { %17169 = vmatprep.subr.bf16.mxu1 %v27316_v12 }
 0xe8d   : > { %13640 = vmatmul.mubr.msk.f32.vlgmr.msra.gmra.mrb[32].mxu0 %vm1565_vm4, %v27066_v39 }
 0xe8e   : > { %13641 = vmatmul.mubr.msk.f32.vlgmr.msra.gmra.mrb[26].mxu1 %vm1565_vm4, %v27066_v39  ;;  %17099 = vmatpush1.bf16.msra.mxu0 %v27326_v43 }
 0xe8f   : > { %10996 = vmatprep.mubr.f32.mxu0 %v27062_v18  ;;  %17171 = vmatpush1.bf16.msra.mxu1 %v27333_v46 }
 0xe90   : > { %11138 = vmatprep.mubr.f32.mxu1 %v27062_v18  ;;  %17101 = vmatprep.subr.bf16.mxu0 %v27340_v6  ;;  %v27472_v18 = vld [vmem:[%s28800_s7 + $0x260] ss:$48 sps:$4 sm:$0xff]  }
 0xe91   : > { %17173 = vmatprep.subr.bf16.mxu1 %v27346_v30  ;;  %30211 = vst [vmem:[#allocation39_spill] sm:$0xff] %v27472_v18 }
 0xe92   : > { %17103 = vmatpush1.bf16.msra.mxu0 %v27352_v55 }
 0xe93   : > { %17175 = vmatpush1.bf16.msra.mxu1 %v27358_v48  ;;  %17105 = vmatprep.subr.bf16.mxu0 %v27364_v63 }
 0xe94   : > { %17177 = vmatprep.subr.bf16.mxu1 %v27370_v24 }
 0xe96   : > { %17107 = vmatpush1.bf16.msra.mxu0 %v27376_v50 }
 0xe97   : > { %17179 = vmatpush1.bf16.msra.mxu1 %v27382_v59  ;;  %17109 = vmatprep.subr.bf16.mxu0 %v27388_v7 }
 0xe98   : > { %17181 = vmatprep.subr.bf16.mxu1 %v27394_v57 }
 0xe9a   : > { %17111 = vmatpush1.bf16.msra.mxu0 %v27400_v23 }
 0xe9b   : > { %17183 = vmatpush1.bf16.msra.mxu1 %v27406_v14  ;;  %17113 = vmatprep.subr.bf16.mxu0 %v27412_v29 }
 0xe9c   : > { %17185 = vmatprep.subr.bf16.mxu1 %v27418_v1 }
 0xe9e   : > { %17115 = vmatpush1.bf16.msra.mxu0 %v27424_v5 }
 0xe9f   : > { %17187 = vmatpush1.bf16.msra.mxu1 %v27430_v38  ;;  %17117 = vmatprep.subr.bf16.mxu0 %v27436_v31 }
 0xea0   : > { %17189 = vmatprep.subr.bf16.mxu1 %v27442_v47 }
 0xea2   : > { %17119 = vmatpush1.bf16.msra.mxu0 %v27448_v33 }
 0xea3   : > { %17191 = vmatpush1.bf16.msra.mxu1 %v27454_v8  ;;  %17121 = vmatprep.subr.bf16.mxu0 %v27460_v34  ;;  %v27478_v8 = vld [vmem:[%s28800_s7 + $0x268] ss:$48 sps:$4 sm:$0xff]   ;;  %v27484_v34 = vld [vmem:[%s28800_s7 + $0x2c4] ss:$48 sps:$4 sm:$0xff]  }
 0xea4   : > { %17193 = vmatprep.subr.bf16.mxu1 %v27466_v45  ;;  %30212 = vst [vmem:[#allocation40_spill] sm:$0xff] %v27478_v8  ;;  %30213 = vst [vmem:[#allocation41_spill] sm:$0xff] %v27484_v34  ;;  %v27490_v45 = vld [vmem:[%s28800_s7 + $0x2cc] ss:$48 sps:$4 sm:$0xff]  }
 0xea5   : > { %30214 = vst [vmem:[#allocation42_spill] sm:$0xff] %v27490_v45 }
 0xea6   : > { %17123 = vmatpush1.bf16.msra.mxu0 %v27472_v18  ;;  %v27496_v18 = vld [vmem:[%s28800_s7 + $0x2c0] ss:$48 sps:$4 sm:$0xff]  }
 0xea7   : > { %17195 = vmatpush1.bf16.msra.mxu1 %v27478_v8  ;;  %17125 = vmatprep.subr.bf16.mxu0 %v27484_v34  ;;  %30215 = vst [vmem:[#allocation43_spill] sm:$0xff] %v27496_v18  ;;  %v27502_v8 = vld [vmem:[%s28800_s7 + $0x2c8] ss:$48 sps:$4 sm:$0xff]   ;;  %v27508_v34 = vld [vmem:[%s28800_s7 + $0x324] ss:$48 sps:$4 sm:$0xff]  }
 0xea8   : > { %17197 = vmatprep.subr.bf16.mxu1 %v27490_v45  ;;  %30216 = vst [vmem:[#allocation44_spill] sm:$0xff] %v27502_v8  ;;  %30217 = vst [vmem:[#allocation45_spill] sm:$0xff] %v27508_v34  ;;  %v27514_v45 = vld [vmem:[%s28800_s7 + $0x32c] ss:$48 sps:$4 sm:$0xff]  }
 0xea9   : > { %30218 = vst [vmem:[#allocation46_spill] sm:$0xff] %v27514_v45 }
 0xeaa   : > { %17127 = vmatpush1.bf16.msra.mxu0 %v27496_v18  ;;  %v27520_v18 = vld [vmem:[%s28800_s7 + $0x320] ss:$48 sps:$4 sm:$0xff]  }
 0xeab   : > { %17199 = vmatpush1.bf16.msra.mxu1 %v27502_v8  ;;  %17129 = vmatprep.subr.bf16.mxu0 %v27508_v34  ;;  %30219 = vst [vmem:[#allocation47_spill] sm:$0xff] %v27520_v18  ;;  %v27526_v8 = vld [vmem:[%s28800_s7 + $0x328] ss:$48 sps:$4 sm:$0xff]   ;;  %v27532_v34 = vld [vmem:[%s28800_s7 + $0x384] ss:$48 sps:$4 sm:$0xff]  }
 0xeac   : > { %17201 = vmatprep.subr.bf16.mxu1 %v27514_v45  ;;  %30220 = vst [vmem:[#allocation48_spill] sm:$0xff] %v27526_v8  ;;  %30221 = vst [vmem:[#allocation49_spill] sm:$0xff] %v27532_v34  ;;  %v27538_v45 = vld [vmem:[%s28800_s7 + $0x38c] ss:$48 sps:$4 sm:$0xff]  }
 0xead   : > { %30222 = vst [vmem:[#allocation50_spill] sm:$0xff] %v27538_v45 }
 0xeae   : > { %17131 = vmatpush1.bf16.msra.mxu0 %v27520_v18  ;;  %v27544_v18 = vld [vmem:[%s28800_s7 + $0x380] ss:$48 sps:$4 sm:$0xff]  }
 0xeaf   : > { %17203 = vmatpush1.bf16.msra.mxu1 %v27526_v8  ;;  %17133 = vmatprep.subr.bf16.mxu0 %v27532_v34  ;;  %30223 = vst [vmem:[#allocation51_spill] sm:$0xff] %v27544_v18  ;;  %v27550_v8 = vld [vmem:[%s28800_s7 + $0x388] ss:$48 sps:$4 sm:$0xff]   ;;  %v27556_v34 = vld [vmem:[%s28800_s7 + $0x3e4] ss:$48 sps:$4 sm:$0xff]  }
 0xeb0   : > { %17205 = vmatprep.subr.bf16.mxu1 %v27538_v45  ;;  %30224 = vst [vmem:[#allocation52_spill] sm:$0xff] %v27550_v8  ;;  %30225 = vst [vmem:[#allocation53_spill] sm:$0xff] %v27556_v34  ;;  %v27562_v45 = vld [vmem:[%s28800_s7 + $0x3ec] ss:$48 sps:$4 sm:$0xff]  }
 0xeb1   : > { %30226 = vst [vmem:[#allocation54_spill] sm:$0xff] %v27562_v45 }
 0xeb2   : > { %17135 = vmatpush1.bf16.msra.mxu0 %v27544_v18  ;;  %v27568_v18 = vld [vmem:[%s28800_s7 + $0x3e0] ss:$48 sps:$4 sm:$0xff]  }
 0xeb3   : > { %17207 = vmatpush1.bf16.msra.mxu1 %v27550_v8  ;;  %17137 = vmatprep.subr.bf16.mxu0 %v27556_v34  ;;  %30227 = vst [vmem:[#allocation55_spill] sm:$0xff] %v27568_v18  ;;  %v27574_v8 = vld [vmem:[%s28800_s7 + $0x3e8] ss:$48 sps:$4 sm:$0xff]   ;;  %v27580_v34 = vld [vmem:[%s28800_s7 + $0x444] ss:$48 sps:$4 sm:$0xff]  }
 0xeb4   : > { %17209 = vmatprep.subr.bf16.mxu1 %v27562_v45  ;;  %30228 = vst [vmem:[#allocation56_spill] sm:$0xff] %v27574_v8  ;;  %30229 = vst [vmem:[#allocation57_spill] sm:$0xff] %v27580_v34  ;;  %v27586_v45 = vld [vmem:[%s28800_s7 + $0x44c] ss:$48 sps:$4 sm:$0xff]  }
 0xeb5   : > { %30230 = vst [vmem:[#allocation58_spill] sm:$0xff] %v27586_v45 }
 0xeb6   : > { %17139 = vmatpush1.bf16.msra.mxu0 %v27568_v18  ;;  %v27592_v18 = vld [vmem:[%s28800_s7 + $0x440] ss:$48 sps:$4 sm:$0xff]  }
 0xeb7   : > { %17211 = vmatpush1.bf16.msra.mxu1 %v27574_v8  ;;  %17141 = vmatprep.subr.bf16.mxu0 %v27580_v34  ;;  %30231 = vst [vmem:[#allocation59_spill] sm:$0xff] %v27592_v18  ;;  %v27598_v8 = vld [vmem:[%s28800_s7 + $0x448] ss:$48 sps:$4 sm:$0xff]   ;;  %v27604_v34 = vld [vmem:[%s28800_s7 + $0x4a4] ss:$48 sps:$4 sm:$0xff]  }
 0xeb8   : > { %17213 = vmatprep.subr.bf16.mxu1 %v27586_v45  ;;  %30232 = vst [vmem:[#allocation60_spill] sm:$0xff] %v27598_v8  ;;  %30233 = vst [vmem:[#allocation61_spill] sm:$0xff] %v27604_v34  ;;  %v27610_v45 = vld [vmem:[%s28800_s7 + $0x4ac] ss:$48 sps:$4 sm:$0xff]  }
 0xeb9   : > { %30234 = vst [vmem:[#allocation62_spill] sm:$0xff] %v27610_v45 }
 0xeba   : > { %17143 = vmatpush1.bf16.msra.mxu0 %v27592_v18  ;;  %v27616_v18 = vld [vmem:[%s28800_s7 + $0x4a0] ss:$48 sps:$4 sm:$0xff]  }
 0xebb   : > { %17215 = vmatpush1.bf16.msra.mxu1 %v27598_v8  ;;  %17145 = vmatprep.subr.bf16.mxu0 %v27604_v34  ;;  %30235 = vst [vmem:[#allocation63_spill] sm:$0xff] %v27616_v18  ;;  %v27622_v8 = vld [vmem:[%s28800_s7 + $0x4a8] ss:$48 sps:$4 sm:$0xff]   ;;  %v27628_v34 = vld [vmem:[%s28800_s7 + $0x504] ss:$48 sps:$4 sm:$0xff]  }
 0xebc   : > { %17217 = vmatprep.subr.bf16.mxu1 %v27610_v45  ;;  %30236 = vst [vmem:[#allocation64_spill] sm:$0xff] %v27622_v8  ;;  %30237 = vst [vmem:[#allocation65_spill] sm:$0xff] %v27628_v34  ;;  %v27634_v45 = vld [vmem:[%s28800_s7 + $0x50c] ss:$48 sps:$4 sm:$0xff]  }
 0xebd   : > { %30238 = vst [vmem:[#allocation66_spill] sm:$0xff] %v27634_v45 }
 0xebe   : > { %17147 = vmatpush1.bf16.msra.mxu0 %v27616_v18  ;;  %v27640_v18 = vld [vmem:[%s28800_s7 + $0x500] ss:$48 sps:$4 sm:$0xff]  }
 0xebf   : > { %17219 = vmatpush1.bf16.msra.mxu1 %v27622_v8  ;;  %17149 = vmatprep.subr.bf16.mxu0 %v27628_v34  ;;  %30239 = vst [vmem:[#allocation67_spill] sm:$0xff] %v27640_v18  ;;  %v27646_v8 = vld [vmem:[%s28800_s7 + $0x508] ss:$48 sps:$4 sm:$0xff]   ;;  %v27652_v34 = vld [vmem:[%s28800_s7 + $0x564] ss:$48 sps:$4 sm:$0xff]  }
 0xec0   : > { %17221 = vmatprep.subr.bf16.mxu1 %v27634_v45  ;;  %30240 = vst [vmem:[#allocation68_spill] sm:$0xff] %v27646_v8  ;;  %30241 = vst [vmem:[#allocation69_spill] sm:$0xff] %v27652_v34  ;;  %v27658_v45 = vld [vmem:[%s28800_s7 + $0x56c] ss:$48 sps:$4 sm:$0xff]  }
 0xec1   : > { %30242 = vst [vmem:[#allocation70_spill] sm:$0xff] %v27658_v45 }
 0xec2   : > { %17151 = vmatpush1.bf16.msra.mxu0 %v27640_v18  ;;  %v27664_v18 = vld [vmem:[%s28800_s7 + $0x560] ss:$48 sps:$4 sm:$0xff]  }
 0xec3   : > { %17223 = vmatpush1.bf16.msra.mxu1 %v27646_v8  ;;  %17153 = vmatprep.subr.bf16.mxu0 %v27652_v34  ;;  %30243 = vst [vmem:[#allocation71_spill] sm:$0xff] %v27664_v18  ;;  %v27670_v8 = vld [vmem:[%s28800_s7 + $0x568] ss:$48 sps:$4 sm:$0xff]   ;;  %v27676_v34 = vld [vmem:[%s28800_s7 + $0x5c4] ss:$48 sps:$4 sm:$0xff]  }
 0xec4   : > { %17225 = vmatprep.subr.bf16.mxu1 %v27658_v45  ;;  %30244 = vst [vmem:[#allocation72_spill] sm:$0xff] %v27670_v8  ;;  %30245 = vst [vmem:[#allocation74_spill] sm:$0xff] %v27676_v34  ;;  %v27682_v45 = vld [vmem:[%s28800_s7 + $0x5cc] ss:$48 sps:$4 sm:$0xff]  }
 0xec5   : > { %30246 = vst [vmem:[#allocation73_spill] sm:$0xff] %v27682_v45 }
 0xec6   : > { %17155 = vmatpush1.bf16.msra.mxu0 %v27664_v18  ;;  %v27688_v18 = vld [vmem:[%s28800_s7 + $0x5c0] ss:$48 sps:$4 sm:$0xff]  }
 0xec7   : > { %17227 = vmatpush1.bf16.msra.mxu1 %v27670_v8  ;;  %17157 = vmatprep.subr.bf16.mxu0 %v27676_v34  ;;  %30247 = vst [vmem:[#allocation75_spill] sm:$0xff] %v27688_v18  ;;  %v27694_v8 = vld [vmem:[%s28800_s7 + $0x5c8] ss:$48 sps:$4 sm:$0xff]   ;;  %v27700_v34 = vld [vmem:[%s28800_s7 + $0x624] ss:$48 sps:$4 sm:$0xff]  }
 0xec8   : > { %17229 = vmatprep.subr.bf16.mxu1 %v27682_v45  ;;  %30248 = vst [vmem:[#allocation77_spill] sm:$0xff] %v27694_v8  ;;  %30249 = vst [vmem:[#allocation79_spill] sm:$0xff] %v27700_v34  ;;  %v27706_v45 = vld [vmem:[%s28800_s7 + $0x62c] ss:$48 sps:$4 sm:$0xff]  }
 0xec9   : > { %30250 = vst [vmem:[#allocation84_spill] sm:$0xff] %v27706_v45 }
 0xeca   : > { %17159 = vmatpush1.bf16.msra.mxu0 %v27688_v18 }
 0xecb   : > { %17231 = vmatpush1.bf16.msra.mxu1 %v27694_v8  ;;  %17161 = vmatprep.subr.bf16.mxu0 %v27700_v34  ;;  %v27714_v8 = vld [vmem:[%s28800_s7 + $0x620] ss:$48 sps:$4 sm:$0xff]   ;;  %v27720_v34 = vld [vmem:[%s28800_s7 + $0x628] ss:$48 sps:$4 sm:$0xff]  }
 0xecc   : > { %17233 = vmatprep.subr.bf16.mxu1 %v27706_v45  ;;  %30251 = vst [vmem:[#allocation86_spill] sm:$0xff] %v27714_v8  ;;  %30252 = vst [vmem:[#allocation85_spill] sm:$0xff] %v27720_v34  ;;  %v27726_v45 = vld [vmem:[%s28800_s7 + $0x684] ss:$48 sps:$4 sm:$0xff]  }
 0xecd   : > { %10997 = vmatmul.mubr.f32.vlgmr.msra.gmra.mrb[44].mxu0 %v27064_v35  ;;  %30253 = vst [vmem:[#allocation88_spill] sm:$0xff] %v27726_v45 }
 0xece   : > { %11139 = vmatmul.mubr.f32.vlgmr.msra.gmra.mrb[38].mxu1 %v27064_v35  ;;  %17163 = vmatpush1.bf16.msra.mxu0 %v27714_v8  ;;  %v27732_v35 = vld [vmem:[%s28800_s7 + $0x68c] ss:$48 sps:$4 sm:$0xff]  }
 0xecf   : > { %17235 = vmatpush1.bf16.msra.mxu1 %v27720_v34  ;;  %17165 = vmatprep.subr.bf16.mxu0 %v27726_v45  ;;  %30254 = vst [vmem:[#allocation12_spill] sm:$0xff] %v27732_v35  ;;  %v27740_v34 = vld [vmem:[%s28800_s7 + $0x680] ss:$48 sps:$4 sm:$0xff]   ;;  %v27746_v45 = vld [vmem:[%s28800_s7 + $0x688] ss:$48 sps:$4 sm:$0xff]  }
 0xed0   : > { %17237 = vmatprep.subr.bf16.mxu1 %v27732_v35  ;;  %11067 = vmatprep.mubr.f32.mxu0 %v29410_v53  ;;  %30255 = vst [vmem:[#allocation13_spill] sm:$0xff] %v27740_v34  ;;  %30256 = vst [vmem:[#allocation14_spill] sm:$0xff] %v27746_v45  ;;  %v30263_v35 = vld [vmem:[#allocation78_spill] sm:$0xff] }
 0xed1   : > { %11209 = vmatprep.mubr.f32.mxu1 %v29410_v53 }
 0xed2   : > { %17167 = vmatpush1.bf16.msra.mxu0 %v27740_v34 }
 0xed3   : > { %17239 = vmatpush1.bf16.msra.mxu1 %v27746_v45  ;;  %17272 = vmatprep.subr.bf16.mxu0 %v30040_v51 }
 0xed4   : > { %17241 = vmatprep.subr.bf16.mxu1 %v30039_v11  ;;  %v21374_v11 = vld [vmem:[%s28799_s6 + $0x4] ss:$48 sps:$4 sm:$0xff]  }
 0xed5   : > { %13642 = vmatmul.mubr.msk.f32.vlgmr.msra.gmra.mrb[44].mxu0 %vm1565_vm4, %v27066_v39 }
 0xed6   : > { %13643 = vmatmul.mubr.msk.f32.vlgmr.msra.gmra.mrb[38].mxu1 %vm1565_vm4, %v27066_v39  ;;  %17274 = vmatpush3.bf16.msra.mxu0 %v30043_v15  ;;  %v30259_v15 = vld [vmem:[#allocation27_spill] sm:$0xff] }
 0xed7   : > { %17243 = vmatpush3.bf16.msra.mxu1 %v30041_v13  ;;  %17275 = vmatprep.subr.bf16.mxu0 %v30040_v51  ;;  %v30257_v13 = vld [vmem:[#allocation25_spill] sm:$0xff] }
 0xed8   : > { %17245 = vmatprep.subr.bf16.mxu1 %v30042_v20  ;;  %14132 = vmatprep.mubr.msk.f32.mxu0 %vm21602_vm5, %v29410_v53  ;;  %v30258_v20 = vld [vmem:[#allocation26_spill] sm:$0xff] }
 0xeda   : > { %17277 = vmatpush3.bf16.msra.mxu0 %v30046_v27  ;;  %v21375_v27 = vld [vmem:[%s28799_s6 + $0xc] ss:$48 sps:$4 sm:$0xff]  }
 0xedb   : > { %17247 = vmatpush3.bf16.msra.mxu1 %v30044_v0  ;;  %17279 = vmatprep.subr.bf16.mxu0 %v21374_v11  ;;  %v30260_v0 = vld [vmem:[#allocation28_spill] sm:$0xff] }
 0xedc   : > { %17249 = vmatprep.subr.bf16.mxu1 %v30045_v60  ;;  %v30261_v60 = vld [vmem:[#allocation29_spill] sm:$0xff] }
 0xedf   : > { %17251 = vmatpush3.bf16.msra.mxu1 %v30048_v49 }
 0xee0   : > { %17253 = vmatprep.subr.bf16.mxu1 %v30049_v3 }
 0xee3   : > { %17255 = vmatpush3.bf16.msra.mxu1 %v30050_v42 }
 0xee4   : > { %17257 = vmatprep.subr.bf16.mxu1 %v30051_v9 }
 0xee7   : > { %17259 = vmatpush3.bf16.msra.mxu1 %v30052_v36  ;;  %v30262_v36 = vld [vmem:[#allocation76_spill] sm:$0xff] }
 0xee8   : > { %17261 = vmatprep.subr.bf16.mxu1 %v30053_v25 }
 0xeeb   : > { %17263 = vmatpush3.bf16.msra.mxu1 %v30257_v13 }
 0xeec   : > { %17265 = vmatprep.subr.bf16.mxu1 %v30258_v20 }
 0xeef   : > { %17267 = vmatpush3.bf16.msra.mxu1 %v30259_v15 }
 0xef0   : > { %17269 = vmatprep.subr.bf16.mxu1 %v30260_v0 }
 0xef3   : > { %17271 = vmatpush3.bf16.msra.mxu1 %v30261_v60 }
 0xef4   : > { %17287 = vmatprep.subr.bf16.mxu1 %v21375_v27 }
 0xf18   : > { %v10501_v49 = vpop.f32.mrb[20].mxu0 }
 0xf19   : > { %v10643_v3 = vpop.f32.mrb[14].mxu1  ;;  %v10503_v42 = vpop.f32.mrb[21].mxu0  ;;  %v17804_v11 = vadd.f32 %v10501_v49, %v29637_v4 }
 0xf1a   : > { %v10645_v9 = vpop.f32.mrb[15].mxu1  ;;  %v17805_v13 = vadd.f32 %v10503_v42, %v29638_v17 }
 0xf1b   : > { %v17817_v25 = vadd.f32 %v10645_v9, %v30262_v36  ;;  %v13644_v15 = vmul.f32 -1.442695, %v17804_v11  ;;  %v30264_v11 = vld [vmem:[#allocation80_spill] sm:$0xff] }
 0xf1c   : > { %v13645_v0 = vmul.f32 -1.442695, %v17805_v13 }
 0xf1d   : > { %v13647_v20 = vmul.f32 -1.442695, %v17817_v25 }
 0xf1f   : > { %20796 = vpow2.f32 %v13647_v20 }
 0xf20   : > { %20798 = vpow2.f32 %v13644_v15 }
 0xf21   : > { %20800 = vpow2.f32 %v13645_v0 }
 0xf29   : > { %v20797_v60 = vpop.eup %20796 }
 0xf2a   : > { %v20799_v39 = vpop.eup %20798  ;;  %v11255_v51 = vadd.f32 1.0, %v20797_v60 }
 0xf2b   : > { %v20801_v27 = vpop.eup %20800  ;;  %v11237_v45 = vadd.f32 1.0, %v20799_v39 }
 0xf2c   : > { %v11238_v36 = vadd.f32 1.0, %v20801_v27  ;;  %20802 = vrcp.f32 %v11255_v51 }
 0xf2d   : > { %20804 = vrcp.f32 %v11237_v45 }
 0xf36   : > { %v20803_v20 = vpop.eup %20802 }
 0xf37   : > { %v20805_v39 = vpop.eup %20804 }
 0xf60   : > { %v10785_v34 = vpop.f32.mrb[32].mxu0 }
 0xf61   : > { %v17828_v8 = vadd.f32 %v10785_v34, %v30263_v35  ;;  %v10927_v18 = vpop.f32.mrb[26].mxu1  ;;  %v10787_v9 = vpop.f32.mrb[33].mxu0  ;;  %v11285_v34 = vmul.f32 %v20803_v20, %v27045_v62 }
 0xf62   : > { %v17840_v49 = vadd.f32 %v10927_v18, %v29640_v56  ;;  %v10929_v42 = vpop.f32.mrb[27].mxu1 }
 0xf63   : > { %v13648_v25 = vmul.f32 -1.442695, %v17828_v8  ;;  %v17841_v13 = vadd.f32 %v10929_v42, %v30264_v11 }
 0xf64   : > { %20806 = vtanh.f32 %v17840_v49 }
 0xf65   : > { %20808 = vpow2.f32 %v13648_v25  ;;  %v17816_v25 = vadd.f32 %v10643_v3, %v24016_v28 }
 0xf66   : > { %20810 = vrcp.f32 %v11238_v36  ;;  %v17829_v36 = vadd.f32 %v10787_v9, %v24013_v32 }
 0xf67   : > { %20812 = vtanh.f32 %v17841_v13  ;;  %v13646_v11 = vmul.f32 -1.442695, %v17816_v25 }
 0xf68   : > { %v13649_v13 = vmul.f32 -1.442695, %v17829_v36 }
 0xf6e   : > { %v20807_v15 = vpop.eup %20806 }
 0xf6f   : > { %v20809_v0 = vpop.eup %20808  ;;  %v11288_v60 = vmul.f32 %v20807_v15, %v20805_v39 }
 0xf70   : > { %v20811_v27 = vpop.eup %20810  ;;  %v11256_v51 = vadd.f32 1.0, %v20809_v0 }
 0xf71   : > { %v20813_v35 = vpop.eup %20812  ;;  %v27788_v18 = vadd.f32 %v11288_v60, %v11285_v34 }
 0xf72   : > { %20814 = vrcp.f32 %v11256_v51  ;;  %v11289_v8 = vmul.f32 %v20813_v35, %v20811_v27 }
 0xf73   : > { %20816 = vpow2.f32 %v13649_v13 }
 0xf74   : > { %20818 = vpow2.f32 %v13646_v11 }
 0xf7c   : > { %v20815_v45 = vpop.eup %20814 }
 0xf7d   : > { %v11286_v49 = vmul.f32 %v20815_v45, %v27048_v44  ;;  %v20817_v62 = vpop.eup %20816 }
 0xf7e   : > { %v20819_v20 = vpop.eup %20818  ;;  %v11257_v39 = vadd.f32 1.0, %v20817_v62 }
 0xf7f   : > { %v27791_v42 = vadd.f32 %v11289_v8, %v11286_v49  ;;  %v11239_v15 = vadd.f32 1.0, %v20819_v20 }
 0xf80   : > { %20820 = vrcp.f32 %v11257_v39 }
 0xf81   : > { %20822 = vrcp.f32 %v11239_v15 }
 0xf8a   : > { %v20821_v45 = vpop.eup %20820 }
 0xf8b   : > { %v20823_v49 = vpop.eup %20822  ;;  %v11287_v25 = vmul.f32 %v20821_v45, %v27058_v21  ;;  %v21376_v45 = vld [vmem:[%s28799_s6 + $0x8] ss:$48 sps:$4 sm:$0xff]  }
 0xfa8   : > { %v11069_v0 = vpop.f32.mrb[44].mxu0 }
 0xfa9   : > { %v17852_v35 = vadd.f32 %v11069_v0, %v24024_v10  ;;  %v11211_v34 = vpop.f32.mrb[38].mxu1  ;;  %v11071_v44 = vpop.f32.mrb[45].mxu0 }
 0xfaa   : > { %v17864_v60 = vadd.f32 %v11211_v34, %v24027_v54  ;;  %v17853_v9 = vadd.f32 %v11071_v44, %v24030_v37  ;;  %v11213_v3 = vpop.f32.mrb[39].mxu1 }
 0xfab   : > { %20824 = vtanh.f32 %v17852_v35  ;;  %v17865_v27 = vadd.f32 %v11213_v3, %v24034_v61 }
 0xfac   : > { %v13651_v11 = vmul.f32 -1.442695, %v17864_v60  ;;  %v13650_v51 = vmul.f32 -1.442695, %v17853_v9 }
 0xfad   : > { %v13652_v8 = vmul.f32 -1.442695, %v17865_v27 }
 0xfae   : > { %20826 = vpow2.f32 %v13651_v11 }
 0xfaf   : > { %20828 = vpow2.f32 %v13650_v51 }
 0xfb0   : > { %20830 = vpow2.f32 %v13652_v8 }
 0xfb1   : > { %20832 = vtanh.f32 %v27788_v18 }
 0xfb2   : > { %20834 = vtanh.f32 %v27791_v42 }
 0xfb5   : > { %v20825_v36 = vpop.eup %20824 }
 0xfb6   : > { %v11290_v13 = vmul.f32 %v20825_v36, %v20823_v49  ;;  %v21377_v49 = vld [vmem:[%s28799_s6] ss:$48 sps:$4 sm:$0xff]   ;;  %v21378_v36 = vld [vmem:[%s28799_s6 + $0x6c] ss:$48 sps:$4 sm:$0xff]  }
 0xfb8   : > { %v20827_v62 = vpop.eup %20826  ;;  %v27801_v20 = vadd.f32 %v11290_v13, %v11287_v25  ;;  %v21379_v25 = vld [vmem:[%s28799_s6 + $0x64] ss:$48 sps:$4 sm:$0xff]   ;;  %v21380_v13 = vld [vmem:[%s28799_s6 + $0x68] ss:$48 sps:$4 sm:$0xff]  }
 0xfb9   : > { %v20829_v39 = vpop.eup %20828  ;;  %v11277_v15 = vadd.f32 1.0, %v20827_v62  ;;  %v21381_v62 = vld [vmem:[%s28799_s6 + $0x60] ss:$48 sps:$4 sm:$0xff]  }
 0xfba   : > { %v20831_v0 = vpop.eup %20830  ;;  %20836 = vtanh.f32 %v27801_v20  ;;  %v11276_v35 = vadd.f32 1.0, %v20829_v39  ;;  %v21382_v39 = vld [vmem:[%s28799_s6 + $0x1c] ss:$48 sps:$4 sm:$0xff]  }
 0xfbb   : > { %20838 = vrcp.f32 %v11277_v15  ;;  %v11278_v34 = vadd.f32 1.0, %v20831_v0  ;;  %v20833_v44 = vpop.eup %20832  ;;  %v21383_v15 = vld [vmem:[%s28799_s6 + $0x14] ss:$48 sps:$4 sm:$0xff]  }
 0xfbc   : > { %20840 = vrcp.f32 %v11276_v35  ;;  %v20835_v21 = vpop.eup %20834 }
 0xfbd   : > { %20842 = vrcp.f32 %v11278_v34 }
 0xfc4   : > { %v20837_v60 = vpop.eup %20836 }
 0xfc5   : > { %v20839_v9 = vpop.eup %20838 }
 0xfc6   : > { %v20841_v3 = vpop.eup %20840  ;;  %v27805_v27 = vmul.f32 %v20839_v9, %v20835_v21 }
 0xfc7   : > { %v20843_v11 = vpop.eup %20842  ;;  %v27807_v51 = vmul.f32 %v20841_v3, %v20833_v44 }
 0xfc8   : > { %v27809_v8 = vmul.f32 %v20843_v11, %v20837_v60  ;;  %11367 = vmatprep.mubr.f32.mxu1 %v27805_v27  ;;  %v21384_v60 = vld [vmem:[%s28797_s4] ss:$0 sm:$0xff] }
 0xfc9   : > { %11368 = vmatmul.mubr.f32.vlgmr.msra.gmra.mrb[52].mxu1 %v27807_v51 }
 0xfca   : > { %14133 = vmatmul.mubr.msk.f32.vlgmr.msra.gmra.mrb[58].mxu0 %vm1565_vm4, %v27809_v8  ;;  %17289 = vmatpush1.bf16.msra.mxu1 %v21376_v45  ;;  %v21385_v45 = vld [vmem:[%s28799_s6 + $0x10] ss:$48 sps:$4 sm:$0xff]  }
 0xfcb   : > { %17281 = vmatpush1.bf16.msra.mxu0 %v21377_v49  ;;  %17291 = vmatprep.subr.bf16.mxu1 %v21378_v36  ;;  %v21386_v49 = vld [vmem:[%s28799_s6 + $0x18] ss:$48 sps:$4 sm:$0xff]   ;;  %v21387_v36 = vld [vmem:[%s28799_s6 + $0x74] ss:$48 sps:$4 sm:$0xff]  }
 0xfcc   : > { %17283 = vmatprep.subr.bf16.mxu0 %v21379_v25  ;;  %11524 = vmatprep.mubr.f32.mxu0 %v29410_v53  ;;  %v21388_v25 = vld [vmem:[%s28799_s6 + $0x7c] ss:$48 sps:$4 sm:$0xff]  }
 0xfcd   : > { %11595 = vmatprep.mubr.f32.mxu1 %v29410_v53 }
 0xfce   : > { %17293 = vmatpush1.bf16.msra.mxu1 %v21380_v13  ;;  %v21389_v13 = vld [vmem:[%s28799_s6 + $0x70] ss:$48 sps:$4 sm:$0xff]  }
 0xfcf   : > { %17285 = vmatpush1.bf16.msra.mxu0 %v21381_v62  ;;  %17303 = vmatprep.subr.bf16.mxu1 %v21382_v39  ;;  %v21390_v62 = vld [vmem:[%s28799_s6 + $0x78] ss:$48 sps:$4 sm:$0xff]   ;;  %v21391_v39 = vld [vmem:[%s28799_s6 + $0x24] ss:$48 sps:$4 sm:$0xff]  }
 0xfd0   : > { %17295 = vmatprep.subr.bf16.mxu0 %v21383_v15  ;;  %v21392_v15 = vld [vmem:[%s28799_s6 + $0x2c] ss:$48 sps:$4 sm:$0xff]  }
0x109c   : > { %v13968_v0 = vpop.f32.mrb[52].mxu1 }
0x109d   : > { %v11439_v35 = vpop.f32.mrb[58].mxu0  ;;  %v13969_v34 = vpop.f32.mrb[53].mxu1 }
0x109e   : > { %v13970_v44 = vadd.f32 %v13969_v34, %v13968_v0  ;;  %v14134_v21 = vpop.f32.mrb[59].mxu0  ;;  %v21393_v0 = vld [vmem:[%s28799_s6 + $0x20] ss:$48 sps:$4 sm:$0xff]   ;;  %v21395_v34 = vld [vmem:[%s28799_s6 + $0x84] ss:$48 sps:$4 sm:$0xff]  }
0x109f   : > { %v21397_v21 = vld [vmem:[%s28799_s6 + $0x80] ss:$48 sps:$4 sm:$0xff]  }
0x10a0   : > { %v11370_v9 = vadd.f32 %v21384_v60, %v13970_v44  ;;  %v21396_v44 = vld [vmem:[%s28799_s6 + $0x8c] ss:$48 sps:$4 sm:$0xff]   ;;  %v21398_v60 = vld [vmem:[%s28799_s6 + $0x88] ss:$48 sps:$4 sm:$0xff]  }
0x10a2   : > { %v11440_v3 = vadd.f32 %v11439_v35, %v11370_v9  ;;  %v21394_v35 = vld [vmem:[%s28799_s6 + $0x28] ss:$48 sps:$4 sm:$0xff]   ;;  %v21399_v9 = vld [vmem:[%s28800_s7 + $0x4] ss:$48 sps:$4 sm:$0xff]  }
0x10a4   : > { %v11443_v11 = vmax.f32 %v11440_v3, 0.0  ;;  %v21400_v3 = vld [vmem:[%s28800_s7 + $0xc] ss:$48 sps:$4 sm:$0xff]  }
0x10a6   : > { %13654 = vmatmul.mubr.msk.f32.vlgmr.msra.gmra.mrb[22].mxu0 %vm1565_vm4, %v11443_v11  ;;  %13655 = vmatmul.mubr.msk.f32.vlgmr.msra.gmra.mrb[16].mxu1 %vm1565_vm4, %v11443_v11 }
0x10a7   : > { %17297 = vmatpush1.bf16.msra.mxu0 %v21385_v45  ;;  %17305 = vmatpush1.bf16.msra.mxu1 %v21386_v49  ;;  %v21401_v45 = vld [vmem:[%s28800_s7] ss:$48 sps:$4 sm:$0xff]   ;;  %v21402_v49 = vld [vmem:[%s28800_s7 + $0x8] ss:$48 sps:$4 sm:$0xff]  }
0x10a8   : > { %17299 = vmatprep.subr.bf16.mxu0 %v21387_v36  ;;  %17307 = vmatprep.subr.bf16.mxu1 %v21388_v25  ;;  %v21403_v36 = vld [vmem:[%s28800_s7 + $0x64] ss:$48 sps:$4 sm:$0xff]   ;;  %v21405_v25 = vld [vmem:[%s28800_s7 + $0x60] ss:$48 sps:$4 sm:$0xff]  }
0x10a9   : > { %11666 = vmatprep.mubr.f32.mxu0 %v29410_v53  ;;  %11737 = vmatprep.mubr.f32.mxu1 %v29410_v53 }
0x10ab   : > { %17301 = vmatpush1.bf16.msra.mxu0 %v21389_v13  ;;  %17309 = vmatpush1.bf16.msra.mxu1 %v21390_v62  ;;  %v21406_v13 = vld [vmem:[%s28800_s7 + $0x68] ss:$48 sps:$4 sm:$0xff]   ;;  %v21407_v62 = vld [vmem:[%s28800_s7 + $0xc4] ss:$48 sps:$4 sm:$0xff]  }
0x10ac   : > { %17311 = vmatprep.subr.bf16.mxu0 %v21391_v39  ;;  %17319 = vmatprep.subr.bf16.mxu1 %v21392_v15  ;;  %v21408_v39 = vld [vmem:[%s28800_s7 + $0xcc] ss:$48 sps:$4 sm:$0xff]   ;;  %v21409_v15 = vld [vmem:[%s28800_s7 + $0xc0] ss:$48 sps:$4 sm:$0xff]  }
0x10ae   : > { %13656 = vmatmul.mubr.msk.f32.vlgmr.msra.gmra.mrb[34].mxu0 %vm1565_vm4, %v11443_v11  ;;  %13657 = vmatmul.mubr.msk.f32.vlgmr.msra.gmra.mrb[28].mxu1 %vm1565_vm4, %v11443_v11 }
0x10af   : > { %17313 = vmatpush1.bf16.msra.mxu0 %v21393_v0  ;;  %17321 = vmatpush1.bf16.msra.mxu1 %v21394_v35  ;;  %v21410_v0 = vld [vmem:[%s28800_s7 + $0xc8] ss:$48 sps:$4 sm:$0xff]   ;;  %v21411_v35 = vld [vmem:[%s28800_s7 + $0x124] ss:$48 sps:$4 sm:$0xff]  }
0x10b0   : > { %17315 = vmatprep.subr.bf16.mxu0 %v21395_v34  ;;  %17323 = vmatprep.subr.bf16.mxu1 %v21396_v44  ;;  %v21412_v34 = vld [vmem:[%s28800_s7 + $0x12c] ss:$48 sps:$4 sm:$0xff]   ;;  %v21413_v44 = vld [vmem:[%s28800_s7 + $0x120] ss:$48 sps:$4 sm:$0xff]  }
0x10b1   : > { %11808 = vmatprep.mubr.f32.mxu0 %v29410_v53  ;;  %11879 = vmatprep.mubr.f32.mxu1 %v29410_v53 }
0x10b3   : > { %17317 = vmatpush1.bf16.msra.mxu0 %v21397_v21  ;;  %17325 = vmatpush1.bf16.msra.mxu1 %v21398_v60  ;;  %v21414_v21 = vld [vmem:[%s28800_s7 + $0x128] ss:$48 sps:$4 sm:$0xff]   ;;  %v21415_v60 = vld [vmem:[%s28800_s7 + $0x184] ss:$48 sps:$4 sm:$0xff]  }
0x10b4   : > { %17327 = vmatprep.subr.bf16.mxu0 %v21399_v9  ;;  %17399 = vmatprep.subr.bf16.mxu1 %v21400_v3  ;;  %v21416_v9 = vld [vmem:[%s28800_s7 + $0x18c] ss:$48 sps:$4 sm:$0xff]   ;;  %v21417_v3 = vld [vmem:[%s28800_s7 + $0x180] ss:$48 sps:$4 sm:$0xff]  }
0x10b6   : > { %13658 = vmatmul.mubr.msk.f32.vlgmr.msra.gmra.mrb[46].mxu0 %vm1565_vm4, %v11443_v11  ;;  %13659 = vmatmul.mubr.msk.f32.vlgmr.msra.gmra.mrb[40].mxu1 %vm1565_vm4, %v11443_v11  ;;  %v21404_v11 = vld [vmem:[%s28800_s7 + $0x6c] ss:$48 sps:$4 sm:$0xff]  }
0x10b7   : > { %17329 = vmatpush1.bf16.msra.mxu0 %v21401_v45  ;;  %11962 = vmatprep.mubr.f32.mxu0 %v27805_v27  ;;  %v21418_v45 = vld [vmem:[%s28800_s7 + $0x188] ss:$48 sps:$4 sm:$0xff]  }
0x10b8   : > { %17401 = vmatpush1.bf16.msra.mxu1 %v21402_v49  ;;  %12104 = vmatprep.mubr.f32.mxu1 %v27805_v27  ;;  %v21419_v49 = vld [vmem:[%s28800_s7 + $0x1e4] ss:$48 sps:$4 sm:$0xff]  }
0x10b9   : > { %17331 = vmatprep.subr.bf16.mxu0 %v21403_v36  ;;  %17403 = vmatprep.subr.bf16.mxu1 %v21404_v11  ;;  %v21420_v36 = vld [vmem:[%s28800_s7 + $0x1ec] ss:$48 sps:$4 sm:$0xff]   ;;  %v21421_v11 = vld [vmem:[%s28800_s7 + $0x1e0] ss:$48 sps:$4 sm:$0xff]  }
0x10bb   : > { %17333 = vmatpush1.bf16.msra.mxu0 %v21405_v25  ;;  %v21422_v25 = vld [vmem:[%s28800_s7 + $0x1e8] ss:$48 sps:$4 sm:$0xff]  }
0x10bc   : > { %17405 = vmatpush1.bf16.msra.mxu1 %v21406_v13  ;;  %17335 = vmatprep.subr.bf16.mxu0 %v21407_v62  ;;  %v21423_v13 = vld [vmem:[%s28800_s7 + $0x244] ss:$48 sps:$4 sm:$0xff]   ;;  %v21424_v62 = vld [vmem:[%s28800_s7 + $0x24c] ss:$48 sps:$4 sm:$0xff]  }
0x10bd   : > { %17407 = vmatprep.subr.bf16.mxu1 %v21408_v39  ;;  %v21425_v39 = vld [vmem:[%s28800_s7 + $0x240] ss:$48 sps:$4 sm:$0xff]  }
0x10bf   : > { %17337 = vmatpush1.bf16.msra.mxu0 %v21409_v15  ;;  %v21426_v15 = vld [vmem:[%s28800_s7 + $0x248] ss:$48 sps:$4 sm:$0xff]  }
0x10c0   : > { %17409 = vmatpush1.bf16.msra.mxu1 %v21410_v0  ;;  %17339 = vmatprep.subr.bf16.mxu0 %v21411_v35  ;;  %v21427_v0 = vld [vmem:[%s28800_s7 + $0x2a4] ss:$48 sps:$4 sm:$0xff]   ;;  %v21428_v35 = vld [vmem:[%s28800_s7 + $0x2ac] ss:$48 sps:$4 sm:$0xff]  }
0x10c1   : > { %17411 = vmatprep.subr.bf16.mxu1 %v21412_v34  ;;  %v21429_v34 = vld [vmem:[%s28800_s7 + $0x2a0] ss:$48 sps:$4 sm:$0xff]  }
0x10c3   : > { %17341 = vmatpush1.bf16.msra.mxu0 %v21413_v44  ;;  %v21430_v44 = vld [vmem:[%s28800_s7 + $0x2a8] ss:$48 sps:$4 sm:$0xff]  }
0x10c4   : > { %17413 = vmatpush1.bf16.msra.mxu1 %v21414_v21  ;;  %17343 = vmatprep.subr.bf16.mxu0 %v21415_v60  ;;  %v21431_v21 = vld [vmem:[%s28800_s7 + $0x304] ss:$48 sps:$4 sm:$0xff]   ;;  %v21432_v60 = vld [vmem:[%s28800_s7 + $0x30c] ss:$48 sps:$4 sm:$0xff]  }
0x10c5   : > { %17415 = vmatprep.subr.bf16.mxu1 %v21416_v9  ;;  %v21433_v9 = vld [vmem:[%s28800_s7 + $0x300] ss:$48 sps:$4 sm:$0xff]  }
0x10c7   : > { %17345 = vmatpush1.bf16.msra.mxu0 %v21417_v3  ;;  %v21434_v3 = vld [vmem:[%s28800_s7 + $0x308] ss:$48 sps:$4 sm:$0xff]  }
0x10c8   : > { %17417 = vmatpush1.bf16.msra.mxu1 %v21418_v45  ;;  %17347 = vmatprep.subr.bf16.mxu0 %v21419_v49  ;;  %v21435_v45 = vld [vmem:[%s28800_s7 + $0x364] ss:$48 sps:$4 sm:$0xff]   ;;  %v21436_v49 = vld [vmem:[%s28800_s7 + $0x36c] ss:$48 sps:$4 sm:$0xff]  }
0x10c9   : > { %17419 = vmatprep.subr.bf16.mxu1 %v21420_v36  ;;  %v21437_v36 = vld [vmem:[%s28800_s7 + $0x360] ss:$48 sps:$4 sm:$0xff]  }
0x10cb   : > { %17349 = vmatpush1.bf16.msra.mxu0 %v21421_v11  ;;  %v21438_v11 = vld [vmem:[%s28800_s7 + $0x368] ss:$48 sps:$4 sm:$0xff]  }
0x10cc   : > { %17421 = vmatpush1.bf16.msra.mxu1 %v21422_v25  ;;  %17351 = vmatprep.subr.bf16.mxu0 %v21423_v13  ;;  %v21439_v25 = vld [vmem:[%s28800_s7 + $0x3c4] ss:$48 sps:$4 sm:$0xff]   ;;  %v21440_v13 = vld [vmem:[%s28800_s7 + $0x3cc] ss:$48 sps:$4 sm:$0xff]  }
0x10cd   : > { %17423 = vmatprep.subr.bf16.mxu1 %v21424_v62  ;;  %v21441_v62 = vld [vmem:[%s28800_s7 + $0x3c0] ss:$48 sps:$4 sm:$0xff]  }
0x10cf   : > { %17353 = vmatpush1.bf16.msra.mxu0 %v21425_v39  ;;  %v21442_v39 = vld [vmem:[%s28800_s7 + $0x3c8] ss:$48 sps:$4 sm:$0xff]  }
0x10d0   : > { %17425 = vmatpush1.bf16.msra.mxu1 %v21426_v15  ;;  %17355 = vmatprep.subr.bf16.mxu0 %v21427_v0  ;;  %v21443_v15 = vld [vmem:[%s28800_s7 + $0x424] ss:$48 sps:$4 sm:$0xff]   ;;  %v21444_v0 = vld [vmem:[%s28800_s7 + $0x42c] ss:$48 sps:$4 sm:$0xff]  }
0x10d1   : > { %17427 = vmatprep.subr.bf16.mxu1 %v21428_v35  ;;  %v21445_v35 = vld [vmem:[%s28800_s7 + $0x420] ss:$48 sps:$4 sm:$0xff]  }
0x10d3   : > { %17357 = vmatpush1.bf16.msra.mxu0 %v21429_v34  ;;  %v21446_v34 = vld [vmem:[%s28800_s7 + $0x428] ss:$48 sps:$4 sm:$0xff]  }
0x10d4   : > { %17429 = vmatpush1.bf16.msra.mxu1 %v21430_v44  ;;  %17359 = vmatprep.subr.bf16.mxu0 %v21431_v21  ;;  %v21447_v44 = vld [vmem:[%s28800_s7 + $0x484] ss:$48 sps:$4 sm:$0xff]   ;;  %v21448_v21 = vld [vmem:[%s28800_s7 + $0x48c] ss:$48 sps:$4 sm:$0xff]  }
0x10d5   : > { %17431 = vmatprep.subr.bf16.mxu1 %v21432_v60  ;;  %v21449_v60 = vld [vmem:[%s28800_s7 + $0x480] ss:$48 sps:$4 sm:$0xff]  }
0x10d7   : > { %17361 = vmatpush1.bf16.msra.mxu0 %v21433_v9  ;;  %v21450_v9 = vld [vmem:[%s28800_s7 + $0x488] ss:$48 sps:$4 sm:$0xff]  }
0x10d8   : > { %17433 = vmatpush1.bf16.msra.mxu1 %v21434_v3  ;;  %17363 = vmatprep.subr.bf16.mxu0 %v21435_v45  ;;  %v21451_v3 = vld [vmem:[%s28800_s7 + $0x4e4] ss:$48 sps:$4 sm:$0xff]   ;;  %v21452_v45 = vld [vmem:[%s28800_s7 + $0x4ec] ss:$48 sps:$4 sm:$0xff]  }
0x10d9   : > { %17435 = vmatprep.subr.bf16.mxu1 %v21436_v49  ;;  %v21453_v49 = vld [vmem:[%s28800_s7 + $0x4e0] ss:$48 sps:$4 sm:$0xff]  }
0x10db   : > { %17365 = vmatpush1.bf16.msra.mxu0 %v21437_v36  ;;  %v21454_v36 = vld [vmem:[%s28800_s7 + $0x4e8] ss:$48 sps:$4 sm:$0xff]  }
0x10dc   : > { %17437 = vmatpush1.bf16.msra.mxu1 %v21438_v11  ;;  %17367 = vmatprep.subr.bf16.mxu0 %v21439_v25  ;;  %v21455_v11 = vld [vmem:[%s28800_s7 + $0x544] ss:$48 sps:$4 sm:$0xff]   ;;  %v21456_v25 = vld [vmem:[%s28800_s7 + $0x54c] ss:$48 sps:$4 sm:$0xff]  }
0x10dd   : > { %17439 = vmatprep.subr.bf16.mxu1 %v21440_v13  ;;  %v21457_v13 = vld [vmem:[%s28800_s7 + $0x540] ss:$48 sps:$4 sm:$0xff]  }
0x10df   : > { %17369 = vmatpush1.bf16.msra.mxu0 %v21441_v62  ;;  %v21458_v62 = vld [vmem:[%s28800_s7 + $0x548] ss:$48 sps:$4 sm:$0xff]  }
0x10e0   : > { %17441 = vmatpush1.bf16.msra.mxu1 %v21442_v39  ;;  %17371 = vmatprep.subr.bf16.mxu0 %v21443_v15  ;;  %v21459_v39 = vld [vmem:[%s28800_s7 + $0x5a4] ss:$48 sps:$4 sm:$0xff]   ;;  %v21460_v15 = vld [vmem:[%s28800_s7 + $0x5ac] ss:$48 sps:$4 sm:$0xff]  }
0x10e1   : > { %17443 = vmatprep.subr.bf16.mxu1 %v21444_v0  ;;  %v21461_v0 = vld [vmem:[%s28800_s7 + $0x5a0] ss:$48 sps:$4 sm:$0xff]  }
0x10e3   : > { %17373 = vmatpush1.bf16.msra.mxu0 %v21445_v35  ;;  %v21462_v35 = vld [vmem:[%s28800_s7 + $0x5a8] ss:$48 sps:$4 sm:$0xff]  }
0x10e4   : > { %17445 = vmatpush1.bf16.msra.mxu1 %v21446_v34  ;;  %17375 = vmatprep.subr.bf16.mxu0 %v21447_v44  ;;  %v21463_v34 = vld [vmem:[%s28800_s7 + $0x604] ss:$48 sps:$4 sm:$0xff]   ;;  %v21464_v44 = vld [vmem:[%s28800_s7 + $0x60c] ss:$48 sps:$4 sm:$0xff]  }
0x10e5   : > { %17447 = vmatprep.subr.bf16.mxu1 %v21448_v21  ;;  %v21465_v21 = vld [vmem:[%s28800_s7 + $0x600] ss:$48 sps:$4 sm:$0xff]  }
0x10e7   : > { %17377 = vmatpush1.bf16.msra.mxu0 %v21449_v60  ;;  %v21466_v60 = vld [vmem:[%s28800_s7 + $0x608] ss:$48 sps:$4 sm:$0xff]  }
0x10e8   : > { %17449 = vmatpush1.bf16.msra.mxu1 %v21450_v9  ;;  %17379 = vmatprep.subr.bf16.mxu0 %v21451_v3  ;;  %v21467_v9 = vld [vmem:[%s28800_s7 + $0x664] ss:$48 sps:$4 sm:$0xff]   ;;  %v21468_v3 = vld [vmem:[%s28800_s7 + $0x66c] ss:$48 sps:$4 sm:$0xff]  }
0x10e9   : > { %17451 = vmatprep.subr.bf16.mxu1 %v21452_v45  ;;  %v21469_v45 = vld [vmem:[%s28800_s7 + $0x660] ss:$48 sps:$4 sm:$0xff]  }
0x10eb   : > { %17381 = vmatpush1.bf16.msra.mxu0 %v21453_v49  ;;  %v21470_v49 = vld [vmem:[%s28800_s7 + $0x668] ss:$48 sps:$4 sm:$0xff]  }
0x10ec   : > { %17453 = vmatpush1.bf16.msra.mxu1 %v21454_v36  ;;  %17383 = vmatprep.subr.bf16.mxu0 %v21455_v11  ;;  %v21471_v36 = vld [vmem:[%s28800_s7 + $0x14] ss:$48 sps:$4 sm:$0xff]   ;;  %v21472_v11 = vld [vmem:[%s28800_s7 + $0x1c] ss:$48 sps:$4 sm:$0xff]  }
0x10ed   : > { %17455 = vmatprep.subr.bf16.mxu1 %v21456_v25  ;;  %v21473_v25 = vld [vmem:[%s28800_s7 + $0x10] ss:$48 sps:$4 sm:$0xff]  }
0x10ef   : > { %17385 = vmatpush1.bf16.msra.mxu0 %v21457_v13  ;;  %v21474_v13 = vld [vmem:[%s28800_s7 + $0x18] ss:$48 sps:$4 sm:$0xff]  }
0x10f0   : > { %17457 = vmatpush1.bf16.msra.mxu1 %v21458_v62  ;;  %17387 = vmatprep.subr.bf16.mxu0 %v21459_v39  ;;  %v21475_v62 = vld [vmem:[%s28800_s7 + $0x74] ss:$48 sps:$4 sm:$0xff]   ;;  %v21476_v39 = vld [vmem:[%s28800_s7 + $0x7c] ss:$48 sps:$4 sm:$0xff]  }
0x10f1   : > { %17459 = vmatprep.subr.bf16.mxu1 %v21460_v15  ;;  %v21477_v15 = vld [vmem:[%s28800_s7 + $0x70] ss:$48 sps:$4 sm:$0xff]  }
0x10f3   : > { %17389 = vmatpush1.bf16.msra.mxu0 %v21461_v0  ;;  %v21478_v0 = vld [vmem:[%s28800_s7 + $0x78] ss:$48 sps:$4 sm:$0xff]  }
0x10f4   : > { %17461 = vmatpush1.bf16.msra.mxu1 %v21462_v35  ;;  %17391 = vmatprep.subr.bf16.mxu0 %v21463_v34  ;;  %v21479_v35 = vld [vmem:[%s28800_s7 + $0xd4] ss:$48 sps:$4 sm:$0xff]   ;;  %v21480_v34 = vld [vmem:[%s28800_s7 + $0xdc] ss:$48 sps:$4 sm:$0xff]  }
0x10f5   : > { %17463 = vmatprep.subr.bf16.mxu1 %v21464_v44  ;;  %v21481_v44 = vld [vmem:[%s28800_s7 + $0xd0] ss:$48 sps:$4 sm:$0xff]  }
0x10f6   : > { %11963 = vmatmul.mubr.f32.vlgmr.msra.gmra.mrb[22].mxu0 %v27807_v51 }
0x10f7   : > { %12105 = vmatmul.mubr.f32.vlgmr.msra.gmra.mrb[16].mxu1 %v27807_v51  ;;  %17393 = vmatpush1.bf16.msra.mxu0 %v21465_v21  ;;  %v21482_v21 = vld [vmem:[%s28800_s7 + $0xd8] ss:$48 sps:$4 sm:$0xff]  }
0x10f8   : > { %17465 = vmatpush1.bf16.msra.mxu1 %v21466_v60  ;;  %17395 = vmatprep.subr.bf16.mxu0 %v21467_v9  ;;  %v21483_v60 = vld [vmem:[%s28800_s7 + $0x134] ss:$48 sps:$4 sm:$0xff]   ;;  %v21484_v9 = vld [vmem:[%s28800_s7 + $0x13c] ss:$48 sps:$4 sm:$0xff]  }
0x10f9   : > { %17467 = vmatprep.subr.bf16.mxu1 %v21468_v3  ;;  %12033 = vmatprep.mubr.f32.mxu0 %v29410_v53  ;;  %v21485_v3 = vld [vmem:[%s28800_s7 + $0x130] ss:$48 sps:$4 sm:$0xff]  }
0x10fa   : > { %12175 = vmatprep.mubr.f32.mxu1 %v29410_v53 }
0x10fb   : > { %17397 = vmatpush1.bf16.msra.mxu0 %v21469_v45  ;;  %v21486_v45 = vld [vmem:[%s28800_s7 + $0x138] ss:$48 sps:$4 sm:$0xff]  }
0x10fc   : > { %17469 = vmatpush1.bf16.msra.mxu1 %v21470_v49  ;;  %17471 = vmatprep.subr.bf16.mxu0 %v21471_v36  ;;  %v21487_v49 = vld [vmem:[%s28800_s7 + $0x194] ss:$48 sps:$4 sm:$0xff]   ;;  %v21488_v36 = vld [vmem:[%s28800_s7 + $0x19c] ss:$48 sps:$4 sm:$0xff]  }
0x10fd   : > { %17543 = vmatprep.subr.bf16.mxu1 %v21472_v11  ;;  %v21489_v11 = vld [vmem:[%s28800_s7 + $0x190] ss:$48 sps:$4 sm:$0xff]  }
0x10fe   : > { %13660 = vmatmul.mubr.msk.f32.vlgmr.msra.gmra.mrb[22].mxu0 %vm1565_vm4, %v27809_v8 }
0x10ff   : > { %13661 = vmatmul.mubr.msk.f32.vlgmr.msra.gmra.mrb[16].mxu1 %vm1565_vm4, %v27809_v8  ;;  %17473 = vmatpush1.bf16.msra.mxu0 %v21473_v25  ;;  %v21490_v25 = vld [vmem:[%s28800_s7 + $0x198] ss:$48 sps:$4 sm:$0xff]  }
0x1100   : > { %12246 = vmatprep.mubr.f32.mxu0 %v27805_v27  ;;  %17545 = vmatpush1.bf16.msra.mxu1 %v21474_v13  ;;  %v21491_v13 = vld [vmem:[%s28800_s7 + $0x1f4] ss:$48 sps:$4 sm:$0xff]  }
0x1101   : > { %12388 = vmatprep.mubr.f32.mxu1 %v27805_v27  ;;  %17475 = vmatprep.subr.bf16.mxu0 %v21475_v62  ;;  %v21492_v62 = vld [vmem:[%s28800_s7 + $0x1fc] ss:$48 sps:$4 sm:$0xff]  }
0x1102   : > { %17547 = vmatprep.subr.bf16.mxu1 %v21476_v39  ;;  %v21493_v39 = vld [vmem:[%s28800_s7 + $0x1f0] ss:$48 sps:$4 sm:$0xff]  }
0x1103   : > { %17477 = vmatpush1.bf16.msra.mxu0 %v21477_v15  ;;  %v21494_v15 = vld [vmem:[%s28800_s7 + $0x1f8] ss:$48 sps:$4 sm:$0xff]  }
0x1104   : > { %17549 = vmatpush1.bf16.msra.mxu1 %v21478_v0  ;;  %17479 = vmatprep.subr.bf16.mxu0 %v21479_v35  ;;  %v21495_v0 = vld [vmem:[%s28800_s7 + $0x254] ss:$48 sps:$4 sm:$0xff]   ;;  %v21496_v35 = vld [vmem:[%s28800_s7 + $0x25c] ss:$48 sps:$4 sm:$0xff]  }
0x1105   : > { %17551 = vmatprep.subr.bf16.mxu1 %v21480_v34  ;;  %v21497_v34 = vld [vmem:[%s28800_s7 + $0x250] ss:$48 sps:$4 sm:$0xff]  }
0x1107   : > { %17481 = vmatpush1.bf16.msra.mxu0 %v21481_v44  ;;  %v21498_v44 = vld [vmem:[%s28800_s7 + $0x258] ss:$48 sps:$4 sm:$0xff]  }
0x1108   : > { %17553 = vmatpush1.bf16.msra.mxu1 %v21482_v21  ;;  %17483 = vmatprep.subr.bf16.mxu0 %v21483_v60  ;;  %v21499_v21 = vld [vmem:[%s28800_s7 + $0x2b4] ss:$48 sps:$4 sm:$0xff]   ;;  %v21500_v60 = vld [vmem:[%s28800_s7 + $0x2bc] ss:$48 sps:$4 sm:$0xff]  }
0x1109   : > { %17555 = vmatprep.subr.bf16.mxu1 %v21484_v9  ;;  %v21501_v9 = vld [vmem:[%s28800_s7 + $0x2b0] ss:$48 sps:$4 sm:$0xff]  }
0x110b   : > { %17485 = vmatpush1.bf16.msra.mxu0 %v21485_v3  ;;  %v21502_v3 = vld [vmem:[%s28800_s7 + $0x2b8] ss:$48 sps:$4 sm:$0xff]  }
0x110c   : > { %17557 = vmatpush1.bf16.msra.mxu1 %v21486_v45  ;;  %17487 = vmatprep.subr.bf16.mxu0 %v21487_v49  ;;  %v21503_v45 = vld [vmem:[%s28800_s7 + $0x314] ss:$48 sps:$4 sm:$0xff]   ;;  %v21504_v49 = vld [vmem:[%s28800_s7 + $0x31c] ss:$48 sps:$4 sm:$0xff]  }
0x110d   : > { %17559 = vmatprep.subr.bf16.mxu1 %v21488_v36  ;;  %v21505_v36 = vld [vmem:[%s28800_s7 + $0x310] ss:$48 sps:$4 sm:$0xff]  }
0x110f   : > { %17489 = vmatpush1.bf16.msra.mxu0 %v21489_v11  ;;  %v21506_v11 = vld [vmem:[%s28800_s7 + $0x318] ss:$48 sps:$4 sm:$0xff]  }
0x1110   : > { %17561 = vmatpush1.bf16.msra.mxu1 %v21490_v25  ;;  %17491 = vmatprep.subr.bf16.mxu0 %v21491_v13  ;;  %v21507_v25 = vld [vmem:[%s28800_s7 + $0x374] ss:$48 sps:$4 sm:$0xff]   ;;  %v21508_v13 = vld [vmem:[%s28800_s7 + $0x37c] ss:$48 sps:$4 sm:$0xff]  }
0x1111   : > { %17563 = vmatprep.subr.bf16.mxu1 %v21492_v62  ;;  %v21509_v62 = vld [vmem:[%s28800_s7 + $0x370] ss:$48 sps:$4 sm:$0xff]  }
0x1113   : > { %17493 = vmatpush1.bf16.msra.mxu0 %v21493_v39  ;;  %v21510_v39 = vld [vmem:[%s28800_s7 + $0x378] ss:$48 sps:$4 sm:$0xff]  }
0x1114   : > { %17565 = vmatpush1.bf16.msra.mxu1 %v21494_v15  ;;  %17495 = vmatprep.subr.bf16.mxu0 %v21495_v0  ;;  %v21511_v15 = vld [vmem:[%s28800_s7 + $0x3d4] ss:$48 sps:$4 sm:$0xff]   ;;  %v21512_v0 = vld [vmem:[%s28800_s7 + $0x3dc] ss:$48 sps:$4 sm:$0xff]  }
0x1115   : > { %17567 = vmatprep.subr.bf16.mxu1 %v21496_v35  ;;  %v21513_v35 = vld [vmem:[%s28800_s7 + $0x3d0] ss:$48 sps:$4 sm:$0xff]  }
0x1117   : > { %17497 = vmatpush1.bf16.msra.mxu0 %v21497_v34  ;;  %v21514_v34 = vld [vmem:[%s28800_s7 + $0x3d8] ss:$48 sps:$4 sm:$0xff]  }
0x1118   : > { %17569 = vmatpush1.bf16.msra.mxu1 %v21498_v44  ;;  %17499 = vmatprep.subr.bf16.mxu0 %v21499_v21  ;;  %v21515_v44 = vld [vmem:[%s28800_s7 + $0x434] ss:$48 sps:$4 sm:$0xff]   ;;  %v21516_v21 = vld [vmem:[%s28800_s7 + $0x43c] ss:$48 sps:$4 sm:$0xff]  }
0x1119   : > { %17571 = vmatprep.subr.bf16.mxu1 %v21500_v60  ;;  %v21517_v60 = vld [vmem:[%s28800_s7 + $0x430] ss:$48 sps:$4 sm:$0xff]  }
0x111b   : > { %17501 = vmatpush1.bf16.msra.mxu0 %v21501_v9  ;;  %v21518_v9 = vld [vmem:[%s28800_s7 + $0x438] ss:$48 sps:$4 sm:$0xff]  }
0x111c   : > { %17573 = vmatpush1.bf16.msra.mxu1 %v21502_v3  ;;  %17503 = vmatprep.subr.bf16.mxu0 %v21503_v45  ;;  %v21519_v3 = vld [vmem:[%s28800_s7 + $0x494] ss:$48 sps:$4 sm:$0xff]   ;;  %v21520_v45 = vld [vmem:[%s28800_s7 + $0x49c] ss:$48 sps:$4 sm:$0xff]  }
0x111d   : > { %17575 = vmatprep.subr.bf16.mxu1 %v21504_v49  ;;  %v21521_v49 = vld [vmem:[%s28800_s7 + $0x490] ss:$48 sps:$4 sm:$0xff]  }
0x111f   : > { %17505 = vmatpush1.bf16.msra.mxu0 %v21505_v36  ;;  %v21522_v36 = vld [vmem:[%s28800_s7 + $0x498] ss:$48 sps:$4 sm:$0xff]  }
0x1120   : > { %17577 = vmatpush1.bf16.msra.mxu1 %v21506_v11  ;;  %17507 = vmatprep.subr.bf16.mxu0 %v21507_v25  ;;  %v21523_v11 = vld [vmem:[%s28800_s7 + $0x4f4] ss:$48 sps:$4 sm:$0xff]   ;;  %v21524_v25 = vld [vmem:[%s28800_s7 + $0x4fc] ss:$48 sps:$4 sm:$0xff]  }
0x1121   : > { %17579 = vmatprep.subr.bf16.mxu1 %v21508_v13  ;;  %v21525_v13 = vld [vmem:[%s28800_s7 + $0x4f0] ss:$48 sps:$4 sm:$0xff]  }
0x1123   : > { %17509 = vmatpush1.bf16.msra.mxu0 %v21509_v62  ;;  %v21526_v62 = vld [vmem:[%s28800_s7 + $0x4f8] ss:$48 sps:$4 sm:$0xff]  }
0x1124   : > { %17581 = vmatpush1.bf16.msra.mxu1 %v21510_v39  ;;  %17511 = vmatprep.subr.bf16.mxu0 %v21511_v15  ;;  %v21527_v39 = vld [vmem:[%s28800_s7 + $0x554] ss:$48 sps:$4 sm:$0xff]   ;;  %v21528_v15 = vld [vmem:[%s28800_s7 + $0x55c] ss:$48 sps:$4 sm:$0xff]  }
0x1125   : > { %17583 = vmatprep.subr.bf16.mxu1 %v21512_v0  ;;  %v21529_v0 = vld [vmem:[%s28800_s7 + $0x550] ss:$48 sps:$4 sm:$0xff]  }
0x1127   : > { %17513 = vmatpush1.bf16.msra.mxu0 %v21513_v35  ;;  %v21530_v35 = vld [vmem:[%s28800_s7 + $0x558] ss:$48 sps:$4 sm:$0xff]  }
0x1128   : > { %17585 = vmatpush1.bf16.msra.mxu1 %v21514_v34  ;;  %17515 = vmatprep.subr.bf16.mxu0 %v21515_v44  ;;  %v21531_v34 = vld [vmem:[%s28800_s7 + $0x5b4] ss:$48 sps:$4 sm:$0xff]   ;;  %v21532_v44 = vld [vmem:[%s28800_s7 + $0x5bc] ss:$48 sps:$4 sm:$0xff]  }
0x1129   : > { %17587 = vmatprep.subr.bf16.mxu1 %v21516_v21  ;;  %v21533_v21 = vld [vmem:[%s28800_s7 + $0x5b0] ss:$48 sps:$4 sm:$0xff]  }
0x112b   : > { %17517 = vmatpush1.bf16.msra.mxu0 %v21517_v60  ;;  %v21534_v60 = vld [vmem:[%s28800_s7 + $0x5b8] ss:$48 sps:$4 sm:$0xff]  }
0x112c   : > { %17589 = vmatpush1.bf16.msra.mxu1 %v21518_v9  ;;  %17519 = vmatprep.subr.bf16.mxu0 %v21519_v3  ;;  %v30296_v9 = vld [vmem:[#allocation67_spill] sm:$0xff]  ;;  %v30297_v3 = vld [vmem:[#allocation68_spill] sm:$0xff] }
0x112d   : > { %17591 = vmatprep.subr.bf16.mxu1 %v21520_v45  ;;  %v30298_v45 = vld [vmem:[#allocation69_spill] sm:$0xff] }
0x112f   : > { %17521 = vmatpush1.bf16.msra.mxu0 %v21521_v49  ;;  %v30299_v49 = vld [vmem:[#allocation70_spill] sm:$0xff] }
0x1130   : > { %17593 = vmatpush1.bf16.msra.mxu1 %v21522_v36  ;;  %17523 = vmatprep.subr.bf16.mxu0 %v21523_v11  ;;  %v30300_v36 = vld [vmem:[#allocation71_spill] sm:$0xff]  ;;  %v30301_v11 = vld [vmem:[#allocation72_spill] sm:$0xff] }
0x1131   : > { %17595 = vmatprep.subr.bf16.mxu1 %v21524_v25  ;;  %v30302_v25 = vld [vmem:[#allocation74_spill] sm:$0xff] }
0x1133   : > { %17525 = vmatpush1.bf16.msra.mxu0 %v21525_v13  ;;  %v30303_v13 = vld [vmem:[#allocation73_spill] sm:$0xff] }
0x1134   : > { %17597 = vmatpush1.bf16.msra.mxu1 %v21526_v62  ;;  %17527 = vmatprep.subr.bf16.mxu0 %v21527_v39  ;;  %v30304_v62 = vld [vmem:[#allocation75_spill] sm:$0xff]  ;;  %v30305_v39 = vld [vmem:[#allocation77_spill] sm:$0xff] }
0x1135   : > { %17599 = vmatprep.subr.bf16.mxu1 %v21528_v15  ;;  %v30306_v15 = vld [vmem:[#allocation79_spill] sm:$0xff] }
0x1137   : > { %17529 = vmatpush1.bf16.msra.mxu0 %v21529_v0  ;;  %v30307_v0 = vld [vmem:[#allocation84_spill] sm:$0xff] }
0x1138   : > { %17601 = vmatpush1.bf16.msra.mxu1 %v21530_v35  ;;  %17531 = vmatprep.subr.bf16.mxu0 %v21531_v34  ;;  %v30308_v35 = vld [vmem:[#allocation86_spill] sm:$0xff]  ;;  %v30309_v34 = vld [vmem:[#allocation85_spill] sm:$0xff] }
0x1139   : > { %17603 = vmatprep.subr.bf16.mxu1 %v21532_v44  ;;  %v30310_v44 = vld [vmem:[#allocation88_spill] sm:$0xff] }
0x113b   : > { %17533 = vmatpush1.bf16.msra.mxu0 %v21533_v21  ;;  %v30311_v21 = vld [vmem:[#allocation12_spill] sm:$0xff] }
0x113c   : > { %17605 = vmatpush1.bf16.msra.mxu1 %v21534_v60  ;;  %17535 = vmatprep.subr.bf16.mxu0 %v27258_v19  ;;  %v30265_v19 = vld [vmem:[#allocation36_spill] sm:$0xff]  ;;  %v30312_v60 = vld [vmem:[#allocation13_spill] sm:$0xff] }
0x113d   : > { %17607 = vmatprep.subr.bf16.mxu1 %v27264_v16  ;;  %v30266_v16 = vld [vmem:[#allocation37_spill] sm:$0xff] }
0x113e   : > { %12247 = vmatmul.mubr.f32.vlgmr.msra.gmra.mrb[34].mxu0 %v27807_v51 }
0x113f   : > { %12389 = vmatmul.mubr.f32.vlgmr.msra.gmra.mrb[28].mxu1 %v27807_v51  ;;  %17537 = vmatpush1.bf16.msra.mxu0 %v27272_v2  ;;  %v30267_v2 = vld [vmem:[#allocation38_spill] sm:$0xff] }
0x1140   : > { %17609 = vmatpush1.bf16.msra.mxu1 %v27278_v26  ;;  %17539 = vmatprep.subr.bf16.mxu0 %v27284_v52  ;;  %v30268_v26 = vld [vmem:[#allocation39_spill] sm:$0xff]  ;;  %v30269_v52 = vld [vmem:[#allocation40_spill] sm:$0xff] }
0x1141   : > { %17611 = vmatprep.subr.bf16.mxu1 %v27290_v58  ;;  %12317 = vmatprep.mubr.f32.mxu0 %v29410_v53  ;;  %v30270_v58 = vld [vmem:[#allocation41_spill] sm:$0xff] }
0x1142   : > { %12459 = vmatprep.mubr.f32.mxu1 %v29410_v53 }
0x1143   : > { %17541 = vmatpush1.bf16.msra.mxu0 %v27298_v41  ;;  %v30271_v41 = vld [vmem:[#allocation42_spill] sm:$0xff] }
0x1144   : > { %17613 = vmatpush1.bf16.msra.mxu1 %v27304_v40  ;;  %17615 = vmatprep.subr.bf16.mxu0 %v27310_v22  ;;  %v30272_v40 = vld [vmem:[#allocation43_spill] sm:$0xff]  ;;  %v30273_v22 = vld [vmem:[#allocation44_spill] sm:$0xff] }
0x1145   : > { %17687 = vmatprep.subr.bf16.mxu1 %v27316_v12  ;;  %v30274_v12 = vld [vmem:[#allocation45_spill] sm:$0xff] }
0x1146   : > { %13662 = vmatmul.mubr.msk.f32.vlgmr.msra.gmra.mrb[34].mxu0 %vm1565_vm4, %v27809_v8 }
0x1147   : > { %13663 = vmatmul.mubr.msk.f32.vlgmr.msra.gmra.mrb[28].mxu1 %vm1565_vm4, %v27809_v8  ;;  %17617 = vmatpush1.bf16.msra.mxu0 %v27326_v43  ;;  %v30275_v43 = vld [vmem:[#allocation46_spill] sm:$0xff] }
0x1148   : > { %12530 = vmatprep.mubr.f32.mxu0 %v27805_v27  ;;  %17689 = vmatpush1.bf16.msra.mxu1 %v27333_v46  ;;  %v30276_v46 = vld [vmem:[#allocation47_spill] sm:$0xff] }
0x1149   : > { %12672 = vmatprep.mubr.f32.mxu1 %v27805_v27  ;;  %17619 = vmatprep.subr.bf16.mxu0 %v27340_v6  ;;  %v30277_v6 = vld [vmem:[#allocation48_spill] sm:$0xff] }
0x114a   : > { %17691 = vmatprep.subr.bf16.mxu1 %v27346_v30  ;;  %v30278_v30 = vld [vmem:[#allocation49_spill] sm:$0xff] }
0x114b   : > { %17621 = vmatpush1.bf16.msra.mxu0 %v27352_v55  ;;  %v30279_v55 = vld [vmem:[#allocation50_spill] sm:$0xff] }
0x114c   : > { %17693 = vmatpush1.bf16.msra.mxu1 %v27358_v48  ;;  %17623 = vmatprep.subr.bf16.mxu0 %v27364_v63  ;;  %v30280_v48 = vld [vmem:[#allocation51_spill] sm:$0xff]  ;;  %v30281_v63 = vld [vmem:[#allocation52_spill] sm:$0xff] }
0x114d   : > { %17695 = vmatprep.subr.bf16.mxu1 %v27370_v24  ;;  %v30282_v24 = vld [vmem:[#allocation53_spill] sm:$0xff] }
0x114f   : > { %17625 = vmatpush1.bf16.msra.mxu0 %v27376_v50  ;;  %v30283_v50 = vld [vmem:[#allocation54_spill] sm:$0xff] }
0x1150   : > { %17697 = vmatpush1.bf16.msra.mxu1 %v27382_v59  ;;  %17627 = vmatprep.subr.bf16.mxu0 %v27388_v7  ;;  %v30284_v59 = vld [vmem:[#allocation55_spill] sm:$0xff]  ;;  %v30285_v7 = vld [vmem:[#allocation56_spill] sm:$0xff] }
0x1151   : > { %17699 = vmatprep.subr.bf16.mxu1 %v27394_v57  ;;  %v30286_v57 = vld [vmem:[#allocation57_spill] sm:$0xff] }
0x1153   : > { %17629 = vmatpush1.bf16.msra.mxu0 %v27400_v23  ;;  %v30287_v23 = vld [vmem:[#allocation58_spill] sm:$0xff] }
0x1154   : > { %17701 = vmatpush1.bf16.msra.mxu1 %v27406_v14  ;;  %17631 = vmatprep.subr.bf16.mxu0 %v27412_v29  ;;  %v30288_v14 = vld [vmem:[#allocation59_spill] sm:$0xff]  ;;  %v30289_v29 = vld [vmem:[#allocation60_spill] sm:$0xff] }
0x1155   : > { %17703 = vmatprep.subr.bf16.mxu1 %v27418_v1  ;;  %v30290_v1 = vld [vmem:[#allocation61_spill] sm:$0xff] }
0x1157   : > { %17633 = vmatpush1.bf16.msra.mxu0 %v27424_v5  ;;  %v30291_v5 = vld [vmem:[#allocation62_spill] sm:$0xff] }
0x1158   : > { %17705 = vmatpush1.bf16.msra.mxu1 %v27430_v38  ;;  %17635 = vmatprep.subr.bf16.mxu0 %v27436_v31  ;;  %v30292_v38 = vld [vmem:[#allocation63_spill] sm:$0xff]  ;;  %v30293_v31 = vld [vmem:[#allocation64_spill] sm:$0xff] }
0x1159   : > { %17707 = vmatprep.subr.bf16.mxu1 %v27442_v47  ;;  %v30294_v47 = vld [vmem:[#allocation65_spill] sm:$0xff] }
0x115b   : > { %17637 = vmatpush1.bf16.msra.mxu0 %v27448_v33  ;;  %v30295_v33 = vld [vmem:[#allocation66_spill] sm:$0xff] }
0x115c   : > { %17709 = vmatpush1.bf16.msra.mxu1 %v30265_v19  ;;  %17639 = vmatprep.subr.bf16.mxu0 %v30266_v16  ;;  %v30313_v19 = vld [vmem:[#allocation14_spill] sm:$0xff]  ;;  %v30314_v16 = vmov 0.0|0.0  }
0x115d   : > { %17711 = vmatprep.subr.bf16.mxu1 %v30267_v2 }
0x115f   : > { %17641 = vmatpush1.bf16.msra.mxu0 %v30268_v26 }
0x1160   : > { %17713 = vmatpush1.bf16.msra.mxu1 %v30269_v52  ;;  %17643 = vmatprep.subr.bf16.mxu0 %v30270_v58 }
0x1161   : > { %17715 = vmatprep.subr.bf16.mxu1 %v30271_v41  ;;  %v13130_v41 = vld [vmem:[%s28802_s9 + $0x80] sm:$0xff] }
0x1163   : > { %17645 = vmatpush1.bf16.msra.mxu0 %v30272_v40  ;;  %v13131_v40 = vld [vmem:[%s28802_s9 + $0x88] sm:$0xff] }
0x1164   : > { %17717 = vmatpush1.bf16.msra.mxu1 %v30273_v22  ;;  %17647 = vmatprep.subr.bf16.mxu0 %v30274_v12  ;;  %v17758_v22 = vpack.c.bf16 %v13131_v40, %v13130_v41  ;;  %v13114_v12 = vld [vmem:[%s28802_s9] sm:$0xff]  ;;  %v13147_v40 = vld [vmem:[%s28802_s9 + $0x108] sm:$0xff] }
0x1165   : > { %17719 = vmatprep.subr.bf16.mxu1 %v30275_v43  ;;  %v13115_v43 = vld [vmem:[%s28802_s9 + $0x8] sm:$0xff]  ;;  %v13146_v41 = vld [vmem:[%s28802_s9 + $0x100] sm:$0xff] }
0x1167   : > { %17649 = vmatpush1.bf16.msra.mxu0 %v30276_v46  ;;  %v17760_v46 = vpack.c.bf16 %v13115_v43, %v13114_v12  ;;  %v17791_v43 = vpack.c.bf16 %v13147_v40, %v13146_v41  ;;  %v12835_v40 = vstv %s12834_s22  ;;  %s28563_s22 = sld [smem:[#allocation5 + $0x82]] }
0x1168   : > { %17721 = vmatpush1.bf16.msra.mxu1 %v30277_v6  ;;  %17651 = vmatprep.subr.bf16.mxu0 %v30278_v30  ;;  %v13132_v6 = vld [vmem:[%s28802_s9 + $0x90] sm:$0xff]  ;;  %v13133_v30 = vld [vmem:[%s28802_s9 + $0x98] sm:$0xff] }
0x1169   : > { %17723 = vmatprep.subr.bf16.mxu1 %v30279_v55  ;;  %v17762_v55 = vpack.c.bf16 %v13133_v30, %v13132_v6  ;;  %v13128_v6 = vld [vmem:[%s28802_s9 + $0x70] sm:$0xff] }
0x116b   : > { %17653 = vmatpush1.bf16.msra.mxu0 %v30280_v48  ;;  %v13116_v48 = vld [vmem:[%s28802_s9 + $0x10] sm:$0xff] }
0x116c   : > { %17725 = vmatpush1.bf16.msra.mxu1 %v30281_v63  ;;  %17655 = vmatprep.subr.bf16.mxu0 %v30282_v24  ;;  %v13117_v63 = vld [vmem:[%s28802_s9 + $0x18] sm:$0xff] }
0x116d   : > { %17727 = vmatprep.subr.bf16.mxu1 %v30283_v50  ;;  %v17764_v24 = vpack.c.bf16 %v13117_v63, %v13116_v48  ;;  %v13134_v50 = vld [vmem:[%s28802_s9 + $0xa0] sm:$0xff] }
0x116f   : > { %17657 = vmatpush1.bf16.msra.mxu0 %v30284_v59  ;;  %v13135_v59 = vld [vmem:[%s28802_s9 + $0xa8] sm:$0xff] }
0x1170   : > { %17729 = vmatpush1.bf16.msra.mxu1 %v30285_v7  ;;  %17659 = vmatprep.subr.bf16.mxu0 %v30286_v57  ;;  %v17766_v7 = vpack.c.bf16 %v13135_v59, %v13134_v50  ;;  %v13118_v57 = vld [vmem:[%s28802_s9 + $0x20] sm:$0xff] }
0x1171   : > { %17731 = vmatprep.subr.bf16.mxu1 %v30287_v23  ;;  %v13119_v23 = vld [vmem:[%s28802_s9 + $0x28] sm:$0xff] }
0x1173   : > { %17661 = vmatpush1.bf16.msra.mxu0 %v30288_v14  ;;  %v17768_v14 = vpack.c.bf16 %v13119_v23, %v13118_v57 }
0x1174   : > { %17733 = vmatpush1.bf16.msra.mxu1 %v30289_v29  ;;  %17663 = vmatprep.subr.bf16.mxu0 %v30290_v1  ;;  %v13136_v29 = vld [vmem:[%s28802_s9 + $0xb0] sm:$0xff]  ;;  %v13137_v1 = vld [vmem:[%s28802_s9 + $0xb8] sm:$0xff] }
0x1175   : > { %17735 = vmatprep.subr.bf16.mxu1 %v30291_v5  ;;  %v17770_v5 = vpack.c.bf16 %v13137_v1, %v13136_v29 }
0x1177   : > { %17665 = vmatpush1.bf16.msra.mxu0 %v30292_v38  ;;  %v13120_v38 = vld [vmem:[%s28802_s9 + $0x30] sm:$0xff] }
0x1178   : > { %17737 = vmatpush1.bf16.msra.mxu1 %v30293_v31  ;;  %17667 = vmatprep.subr.bf16.mxu0 %v30294_v47  ;;  %v13121_v31 = vld [vmem:[%s28802_s9 + $0x38] sm:$0xff] }
0x1179   : > { %17739 = vmatprep.subr.bf16.mxu1 %v30295_v33  ;;  %v17772_v47 = vpack.c.bf16 %v13121_v31, %v13120_v38  ;;  %v13138_v33 = vld [vmem:[%s28802_s9 + $0xc0] sm:$0xff] }
0x117a   : > { %v30316_v38 = vld [vmem:[#allocation78_spill] sm:$0xff] }
0x117b   : > { %17669 = vmatpush1.bf16.msra.mxu0 %v30296_v9  ;;  %v13139_v9 = vld [vmem:[%s28802_s9 + $0xc8] sm:$0xff] }
0x117c   : > { %17741 = vmatpush1.bf16.msra.mxu1 %v30297_v3  ;;  %17671 = vmatprep.subr.bf16.mxu0 %v30298_v45  ;;  %v17774_v3 = vpack.c.bf16 %v13139_v9, %v13138_v33  ;;  %v13122_v45 = vld [vmem:[%s28802_s9 + $0x40] sm:$0xff] }
0x117d   : > { %17743 = vmatprep.subr.bf16.mxu1 %v30299_v49  ;;  %v13123_v49 = vld [vmem:[%s28802_s9 + $0x48] sm:$0xff] }
0x117f   : > { %17673 = vmatpush1.bf16.msra.mxu0 %v30300_v36  ;;  %v17776_v36 = vpack.c.bf16 %v13123_v49, %v13122_v45 }
0x1180   : > { %17745 = vmatpush1.bf16.msra.mxu1 %v30301_v11  ;;  %17675 = vmatprep.subr.bf16.mxu0 %v30302_v25  ;;  %v13140_v11 = vld [vmem:[%s28802_s9 + $0xd0] sm:$0xff]  ;;  %v13141_v25 = vld [vmem:[%s28802_s9 + $0xd8] sm:$0xff] }
0x1181   : > { %17747 = vmatprep.subr.bf16.mxu1 %v30303_v13  ;;  %v17778_v13 = vpack.c.bf16 %v13141_v25, %v13140_v11 }
0x1183   : > { %17677 = vmatpush1.bf16.msra.mxu0 %v30304_v62  ;;  %v13124_v62 = vld [vmem:[%s28802_s9 + $0x50] sm:$0xff] }
0x1184   : > { %17749 = vmatpush1.bf16.msra.mxu1 %v30305_v39  ;;  %17679 = vmatprep.subr.bf16.mxu0 %v30306_v15  ;;  %v13125_v39 = vld [vmem:[%s28802_s9 + $0x58] sm:$0xff] }
0x1185   : > { %17751 = vmatprep.subr.bf16.mxu1 %v30307_v0  ;;  %v17780_v15 = vpack.c.bf16 %v13125_v39, %v13124_v62  ;;  %v13142_v0 = vld [vmem:[%s28802_s9 + $0xe0] sm:$0xff] }
0x1186   : > { %12531 = vmatmul.mubr.f32.vlgmr.msra.gmra.mrb[46].mxu0 %v27807_v51 }
0x1187   : > { %12673 = vmatmul.mubr.f32.vlgmr.msra.gmra.mrb[40].mxu1 %v27807_v51  ;;  %17681 = vmatpush1.bf16.msra.mxu0 %v30308_v35  ;;  %v13143_v35 = vld [vmem:[%s28802_s9 + $0xe8] sm:$0xff] }
0x1188   : > { %17753 = vmatpush1.bf16.msra.mxu1 %v30309_v34  ;;  %17683 = vmatprep.subr.bf16.mxu0 %v30310_v44  ;;  %v13126_v34 = vld [vmem:[%s28802_s9 + $0x60] sm:$0xff]  ;;  %v30315_v44 = vld [vmem:[#allocation76_spill] sm:$0xff] }
0x1189   : > { %17755 = vmatprep.subr.bf16.mxu1 %v30311_v21  ;;  %12601 = vmatprep.mubr.f32.mxu0 %v29410_v53 }
0x118a   : > { %12743 = vmatprep.mubr.f32.mxu1 %v29410_v53 }
0x118b   : > { %17685 = vmatpush1.bf16.msra.mxu0 %v30312_v60  ;;  %v17782_v60 = vpack.c.bf16 %v13143_v35, %v13142_v0 }
0x118c   : > { %17757 = vmatpush1.bf16.msra.mxu1 %v30313_v19  ;;  %17759 = vmatprep.subr.bf16.mxu0 %v17758_v22  ;;  %v13127_v19 = vld [vmem:[%s28802_s9 + $0x68] sm:$0xff] }
0x118d   : > { %17790 = vmatprep.subr.bf16.mxu1 %v30314_v16  ;;  %v17784_v12 = vpack.c.bf16 %v13127_v19, %v13126_v34 }
0x118e   : > { %13664 = vmatmul.mubr.msk.f32.vlgmr.msra.gmra.mrb[46].mxu0 %vm1565_vm4, %v27809_v8 }
0x118f   : > { %13665 = vmatmul.mubr.msk.f32.vlgmr.msra.gmra.mrb[40].mxu1 %vm1565_vm4, %v27809_v8  ;;  %17761 = vmatpush3.bf16.msra.mxu0 %v17760_v46  ;;  %v13145_v46 = vld [vmem:[%s28802_s9 + $0xf8] sm:$0xff] }
0x1190   : > { %14143 = vmatprep.mubr.msk.f32.mxu1 %vm21602_vm5, %v29410_v53  ;;  %17763 = vmatprep.subr.bf16.mxu0 %v17762_v55  ;;  %v13149_v55 = vld [vmem:[%s28802_s9 + $0x118] sm:$0xff] }
0x1191   : > { %17792 = vmatpush3.bf16.msra.mxu1 %v17791_v43 }
0x1192   : > { %17793 = vmatprep.subr.bf16.mxu1 %v30314_v16 }
0x1193   : > { %17765 = vmatpush3.bf16.msra.mxu0 %v17764_v24 }
0x1194   : > { %17767 = vmatprep.subr.bf16.mxu0 %v17766_v7 }
0x1197   : > { %17769 = vmatpush3.bf16.msra.mxu0 %v17768_v14 }
0x1198   : > { %17771 = vmatprep.subr.bf16.mxu0 %v17770_v5 }
0x119b   : > { %17773 = vmatpush3.bf16.msra.mxu0 %v17772_v47 }
0x119c   : > { %17775 = vmatprep.subr.bf16.mxu0 %v17774_v3  ;;  %v30317_v3 = vld [vmem:[#allocation80_spill] sm:$0xff] }
0x119f   : > { %17777 = vmatpush3.bf16.msra.mxu0 %v17776_v36 }
0x11a0   : > { %17779 = vmatprep.subr.bf16.mxu0 %v17778_v13 }
0x11a3   : > { %17781 = vmatpush3.bf16.msra.mxu0 %v17780_v15 }
0x11a4   : > { %17783 = vmatprep.subr.bf16.mxu0 %v17782_v60 }
0x11a7   : > { %17785 = vmatpush3.bf16.msra.mxu0 %v17784_v12  ;;  %v13003_v12 = vstv %s13694_s24  ;;  %s28576_s24 = sld [smem:[#allocation5 + $0x202]] }
0x11d1   : > { %v12035_v2 = vpop.f32.mrb[22].mxu0 }
0x11d2   : > { %v28417_v26 = vpop.f32.mrb[16].mxu1  ;;  %v28419_v52 = vpop.f32.mrb[23].mxu0  ;;  %v17806_v22 = vadd.f32 %v12035_v2, %v29637_v4  ;;  %v13129_v4 = vld [vmem:[%s28802_s9 + $0x78] sm:$0xff]  ;;  %v13148_v2 = vld [vmem:[%s28802_s9 + $0x110] sm:$0xff] }
0x11d3   : > { %v12179_v58 = vpop.f32.mrb[17].mxu1  ;;  %v17788_v48 = vpack.c.bf16 %v13129_v4, %v13128_v6  ;;  %v17794_v63 = vpack.c.bf16 %v13149_v55, %v13148_v2  ;;  %v17807_v24 = vadd.f32 %v28419_v52, %v29638_v17 }
0x11d4   : > { %v17819_v21 = vadd.f32 %v12179_v58, %v30315_v44  ;;  %v13144_v58 = vld [vmem:[%s28802_s9 + $0xf0] sm:$0xff]  ;;  %v13666_v59 = vmul.f32 -1.442695, %v17806_v22  ;;  %v12947_v22 = vstv %s13687_s26  ;;  %s28573_s26 = sld [smem:[#allocation5 + $0x182]] }
0x11d5   : > { %v17786_v30 = vpack.c.bf16 %v13145_v46, %v13144_v58  ;;  %17795 = vmatpush3.bf16.msra.mxu1 %v17794_v63  ;;  %v13667_v7 = vmul.f32 -1.442695, %v17807_v24  ;;  %v13059_v58 = vstv %s13701_s14  ;;  %v12843_v46 = vstv %s13675_s15  ;;  %v30320_v63 = vld [vmem:[#allocation83_spill] sm:$0xff]  ;;  %s28598_s14 = sld [smem:[#allocation5 + $0x3]] }
0x11d6   : > { %v13669_v50 = vmul.f32 -1.442695, %v17819_v21  ;;  %v12838_v24 = vmul.f32 %v12835_v40, %v30320_v63  ;;  %s28609_s15 = sld [smem:[#allocation5 + $0x83]] }
0x11d7   : > { %17787 = vmatprep.subr.bf16.mxu0 %v17786_v30  ;;  %v30319_v30 = vld [vmem:[#allocation82_spill] sm:$0xff] }
0x11d8   : > { %17789 = vmatpush3.bf16.msra.mxu0 %v17788_v48  ;;  %20844 = vpow2.f32 %v13669_v50  ;;  %v12836_v4 = vmul.f32 %v12835_v40, %v30319_v30  ;;  %v12948_v55 = vmul.f32 %v12947_v22, %v30319_v30 }
0x11d9   : > { %20846 = vpow2.f32 %v13666_v59  ;;  %v12955_v59 = vstv %s13688_s25  ;;  %s28620_s25 = sld [smem:[#allocation5 + $0x183]] }
0x11da   : > { %20848 = vpow2.f32 %v13667_v7  ;;  %v12950_v7 = vmul.f32 %v12947_v22, %v30320_v63 }
0x11e2   : > { %v20845_v57 = vpop.eup %20844 }
0x11e3   : > { %v20847_v23 = vpop.eup %20846  ;;  %v12789_v14 = vadd.f32 1.0, %v20845_v57  ;;  %v30321_v57 = vld [vmem:[#allocation30_spill] sm:$0xff] }
0x11e4   : > { %v20849_v29 = vpop.eup %20848  ;;  %v12771_v1 = vadd.f32 1.0, %v20847_v23  ;;  %v12845_v23 = vmul.f32 %v12843_v46, %v30321_v57 }
0x11e5   : > { %v12772_v47 = vadd.f32 1.0, %v20849_v29  ;;  %20850 = vrcp.f32 %v12789_v14  ;;  %v30322_v14 = vld [vmem:[#allocation31_spill] sm:$0xff] }
0x11e6   : > { %20852 = vrcp.f32 %v12771_v1  ;;  %v12844_v29 = vmul.f32 %v12843_v46, %v30322_v14 }
0x11ef   : > { %v20851_v49 = vpop.eup %20850 }
0x11f0   : > { %v20853_v36 = vpop.eup %20852  ;;  %v12819_v13 = vmul.f32 %v20851_v49, %v27788_v18  ;;  %v17818_v18 = vadd.f32 %v28417_v26, %v24016_v28  ;;  %v12899_v26 = vstv %s13681_s20  ;;  %v12956_v49 = vmul.f32 %v12955_v59, %v30322_v14  ;;  %s28615_s20 = sld [smem:[#allocation5 + $0x103]] }
0x11f1   : > { %v12901_v1 = vmul.f32 %v12899_v26, %v30321_v57 }
0x11f2   : > { %v13668_v41 = vmul.f32 -1.442695, %v17818_v18 }
0x1219   : > { %v12319_v5 = vpop.f32.mrb[34].mxu0 }
0x121a   : > { %v17830_v31 = vadd.f32 %v12319_v5, %v30316_v38  ;;  %v12461_v17 = vpop.f32.mrb[28].mxu1  ;;  %v12321_v52 = vpop.f32.mrb[35].mxu0  ;;  %v13011_v5 = vstv %s13695_s17  ;;  %v12900_v38 = vmul.f32 %v12899_v26, %v30322_v14  ;;  %s28625_s17 = sld [smem:[#allocation5 + $0x203]] }
0x121b   : > { %v17842_v16 = vadd.f32 %v12461_v17, %v29640_v56  ;;  %v12463_v33 = vpop.f32.mrb[29].mxu1  ;;  %v17831_v60 = vadd.f32 %v12321_v52, %v24013_v32  ;;  %v30318_v32 = vld [vmem:[#allocation81_spill] sm:$0xff]  ;;  %v13006_v17 = vmul.f32 %v13003_v12, %v30320_v63 }
0x121c   : > { %v13670_v9 = vmul.f32 -1.442695, %v17830_v31  ;;  %v17843_v45 = vadd.f32 %v12463_v33, %v30317_v3  ;;  %v12837_v43 = vmul.f32 %v12835_v40, %v30318_v32  ;;  %v12949_v6 = vmul.f32 %v12947_v22, %v30318_v32 }
0x121d   : > { %20854 = vtanh.f32 %v17842_v16  ;;  %v13671_v19 = vmul.f32 -1.442695, %v17831_v60  ;;  %v13005_v48 = vmul.f32 %v13003_v12, %v30318_v32  ;;  %v13004_v31 = vmul.f32 %v13003_v12, %v30319_v30 }
0x121e   : > { %20856 = vpow2.f32 %v13670_v9  ;;  %v13061_v52 = vmul.f32 %v13059_v58, %v30318_v32  ;;  %v12957_v33 = vmul.f32 %v12955_v59, %v30321_v57  ;;  %v13067_v9 = vstv %s28546_s19  ;;  %s28644_s19 = sld [smem:[#allocation5 + $0x4]] }
0x121f   : > { %20858 = vrcp.f32 %v12772_v47  ;;  %v30323_v47 = vld [vmem:[#allocation32_spill] sm:$0xff]  ;;  %v13060_v3 = vmul.f32 %v13059_v58, %v30319_v30  ;;  %v12959_v22 = vadd.f32 %v12956_v49, %v12948_v55 }
0x1220   : > { %20860 = vtanh.f32 %v17843_v45  ;;  %v12846_v16 = vmul.f32 %v12843_v46, %v30323_v47  ;;  %v12902_v45 = vmul.f32 %v12899_v26, %v30323_v47  ;;  %v13070_v40 = vmul.f32 %v13067_v9, %v30323_v47 }
0x1221   : > { %v12907_v46 = vstv %s28563_s22  ;;  %s28652_s22 = sld [smem:[#allocation5 + $0x104]] }
0x1222   : > { %v12849_v18 = vadd.f32 %v12846_v16, %v12838_v24 }
0x1227   : > { %v20855_v11 = vpop.eup %20854 }
0x1228   : > { %v20857_v25 = vpop.eup %20856  ;;  %v12822_v62 = vmul.f32 %v20855_v11, %v20853_v36  ;;  %v12958_v36 = vmul.f32 %v12955_v59, %v30323_v47  ;;  %v13013_v11 = vmul.f32 %v13011_v5, %v30321_v57 }
0x1229   : > { %v20859_v39 = vpop.eup %20858  ;;  %v12790_v15 = vadd.f32 1.0, %v20857_v25  ;;  %v12848_v25 = vadd.f32 %v12845_v23, %v12837_v43 }
0x122a   : > { %v20861_v0 = vpop.eup %20860  ;;  %v28538_v56 = vadd.f32 %v12822_v62, %v12819_v13  ;;  %v12847_v13 = vadd.f32 %v12844_v29, %v12836_v4  ;;  %v28589_v12 = vadd.f32 %v12958_v36, %v12950_v7  ;;  %v30325_v7 = vld [vmem:[#allocation91_spill] sm:$0xff] }
0x122b   : > { %20862 = vrcp.f32 %v12790_v15  ;;  %v12823_v35 = vmul.f32 %v20861_v0, %v20859_v39  ;;  %v13062_v39 = vmul.f32 %v13059_v58, %v30320_v63  ;;  %v12851_v58 = vstv %s28556_s21  ;;  %s28648_s21 = sld [smem:[#allocation5 + $0x84]] }
0x122c   : > { %20864 = vpow2.f32 %v13671_v19  ;;  %v12960_v19 = vadd.f32 %v12957_v33, %v12949_v6 }
0x122d   : > { %20866 = vpow2.f32 %v13668_v41  ;;  %v13068_v41 = vmul.f32 %v13067_v9, %v30322_v14  ;;  %v28604_v55 = vadd.f32 %v13070_v40, %v13062_v39 }
0x122f   : > { %v28602_v24 = vadd.f32 %v13068_v41, %v13060_v3 }
0x1235   : > { %v20863_v34 = vpop.eup %20862 }
0x1236   : > { %v12820_v44 = vmul.f32 %v20863_v34, %v27791_v42  ;;  %v12891_v42 = vstv %s13680_s23  ;;  %s28565_s23 = sld [smem:[#allocation5 + $0x102]]  ;;  %v20865_v15 = vpop.eup %20864  ;;  %v13014_v34 = vmul.f32 %v13011_v5, %v30323_v47 }
0x1237   : > { %v12893_v28 = vmul.f32 %v12891_v42, %v30318_v32  ;;  %v12892_v2 = vmul.f32 %v12891_v42, %v30319_v30  ;;  %v12894_v50 = vmul.f32 %v12891_v42, %v30320_v63  ;;  %v20867_v60 = vpop.eup %20866  ;;  %v13016_v32 = vadd.f32 %v13013_v11, %v13005_v48  ;;  %v30324_v48 = vld [vmem:[#allocation90_spill] sm:$0xff] }
0x1238   : > { %v28541_v21 = vadd.f32 %v12823_v35, %v12820_v44  ;;  %v13012_v35 = vmul.f32 %v13011_v5, %v30322_v14  ;;  %v13069_v44 = vmul.f32 %v13067_v9, %v30321_v57  ;;  %v12791_v43 = vadd.f32 1.0, %v20865_v15 }
0x1239   : > { %v12904_v62 = vadd.f32 %v12901_v1, %v12893_v28  ;;  %v12903_v0 = vadd.f32 %v12900_v38, %v12892_v2  ;;  %v12905_v42 = vadd.f32 %v12902_v45, %v12894_v50  ;;  %v12773_v26 = vadd.f32 1.0, %v20867_v60  ;;  %v30326_v38 = vld [vmem:[#allocation92_spill] sm:$0xff] }
0x123a   : > { %v13015_v30 = vadd.f32 %v13012_v35, %v13004_v31  ;;  %v28594_v4 = vadd.f32 %v13014_v34, %v13006_v17  ;;  %v28596_v6 = vadd.f32 %v13069_v44, %v13061_v52  ;;  %v13019_v2 = vstv %s28573_s26  ;;  %s28668_s26 = sld [smem:[#allocation5 + $0x204]] }
0x123b   : > { %v13075_v63 = vstv %s28576_s24  ;;  %v12853_v59 = vmul.f32 %v12851_v58, %v30324_v48  ;;  %v12852_v57 = vmul.f32 %v12851_v58, %v30325_v7  ;;  %v12909_v23 = vmul.f32 %v12907_v46, %v30324_v48  ;;  %s28673_s24 = sld [smem:[#allocation5 + $0x5]] }
0x123c   : > { %v12963_v28 = vstv %s28565_s23  ;;  %20868 = vrcp.f32 %v12791_v43  ;;  %v12854_v31 = vmul.f32 %v12851_v58, %v30326_v38  ;;  %v12908_v17 = vmul.f32 %v12907_v46, %v30325_v7  ;;  %v30327_v43 = vld [vmem:[#allocation33_spill] sm:$0xff]  ;;  %s28658_s23 = sld [smem:[#allocation5 + $0x184]] }
0x123d   : > { %v12965_v14 = vmul.f32 %v12963_v28, %v30324_v48  ;;  %20870 = vrcp.f32 %v12773_v26  ;;  %v12964_v33 = vmul.f32 %v12963_v28, %v30325_v7  ;;  %v12910_v9 = vmul.f32 %v12907_v46, %v30326_v38  ;;  %v30328_v26 = vld [vmem:[#allocation35_spill] sm:$0xff] }
0x123e   : > { %v13021_v3 = vmul.f32 %v13019_v2, %v30324_v48  ;;  %v12856_v36 = vadd.f32 %v12853_v59, %v12848_v25  ;;  %v12855_v39 = vadd.f32 %v12852_v57, %v12847_v13  ;;  %v12911_v15 = vadd.f32 %v12908_v17, %v12903_v0 }
0x123f   : > { %v12968_v35 = vadd.f32 %v12965_v14, %v12960_v19  ;;  %v13020_v34 = vmul.f32 %v13019_v2, %v30325_v7  ;;  %v12859_v44 = vstv %s28598_s14  ;;  %v12913_v60 = vadd.f32 %v12910_v9, %v12905_v42  ;;  %s28678_s14 = sld [smem:[#allocation5 + $0x85]] }
0x1240   : > { %v12967_v25 = vadd.f32 %v12964_v33, %v12959_v22  ;;  %v13077_v13 = vmul.f32 %v13075_v63, %v30324_v48  ;;  %v12971_v0 = vstv %s28615_s20  ;;  %v13024_v41 = vadd.f32 %v13021_v3, %v13016_v32  ;;  %s28686_s20 = sld [smem:[#allocation7]] }
0x1241   : > { %v13076_v40 = vmul.f32 %v13075_v63, %v30325_v7  ;;  %v13078_v19 = vmul.f32 %v13075_v63, %v30326_v38  ;;  %v12861_v58 = vmul.f32 %v12859_v44, %v30327_v43  ;;  %v28641_v42 = vadd.f32 %v13020_v34, %v13015_v30 }
0x1242   : > { %v13080_v57 = vadd.f32 %v13077_v13, %v28596_v6 }
0x1243   : > { %v12864_v17 = vadd.f32 %v12861_v58, %v12856_v36 }
0x1246   : > { %v20869_v22 = vpop.eup %20868 }
0x1247   : > { %v20871_v59 = vpop.eup %20870 }
0x1261   : > { %v12603_v50 = vpop.f32.mrb[46].mxu0 }
0x1262   : > { %v17854_v29 = vadd.f32 %v12603_v50, %v24024_v10  ;;  %v12745_v1 = vpop.f32.mrb[40].mxu1  ;;  %v12605_v5 = vpop.f32.mrb[47].mxu0  ;;  %v30329_v50 = vld [vmem:[#allocation34_spill] sm:$0xff] }
0x1263   : > { %v17866_v52 = vadd.f32 %v12745_v1, %v24027_v54  ;;  %v17855_v47 = vadd.f32 %v12605_v5, %v24030_v37  ;;  %v12747_v16 = vpop.f32.mrb[41].mxu1  ;;  %v12912_v54 = vadd.f32 %v12909_v23, %v12904_v62  ;;  %v12857_v37 = vadd.f32 %v12854_v31, %v12849_v18 }
0x1264   : > { %20872 = vtanh.f32 %v17854_v29  ;;  %v17867_v10 = vadd.f32 %v12747_v16, %v24034_v61  ;;  %v12966_v61 = vmul.f32 %v12963_v28, %v30326_v38  ;;  %v12915_v62 = vstv %s28609_s15  ;;  %s28680_s15 = sld [smem:[#allocation5 + $0x105]] }
0x1265   : > { %v13673_v45 = vmul.f32 -1.442695, %v17866_v52  ;;  %v13672_v49 = vmul.f32 -1.442695, %v17855_v47  ;;  %v13022_v18 = vmul.f32 %v13019_v2, %v30326_v38  ;;  %v13027_v28 = vstv %s28620_s25  ;;  %s28692_s25 = sld [smem:[#allocation7 + $0x1]] }
0x1266   : > { %v13674_v11 = vmul.f32 -1.442695, %v17867_v10  ;;  %v28638_v46 = vadd.f32 %v12966_v61, %v28589_v12  ;;  %v12862_v2 = vmul.f32 %v12859_v44, %v30328_v26  ;;  %v12860_v32 = vmul.f32 %v12859_v44, %v30329_v50 }
0x1267   : > { %20874 = vpow2.f32 %v13673_v45  ;;  %v12917_v48 = vmul.f32 %v12915_v62, %v30327_v43  ;;  %v12916_v63 = vmul.f32 %v12915_v62, %v30329_v50  ;;  %v12973_v12 = vmul.f32 %v12971_v0, %v30327_v43 }
0x1268   : > { %20876 = vpow2.f32 %v13672_v49  ;;  %v12972_v30 = vmul.f32 %v12971_v0, %v30329_v50  ;;  %v13025_v7 = vadd.f32 %v13022_v18, %v28594_v4  ;;  %v12918_v14 = vmul.f32 %v12915_v62, %v30328_v26 }
0x1269   : > { %20878 = vpow2.f32 %v13674_v11  ;;  %v13083_v29 = vstv %s28625_s17  ;;  %v13079_v1 = vadd.f32 %v13076_v40, %v28602_v24  ;;  %v13081_v5 = vadd.f32 %v13078_v19, %v28604_v55  ;;  %s28697_s17 = sld [smem:[#allocation5 + $0x185]] }
0x126a   : > { %v12821_v38 = vmul.f32 %v20869_v22, %v27801_v20  ;;  %v13029_v52 = vmul.f32 %v13027_v28, %v30327_v43  ;;  %v12865_v47 = vadd.f32 %v12862_v2, %v12857_v37  ;;  %v12863_v4 = vadd.f32 %v12860_v32, %v12855_v39 }
0x126b   : > { %v12920_v16 = vadd.f32 %v12917_v48, %v12912_v54  ;;  %v12919_v6 = vadd.f32 %v12916_v63, %v12911_v15  ;;  %20880 = vtanh.f32 %v28538_v56  ;;  %v12976_v9 = vadd.f32 %v12973_v12, %v12968_v35 }
0x126c   : > { %v12975_v24 = vadd.f32 %v12972_v30, %v12967_v25  ;;  %20882 = vtanh.f32 %v28541_v21  ;;  %v12921_v55 = vadd.f32 %v12918_v14, %v12913_v60  ;;  %v12974_v45 = vmul.f32 %v12971_v0, %v30328_v26 }
0x126d   : > { %v13032_v56 = vadd.f32 %v13029_v52, %v13024_v41  ;;  %v13028_v54 = vmul.f32 %v13027_v28, %v30329_v50  ;;  %v12867_v37 = vstv %s28644_s19  ;;  %v12923_v39 = vstv %s28648_s21  ;;  %s28704_s19 = sld [smem:[#allocation7 + $0x2]]  ;;  %s28720_s21 = sld [smem:[#allocation5 + $0x205]] }
0x126e   : > { %v20873_v23 = vpop.eup %20872  ;;  %v12979_v21 = vstv %s28652_s22  ;;  %v13030_v15 = vmul.f32 %v13027_v28, %v30328_v26  ;;  %v13085_v35 = vmul.f32 %v13083_v29, %v30327_v43  ;;  %v13035_v61 = vstv %s28658_s23  ;;  %s28731_s22 = sld [smem:[#allocation7 + $0x3]]  ;;  %s28735_s23 = sld [smem:[#allocation7 + $0x4]] }
0x126f   : > { %v12824_v31 = vmul.f32 %v20873_v23, %v20871_v59  ;;  %v13084_v34 = vmul.f32 %v13083_v29, %v30329_v50  ;;  %v13086_v44 = vmul.f32 %v13083_v29, %v30328_v26  ;;  %v12869_v60 = vmul.f32 %v12867_v37, %v27805_v27 }
0x1270   : > { %v12868_v25 = vmul.f32 %v12867_v37, %v27807_v51  ;;  %v12925_v62 = vmul.f32 %v12923_v39, %v27805_v27  ;;  %v12977_v18 = vadd.f32 %v12974_v45, %v28638_v46  ;;  %v12870_v13 = vmul.f32 %v12867_v37, %v27809_v8 }
0x1271   : > { %v20875_v33 = vpop.eup %20874  ;;  %v12827_v10 = vadd.f32 %v12824_v31, %v12821_v38  ;;  %v12924_v0 = vmul.f32 %v12923_v39, %v27807_v51  ;;  %v12981_v41 = vmul.f32 %v12979_v21, %v27805_v27  ;;  %v12980_v40 = vmul.f32 %v12979_v21, %v27807_v51 }
0x1272   : > { %v20877_v3 = vpop.eup %20876  ;;  %v12811_v20 = vadd.f32 1.0, %v20875_v33  ;;  %v12926_v19 = vmul.f32 %v12923_v39, %v27809_v8  ;;  %v13037_v43 = vmul.f32 %v13035_v61, %v27805_v27  ;;  %v13031_v58 = vadd.f32 %v13028_v54, %v28641_v42 }
0x1273   : > { %v20879_v49 = vpop.eup %20878  ;;  %20884 = vtanh.f32 %v12827_v10  ;;  %v12810_v36 = vadd.f32 1.0, %v20877_v3  ;;  %v28702_v28 = vadd.f32 %v13030_v15, %v13025_v7  ;;  %v28706_v46 = vadd.f32 %v13085_v35, %v13080_v57 }
0x1274   : > { %20886 = vrcp.f32 %v12811_v20  ;;  %v12812_v11 = vadd.f32 1.0, %v20879_v49  ;;  %v13091_v22 = vstv %s28668_s26  ;;  %v28709_v26 = vadd.f32 %v13084_v34, %v13079_v1  ;;  %s13150_s26 = sld [smem:[#allocation3]] }
0x1275   : > { %20888 = vrcp.f32 %v12810_v36  ;;  %v28711_v2 = vadd.f32 %v13086_v44, %v13081_v5  ;;  %v20881_v50 = vpop.eup %20880  ;;  %v12872_v32 = vadd.f32 %v12869_v60, %v12864_v17  ;;  %v12871_v48 = vadd.f32 %v12868_v25, %v12863_v4 }
0x1276   : > { %20890 = vrcp.f32 %v12812_v11  ;;  %v12928_v63 = vadd.f32 %v12925_v62, %v12920_v16  ;;  %v12982_v42 = vmul.f32 %v12979_v21, %v27809_v8  ;;  %v20883_v59 = vpop.eup %20882  ;;  %v12873_v12 = vadd.f32 %v12870_v13, %v12865_v47 }
0x1277   : > { %v12927_v30 = vadd.f32 %v12924_v0, %v12919_v6  ;;  %v12984_v7 = vadd.f32 %v12981_v41, %v12976_v9  ;;  %v12983_v57 = vadd.f32 %v12980_v40, %v12975_v24  ;;  %v12929_v14 = vadd.f32 %v12926_v19, %v12921_v55 }
0x1278   : > { %v13040_v29 = vadd.f32 %v13037_v43, %v13032_v56  ;;  %v13036_v1 = vmul.f32 %v13035_v61, %v27807_v51  ;;  %v13038_v5 = vmul.f32 %v13035_v61, %v27809_v8  ;;  %v12875_v31 = vstv %s28673_s24  ;;  %s19842_s24 = smul.u32 40, %s466_s29 }
0x1279   : > { %v12931_v17 = vstv %s28678_s14  ;;  %v12987_v52 = vstv %s28680_s15  ;;  %v13093_v4 = vmul.f32 %v13091_v22, %v27805_v27  ;;  %v12985_v6 = vadd.f32 %v12982_v42, %v12977_v18 }
0x127a   : > { %v28723_v33 = vmul.f32 %v13091_v22, %v27807_v51  ;;  %v28726_v10 = vmul.f32 %v13091_v22, %v27809_v8  ;;  %v12883_v3 = vstv %s28686_s20  ;;  %v12939_v20 = vstv %s28692_s25  ;;  %s28760_s14 = scalar_lea.vmem [#allocation9], %s19842_s24  ;;  %s13361_s20 = scalar_lea.vmem (%p30330_p13), %s28806_s13, %s13713_s27 }
0x127b   : > { %v13043_v55 = vstv %s28697_s17  ;;  %v12995_v11 = vstv %s28704_s19  ;;  %v13039_v0 = vadd.f32 %v13036_v1, %v13031_v58  ;;  %v13099_v41 = vstv %s28720_s21 }
0x127d   : > { %v20885_v23 = vpop.eup %20884 }
0x127e   : > { %v20887_v38 = vpop.eup %20886 }
0x127f   : > { %v20889_v47 = vpop.eup %20888  ;;  %v12832_v16 = vmul.f32 %v20887_v38, %v20883_v59 }
0x1280   : > { %v20891_v9 = vpop.eup %20890  ;;  %v12831_v24 = vmul.f32 %v20889_v47, %v20881_v50 }
0x1281   : > { %v12833_v27 = vmul.f32 %v20891_v9, %v20885_v23  ;;  %v12877_v45 = vmul.f32 %v12875_v31, %v12832_v16  ;;  %v12933_v49 = vmul.f32 %v12931_v17, %v12832_v16  ;;  %v12989_v36 = vmul.f32 %v12987_v52, %v12832_v16 }
0x1282   : > { %v12876_v56 = vmul.f32 %v12875_v31, %v12831_v24  ;;  %v12932_v54 = vmul.f32 %v12931_v17, %v12831_v24  ;;  %v12988_v37 = vmul.f32 %v12987_v52, %v12831_v24  ;;  %v13045_v34 = vmul.f32 %v13043_v55, %v12832_v16 }
0x1283   : > { %v12878_v51 = vmul.f32 %v12875_v31, %v12833_v27  ;;  %v12880_v39 = vadd.f32 %v12877_v45, %v12872_v32  ;;  %v12936_v8 = vadd.f32 %v12933_v49, %v12928_v63  ;;  %v12934_v21 = vmul.f32 %v12931_v17, %v12833_v27 }
0x1284   : > { %v12879_v15 = vadd.f32 %v12876_v56, %v12871_v48  ;;  %v12935_v35 = vadd.f32 %v12932_v54, %v12927_v30  ;;  %v12992_v61 = vadd.f32 %v12989_v36, %v12984_v7  ;;  %v12991_v13 = vadd.f32 %v12988_v37, %v12983_v57 }
0x1285   : > { %v12881_v44 = vadd.f32 %v12878_v51, %v12873_v12  ;;  %v12885_v60 = vadd.f32 %v12883_v3, %v12880_v39  ;;  %v12941_v25 = vadd.f32 %v12939_v20, %v12936_v8  ;;  %v12937_v62 = vadd.f32 %v12934_v21, %v12929_v14 }
0x1286   : > { %v12884_v18 = vadd.f32 %v12883_v3, %v12879_v15  ;;  %v12940_v43 = vadd.f32 %v12939_v20, %v12935_v35  ;;  %v12997_v22 = vadd.f32 %v12995_v11, %v12992_v61  ;;  %v13051_v48 = vstv %s28731_s22 }
0x1287   : > { %v12886_v40 = vadd.f32 %v12883_v3, %v12881_v44  ;;  %v12888_v19 = vmax.f32 %v12885_v60, 0.0  ;;  %v12942_v32 = vadd.f32 %v12939_v20, %v12937_v62  ;;  %v13041_v63 = vadd.f32 %v13038_v5, %v28702_v28 }
0x1288   : > { %v12887_v50 = vmax.f32 %v12884_v18, 0.0  ;;  %v12944_v59 = vmax.f32 %v12941_v25, 0.0  ;;  %v12990_v12 = vmul.f32 %v12987_v52, %v12833_v27  ;;  %v13048_v30 = vadd.f32 %v13045_v34, %v13040_v29 }
0x1289   : > { %v12889_v42 = vmax.f32 %v12886_v40, 0.0  ;;  %13231 = vmatprep.mubr.f32.mxu0 %v12888_v19  ;;  %v13044_v7 = vmul.f32 %v13043_v55, %v12831_v24  ;;  %v13046_v58 = vmul.f32 %v13043_v55, %v12833_v27  ;;  %v13096_v57 = vadd.f32 %v13093_v4, %v28706_v46 }
0x128a   : > { %13232 = vmatmul.mubr.f32.vlgmr.msra.gmra.mrb[60].mxu0 %v12887_v50  ;;  %v13101_v23 = vmul.f32 %v13099_v41, %v12832_v16  ;;  %v12943_v14 = vmax.f32 %v12940_v43, 0.0  ;;  %v13000_v1 = vmax.f32 %v12997_v22, 0.0  ;;  %v12996_v38 = vadd.f32 %v12995_v11, %v12991_v13 }
0x128b   : > { %14144 = vmatmul.mubr.msk.f32.vlgmr.msra.gmra.mrb[54].mxu1 %vm1565_vm4, %v12889_v42  ;;  %13236 = vmatprep.mubr.f32.mxu0 %v12944_v59  ;;  %v12993_v31 = vadd.f32 %v12990_v12, %v12985_v6  ;;  %v12945_v28 = vmax.f32 %v12942_v32, 0.0  ;;  %v13053_v5 = vadd.f32 %v13051_v48, %v13048_v30  ;;  %v13047_v29 = vadd.f32 %v13044_v7, %v13039_v0 }
0x128c   : > { %14146 = vmatprep.mubr.msk.f32.mxu1 %vm21602_vm5, %v29410_v53  ;;  %v13100_v17 = vmul.f32 %v13099_v41, %v12831_v24  ;;  %v13049_v47 = vadd.f32 %v13046_v58, %v13041_v63  ;;  %v13104_v9 = vadd.f32 %v13101_v23, %v13096_v57  ;;  %v13102_v46 = vmul.f32 %v13099_v41, %v12833_v27 }
0x128d   : > { %v12998_v52 = vadd.f32 %v12995_v11, %v12993_v31  ;;  %v13107_v4 = vstv %s28735_s23  ;;  %v13095_v16 = vadd.f32 %v28723_v33, %v28709_v26  ;;  %v13097_v6 = vadd.f32 %v28726_v10, %v28711_v2 }
0x128e   : > { %13237 = vmatmul.mubr.f32.gmra.mrb[62].mxu0 %v12943_v14  ;;  %v12999_v3 = vmax.f32 %v12996_v38, 0.0  ;;  %v13056_v24 = vmax.f32 %v13053_v5, 0.0  ;;  %v13052_v20 = vadd.f32 %v13051_v48, %v13047_v29  ;;  %v13054_v27 = vadd.f32 %v13051_v48, %v13049_v47 }
0x128f   : > { %14147 = vmatmul.mubr.msk.f32.gmra.mrb[56].mxu1 %vm1565_vm4, %v12945_v28  ;;  %13241 = vmatprep.mubr.f32.mxu0 %v13000_v1  ;;  %v13103_v55 = vadd.f32 %v13100_v17, %v13095_v16  ;;  %v13001_v45 = vmax.f32 %v12998_v52, 0.0  ;;  %v13109_v49 = vadd.f32 %v13107_v4, %v13104_v9  ;;  %v13105_v36 = vadd.f32 %v13102_v46, %v13097_v6 }
0x1290   : > { %14149 = vmatprep.mubr.msk.f32.mxu1 %vm21602_vm5, %v29410_v53  ;;  %v13055_v26 = vmax.f32 %v13052_v20, 0.0  ;;  %v13057_v33 = vmax.f32 %v13054_v27, 0.0  ;;  %v13151_v39 = vstv %s13150_s26 }
0x1291   : > { %v13108_v2 = vadd.f32 %v13107_v4, %v13103_v55  ;;  %v13112_v10 = vmax.f32 %v13109_v49, 0.0  ;;  %v13110_v56 = vadd.f32 %v13107_v4, %v13105_v36 }
0x1292   : > { %13242 = vmatmul.mubr.f32.gmra.mrb[64].mxu0 %v12999_v3 }
0x1293   : > { %14150 = vmatmul.mubr.msk.f32.gmra.mrb[58].mxu1 %vm1565_vm4, %v13001_v45  ;;  %13246 = vmatprep.mubr.f32.mxu0 %v13056_v24  ;;  %v13111_v54 = vmax.f32 %v13108_v2, 0.0  ;;  %v13113_v11 = vmax.f32 %v13110_v56, 0.0 }
0x1294   : > { %14152 = vmatprep.mubr.msk.f32.mxu1 %vm21602_vm5, %v29410_v53 }
0x1296   : > { %13247 = vmatmul.mubr.f32.gmra.mrb[66].mxu0 %v13055_v26 }
0x1297   : > { %14153 = vmatmul.mubr.msk.f32.gmra.mrb[60].mxu1 %vm1565_vm4, %v13057_v33  ;;  %13251 = vmatprep.mubr.f32.mxu0 %v13112_v10 }
0x1298   : > { %14155 = vmatprep.mubr.msk.f32.mxu1 %vm21602_vm5, %v29410_v53 }
0x129a   : > { %13252 = vmatmul.mubr.f32.gmra.mrb[68].mxu0 %v13111_v54 }
0x129b   : > { %14156 = vmatmul.mubr.msk.f32.gmra.mrb[62].mxu1 %vm1565_vm4, %v13113_v11 }
0x135d   : > { %v14008_v37 = vpop.f32.mrb[60].mxu0 }
0x135e   : > { %v13323_v51 = vpop.f32.mrb[54].mxu1  ;;  %v14009_v8 = vpop.f32.mrb[61].mxu0 }
0x135f   : > { %v14010_v21 = vadd.f32 %v14009_v8, %v14008_v37  ;;  %v14145_v15 = vpop.f32.mrb[55].mxu1 }
0x1361   : > { %v13234_v35 = vadd.f32 %v14010_v21, %v13151_v39  ;;  %v14011_v61 = vpop.f32.mrb[62].mxu0 }
0x1362   : > { %v13328_v34 = vpop.f32.mrb[56].mxu1  ;;  %v14012_v44 = vpop.f32.mrb[63].mxu0 }
0x1363   : > { %v13324_v53 = vadd.f32 %v13323_v51, %v13234_v35  ;;  %v14013_v60 = vadd.f32 %v14012_v44, %v14011_v61  ;;  %v14148_v25 = vpop.f32.mrb[57].mxu1 }
0x1365   : > { %13348 = vst.msk [vmem:[%s28760_s14] sm:$0xff] %vm13347_vm6, %v13324_v53  ;;  %v13239_v62 = vadd.f32 %v14013_v60, %v13151_v39  ;;  %v14014_v18 = vpop.f32.mrb[64].mxu0 }
0x1366   : > { %v13333_v13 = vpop.f32.mrb[58].mxu1  ;;  %v14015_v0 = vpop.f32.mrb[65].mxu0 }
0x1367   : > { %v13329_v41 = vadd.f32 %v13328_v34, %v13239_v62  ;;  %v14016_v40 = vadd.f32 %v14015_v0, %v14014_v18  ;;  %v14151_v19 = vpop.f32.mrb[59].mxu1 }
0x1369   : > { %13349 = vst.msk [vmem:[%s28760_s14 + $0x8] sm:$0xff] %vm13347_vm6, %v13329_v41  ;;  %v13244_v43 = vadd.f32 %v14016_v40, %v13151_v39  ;;  %v14017_v22 = vpop.f32.mrb[66].mxu0 }
0x136a   : > { %v13338_v50 = vpop.f32.mrb[60].mxu1  ;;  %v14018_v32 = vpop.f32.mrb[67].mxu0 }
0x136b   : > { %v13334_v48 = vadd.f32 %v13333_v13, %v13244_v43  ;;  %v14019_v63 = vadd.f32 %v14018_v32, %v14017_v22  ;;  %v14154_v42 = vpop.f32.mrb[61].mxu1 }
0x136c   : > { %v13397_v38 = vld [vmem:[%s28760_s14] sm:$0xff] (%p30330_p13) }
0x136d   : > { %13350 = vst.msk [vmem:[%s28760_s14 + $0x10] sm:$0xff] %vm13347_vm6, %v13334_v48  ;;  %v13249_v59 = vadd.f32 %v14019_v63, %v13151_v39  ;;  %v14020_v12 = vpop.f32.mrb[68].mxu0  ;;  %13398 = vst [vmem:[%s13361_s20] sm:$0xff] (%p30330_p13), %v13397_v38 }
0x136e   : > { %v13343_v30 = vpop.f32.mrb[62].mxu1  ;;  %v14021_v7 = vpop.f32.mrb[69].mxu0 }
0x136f   : > { %v13339_v58 = vadd.f32 %v13338_v50, %v13249_v59  ;;  %v14022_v57 = vadd.f32 %v14021_v7, %v14020_v12  ;;  %v14157_v23 = vpop.f32.mrb[63].mxu1  ;;  %13359 = sbr.rel (!%p30330_p13) target bundleno = 4990 (0x137e), region = 122 }
0x1370   : > { %v13399_v31 = vld [vmem:[%s28760_s14 + $0x8] sm:$0xff] (%p30330_p13) }
0x1371   : > { %13351 = vst.msk [vmem:[%s28760_s14 + $0x18] sm:$0xff] %vm13347_vm6, %v13339_v58  ;;  %v13254_v14 = vadd.f32 %v14022_v57, %v13151_v39  ;;  %13400 = vst [vmem:[%s13361_s20 + $0x10] sm:$0xff] (%p30330_p13), %v13399_v31 }
0x1373   : > { %v13344_v1 = vadd.f32 %v13343_v30, %v13254_v14 }
0x1374   : > { %v13401_v28 = vld [vmem:[%s28760_s14 + $0x10] sm:$0xff] (%p30330_p13) }
0x1375   : > { %13352 = vst.msk [vmem:[%s28760_s14 + $0x20] sm:$0xff] %vm13347_vm6, %v13344_v1  ;;  %13402 = vst [vmem:[%s13361_s20 + $0x20] sm:$0xff] (%p30330_p13), %v13401_v28 }
0x1378   : > { %v13403_v5 = vld [vmem:[%s28760_s14 + $0x18] sm:$0xff] }
0x1379   : > { %13404 = vst [vmem:[%s13361_s20 + $0x30] sm:$0xff] %v13403_v5 }
0x137c   : > { %v13405_v29 = vld [vmem:[%s28760_s14 + $0x20] sm:$0xff] }
0x137d   : > { %13406 = vst [vmem:[%s13361_s20 + $0x40] sm:$0xff] %v13405_v29 }
0x137e PF: > { %p23_p3 = scmp.ge.s32.totalorder %s21695_s30, 4   ;;  %s30331_s27 = smov %s21591_s28 }
0x137f   : > { %s30332_s28 = smov %s21705_s16  ;;  %s30333_s29 = smov %s21695_s30 }
0x1380   :  { %25 = sbr.rel (!%p23_p3) target bundleno = 5 (0x5), region = 197 }
0x1387   :  { %13422 = vsyncpa [#allocation6], 1 }
0x1388   :  { %13424 = vsyncpa [#allocation6 + $0x1], 1 }
0x1389   :  { %13425 = vsyncpa [#allocation8], 1 }

</bundles_post_ra>
